<compile_context>
chip_gen: v5e
topology: v5e:2x2
jax: 0.10.0
libtpu: 0.0.40
codegen_flags: <defaults>
</compile_context>

<pallas_src>
import functools

import jax
import jax.numpy as jnp
import numpy as np
from jax.experimental import pallas as pl
from jax.experimental.pallas import tpu as pltpu

BN_EPS = 1e-5
_VMEM_LIMIT_BYTES = 32 * 1024 * 1024   # safe on v5e/v6e/v7x, > v5e's 16 MiB default


def _pick_rows_per_chunk(ho, wo, max_chunk_pixels):
    """Largest divisor `rows` of `ho` whose (rows*wo) chunk is 8-sublane
    aligned (or the full extent) and fits the per-chunk pixel budget."""
    candidates = [r for r in range(1, ho + 1)
                  if ho % r == 0 and (r == ho or (r * wo) % 8 == 0)]
    fitting = [r for r in candidates if r * wo <= max_chunk_pixels]
    return max(fitting) if fitting else min(candidates)


def _build_weight_block(wr, wi):
    # wr, wi: (K, K, Cin, Cout) real/imag conv weights.
    # Returns (K*K*2*Cin, 2*Cout):
    #   per tap t, rows [0:Cin]      -> [ wr | wi ]   (paired with real inputs)
    #              rows [Cin:2*Cin]  -> [-wi | wr ]   (paired with imag inputs)
    k, _, cin, cout = wr.shape
    wr2 = wr.reshape(k * k, cin, cout)
    wi2 = wi.reshape(k * k, cin, cout)
    top = jnp.concatenate([wr2, wi2], axis=-1)       # (K*K, Cin, 2*Cout)
    bot = jnp.concatenate([-wi2, wr2], axis=-1)      # (K*K, Cin, 2*Cout)
    wb = jnp.concatenate([top, bot], axis=1)         # (K*K, 2*Cin, 2*Cout)
    return wb.reshape(k * k * 2 * cin, 2 * cout)


# ----------------------------------------------------------------------------
# Fused conv kernel: [optional BN+ReLU of the previous block] -> in-VMEM zero
# padding -> im2col staging -> ONE deep matmul -> raw conv output + BN partial
# statistics.  Grid = (batch, output-row chunk), both parallel.
# ----------------------------------------------------------------------------
def _fused_conv_kernel(x_ref, scale_ref, shift_ref, w_ref, y_ref, stats_ref,
                       pad_scr, col_ref, *, k, pad, rows, fuse_bn_relu):
    # x_ref    : (1, H, W, C)        un-padded input image, C = [real | imag]
    # scale/shift : (1, C)           previous block's BN scale/shift (f32)
    # w_ref    : (K*K*C, F)          block-complex weight, F = 2*Cout
    # y_ref    : (1, rows*Wo, F)     raw conv output rows of this chunk (f32)
    # stats_ref: (1, 1, 2, F)        row 0: sum(y), row 1: sum(y*y)
    # pad_scr  : (H+2p, W+2p, C)     zero-padded activation (VMEM scratch)
    # col_ref  : (rows*Wo, K*K*C)    im2col staging (VMEM scratch)
    _, h, w, c = x_ref.shape
    wo = w + 2 * pad - k + 1

    x = x_ref[0]
    if fuse_bn_relu:
        # Previous block's BatchNorm affine + ComplexReLU, fused (f32 VPU math).
        x = jnp.maximum(x * scale_ref[...] + shift_ref[...], 0.0)

    # Spatial zero-padding into VMEM (no HBM pad pass).
    if pad > 0:
        pad_scr[...] = jnp.zeros(pad_scr.shape, pad_scr.dtype)
        pad_scr[pad:pad + h, pad:pad + w, :] = x.astype(pad_scr.dtype)
    else:
        pad_scr[...] = x.astype(pad_scr.dtype)

    # Stage the K*K tap windows of this row chunk into the im2col scratch.
    # Each tap is a small slice-copy whose live range ends at the store, so a
    # plain unrolled Python loop (K*K = 9) is fine; the heavy work is the
    # single deep matmul below.
    row0 = pl.program_id(1) * rows
    for kh in range(k):
        for kw in range(k):
            t = kh * k + kw
            win = pad_scr[pl.ds(row0 + kh, rows), kw:kw + wo, :]
            col_ref[:, t * c:(t + 1) * c] = win.reshape(rows * wo, c)

    # One deep matmul: (rows*Wo, K*K*C) x (K*K*C, F), f32 accumulation.
    y = jnp.dot(col_ref[...], w_ref[...], preferred_element_type=jnp.float32)
    y_ref[0] = y

    # Per-chunk BatchNorm partial statistics (two direct row stores).
    stats_ref[0, 0, 0:1, :] = jnp.sum(y, axis=0, keepdims=True)
    stats_ref[0, 0, 1:2, :] = jnp.sum(y * y, axis=0, keepdims=True)


# ----------------------------------------------------------------------------
# Final standalone BatchNorm-normalize + ComplexReLU (only for block 2 output).
# ----------------------------------------------------------------------------
def _bn_relu_kernel(y_ref, scale_ref, shift_ref, o_ref):
    o_ref[0] = jnp.maximum(y_ref[0] * scale_ref[...] + shift_ref[...], 0.0)


# ----------------------------------------------------------------------------
# Wrappers.
# ----------------------------------------------------------------------------
def _fused_conv_block(x_img, w_blk, scale, shift, *, k, padding, matmul_dtype,
                      max_chunk_pixels, fuse_bn_relu):
    # x_img: (N, H, W, C) f32, channels = [real | imag]
    # w_blk: (K*K*C, F) block-complex weight, F = 2*Cout
    n, h, w, c = x_img.shape
    kkc, f = w_blk.shape
    assert kkc == k * k * c
    hp, wp = h + 2 * padding, w + 2 * padding
    ho, wo = hp - k + 1, wp - k + 1
    rows = _pick_rows_per_chunk(ho, wo, max_chunk_pixels)
    nr = ho // rows

    w_blk = w_blk.astype(matmul_dtype)

    kernel = functools.partial(_fused_conv_kernel, k=k, pad=padding, rows=rows,
                               fuse_bn_relu=fuse_bn_relu)
    y, stats = pl.pallas_call(
        kernel,
        grid=(n, nr),
        in_specs=[
            pl.BlockSpec((1, h, w, c), lambda i, r: (i, 0, 0, 0)),
            pl.BlockSpec((1, c), lambda i, r: (0, 0)),
            pl.BlockSpec((1, c), lambda i, r: (0, 0)),
            pl.BlockSpec((kkc, f), lambda i, r: (0, 0)),
        ],
        out_specs=(
            pl.BlockSpec((1, rows * wo, f), lambda i, r: (i, r, 0)),
            pl.BlockSpec((1, 1, 2, f), lambda i, r: (i, r, 0, 0)),
        ),
        out_shape=(
            jax.ShapeDtypeStruct((n, ho * wo, f), jnp.float32),
            jax.ShapeDtypeStruct((n, nr, 2, f), jnp.float32),
        ),
        scratch_shapes=[
            pltpu.VMEM((hp, wp, c), matmul_dtype),       # padded activation
            pltpu.VMEM((rows * wo, kkc), matmul_dtype),  # im2col staging
        ],
        compiler_params=pltpu.CompilerParams(
            dimension_semantics=("parallel", "parallel"),
            vmem_limit_bytes=_VMEM_LIMIT_BYTES),
    )(x_img, scale, shift, w_blk)
    return y, stats, ho, wo


def _bn_finalize(stats, cout, count):
    # stats: (N, chunks, 2, 2*cout); row 0 = sum(y), row 1 = sum(y*y).
    tot = jnp.sum(stats, axis=(0, 1))                 # (2, 2*cout)
    mean = tot[0] / count
    esq = tot[1] / count
    mr, mi = mean[:cout], mean[cout:]
    var = (esq[:cout] + esq[cout:]) - (mr * mr + mi * mi)
    inv = jax.lax.rsqrt(var + BN_EPS)
    scale = jnp.concatenate([inv, inv]).reshape(1, 2 * cout)
    shift = jnp.concatenate([-mr * inv, -mi * inv]).reshape(1, 2 * cout)
    return scale.astype(jnp.float32), shift.astype(jnp.float32)


def complex_double_conv(x, w1, w2, padding, *, matmul_dtype=jnp.float32,
                        max_chunk_pixels=16 * 1024):
    """ComplexDoubleConv forward (dim=2, stride=1, dilation=1, dropout=0.0).

    x : (N, Cin, H, W) complex64 (PyTorch NCHW layout)
    w1: (Cout, Cin,  K, K) complex64   (first conv, bias=False)
    w2: (Cout, Cout, K, K) complex64   (second conv, bias=False)
    returns (N, Cout, H_out, W_out) complex64

    matmul_dtype=jnp.bfloat16 switches the MXU operands (im2col + weights) to
    bf16 (f32 accumulation / BN kept) for v6e/v7x throughput; relax the
    tolerance accordingly.  max_chunk_pixels bounds per-grid-step VMEM and
    controls the row-chunk "parallel" grid axis.
    """
    cout, cin, k, _ = w1.shape
    c2 = 2 * cout

    xr = jnp.real(x).astype(jnp.float32).transpose(0, 2, 3, 1)   # NHWC
    xi = jnp.imag(x).astype(jnp.float32).transpose(0, 2, 3, 1)
    xcat = jnp.concatenate([xr, xi], axis=-1)                    # (N,H,W,2*Cin)
    n = xcat.shape[0]

    def prep_w(wc):
        wt = jnp.transpose(wc, (2, 3, 1, 0))                     # (K,K,Cin,Cout)
        return (jnp.real(wt).astype(jnp.float32),
                jnp.imag(wt).astype(jnp.float32))

    wb1 = _build_weight_block(*prep_w(w1))       # (K*K*2*Cin,  2*Cout)
    wb2 = _build_weight_block(*prep_w(w2))       # (K*K*2*Cout, 2*Cout)

    # ---- Block 1: conv only (no preceding BN/ReLU); raw y1 + BN1 stats. ----
    ones1 = jnp.ones((1, 2 * cin), jnp.float32)
    zeros1 = jnp.zeros((1, 2 * cin), jnp.float32)
    y1, st1, ho, wo = _fused_conv_block(
        xcat, wb1, ones1, zeros1, k=k, padding=padding,
        matmul_dtype=matmul_dtype, max_chunk_pixels=max_chunk_pixels,
        fuse_bn_relu=False)
    scale1, shift1 = _bn_finalize(st1, cout, float(n * ho * wo))

    # ---- Block 2: BN1 + ReLU1 + pad fused into the conv; raw y2 + stats. ----
    y1_img = y1.reshape(n, ho, wo, c2)
    y2, st2, ho2, wo2 = _fused_conv_block(
        y1_img, wb2, scale1, shift1, k=k, padding=padding,
        matmul_dtype=matmul_dtype, max_chunk_pixels=max_chunk_pixels,
        fuse_bn_relu=True)
    scale2, shift2 = _bn_finalize(st2, cout, float(n * ho2 * wo2))

    # ---- Final BN2 + ReLU2 (small standalone elementwise kernel). ----------
    rows_f = _pick_rows_per_chunk(ho2, wo2, max_chunk_pixels)
    nrf = ho2 // rows_f
    yf = pl.pallas_call(
        _bn_relu_kernel,
        grid=(n, nrf),
        in_specs=[
            pl.BlockSpec((1, rows_f * wo2, c2), lambda i, r: (i, r, 0)),
            pl.BlockSpec((1, c2), lambda i, r: (0, 0)),
            pl.BlockSpec((1, c2), lambda i, r: (0, 0)),
        ],
        out_specs=pl.BlockSpec((1, rows_f * wo2, c2), lambda i, r: (i, r, 0)),
        out_shape=jax.ShapeDtypeStruct((n, ho2 * wo2, c2), jnp.float32),
        compiler_params=pltpu.CompilerParams(
            dimension_semantics=("parallel", "parallel"),
            vmem_limit_bytes=_VMEM_LIMIT_BYTES),
    )(y2, scale2, shift2)

    # ComplexDropout(p=0.0) == identity.
    yf = yf.reshape(n, ho2, wo2, c2)
    out = (yf[..., :cout] + 1j * yf[..., cout:]).astype(jnp.complex64)
    return out.transpose(0, 3, 1, 2)                             # back to NCHW


# ----------------------------------------------------------------------------
# Pure-JAX reference (no Pallas) for the correctness check.
# ----------------------------------------------------------------------------
def _reference(x, w1, w2, padding):
    conv = functools.partial(
        jax.lax.conv_general_dilated,
        window_strides=(1, 1),
        padding=[(padding, padding), (padding, padding)],
        dimension_numbers=("NCHW", "OIHW", "NCHW"))

    def block(xc, wc):
        xr, xi = jnp.real(xc), jnp.imag(xc)
        wr, wi = jnp.real(wc), jnp.imag(wc)
        yr = conv(xr, wr) - conv(xi, wi)
        yi = conv(xr, wi) + conv(xi, wr)
        mr = jnp.mean(yr, axis=(0, 2, 3), keepdims=True)
        mi = jnp.mean(yi, axis=(0, 2, 3), keepdims=True)
        cr, ci = yr - mr, yi - mi
        var = jnp.mean(cr * cr + ci * ci, axis=(0, 2, 3), keepdims=True)
        inv = jax.lax.rsqrt(var + BN_EPS)
        return jnp.maximum(cr * inv, 0.0) + 1j * jnp.maximum(ci * inv, 0.0)

    y = block(x, w1)
    y = block(y, w2)
    return y.astype(jnp.complex64)


# ----------------------------------------------------------------------------
if __name__ == "__main__":
    # Module hyperparameters (dim=2, stride=1, dilation=1, dropout=0.0)
    in_channels, out_channels, kernel_size, padding = 4, 8, 3, 1
    N, H, W = 2, 16, 16

    key = jax.random.PRNGKey(0)
    kx_r, kx_i, k1r, k1i, k2r, k2i = jax.random.split(key, 6)

    x = (jax.random.normal(kx_r, (N, in_channels, H, W), jnp.float32)
         + 1j * jax.random.normal(kx_i, (N, in_channels, H, W), jnp.float32)
         ).astype(jnp.complex64)

    fan_in1 = in_channels * kernel_size * kernel_size
    fan_in2 = out_channels * kernel_size * kernel_size
    s1 = 1.0 / np.sqrt(2.0 * fan_in1)
    s2 = 1.0 / np.sqrt(2.0 * fan_in2)
    w1 = (s1 * jax.random.normal(k1r, (out_channels, in_channels, kernel_size, kernel_size), jnp.float32)
          + 1j * s1 * jax.random.normal(k1i, (out_channels, in_channels, kernel_size, kernel_size), jnp.float32)
          ).astype(jnp.complex64)
    w2 = (s2 * jax.random.normal(k2r, (out_channels, out_channels, kernel_size, kernel_size), jnp.float32)
          + 1j * s2 * jax.random.normal(k2i, (out_channels, out_channels, kernel_size, kernel_size), jnp.float32)
          ).astype(jnp.complex64)

    ref = jax.block_until_ready(_reference(x, w1, w2, padding))

    # Default config (one row chunk per image at this toy size).
    fwd = jax.jit(functools.partial(complex_double_conv, padding=padding))
    out = jax.block_until_ready(fwd(x, w1, w2))
    assert out.shape == (N, out_channels, H, W), out.shape
    assert out.dtype == jnp.complex64, out.dtype
    np.testing.assert_allclose(np.asarray(out), np.asarray(ref),
                               rtol=1e-3, atol=1e-3)

    # Row-tiled config: exercises the second "parallel" grid axis (2 chunks of
    # 8 output rows each) that bounds VMEM and feeds both v7x TensorCores.
    fwd_tiled = jax.jit(functools.partial(complex_double_conv, padding=padding,
                                          max_chunk_pixels=128))
    out_tiled = jax.block_until_ready(fwd_tiled(x, w1, w2))
    np.testing.assert_allclose(np.asarray(out_tiled), np.asarray(ref),
                               rtol=1e-3, atol=1e-3)

    print("KERNEL_OK")
</pallas_src>

<mosaic_0001>
module attributes {stable_mosaic.version = 11 : i64} {
  func.func @_fused_conv_kernel(%arg0: i32, %arg1: i32, %arg2: memref<1x16x16x8xf32, #tpu.memory_space<vmem>>, %arg3: memref<1x8xf32, #tpu.memory_space<vmem>>, %arg4: memref<1x8xf32, #tpu.memory_space<vmem>>, %arg5: memref<72x16xf32, #tpu.memory_space<vmem>>, %arg6: memref<1x256x16xf32, #tpu.memory_space<vmem>>, %arg7: memref<1x1x2x16xf32, #tpu.memory_space<vmem>>, %arg8: memref<18x18x8xf32, #tpu.memory_space<vmem>>, %arg9: memref<256x72xf32, #tpu.memory_space<vmem>>) attributes {dimension_semantics = [#tpu.dimension_semantics<parallel>, #tpu.dimension_semantics<parallel>], iteration_bounds = array<i64: 2, 1>, scalar_prefetch = 0 : i64, scratch_operands = 2 : i64, tpu.core_type = #tpu.core_type<tc>, window_params = [{transform_indices = @transform_0, window_bounds = array<i64: 1, 16, 16, 8>}, {pipeline_mode = #tpu.pipeline_mode<synchronous>, transform_indices = @transform_1, window_bounds = array<i64: 1, 8>}, {pipeline_mode = #tpu.pipeline_mode<synchronous>, transform_indices = @transform_2, window_bounds = array<i64: 1, 8>}, {pipeline_mode = #tpu.pipeline_mode<synchronous>, transform_indices = @transform_3, window_bounds = array<i64: 72, 16>}, {transform_indices = @transform_4, window_bounds = array<i64: 1, 256, 16>}, {transform_indices = @transform_5, window_bounds = array<i64: 1, 1, 2, 16>}]} {
    %c0 = arith.constant 0 : index
    %c0_0 = arith.constant 0 : index
    %c0_1 = arith.constant 0 : index
    %c0_2 = arith.constant 0 : index
    %0 = vector.load %arg2[%c0, %c0_0, %c0_1, %c0_2] : memref<1x16x16x8xf32, #tpu.memory_space<vmem>>, vector<1x16x16x8xf32>
    %1 = vector.shape_cast %0 : vector<1x16x16x8xf32> to vector<16x16x8xf32>
    %cst = arith.constant 0.000000e+00 : f32
    %2 = vector.broadcast %cst : f32 to vector<18x18x8xf32>
    %c0_3 = arith.constant 0 : index
    %c0_4 = arith.constant 0 : index
    %c0_5 = arith.constant 0 : index
    %3 = vector.load %arg8[%c0_3, %c0_4, %c0_5] : memref<18x18x8xf32, #tpu.memory_space<vmem>>, vector<18x18x8xf32>
    tpu.vector_store %arg8[%c0_3, %c0_4, %c0_5], %2 {strides = array<i32>} : memref<18x18x8xf32, #tpu.memory_space<vmem>>, vector<18x18x8xf32>,
    %c1 = arith.constant 1 : index
    %c1_6 = arith.constant 1 : index
    %c0_7 = arith.constant 0 : index
    %4 = vector.load %arg8[%c1, %c1_6, %c0_7] : memref<18x18x8xf32, #tpu.memory_space<vmem>>, vector<16x16x8xf32>
    tpu.vector_store %arg8[%c1, %c1_6, %c0_7], %1 {strides = array<i32>} : memref<18x18x8xf32, #tpu.memory_space<vmem>>, vector<16x16x8xf32>,
    %c16_i32 = arith.constant 16 : i32
    %5 = arith.muli %arg1, %c16_i32 : i32
    %c0_i32 = arith.constant 0 : i32
    %6 = arith.addi %5, %c0_i32 : i32
    %7 = arith.index_cast %6 : i32 to index
    %c0_8 = arith.constant 0 : index
    %c0_9 = arith.constant 0 : index
    %8 = vector.load %arg8[%7, %c0_8, %c0_9] : memref<18x18x8xf32, #tpu.memory_space<vmem>>, vector<16x16x8xf32>
    %9 = vector.shape_cast %8 : vector<16x16x8xf32> to vector<256x8xf32>
    %c0_10 = arith.constant 0 : index
    %c0_11 = arith.constant 0 : index
    %10 = vector.load %arg9[%c0_10, %c0_11] : memref<256x72xf32, #tpu.memory_space<vmem>>, vector<256x8xf32>
    tpu.vector_store %arg9[%c0_10, %c0_11], %9 {strides = array<i32>} : memref<256x72xf32, #tpu.memory_space<vmem>>, vector<256x8xf32>,
    %c0_i32_12 = arith.constant 0 : i32
    %11 = arith.addi %5, %c0_i32_12 : i32
    %12 = arith.index_cast %11 : i32 to index
    %c1_13 = arith.constant 1 : index
    %c0_14 = arith.constant 0 : index
    %13 = vector.load %arg8[%12, %c1_13, %c0_14] : memref<18x18x8xf32, #tpu.memory_space<vmem>>, vector<16x16x8xf32>
    %14 = vector.shape_cast %13 : vector<16x16x8xf32> to vector<256x8xf32>
    %c0_15 = arith.constant 0 : index
    %c8 = arith.constant 8 : index
    %15 = vector.load %arg9[%c0_15, %c8] : memref<256x72xf32, #tpu.memory_space<vmem>>, vector<256x8xf32>
    tpu.vector_store %arg9[%c0_15, %c8], %14 {strides = array<i32>} : memref<256x72xf32, #tpu.memory_space<vmem>>, vector<256x8xf32>,
    %c0_i32_16 = arith.constant 0 : i32
    %16 = arith.addi %5, %c0_i32_16 : i32
    %17 = arith.index_cast %16 : i32 to index
    %c2 = arith.constant 2 : index
    %c0_17 = arith.constant 0 : index
    %18 = vector.load %arg8[%17, %c2, %c0_17] : memref<18x18x8xf32, #tpu.memory_space<vmem>>, vector<16x16x8xf32>
    %19 = vector.shape_cast %18 : vector<16x16x8xf32> to vector<256x8xf32>
    %c0_18 = arith.constant 0 : index
    %c16 = arith.constant 16 : index
    %20 = vector.load %arg9[%c0_18, %c16] : memref<256x72xf32, #tpu.memory_space<vmem>>, vector<256x8xf32>
    tpu.vector_store %arg9[%c0_18, %c16], %19 {strides = array<i32>} : memref<256x72xf32, #tpu.memory_space<vmem>>, vector<256x8xf32>,
    %c1_i32 = arith.constant 1 : i32
    %21 = arith.addi %5, %c1_i32 : i32
    %22 = arith.index_cast %21 : i32 to index
    %c0_19 = arith.constant 0 : index
    %c0_20 = arith.constant 0 : index
    %23 = vector.load %arg8[%22, %c0_19, %c0_20] : memref<18x18x8xf32, #tpu.memory_space<vmem>>, vector<16x16x8xf32>
    %24 = vector.shape_cast %23 : vector<16x16x8xf32> to vector<256x8xf32>
    %c0_21 = arith.constant 0 : index
    %c24 = arith.constant 24 : index
    %25 = vector.load %arg9[%c0_21, %c24] : memref<256x72xf32, #tpu.memory_space<vmem>>, vector<256x8xf32>
    tpu.vector_store %arg9[%c0_21, %c24], %24 {strides = array<i32>} : memref<256x72xf32, #tpu.memory_space<vmem>>, vector<256x8xf32>,
    %c1_i32_22 = arith.constant 1 : i32
    %26 = arith.addi %5, %c1_i32_22 : i32
    %27 = arith.index_cast %26 : i32 to index
    %c1_23 = arith.constant 1 : index
    %c0_24 = arith.constant 0 : index
    %28 = vector.load %arg8[%27, %c1_23, %c0_24] : memref<18x18x8xf32, #tpu.memory_space<vmem>>, vector<16x16x8xf32>
    %29 = vector.shape_cast %28 : vector<16x16x8xf32> to vector<256x8xf32>
    %c0_25 = arith.constant 0 : index
    %c32 = arith.constant 32 : index
    %30 = vector.load %arg9[%c0_25, %c32] : memref<256x72xf32, #tpu.memory_space<vmem>>, vector<256x8xf32>
    tpu.vector_store %arg9[%c0_25, %c32], %29 {strides = array<i32>} : memref<256x72xf32, #tpu.memory_space<vmem>>, vector<256x8xf32>,
    %c1_i32_26 = arith.constant 1 : i32
    %31 = arith.addi %5, %c1_i32_26 : i32
    %32 = arith.index_cast %31 : i32 to index
    %c2_27 = arith.constant 2 : index
    %c0_28 = arith.constant 0 : index
    %33 = vector.load %arg8[%32, %c2_27, %c0_28] : memref<18x18x8xf32, #tpu.memory_space<vmem>>, vector<16x16x8xf32>
    %34 = vector.shape_cast %33 : vector<16x16x8xf32> to vector<256x8xf32>
    %c0_29 = arith.constant 0 : index
    %c40 = arith.constant 40 : index
    %35 = vector.load %arg9[%c0_29, %c40] : memref<256x72xf32, #tpu.memory_space<vmem>>, vector<256x8xf32>
    tpu.vector_store %arg9[%c0_29, %c40], %34 {strides = array<i32>} : memref<256x72xf32, #tpu.memory_space<vmem>>, vector<256x8xf32>,
    %c2_i32 = arith.constant 2 : i32
    %36 = arith.addi %5, %c2_i32 : i32
    %37 = arith.index_cast %36 : i32 to index
    %c0_30 = arith.constant 0 : index
    %c0_31 = arith.constant 0 : index
    %38 = vector.load %arg8[%37, %c0_30, %c0_31] : memref<18x18x8xf32, #tpu.memory_space<vmem>>, vector<16x16x8xf32>
    %39 = vector.shape_cast %38 : vector<16x16x8xf32> to vector<256x8xf32>
    %c0_32 = arith.constant 0 : index
    %c48 = arith.constant 48 : index
    %40 = vector.load %arg9[%c0_32, %c48] : memref<256x72xf32, #tpu.memory_space<vmem>>, vector<256x8xf32>
    tpu.vector_store %arg9[%c0_32, %c48], %39 {strides = array<i32>} : memref<256x72xf32, #tpu.memory_space<vmem>>, vector<256x8xf32>,
    %c2_i32_33 = arith.constant 2 : i32
    %41 = arith.addi %5, %c2_i32_33 : i32
    %42 = arith.index_cast %41 : i32 to index
    %c1_34 = arith.constant 1 : index
    %c0_35 = arith.constant 0 : index
    %43 = vector.load %arg8[%42, %c1_34, %c0_35] : memref<18x18x8xf32, #tpu.memory_space<vmem>>, vector<16x16x8xf32>
    %44 = vector.shape_cast %43 : vector<16x16x8xf32> to vector<256x8xf32>
    %c0_36 = arith.constant 0 : index
    %c56 = arith.constant 56 : index
    %45 = vector.load %arg9[%c0_36, %c56] : memref<256x72xf32, #tpu.memory_space<vmem>>, vector<256x8xf32>
    tpu.vector_store %arg9[%c0_36, %c56], %44 {strides = array<i32>} : memref<256x72xf32, #tpu.memory_space<vmem>>, vector<256x8xf32>,
    %c2_i32_37 = arith.constant 2 : i32
    %46 = arith.addi %5, %c2_i32_37 : i32
    %47 = arith.index_cast %46 : i32 to index
    %c2_38 = arith.constant 2 : index
    %c0_39 = arith.constant 0 : index
    %48 = vector.load %arg8[%47, %c2_38, %c0_39] : memref<18x18x8xf32, #tpu.memory_space<vmem>>, vector<16x16x8xf32>
    %49 = vector.shape_cast %48 : vector<16x16x8xf32> to vector<256x8xf32>
    %c0_40 = arith.constant 0 : index
    %c64 = arith.constant 64 : index
    %50 = vector.load %arg9[%c0_40, %c64] : memref<256x72xf32, #tpu.memory_space<vmem>>, vector<256x8xf32>
    tpu.vector_store %arg9[%c0_40, %c64], %49 {strides = array<i32>} : memref<256x72xf32, #tpu.memory_space<vmem>>, vector<256x8xf32>,
    %c0_41 = arith.constant 0 : index
    %c0_42 = arith.constant 0 : index
    %51 = vector.load %arg9[%c0_41, %c0_42] : memref<256x72xf32, #tpu.memory_space<vmem>>, vector<256x72xf32>
    %c0_43 = arith.constant 0 : index
    %c0_44 = arith.constant 0 : index
    %52 = vector.load %arg5[%c0_43, %c0_44] : memref<72x16xf32, #tpu.memory_space<vmem>>, vector<72x16xf32>
    %cst_45 = arith.constant dense<0.000000e+00> : vector<256x16xf32>
    %53 = tpu.matmul %51, %52, %cst_45 {dimension_numbers = #tpu.dot_dimension_numbers<[1], [0], [0], [1], [0, 0, 1, 1], [], []>} : vector<256x72xf32>, vector<72x16xf32>, vector<256x16xf32> -> vector<256x16xf32>
    %c0_46 = arith.constant 0 : index
    %c0_47 = arith.constant 0 : index
    %c0_48 = arith.constant 0 : index
    %54 = vector.load %arg6[%c0_46, %c0_47, %c0_48] : memref<1x256x16xf32, #tpu.memory_space<vmem>>, vector<1x256x16xf32>
    %55 = vector.shape_cast %54 : vector<1x256x16xf32> to vector<256x16xf32>
    %56 = vector.shape_cast %53 : vector<256x16xf32> to vector<1x256x16xf32>
    tpu.vector_store %arg6[%c0_46, %c0_47, %c0_48], %56 {strides = array<i32>} : memref<1x256x16xf32, #tpu.memory_space<vmem>>, vector<1x256x16xf32>,
    %cst_49 = arith.constant dense<0.000000e+00> : vector<16xf32>
    %57 = vector.multi_reduction <add>, %53, %cst_49 [0] : vector<256x16xf32> to vector<16xf32>
    %58 = vector.shape_cast %57 : vector<16xf32> to vector<1x16xf32>
    %c0_50 = arith.constant 0 : index
    %c0_51 = arith.constant 0 : index
    %c0_52 = arith.constant 0 : index
    %c0_53 = arith.constant 0 : index
    %59 = vector.load %arg7[%c0_50, %c0_51, %c0_52, %c0_53] : memref<1x1x2x16xf32, #tpu.memory_space<vmem>>, vector<1x1x1x16xf32>
    %60 = vector.shape_cast %59 : vector<1x1x1x16xf32> to vector<1x16xf32>
    %61 = vector.shape_cast %58 : vector<1x16xf32> to vector<1x1x1x16xf32>
    tpu.vector_store %arg7[%c0_50, %c0_51, %c0_52, %c0_53], %61 {strides = array<i32>} : memref<1x1x2x16xf32, #tpu.memory_space<vmem>>, vector<1x1x1x16xf32>,
    %62 = arith.mulf %53, %53 : vector<256x16xf32>
    %cst_54 = arith.constant dense<0.000000e+00> : vector<16xf32>
    %63 = vector.multi_reduction <add>, %62, %cst_54 [0] : vector<256x16xf32> to vector<16xf32>
    %64 = vector.shape_cast %63 : vector<16xf32> to vector<1x16xf32>
    %c0_55 = arith.constant 0 : index
    %c0_56 = arith.constant 0 : index
    %c1_57 = arith.constant 1 : index
    %c0_58 = arith.constant 0 : index
    %65 = vector.load %arg7[%c0_55, %c0_56, %c1_57, %c0_58] : memref<1x1x2x16xf32, #tpu.memory_space<vmem>>, vector<1x1x1x16xf32>
    %66 = vector.shape_cast %65 : vector<1x1x1x16xf32> to vector<1x16xf32>
    %67 = vector.shape_cast %64 : vector<1x16xf32> to vector<1x1x1x16xf32>
    tpu.vector_store %arg7[%c0_55, %c0_56, %c1_57, %c0_58], %67 {strides = array<i32>} : memref<1x1x2x16xf32, #tpu.memory_space<vmem>>, vector<1x1x1x16xf32>,
    return
  }
  func.func @transform_0(%arg0: i32, %arg1: i32) -> (i32, i32, i32, i32) {
    %c0_i32 = arith.constant 0 : i32
    %c0_i32_0 = arith.constant 0 : i32
    %c0_i32_1 = arith.constant 0 : i32
    %c0_i32_2 = arith.constant 0 : i32
    return %arg0, %c0_i32, %c0_i32_0, %c0_i32_1 : i32, i32, i32, i32
  }
  func.func @transform_1(%arg0: i32, %arg1: i32) -> (i32, i32) {
    %c0_i32 = arith.constant 0 : i32
    %c0_i32_0 = arith.constant 0 : i32
    %c0_i32_1 = arith.constant 0 : i32
    return %c0_i32, %c0_i32_0 : i32, i32
  }
  func.func @transform_2(%arg0: i32, %arg1: i32) -> (i32, i32) {
    %c0_i32 = arith.constant 0 : i32
    %c0_i32_0 = arith.constant 0 : i32
    %c0_i32_1 = arith.constant 0 : i32
    return %c0_i32, %c0_i32_0 : i32, i32
  }
  func.func @transform_3(%arg0: i32, %arg1: i32) -> (i32, i32) {
    %c0_i32 = arith.constant 0 : i32
    %c0_i32_0 = arith.constant 0 : i32
    %c0_i32_1 = arith.constant 0 : i32
    return %c0_i32, %c0_i32_0 : i32, i32
  }
  func.func @transform_4(%arg0: i32, %arg1: i32) -> (i32, i32, i32) {
    %c0_i32 = arith.constant 0 : i32
    %c0_i32_0 = arith.constant 0 : i32
    return %arg0, %arg1, %c0_i32 : i32, i32, i32
  }
  func.func @transform_5(%arg0: i32, %arg1: i32) -> (i32, i32, i32, i32) {
    %c0_i32 = arith.constant 0 : i32
    %c0_i32_0 = arith.constant 0 : i32
    %c0_i32_1 = arith.constant 0 : i32
    return %arg0, %arg1, %c0_i32, %c0_i32_0 : i32, i32, i32, i32
  }
}

module attributes {stable_mosaic.version = 11 : i64} {
  func.func @_fused_conv_kernel(%arg0: i32, %arg1: i32, %arg2: memref<1x16x16x16xf32, #tpu.memory_space<vmem>>, %arg3: memref<1x16xf32, #tpu.memory_space<vmem>>, %arg4: memref<1x16xf32, #tpu.memory_space<vmem>>, %arg5: memref<144x16xf32, #tpu.memory_space<vmem>>, %arg6: memref<1x256x16xf32, #tpu.memory_space<vmem>>, %arg7: memref<1x1x2x16xf32, #tpu.memory_space<vmem>>, %arg8: memref<18x18x16xf32, #tpu.memory_space<vmem>>, %arg9: memref<256x144xf32, #tpu.memory_space<vmem>>) attributes {dimension_semantics = [#tpu.dimension_semantics<parallel>, #tpu.dimension_semantics<parallel>], iteration_bounds = array<i64: 2, 1>, scalar_prefetch = 0 : i64, scratch_operands = 2 : i64, tpu.core_type = #tpu.core_type<tc>, window_params = [{transform_indices = @transform_0, window_bounds = array<i64: 1, 16, 16, 16>}, {pipeline_mode = #tpu.pipeline_mode<synchronous>, transform_indices = @transform_1, window_bounds = array<i64: 1, 16>}, {pipeline_mode = #tpu.pipeline_mode<synchronous>, transform_indices = @transform_2, window_bounds = array<i64: 1, 16>}, {pipeline_mode = #tpu.pipeline_mode<synchronous>, transform_indices = @transform_3, window_bounds = array<i64: 144, 16>}, {transform_indices = @transform_4, window_bounds = array<i64: 1, 256, 16>}, {transform_indices = @transform_5, window_bounds = array<i64: 1, 1, 2, 16>}]} {
    %c0 = arith.constant 0 : index
    %c0_0 = arith.constant 0 : index
    %c0_1 = arith.constant 0 : index
    %c0_2 = arith.constant 0 : index
    %0 = vector.load %arg2[%c0, %c0_0, %c0_1, %c0_2] : memref<1x16x16x16xf32, #tpu.memory_space<vmem>>, vector<1x16x16x16xf32>
    %1 = vector.shape_cast %0 : vector<1x16x16x16xf32> to vector<16x16x16xf32>
    %c0_3 = arith.constant 0 : index
    %c0_4 = arith.constant 0 : index
    %2 = vector.load %arg3[%c0_3, %c0_4] : memref<1x16xf32, #tpu.memory_space<vmem>>, vector<1x16xf32>
    %3 = vector.shape_cast %2 : vector<1x16xf32> to vector<1x1x16xf32>
    %4 = vector.broadcast %3 : vector<1x1x16xf32> to vector<16x16x16xf32>
    %5 = arith.mulf %1, %4 : vector<16x16x16xf32>
    %c0_5 = arith.constant 0 : index
    %c0_6 = arith.constant 0 : index
    %6 = vector.load %arg4[%c0_5, %c0_6] : memref<1x16xf32, #tpu.memory_space<vmem>>, vector<1x16xf32>
    %7 = vector.shape_cast %6 : vector<1x16xf32> to vector<1x1x16xf32>
    %8 = vector.broadcast %7 : vector<1x1x16xf32> to vector<16x16x16xf32>
    %9 = arith.addf %5, %8 : vector<16x16x16xf32>
    %cst = arith.constant 0.000000e+00 : f32
    %10 = vector.broadcast %cst : f32 to vector<16x16x16xf32>
    %11 = arith.maximumf %9, %10 : vector<16x16x16xf32>
    %cst_7 = arith.constant 0.000000e+00 : f32
    %12 = vector.broadcast %cst_7 : f32 to vector<18x18x16xf32>
    %c0_8 = arith.constant 0 : index
    %c0_9 = arith.constant 0 : index
    %c0_10 = arith.constant 0 : index
    %13 = vector.load %arg8[%c0_8, %c0_9, %c0_10] : memref<18x18x16xf32, #tpu.memory_space<vmem>>, vector<18x18x16xf32>
    tpu.vector_store %arg8[%c0_8, %c0_9, %c0_10], %12 {strides = array<i32>} : memref<18x18x16xf32, #tpu.memory_space<vmem>>, vector<18x18x16xf32>,
    %c1 = arith.constant 1 : index
    %c1_11 = arith.constant 1 : index
    %c0_12 = arith.constant 0 : index
    %14 = vector.load %arg8[%c1, %c1_11, %c0_12] : memref<18x18x16xf32, #tpu.memory_space<vmem>>, vector<16x16x16xf32>
    tpu.vector_store %arg8[%c1, %c1_11, %c0_12], %11 {strides = array<i32>} : memref<18x18x16xf32, #tpu.memory_space<vmem>>, vector<16x16x16xf32>,
    %c16_i32 = arith.constant 16 : i32
    %15 = arith.muli %arg1, %c16_i32 : i32
    %c0_i32 = arith.constant 0 : i32
    %16 = arith.addi %15, %c0_i32 : i32
    %17 = arith.index_cast %16 : i32 to index
    %c0_13 = arith.constant 0 : index
    %c0_14 = arith.constant 0 : index
    %18 = vector.load %arg8[%17, %c0_13, %c0_14] : memref<18x18x16xf32, #tpu.memory_space<vmem>>, vector<16x16x16xf32>
    %19 = vector.shape_cast %18 : vector<16x16x16xf32> to vector<256x16xf32>
    %c0_15 = arith.constant 0 : index
    %c0_16 = arith.constant 0 : index
    %20 = vector.load %arg9[%c0_15, %c0_16] : memref<256x144xf32, #tpu.memory_space<vmem>>, vector<256x16xf32>
    tpu.vector_store %arg9[%c0_15, %c0_16], %19 {strides = array<i32>} : memref<256x144xf32, #tpu.memory_space<vmem>>, vector<256x16xf32>,
    %c0_i32_17 = arith.constant 0 : i32
    %21 = arith.addi %15, %c0_i32_17 : i32
    %22 = arith.index_cast %21 : i32 to index
    %c1_18 = arith.constant 1 : index
    %c0_19 = arith.constant 0 : index
    %23 = vector.load %arg8[%22, %c1_18, %c0_19] : memref<18x18x16xf32, #tpu.memory_space<vmem>>, vector<16x16x16xf32>
    %24 = vector.shape_cast %23 : vector<16x16x16xf32> to vector<256x16xf32>
    %c0_20 = arith.constant 0 : index
    %c16 = arith.constant 16 : index
    %25 = vector.load %arg9[%c0_20, %c16] : memref<256x144xf32, #tpu.memory_space<vmem>>, vector<256x16xf32>
    tpu.vector_store %arg9[%c0_20, %c16], %24 {strides = array<i32>} : memref<256x144xf32, #tpu.memory_space<vmem>>, vector<256x16xf32>,
    %c0_i32_21 = arith.constant 0 : i32
    %26 = arith.addi %15, %c0_i32_21 : i32
    %27 = arith.index_cast %26 : i32 to index
    %c2 = arith.constant 2 : index
    %c0_22 = arith.constant 0 : index
    %28 = vector.load %arg8[%27, %c2, %c0_22] : memref<18x18x16xf32, #tpu.memory_space<vmem>>, vector<16x16x16xf32>
    %29 = vector.shape_cast %28 : vector<16x16x16xf32> to vector<256x16xf32>
    %c0_23 = arith.constant 0 : index
    %c32 = arith.constant 32 : index
    %30 = vector.load %arg9[%c0_23, %c32] : memref<256x144xf32, #tpu.memory_space<vmem>>, vector<256x16xf32>
    tpu.vector_store %arg9[%c0_23, %c32], %29 {strides = array<i32>} : memref<256x144xf32, #tpu.memory_space<vmem>>, vector<256x16xf32>,
    %c1_i32 = arith.constant 1 : i32
    %31 = arith.addi %15, %c1_i32 : i32
    %32 = arith.index_cast %31 : i32 to index
    %c0_24 = arith.constant 0 : index
    %c0_25 = arith.constant 0 : index
    %33 = vector.load %arg8[%32, %c0_24, %c0_25] : memref<18x18x16xf32, #tpu.memory_space<vmem>>, vector<16x16x16xf32>
    %34 = vector.shape_cast %33 : vector<16x16x16xf32> to vector<256x16xf32>
    %c0_26 = arith.constant 0 : index
    %c48 = arith.constant 48 : index
    %35 = vector.load %arg9[%c0_26, %c48] : memref<256x144xf32, #tpu.memory_space<vmem>>, vector<256x16xf32>
    tpu.vector_store %arg9[%c0_26, %c48], %34 {strides = array<i32>} : memref<256x144xf32, #tpu.memory_space<vmem>>, vector<256x16xf32>,
    %c1_i32_27 = arith.constant 1 : i32
    %36 = arith.addi %15, %c1_i32_27 : i32
    %37 = arith.index_cast %36 : i32 to index
    %c1_28 = arith.constant 1 : index
    %c0_29 = arith.constant 0 : index
    %38 = vector.load %arg8[%37, %c1_28, %c0_29] : memref<18x18x16xf32, #tpu.memory_space<vmem>>, vector<16x16x16xf32>
    %39 = vector.shape_cast %38 : vector<16x16x16xf32> to vector<256x16xf32>
    %c0_30 = arith.constant 0 : index
    %c64 = arith.constant 64 : index
    %40 = vector.load %arg9[%c0_30, %c64] : memref<256x144xf32, #tpu.memory_space<vmem>>, vector<256x16xf32>
    tpu.vector_store %arg9[%c0_30, %c64], %39 {strides = array<i32>} : memref<256x144xf32, #tpu.memory_space<vmem>>, vector<256x16xf32>,
    %c1_i32_31 = arith.constant 1 : i32
    %41 = arith.addi %15, %c1_i32_31 : i32
    %42 = arith.index_cast %41 : i32 to index
    %c2_32 = arith.constant 2 : index
    %c0_33 = arith.constant 0 : index
    %43 = vector.load %arg8[%42, %c2_32, %c0_33] : memref<18x18x16xf32, #tpu.memory_space<vmem>>, vector<16x16x16xf32>
    %44 = vector.shape_cast %43 : vector<16x16x16xf32> to vector<256x16xf32>
    %c0_34 = arith.constant 0 : index
    %c80 = arith.constant 80 : index
    %45 = vector.load %arg9[%c0_34, %c80] : memref<256x144xf32, #tpu.memory_space<vmem>>, vector<256x16xf32>
    tpu.vector_store %arg9[%c0_34, %c80], %44 {strides = array<i32>} : memref<256x144xf32, #tpu.memory_space<vmem>>, vector<256x16xf32>,
    %c2_i32 = arith.constant 2 : i32
    %46 = arith.addi %15, %c2_i32 : i32
    %47 = arith.index_cast %46 : i32 to index
    %c0_35 = arith.constant 0 : index
    %c0_36 = arith.constant 0 : index
    %48 = vector.load %arg8[%47, %c0_35, %c0_36] : memref<18x18x16xf32, #tpu.memory_space<vmem>>, vector<16x16x16xf32>
    %49 = vector.shape_cast %48 : vector<16x16x16xf32> to vector<256x16xf32>
    %c0_37 = arith.constant 0 : index
    %c96 = arith.constant 96 : index
    %50 = vector.load %arg9[%c0_37, %c96] : memref<256x144xf32, #tpu.memory_space<vmem>>, vector<256x16xf32>
    tpu.vector_store %arg9[%c0_37, %c96], %49 {strides = array<i32>} : memref<256x144xf32, #tpu.memory_space<vmem>>, vector<256x16xf32>,
    %c2_i32_38 = arith.constant 2 : i32
    %51 = arith.addi %15, %c2_i32_38 : i32
    %52 = arith.index_cast %51 : i32 to index
    %c1_39 = arith.constant 1 : index
    %c0_40 = arith.constant 0 : index
    %53 = vector.load %arg8[%52, %c1_39, %c0_40] : memref<18x18x16xf32, #tpu.memory_space<vmem>>, vector<16x16x16xf32>
    %54 = vector.shape_cast %53 : vector<16x16x16xf32> to vector<256x16xf32>
    %c0_41 = arith.constant 0 : index
    %c112 = arith.constant 112 : index
    %55 = vector.load %arg9[%c0_41, %c112] : memref<256x144xf32, #tpu.memory_space<vmem>>, vector<256x16xf32>
    tpu.vector_store %arg9[%c0_41, %c112], %54 {strides = array<i32>} : memref<256x144xf32, #tpu.memory_space<vmem>>, vector<256x16xf32>,
    %c2_i32_42 = arith.constant 2 : i32
    %56 = arith.addi %15, %c2_i32_42 : i32
    %57 = arith.index_cast %56 : i32 to index
    %c2_43 = arith.constant 2 : index
    %c0_44 = arith.constant 0 : index
    %58 = vector.load %arg8[%57, %c2_43, %c0_44] : memref<18x18x16xf32, #tpu.memory_space<vmem>>, vector<16x16x16xf32>
    %59 = vector.shape_cast %58 : vector<16x16x16xf32> to vector<256x16xf32>
    %c0_45 = arith.constant 0 : index
    %c128 = arith.constant 128 : index
    %60 = vector.load %arg9[%c0_45, %c128] : memref<256x144xf32, #tpu.memory_space<vmem>>, vector<256x16xf32>
    tpu.vector_store %arg9[%c0_45, %c128], %59 {strides = array<i32>} : memref<256x144xf32, #tpu.memory_space<vmem>>, vector<256x16xf32>,
    %c0_46 = arith.constant 0 : index
    %c0_47 = arith.constant 0 : index
    %61 = vector.load %arg9[%c0_46, %c0_47] : memref<256x144xf32, #tpu.memory_space<vmem>>, vector<256x144xf32>
    %c0_48 = arith.constant 0 : index
    %c0_49 = arith.constant 0 : index
    %62 = vector.load %arg5[%c0_48, %c0_49] : memref<144x16xf32, #tpu.memory_space<vmem>>, vector<144x16xf32>
    %cst_50 = arith.constant dense<0.000000e+00> : vector<256x16xf32>
    %63 = tpu.matmul %61, %62, %cst_50 {dimension_numbers = #tpu.dot_dimension_numbers<[1], [0], [0], [1], [0, 0, 1, 1], [], []>} : vector<256x144xf32>, vector<144x16xf32>, vector<256x16xf32> -> vector<256x16xf32>
    %c0_51 = arith.constant 0 : index
    %c0_52 = arith.constant 0 : index
    %c0_53 = arith.constant 0 : index
    %64 = vector.load %arg6[%c0_51, %c0_52, %c0_53] : memref<1x256x16xf32, #tpu.memory_space<vmem>>, vector<1x256x16xf32>
    %65 = vector.shape_cast %64 : vector<1x256x16xf32> to vector<256x16xf32>
    %66 = vector.shape_cast %63 : vector<256x16xf32> to vector<1x256x16xf32>
    tpu.vector_store %arg6[%c0_51, %c0_52, %c0_53], %66 {strides = array<i32>} : memref<1x256x16xf32, #tpu.memory_space<vmem>>, vector<1x256x16xf32>,
    %cst_54 = arith.constant dense<0.000000e+00> : vector<16xf32>
    %67 = vector.multi_reduction <add>, %63, %cst_54 [0] : vector<256x16xf32> to vector<16xf32>
    %68 = vector.shape_cast %67 : vector<16xf32> to vector<1x16xf32>
    %c0_55 = arith.constant 0 : index
    %c0_56 = arith.constant 0 : index
    %c0_57 = arith.constant 0 : index
    %c0_58 = arith.constant 0 : index
    %69 = vector.load %arg7[%c0_55, %c0_56, %c0_57, %c0_58] : memref<1x1x2x16xf32, #tpu.memory_space<vmem>>, vector<1x1x1x16xf32>
    %70 = vector.shape_cast %69 : vector<1x1x1x16xf32> to vector<1x16xf32>
    %71 = vector.shape_cast %68 : vector<1x16xf32> to vector<1x1x1x16xf32>
    tpu.vector_store %arg7[%c0_55, %c0_56, %c0_57, %c0_58], %71 {strides = array<i32>} : memref<1x1x2x16xf32, #tpu.memory_space<vmem>>, vector<1x1x1x16xf32>,
    %72 = arith.mulf %63, %63 : vector<256x16xf32>
    %cst_59 = arith.constant dense<0.000000e+00> : vector<16xf32>
    %73 = vector.multi_reduction <add>, %72, %cst_59 [0] : vector<256x16xf32> to vector<16xf32>
    %74 = vector.shape_cast %73 : vector<16xf32> to vector<1x16xf32>
    %c0_60 = arith.constant 0 : index
    %c0_61 = arith.constant 0 : index
    %c1_62 = arith.constant 1 : index
    %c0_63 = arith.constant 0 : index
    %75 = vector.load %arg7[%c0_60, %c0_61, %c1_62, %c0_63] : memref<1x1x2x16xf32, #tpu.memory_space<vmem>>, vector<1x1x1x16xf32>
    %76 = vector.shape_cast %75 : vector<1x1x1x16xf32> to vector<1x16xf32>
    %77 = vector.shape_cast %74 : vector<1x16xf32> to vector<1x1x1x16xf32>
    tpu.vector_store %arg7[%c0_60, %c0_61, %c1_62, %c0_63], %77 {strides = array<i32>} : memref<1x1x2x16xf32, #tpu.memory_space<vmem>>, vector<1x1x1x16xf32>,
    return
  }
  func.func @transform_0(%arg0: i32, %arg1: i32) -> (i32, i32, i32, i32) {
    %c0_i32 = arith.constant 0 : i32
    %c0_i32_0 = arith.constant 0 : i32
    %c0_i32_1 = arith.constant 0 : i32
    %c0_i32_2 = arith.constant 0 : i32
    return %arg0, %c0_i32, %c0_i32_0, %c0_i32_1 : i32, i32, i32, i32
  }
  func.func @transform_1(%arg0: i32, %arg1: i32) -> (i32, i32) {
    %c0_i32 = arith.constant 0 : i32
    %c0_i32_0 = arith.constant 0 : i32
    %c0_i32_1 = arith.constant 0 : i32
    return %c0_i32, %c0_i32_0 : i32, i32
  }
  func.func @transform_2(%arg0: i32, %arg1: i32) -> (i32, i32) {
    %c0_i32 = arith.constant 0 : i32
    %c0_i32_0 = arith.constant 0 : i32
    %c0_i32_1 = arith.constant 0 : i32
    return %c0_i32, %c0_i32_0 : i32, i32
  }
  func.func @transform_3(%arg0: i32, %arg1: i32) -> (i32, i32) {
    %c0_i32 = arith.constant 0 : i32
    %c0_i32_0 = arith.constant 0 : i32
    %c0_i32_1 = arith.constant 0 : i32
    return %c0_i32, %c0_i32_0 : i32, i32
  }
  func.func @transform_4(%arg0: i32, %arg1: i32) -> (i32, i32, i32) {
    %c0_i32 = arith.constant 0 : i32
    %c0_i32_0 = arith.constant 0 : i32
    return %arg0, %arg1, %c0_i32 : i32, i32, i32
  }
  func.func @transform_5(%arg0: i32, %arg1: i32) -> (i32, i32, i32, i32) {
    %c0_i32 = arith.constant 0 : i32
    %c0_i32_0 = arith.constant 0 : i32
    %c0_i32_1 = arith.constant 0 : i32
    return %arg0, %arg1, %c0_i32, %c0_i32_0 : i32, i32, i32, i32
  }
}

module attributes {stable_mosaic.version = 11 : i64} {
  func.func @_bn_relu_kernel(%arg0: i32, %arg1: i32, %arg2: memref<1x256x16xf32, #tpu.memory_space<vmem>>, %arg3: memref<1x16xf32, #tpu.memory_space<vmem>>, %arg4: memref<1x16xf32, #tpu.memory_space<vmem>>, %arg5: memref<1x256x16xf32, #tpu.memory_space<vmem>>) attributes {dimension_semantics = [#tpu.dimension_semantics<parallel>, #tpu.dimension_semantics<parallel>], iteration_bounds = array<i64: 2, 1>, scalar_prefetch = 0 : i64, scratch_operands = 0 : i64, tpu.core_type = #tpu.core_type<tc>, window_params = [{transform_indices = @transform_0, window_bounds = array<i64: 1, 256, 16>}, {pipeline_mode = #tpu.pipeline_mode<synchronous>, transform_indices = @transform_1, window_bounds = array<i64: 1, 16>}, {pipeline_mode = #tpu.pipeline_mode<synchronous>, transform_indices = @transform_2, window_bounds = array<i64: 1, 16>}, {transform_indices = @transform_3, window_bounds = array<i64: 1, 256, 16>}]} {
    %c0 = arith.constant 0 : index
    %c0_0 = arith.constant 0 : index
    %c0_1 = arith.constant 0 : index
    %0 = vector.load %arg2[%c0, %c0_0, %c0_1] : memref<1x256x16xf32, #tpu.memory_space<vmem>>, vector<1x256x16xf32>
    %1 = vector.shape_cast %0 : vector<1x256x16xf32> to vector<256x16xf32>
    %c0_2 = arith.constant 0 : index
    %c0_3 = arith.constant 0 : index
    %2 = vector.load %arg3[%c0_2, %c0_3] : memref<1x16xf32, #tpu.memory_space<vmem>>, vector<1x16xf32>
    %3 = vector.broadcast %2 : vector<1x16xf32> to vector<256x16xf32>
    %4 = arith.mulf %1, %3 : vector<256x16xf32>
    %c0_4 = arith.constant 0 : index
    %c0_5 = arith.constant 0 : index
    %5 = vector.load %arg4[%c0_4, %c0_5] : memref<1x16xf32, #tpu.memory_space<vmem>>, vector<1x16xf32>
    %6 = vector.broadcast %5 : vector<1x16xf32> to vector<256x16xf32>
    %7 = arith.addf %4, %6 : vector<256x16xf32>
    %cst = arith.constant 0.000000e+00 : f32
    %8 = vector.broadcast %cst : f32 to vector<256x16xf32>
    %9 = arith.maximumf %7, %8 : vector<256x16xf32>
    %c0_6 = arith.constant 0 : index
    %c0_7 = arith.constant 0 : index
    %c0_8 = arith.constant 0 : index
    %10 = vector.load %arg5[%c0_6, %c0_7, %c0_8] : memref<1x256x16xf32, #tpu.memory_space<vmem>>, vector<1x256x16xf32>
    %11 = vector.shape_cast %10 : vector<1x256x16xf32> to vector<256x16xf32>
    %12 = vector.shape_cast %9 : vector<256x16xf32> to vector<1x256x16xf32>
    tpu.vector_store %arg5[%c0_6, %c0_7, %c0_8], %12 {strides = array<i32>} : memref<1x256x16xf32, #tpu.memory_space<vmem>>, vector<1x256x16xf32>,
    return
  }
  func.func @transform_0(%arg0: i32, %arg1: i32) -> (i32, i32, i32) {
    %c0_i32 = arith.constant 0 : i32
    %c0_i32_0 = arith.constant 0 : i32
    return %arg0, %arg1, %c0_i32 : i32, i32, i32
  }
  func.func @transform_1(%arg0: i32, %arg1: i32) -> (i32, i32) {
    %c0_i32 = arith.constant 0 : i32
    %c0_i32_0 = arith.constant 0 : i32
    %c0_i32_1 = arith.constant 0 : i32
    return %c0_i32, %c0_i32_0 : i32, i32
  }
  func.func @transform_2(%arg0: i32, %arg1: i32) -> (i32, i32) {
    %c0_i32 = arith.constant 0 : i32
    %c0_i32_0 = arith.constant 0 : i32
    %c0_i32_1 = arith.constant 0 : i32
    return %c0_i32, %c0_i32_0 : i32, i32
  }
  func.func @transform_3(%arg0: i32, %arg1: i32) -> (i32, i32, i32) {
    %c0_i32 = arith.constant 0 : i32
    %c0_i32_0 = arith.constant 0 : i32
    return %arg0, %arg1, %c0_i32 : i32, i32, i32
  }
}

</mosaic_0001>

<bundles_post_ra>
// kernel: custom-call
= control target key start
LH: loop header
LB: loop body
LE: loop exit
PB: predicated region body
PF: predicated region fallthrough
CT: control target
= control target key end

     0   :  { %s776_s0 = inlined_call_operand.vmem [shape: c64[2,4,16,16], index: 0, kind: input, shape index: {}]   ;;  %s777_s1 = inlined_call_operand.vmem [shape: f32[2,4,16,16], index: 1, kind: output, shape index: {}]  }
   0x1   :  { %v2_v0 = vld [vmem:[%s776_s0] sm:$0xff]  ;;  %v256_v1 = vld [vmem:[%s776_s0 + $0x8] sm:$0xff]  ;;  %v258_v2 = vld [vmem:[%s776_s0 + $0x10] sm:$0xff] }
   0x2   :  { %3 = vst [vmem:[%s777_s1] sm:$0xff] %v2_v0  ;;  %v260_v3 = vld [vmem:[%s776_s0 + $0x18] sm:$0xff]  ;;  %v262_v4 = vld [vmem:[%s776_s0 + $0x20] sm:$0xff]  ;;  %v264_v5 = vld [vmem:[%s776_s0 + $0x28] sm:$0xff] }
   0x3   :  { %257 = vst [vmem:[%s777_s1 + $0x8] sm:$0xff] %v256_v1  ;;  %v266_v6 = vld [vmem:[%s776_s0 + $0x30] sm:$0xff]  ;;  %v268_v7 = vld [vmem:[%s776_s0 + $0x38] sm:$0xff]  ;;  %v270_v8 = vld [vmem:[%s776_s0 + $0x40] sm:$0xff] }
   0x4   :  { %259 = vst [vmem:[%s777_s1 + $0x10] sm:$0xff] %v258_v2  ;;  %v272_v9 = vld [vmem:[%s776_s0 + $0x48] sm:$0xff]  ;;  %v274_v10 = vld [vmem:[%s776_s0 + $0x50] sm:$0xff]  ;;  %v276_v11 = vld [vmem:[%s776_s0 + $0x58] sm:$0xff] }
   0x5   :  { %261 = vst [vmem:[%s777_s1 + $0x18] sm:$0xff] %v260_v3  ;;  %v278_v12 = vld [vmem:[%s776_s0 + $0x60] sm:$0xff]  ;;  %v280_v13 = vld [vmem:[%s776_s0 + $0x68] sm:$0xff]  ;;  %v282_v14 = vld [vmem:[%s776_s0 + $0x70] sm:$0xff] }
   0x6   :  { %263 = vst [vmem:[%s777_s1 + $0x20] sm:$0xff] %v262_v4  ;;  %v284_v15 = vld [vmem:[%s776_s0 + $0x78] sm:$0xff]  ;;  %v286_v16 = vld [vmem:[%s776_s0 + $0x80] sm:$0xff]  ;;  %v288_v17 = vld [vmem:[%s776_s0 + $0x88] sm:$0xff] }
   0x7   :  { %265 = vst [vmem:[%s777_s1 + $0x28] sm:$0xff] %v264_v5  ;;  %v290_v18 = vld [vmem:[%s776_s0 + $0x90] sm:$0xff]  ;;  %v292_v19 = vld [vmem:[%s776_s0 + $0x98] sm:$0xff]  ;;  %v294_v20 = vld [vmem:[%s776_s0 + $0xa0] sm:$0xff] }
   0x8   :  { %267 = vst [vmem:[%s777_s1 + $0x30] sm:$0xff] %v266_v6  ;;  %v296_v21 = vld [vmem:[%s776_s0 + $0xa8] sm:$0xff]  ;;  %v298_v22 = vld [vmem:[%s776_s0 + $0xb0] sm:$0xff]  ;;  %v300_v23 = vld [vmem:[%s776_s0 + $0xb8] sm:$0xff] }
   0x9   :  { %269 = vst [vmem:[%s777_s1 + $0x38] sm:$0xff] %v268_v7  ;;  %v302_v24 = vld [vmem:[%s776_s0 + $0xc0] sm:$0xff]  ;;  %v304_v25 = vld [vmem:[%s776_s0 + $0xc8] sm:$0xff]  ;;  %v306_v26 = vld [vmem:[%s776_s0 + $0xd0] sm:$0xff] }
   0xa   :  { %271 = vst [vmem:[%s777_s1 + $0x40] sm:$0xff] %v270_v8  ;;  %v308_v27 = vld [vmem:[%s776_s0 + $0xd8] sm:$0xff]  ;;  %v310_v28 = vld [vmem:[%s776_s0 + $0xe0] sm:$0xff]  ;;  %v312_v29 = vld [vmem:[%s776_s0 + $0xe8] sm:$0xff] }
   0xb   :  { %273 = vst [vmem:[%s777_s1 + $0x48] sm:$0xff] %v272_v9  ;;  %v314_v30 = vld [vmem:[%s776_s0 + $0xf0] sm:$0xff]  ;;  %v316_v31 = vld [vmem:[%s776_s0 + $0xf8] sm:$0xff]  ;;  %v318_v32 = vld [vmem:[%s776_s0 + $0x100] sm:$0xff] }
   0xc   :  { %275 = vst [vmem:[%s777_s1 + $0x50] sm:$0xff] %v274_v10  ;;  %v320_v33 = vld [vmem:[%s776_s0 + $0x108] sm:$0xff]  ;;  %v322_v34 = vld [vmem:[%s776_s0 + $0x110] sm:$0xff]  ;;  %v324_v35 = vld [vmem:[%s776_s0 + $0x118] sm:$0xff] }
   0xd   :  { %277 = vst [vmem:[%s777_s1 + $0x58] sm:$0xff] %v276_v11  ;;  %v326_v36 = vld [vmem:[%s776_s0 + $0x120] sm:$0xff]  ;;  %v328_v37 = vld [vmem:[%s776_s0 + $0x128] sm:$0xff]  ;;  %v330_v38 = vld [vmem:[%s776_s0 + $0x130] sm:$0xff] }
   0xe   :  { %279 = vst [vmem:[%s777_s1 + $0x60] sm:$0xff] %v278_v12  ;;  %v332_v39 = vld [vmem:[%s776_s0 + $0x138] sm:$0xff]  ;;  %v334_v40 = vld [vmem:[%s776_s0 + $0x140] sm:$0xff]  ;;  %v336_v41 = vld [vmem:[%s776_s0 + $0x148] sm:$0xff] }
   0xf   :  { %281 = vst [vmem:[%s777_s1 + $0x68] sm:$0xff] %v280_v13  ;;  %v338_v42 = vld [vmem:[%s776_s0 + $0x150] sm:$0xff]  ;;  %v340_v43 = vld [vmem:[%s776_s0 + $0x158] sm:$0xff]  ;;  %v342_v44 = vld [vmem:[%s776_s0 + $0x160] sm:$0xff] }
  0x10   :  { %283 = vst [vmem:[%s777_s1 + $0x70] sm:$0xff] %v282_v14  ;;  %v344_v45 = vld [vmem:[%s776_s0 + $0x168] sm:$0xff]  ;;  %v346_v46 = vld [vmem:[%s776_s0 + $0x170] sm:$0xff]  ;;  %v348_v47 = vld [vmem:[%s776_s0 + $0x178] sm:$0xff] }
  0x11   :  { %285 = vst [vmem:[%s777_s1 + $0x78] sm:$0xff] %v284_v15  ;;  %v350_v48 = vld [vmem:[%s776_s0 + $0x180] sm:$0xff]  ;;  %v352_v49 = vld [vmem:[%s776_s0 + $0x188] sm:$0xff]  ;;  %v354_v50 = vld [vmem:[%s776_s0 + $0x190] sm:$0xff] }
  0x12   :  { %287 = vst [vmem:[%s777_s1 + $0x80] sm:$0xff] %v286_v16  ;;  %v356_v51 = vld [vmem:[%s776_s0 + $0x198] sm:$0xff]  ;;  %v358_v52 = vld [vmem:[%s776_s0 + $0x1a0] sm:$0xff]  ;;  %v360_v53 = vld [vmem:[%s776_s0 + $0x1a8] sm:$0xff] }
  0x13   :  { %289 = vst [vmem:[%s777_s1 + $0x88] sm:$0xff] %v288_v17  ;;  %v362_v54 = vld [vmem:[%s776_s0 + $0x1b0] sm:$0xff]  ;;  %v364_v55 = vld [vmem:[%s776_s0 + $0x1b8] sm:$0xff]  ;;  %v366_v56 = vld [vmem:[%s776_s0 + $0x1c0] sm:$0xff] }
  0x14   :  { %291 = vst [vmem:[%s777_s1 + $0x90] sm:$0xff] %v290_v18  ;;  %v368_v57 = vld [vmem:[%s776_s0 + $0x1c8] sm:$0xff]  ;;  %v370_v58 = vld [vmem:[%s776_s0 + $0x1d0] sm:$0xff]  ;;  %v372_v59 = vld [vmem:[%s776_s0 + $0x1d8] sm:$0xff] }
  0x15   :  { %293 = vst [vmem:[%s777_s1 + $0x98] sm:$0xff] %v292_v19  ;;  %v374_v60 = vld [vmem:[%s776_s0 + $0x1e0] sm:$0xff]  ;;  %v376_v61 = vld [vmem:[%s776_s0 + $0x1e8] sm:$0xff]  ;;  %v378_v62 = vld [vmem:[%s776_s0 + $0x1f0] sm:$0xff] }
  0x16   :  { %295 = vst [vmem:[%s777_s1 + $0xa0] sm:$0xff] %v294_v20  ;;  %v380_v63 = vld [vmem:[%s776_s0 + $0x1f8] sm:$0xff] }
  0x17   :  { %297 = vst [vmem:[%s777_s1 + $0xa8] sm:$0xff] %v296_v21 }
  0x18   :  { %299 = vst [vmem:[%s777_s1 + $0xb0] sm:$0xff] %v298_v22 }
  0x19   :  { %301 = vst [vmem:[%s777_s1 + $0xb8] sm:$0xff] %v300_v23 }
  0x1a   :  { %303 = vst [vmem:[%s777_s1 + $0xc0] sm:$0xff] %v302_v24 }
  0x1b   :  { %305 = vst [vmem:[%s777_s1 + $0xc8] sm:$0xff] %v304_v25 }
  0x1c   :  { %307 = vst [vmem:[%s777_s1 + $0xd0] sm:$0xff] %v306_v26 }
  0x1d   :  { %309 = vst [vmem:[%s777_s1 + $0xd8] sm:$0xff] %v308_v27 }
  0x1e   :  { %311 = vst [vmem:[%s777_s1 + $0xe0] sm:$0xff] %v310_v28 }
  0x1f   :  { %313 = vst [vmem:[%s777_s1 + $0xe8] sm:$0xff] %v312_v29 }
  0x20   :  { %315 = vst [vmem:[%s777_s1 + $0xf0] sm:$0xff] %v314_v30 }
  0x21   :  { %317 = vst [vmem:[%s777_s1 + $0xf8] sm:$0xff] %v316_v31 }
  0x22   :  { %319 = vst [vmem:[%s777_s1 + $0x100] sm:$0xff] %v318_v32 }
  0x23   :  { %321 = vst [vmem:[%s777_s1 + $0x108] sm:$0xff] %v320_v33 }
  0x24   :  { %323 = vst [vmem:[%s777_s1 + $0x110] sm:$0xff] %v322_v34 }
  0x25   :  { %325 = vst [vmem:[%s777_s1 + $0x118] sm:$0xff] %v324_v35 }
  0x26   :  { %327 = vst [vmem:[%s777_s1 + $0x120] sm:$0xff] %v326_v36 }
  0x27   :  { %329 = vst [vmem:[%s777_s1 + $0x128] sm:$0xff] %v328_v37 }
  0x28   :  { %331 = vst [vmem:[%s777_s1 + $0x130] sm:$0xff] %v330_v38 }
  0x29   :  { %333 = vst [vmem:[%s777_s1 + $0x138] sm:$0xff] %v332_v39 }
  0x2a   :  { %335 = vst [vmem:[%s777_s1 + $0x140] sm:$0xff] %v334_v40 }
  0x2b   :  { %337 = vst [vmem:[%s777_s1 + $0x148] sm:$0xff] %v336_v41 }
  0x2c   :  { %339 = vst [vmem:[%s777_s1 + $0x150] sm:$0xff] %v338_v42 }
  0x2d   :  { %341 = vst [vmem:[%s777_s1 + $0x158] sm:$0xff] %v340_v43 }
  0x2e   :  { %343 = vst [vmem:[%s777_s1 + $0x160] sm:$0xff] %v342_v44 }
  0x2f   :  { %345 = vst [vmem:[%s777_s1 + $0x168] sm:$0xff] %v344_v45 }
  0x30   :  { %347 = vst [vmem:[%s777_s1 + $0x170] sm:$0xff] %v346_v46 }
  0x31   :  { %349 = vst [vmem:[%s777_s1 + $0x178] sm:$0xff] %v348_v47 }
  0x32   :  { %351 = vst [vmem:[%s777_s1 + $0x180] sm:$0xff] %v350_v48 }
  0x33   :  { %353 = vst [vmem:[%s777_s1 + $0x188] sm:$0xff] %v352_v49 }
  0x34   :  { %355 = vst [vmem:[%s777_s1 + $0x190] sm:$0xff] %v354_v50 }
  0x35   :  { %357 = vst [vmem:[%s777_s1 + $0x198] sm:$0xff] %v356_v51 }
  0x36   :  { %359 = vst [vmem:[%s777_s1 + $0x1a0] sm:$0xff] %v358_v52 }
  0x37   :  { %361 = vst [vmem:[%s777_s1 + $0x1a8] sm:$0xff] %v360_v53 }
  0x38   :  { %363 = vst [vmem:[%s777_s1 + $0x1b0] sm:$0xff] %v362_v54 }
  0x39   :  { %365 = vst [vmem:[%s777_s1 + $0x1b8] sm:$0xff] %v364_v55 }
  0x3a   :  { %367 = vst [vmem:[%s777_s1 + $0x1c0] sm:$0xff] %v366_v56 }
  0x3b   :  { %369 = vst [vmem:[%s777_s1 + $0x1c8] sm:$0xff] %v368_v57 }
  0x3c   :  { %371 = vst [vmem:[%s777_s1 + $0x1d0] sm:$0xff] %v370_v58 }
  0x3d   :  { %373 = vst [vmem:[%s777_s1 + $0x1d8] sm:$0xff] %v372_v59 }
  0x3e   :  { %375 = vst [vmem:[%s777_s1 + $0x1e0] sm:$0xff] %v374_v60 }
  0x3f   :  { %377 = vst [vmem:[%s777_s1 + $0x1e8] sm:$0xff] %v376_v61 }
  0x40   :  { %379 = vst [vmem:[%s777_s1 + $0x1f0] sm:$0xff] %v378_v62 }
  0x41   :  { %381 = vst [vmem:[%s777_s1 + $0x1f8] sm:$0xff] %v380_v63 }

// kernel: custom-call.1
= control target key start
LH: loop header
LB: loop body
LE: loop exit
PB: predicated region body
PF: predicated region fallthrough
CT: control target
= control target key end

     0   :  { %s841_s0 = inlined_call_operand.vmem [shape: c64[2,4,16,16], index: 0, kind: input, shape index: {}]   ;;  %s842_s1 = inlined_call_operand.vmem [shape: f32[2,4,16,16], index: 1, kind: output, shape index: {}]  }
   0x1   :  { %v320_v0 = vld [vmem:[%s841_s0 + $0x200] sm:$0xff]  ;;  %v321_v1 = vld [vmem:[%s841_s0 + $0x208] sm:$0xff]  ;;  %v323_v2 = vld [vmem:[%s841_s0 + $0x210] sm:$0xff] }
   0x2   :  { %4 = vst [vmem:[%s842_s1] sm:$0xff] %v320_v0  ;;  %v325_v3 = vld [vmem:[%s841_s0 + $0x218] sm:$0xff]  ;;  %v327_v4 = vld [vmem:[%s841_s0 + $0x220] sm:$0xff]  ;;  %v329_v5 = vld [vmem:[%s841_s0 + $0x228] sm:$0xff] }
   0x3   :  { %322 = vst [vmem:[%s842_s1 + $0x8] sm:$0xff] %v321_v1  ;;  %v331_v6 = vld [vmem:[%s841_s0 + $0x230] sm:$0xff]  ;;  %v333_v7 = vld [vmem:[%s841_s0 + $0x238] sm:$0xff]  ;;  %v335_v8 = vld [vmem:[%s841_s0 + $0x240] sm:$0xff] }
   0x4   :  { %324 = vst [vmem:[%s842_s1 + $0x10] sm:$0xff] %v323_v2  ;;  %v337_v9 = vld [vmem:[%s841_s0 + $0x248] sm:$0xff]  ;;  %v339_v10 = vld [vmem:[%s841_s0 + $0x250] sm:$0xff]  ;;  %v341_v11 = vld [vmem:[%s841_s0 + $0x258] sm:$0xff] }
   0x5   :  { %326 = vst [vmem:[%s842_s1 + $0x18] sm:$0xff] %v325_v3  ;;  %v343_v12 = vld [vmem:[%s841_s0 + $0x260] sm:$0xff]  ;;  %v345_v13 = vld [vmem:[%s841_s0 + $0x268] sm:$0xff]  ;;  %v347_v14 = vld [vmem:[%s841_s0 + $0x270] sm:$0xff] }
   0x6   :  { %328 = vst [vmem:[%s842_s1 + $0x20] sm:$0xff] %v327_v4  ;;  %v349_v15 = vld [vmem:[%s841_s0 + $0x278] sm:$0xff]  ;;  %v351_v16 = vld [vmem:[%s841_s0 + $0x280] sm:$0xff]  ;;  %v353_v17 = vld [vmem:[%s841_s0 + $0x288] sm:$0xff] }
   0x7   :  { %330 = vst [vmem:[%s842_s1 + $0x28] sm:$0xff] %v329_v5  ;;  %v355_v18 = vld [vmem:[%s841_s0 + $0x290] sm:$0xff]  ;;  %v357_v19 = vld [vmem:[%s841_s0 + $0x298] sm:$0xff]  ;;  %v359_v20 = vld [vmem:[%s841_s0 + $0x2a0] sm:$0xff] }
   0x8   :  { %332 = vst [vmem:[%s842_s1 + $0x30] sm:$0xff] %v331_v6  ;;  %v361_v21 = vld [vmem:[%s841_s0 + $0x2a8] sm:$0xff]  ;;  %v363_v22 = vld [vmem:[%s841_s0 + $0x2b0] sm:$0xff]  ;;  %v365_v23 = vld [vmem:[%s841_s0 + $0x2b8] sm:$0xff] }
   0x9   :  { %334 = vst [vmem:[%s842_s1 + $0x38] sm:$0xff] %v333_v7  ;;  %v367_v24 = vld [vmem:[%s841_s0 + $0x2c0] sm:$0xff]  ;;  %v369_v25 = vld [vmem:[%s841_s0 + $0x2c8] sm:$0xff]  ;;  %v371_v26 = vld [vmem:[%s841_s0 + $0x2d0] sm:$0xff] }
   0xa   :  { %336 = vst [vmem:[%s842_s1 + $0x40] sm:$0xff] %v335_v8  ;;  %v373_v27 = vld [vmem:[%s841_s0 + $0x2d8] sm:$0xff]  ;;  %v375_v28 = vld [vmem:[%s841_s0 + $0x2e0] sm:$0xff]  ;;  %v377_v29 = vld [vmem:[%s841_s0 + $0x2e8] sm:$0xff] }
   0xb   :  { %338 = vst [vmem:[%s842_s1 + $0x48] sm:$0xff] %v337_v9  ;;  %v379_v30 = vld [vmem:[%s841_s0 + $0x2f0] sm:$0xff]  ;;  %v381_v31 = vld [vmem:[%s841_s0 + $0x2f8] sm:$0xff]  ;;  %v383_v32 = vld [vmem:[%s841_s0 + $0x300] sm:$0xff] }
   0xc   :  { %340 = vst [vmem:[%s842_s1 + $0x50] sm:$0xff] %v339_v10  ;;  %v385_v33 = vld [vmem:[%s841_s0 + $0x308] sm:$0xff]  ;;  %v387_v34 = vld [vmem:[%s841_s0 + $0x310] sm:$0xff]  ;;  %v389_v35 = vld [vmem:[%s841_s0 + $0x318] sm:$0xff] }
   0xd   :  { %342 = vst [vmem:[%s842_s1 + $0x58] sm:$0xff] %v341_v11  ;;  %v391_v36 = vld [vmem:[%s841_s0 + $0x320] sm:$0xff]  ;;  %v393_v37 = vld [vmem:[%s841_s0 + $0x328] sm:$0xff]  ;;  %v395_v38 = vld [vmem:[%s841_s0 + $0x330] sm:$0xff] }
   0xe   :  { %344 = vst [vmem:[%s842_s1 + $0x60] sm:$0xff] %v343_v12  ;;  %v397_v39 = vld [vmem:[%s841_s0 + $0x338] sm:$0xff]  ;;  %v399_v40 = vld [vmem:[%s841_s0 + $0x340] sm:$0xff]  ;;  %v401_v41 = vld [vmem:[%s841_s0 + $0x348] sm:$0xff] }
   0xf   :  { %346 = vst [vmem:[%s842_s1 + $0x68] sm:$0xff] %v345_v13  ;;  %v403_v42 = vld [vmem:[%s841_s0 + $0x350] sm:$0xff]  ;;  %v405_v43 = vld [vmem:[%s841_s0 + $0x358] sm:$0xff]  ;;  %v407_v44 = vld [vmem:[%s841_s0 + $0x360] sm:$0xff] }
  0x10   :  { %348 = vst [vmem:[%s842_s1 + $0x70] sm:$0xff] %v347_v14  ;;  %v409_v45 = vld [vmem:[%s841_s0 + $0x368] sm:$0xff]  ;;  %v411_v46 = vld [vmem:[%s841_s0 + $0x370] sm:$0xff]  ;;  %v413_v47 = vld [vmem:[%s841_s0 + $0x378] sm:$0xff] }
  0x11   :  { %350 = vst [vmem:[%s842_s1 + $0x78] sm:$0xff] %v349_v15  ;;  %v415_v48 = vld [vmem:[%s841_s0 + $0x380] sm:$0xff]  ;;  %v417_v49 = vld [vmem:[%s841_s0 + $0x388] sm:$0xff]  ;;  %v419_v50 = vld [vmem:[%s841_s0 + $0x390] sm:$0xff] }
  0x12   :  { %352 = vst [vmem:[%s842_s1 + $0x80] sm:$0xff] %v351_v16  ;;  %v421_v51 = vld [vmem:[%s841_s0 + $0x398] sm:$0xff]  ;;  %v423_v52 = vld [vmem:[%s841_s0 + $0x3a0] sm:$0xff]  ;;  %v425_v53 = vld [vmem:[%s841_s0 + $0x3a8] sm:$0xff] }
  0x13   :  { %354 = vst [vmem:[%s842_s1 + $0x88] sm:$0xff] %v353_v17  ;;  %v427_v54 = vld [vmem:[%s841_s0 + $0x3b0] sm:$0xff]  ;;  %v429_v55 = vld [vmem:[%s841_s0 + $0x3b8] sm:$0xff]  ;;  %v431_v56 = vld [vmem:[%s841_s0 + $0x3c0] sm:$0xff] }
  0x14   :  { %356 = vst [vmem:[%s842_s1 + $0x90] sm:$0xff] %v355_v18  ;;  %v433_v57 = vld [vmem:[%s841_s0 + $0x3c8] sm:$0xff]  ;;  %v435_v58 = vld [vmem:[%s841_s0 + $0x3d0] sm:$0xff]  ;;  %v437_v59 = vld [vmem:[%s841_s0 + $0x3d8] sm:$0xff] }
  0x15   :  { %358 = vst [vmem:[%s842_s1 + $0x98] sm:$0xff] %v357_v19  ;;  %v439_v60 = vld [vmem:[%s841_s0 + $0x3e0] sm:$0xff]  ;;  %v441_v61 = vld [vmem:[%s841_s0 + $0x3e8] sm:$0xff]  ;;  %v443_v62 = vld [vmem:[%s841_s0 + $0x3f0] sm:$0xff] }
  0x16   :  { %360 = vst [vmem:[%s842_s1 + $0xa0] sm:$0xff] %v359_v20  ;;  %v445_v63 = vld [vmem:[%s841_s0 + $0x3f8] sm:$0xff] }
  0x17   :  { %362 = vst [vmem:[%s842_s1 + $0xa8] sm:$0xff] %v361_v21 }
  0x18   :  { %364 = vst [vmem:[%s842_s1 + $0xb0] sm:$0xff] %v363_v22 }
  0x19   :  { %366 = vst [vmem:[%s842_s1 + $0xb8] sm:$0xff] %v365_v23 }
  0x1a   :  { %368 = vst [vmem:[%s842_s1 + $0xc0] sm:$0xff] %v367_v24 }
  0x1b   :  { %370 = vst [vmem:[%s842_s1 + $0xc8] sm:$0xff] %v369_v25 }
  0x1c   :  { %372 = vst [vmem:[%s842_s1 + $0xd0] sm:$0xff] %v371_v26 }
  0x1d   :  { %374 = vst [vmem:[%s842_s1 + $0xd8] sm:$0xff] %v373_v27 }
  0x1e   :  { %376 = vst [vmem:[%s842_s1 + $0xe0] sm:$0xff] %v375_v28 }
  0x1f   :  { %378 = vst [vmem:[%s842_s1 + $0xe8] sm:$0xff] %v377_v29 }
  0x20   :  { %380 = vst [vmem:[%s842_s1 + $0xf0] sm:$0xff] %v379_v30 }
  0x21   :  { %382 = vst [vmem:[%s842_s1 + $0xf8] sm:$0xff] %v381_v31 }
  0x22   :  { %384 = vst [vmem:[%s842_s1 + $0x100] sm:$0xff] %v383_v32 }
  0x23   :  { %386 = vst [vmem:[%s842_s1 + $0x108] sm:$0xff] %v385_v33 }
  0x24   :  { %388 = vst [vmem:[%s842_s1 + $0x110] sm:$0xff] %v387_v34 }
  0x25   :  { %390 = vst [vmem:[%s842_s1 + $0x118] sm:$0xff] %v389_v35 }
  0x26   :  { %392 = vst [vmem:[%s842_s1 + $0x120] sm:$0xff] %v391_v36 }
  0x27   :  { %394 = vst [vmem:[%s842_s1 + $0x128] sm:$0xff] %v393_v37 }
  0x28   :  { %396 = vst [vmem:[%s842_s1 + $0x130] sm:$0xff] %v395_v38 }
  0x29   :  { %398 = vst [vmem:[%s842_s1 + $0x138] sm:$0xff] %v397_v39 }
  0x2a   :  { %400 = vst [vmem:[%s842_s1 + $0x140] sm:$0xff] %v399_v40 }
  0x2b   :  { %402 = vst [vmem:[%s842_s1 + $0x148] sm:$0xff] %v401_v41 }
  0x2c   :  { %404 = vst [vmem:[%s842_s1 + $0x150] sm:$0xff] %v403_v42 }
  0x2d   :  { %406 = vst [vmem:[%s842_s1 + $0x158] sm:$0xff] %v405_v43 }
  0x2e   :  { %408 = vst [vmem:[%s842_s1 + $0x160] sm:$0xff] %v407_v44 }
  0x2f   :  { %410 = vst [vmem:[%s842_s1 + $0x168] sm:$0xff] %v409_v45 }
  0x30   :  { %412 = vst [vmem:[%s842_s1 + $0x170] sm:$0xff] %v411_v46 }
  0x31   :  { %414 = vst [vmem:[%s842_s1 + $0x178] sm:$0xff] %v413_v47 }
  0x32   :  { %416 = vst [vmem:[%s842_s1 + $0x180] sm:$0xff] %v415_v48 }
  0x33   :  { %418 = vst [vmem:[%s842_s1 + $0x188] sm:$0xff] %v417_v49 }
  0x34   :  { %420 = vst [vmem:[%s842_s1 + $0x190] sm:$0xff] %v419_v50 }
  0x35   :  { %422 = vst [vmem:[%s842_s1 + $0x198] sm:$0xff] %v421_v51 }
  0x36   :  { %424 = vst [vmem:[%s842_s1 + $0x1a0] sm:$0xff] %v423_v52 }
  0x37   :  { %426 = vst [vmem:[%s842_s1 + $0x1a8] sm:$0xff] %v425_v53 }
  0x38   :  { %428 = vst [vmem:[%s842_s1 + $0x1b0] sm:$0xff] %v427_v54 }
  0x39   :  { %430 = vst [vmem:[%s842_s1 + $0x1b8] sm:$0xff] %v429_v55 }
  0x3a   :  { %432 = vst [vmem:[%s842_s1 + $0x1c0] sm:$0xff] %v431_v56 }
  0x3b   :  { %434 = vst [vmem:[%s842_s1 + $0x1c8] sm:$0xff] %v433_v57 }
  0x3c   :  { %436 = vst [vmem:[%s842_s1 + $0x1d0] sm:$0xff] %v435_v58 }
  0x3d   :  { %438 = vst [vmem:[%s842_s1 + $0x1d8] sm:$0xff] %v437_v59 }
  0x3e   :  { %440 = vst [vmem:[%s842_s1 + $0x1e0] sm:$0xff] %v439_v60 }
  0x3f   :  { %442 = vst [vmem:[%s842_s1 + $0x1e8] sm:$0xff] %v441_v61 }
  0x40   :  { %444 = vst [vmem:[%s842_s1 + $0x1f0] sm:$0xff] %v443_v62 }
  0x41   :  { %446 = vst [vmem:[%s842_s1 + $0x1f8] sm:$0xff] %v445_v63 }

// kernel: custom-call.3
= control target key start
LH: loop header
LB: loop body
LE: loop exit
PB: predicated region body
PF: predicated region fallthrough
CT: control target
= control target key end

     0   :  { %s56_s0 = inlined_call_operand.hbm [shape: c64[8,4,3,3], index: 0, kind: input, shape index: {}]   ;;  %s57_s1 = inlined_call_operand.vmem [shape: f32[8,4,3,3], index: 1, kind: output, shape index: {}]  }
   0x1   :  { %s2_s8 = scalar_lea.hbm %s56_s0, 36 }
   0x2   :  { %3 = vsyncpa [#allocation0], 0  ;;  %s5_s9 = sshll.u32 %s2_s8, 4  ;;  %s7_s12 = sshll.u32 %s57_s1, 4  ;;  %s6_s9 = int_to_ptr.hbm [resolvable:$true] %s5_s9  ;;  %s8_s12 = int_to_ptr.vmem [resolvable:$true] %s7_s12 }
   0x3   :  { %10 = dma.hbm_to_vmem [thread:$0]  %s6_s9, 576, %s8_s12, [#allocation0] }
   0x4   :  { %38 = dma.done.wait [#allocation0], 576  }
   0x5   :  { %39 = vsyncadd [#allocation0], 4294966720 }
   0x6   :  { %13 = vsyncpa [#allocation0], 1 }

// kernel: neg.6
= control target key start
LH: loop header
LB: loop body
LE: loop exit
PB: predicated region body
PF: predicated region fallthrough
CT: control target
= control target key end

     0   :  { %s152_s0 = inlined_call_operand.vmem [shape: f32[9,4,8], index: 0, kind: input, shape index: {}]   ;;  %s153_s1 = inlined_call_operand.vmem [shape: f32[9,4,8], index: 1, kind: output, shape index: {}]  }
   0x1   :  { %v2_v0 = vld [vmem:[%s152_s0] sm:$0xf]  ;;  %v72_v1 = vld [vmem:[%s152_s0 + $0x4] sm:$0xf]  ;;  %v74_v2 = vld [vmem:[%s152_s0 + $0x8] sm:$0xf] }
   0x2   :  { %v5_v3 = vxor.u32 2147483648, %v2_v0  ;;  %v12_v4 = vxor.u32 2147483648, %v72_v1  ;;  %v20_v5 = vxor.u32 2147483648, %v74_v2  ;;  %v76_v6 = vld [vmem:[%s152_s0 + $0xc] sm:$0xf] }
   0x3   :  { %v28_v7 = vxor.u32 2147483648, %v76_v6  ;;  %v78_v8 = vld [vmem:[%s152_s0 + $0x10] sm:$0xf]  ;;  %v80_v9 = vld [vmem:[%s152_s0 + $0x14] sm:$0xf] }
   0x4   :  { %7 = vst [vmem:[%s153_s1] sm:$0xf] %v5_v3  ;;  %v36_v10 = vxor.u32 2147483648, %v78_v8  ;;  %v82_v11 = vld [vmem:[%s152_s0 + $0x18] sm:$0xf]  ;;  %v44_v12 = vxor.u32 2147483648, %v80_v9 }
   0x5   :  { %73 = vst [vmem:[%s153_s1 + $0x4] sm:$0xf] %v12_v4  ;;  %v84_v13 = vld [vmem:[%s152_s0 + $0x1c] sm:$0xf]  ;;  %v52_v14 = vxor.u32 2147483648, %v82_v11 }
   0x6   :  { %75 = vst [vmem:[%s153_s1 + $0x8] sm:$0xf] %v20_v5  ;;  %v86_v15 = vld [vmem:[%s152_s0 + $0x20] sm:$0xf]  ;;  %v60_v16 = vxor.u32 2147483648, %v84_v13 }
   0x7   :  { %77 = vst [vmem:[%s153_s1 + $0xc] sm:$0xf] %v28_v7  ;;  %v68_v17 = vxor.u32 2147483648, %v86_v15 }
   0x8   :  { %79 = vst [vmem:[%s153_s1 + $0x10] sm:$0xf] %v36_v10 }
   0x9   :  { %81 = vst [vmem:[%s153_s1 + $0x14] sm:$0xf] %v44_v12 }
   0xa   :  { %83 = vst [vmem:[%s153_s1 + $0x18] sm:$0xf] %v52_v14 }
   0xb   :  { %85 = vst [vmem:[%s153_s1 + $0x1c] sm:$0xf] %v60_v16 }
   0xc   :  { %87 = vst [vmem:[%s153_s1 + $0x20] sm:$0xf] %v68_v17 }

// kernel: custom-call.2
= control target key start
LH: loop header
LB: loop body
LE: loop exit
PB: predicated region body
PF: predicated region fallthrough
CT: control target
= control target key end

     0   :  { %2 = vsyncpa [#allocation0], 0  ;;  %s55_s0 = inlined_call_operand.hbm [shape: c64[8,4,3,3], index: 0, kind: input, shape index: {}]   ;;  %s56_s1 = inlined_call_operand.vmem [shape: f32[8,4,3,3], index: 1, kind: output, shape index: {}]  }
   0x1   :  { %s4_s8 = sshll.u32 %s55_s0, 4  ;;  %s6_s11 = sshll.u32 %s56_s1, 4  ;;  %s5_s8 = int_to_ptr.hbm [resolvable:$true] %s4_s8  ;;  %s7_s11 = int_to_ptr.vmem [resolvable:$true] %s6_s11 }
   0x2   :  { %9 = dma.hbm_to_vmem [thread:$0]  %s5_s8, 576, %s7_s11, [#allocation0] }
   0x3   :  { %37 = dma.done.wait [#allocation0], 576  }
   0x4   :  { %38 = vsyncadd [#allocation0], 4294966720 }
   0x5   :  { %12 = vsyncpa [#allocation0], 1 }

// kernel: custom-call.5
= control target key start
LH: loop header
LB: loop body
LE: loop exit
PB: predicated region body
PF: predicated region fallthrough
CT: control target
= control target key end

     0   :  { %s56_s0 = inlined_call_operand.hbm [shape: c64[8,8,3,3], index: 0, kind: input, shape index: {}]   ;;  %s57_s1 = inlined_call_operand.vmem [shape: f32[8,8,3,3], index: 1, kind: output, shape index: {}]  }
   0x1   :  { %s2_s8 = scalar_lea.hbm %s56_s0, 72 }
   0x2   :  { %3 = vsyncpa [#allocation0], 0  ;;  %s5_s9 = sshll.u32 %s2_s8, 4  ;;  %s7_s12 = sshll.u32 %s57_s1, 4  ;;  %s6_s9 = int_to_ptr.hbm [resolvable:$true] %s5_s9  ;;  %s8_s12 = int_to_ptr.vmem [resolvable:$true] %s7_s12 }
   0x3   :  { %10 = dma.hbm_to_vmem [thread:$0]  %s6_s9, 1152, %s8_s12, [#allocation0] }
   0x4   :  { %38 = dma.done.wait [#allocation0], 1152  }
   0x5   :  { %39 = vsyncadd [#allocation0], 4294966144 }
   0x6   :  { %13 = vsyncpa [#allocation0], 1 }

// kernel: neg.7
= control target key start
LH: loop header
LB: loop body
LE: loop exit
PB: predicated region body
PF: predicated region fallthrough
CT: control target
= control target key end

     0   :  { %s136_s0 = inlined_call_operand.vmem [shape: f32[9,8,8], index: 0, kind: input, shape index: {}]   ;;  %s137_s1 = inlined_call_operand.vmem [shape: f32[9,8,8], index: 1, kind: output, shape index: {}]  }
   0x1   :  { %v2_v0 = vld [vmem:[%s136_s0] sm:$0xff]  ;;  %v64_v1 = vld [vmem:[%s136_s0 + $0x8] sm:$0xff]  ;;  %v66_v2 = vld [vmem:[%s136_s0 + $0x10] sm:$0xff] }
   0x2   :  { %v5_v3 = vxor.u32 2147483648, %v2_v0  ;;  %v12_v4 = vxor.u32 2147483648, %v64_v1  ;;  %v20_v5 = vxor.u32 2147483648, %v66_v2  ;;  %v68_v6 = vld [vmem:[%s136_s0 + $0x18] sm:$0xff]  ;;  %v70_v7 = vld [vmem:[%s136_s0 + $0x20] sm:$0xff]  ;;  %v72_v8 = vld [vmem:[%s136_s0 + $0x28] sm:$0xff] }
   0x3   :  { %v28_v9 = vxor.u32 2147483648, %v68_v6  ;;  %v74_v10 = vld [vmem:[%s136_s0 + $0x30] sm:$0xff]  ;;  %v36_v11 = vxor.u32 2147483648, %v70_v7  ;;  %v76_v12 = vld [vmem:[%s136_s0 + $0x38] sm:$0xff]  ;;  %v44_v13 = vxor.u32 2147483648, %v72_v8 }
   0x4   :  { %7 = vst [vmem:[%s137_s1] sm:$0xff] %v5_v3  ;;  %v52_v14 = vxor.u32 2147483648, %v74_v10  ;;  %v60_v15 = vxor.u32 2147483648, %v76_v12 }
   0x5   :  { %65 = vst [vmem:[%s137_s1 + $0x8] sm:$0xff] %v12_v4 }
   0x6   :  { %67 = vst [vmem:[%s137_s1 + $0x10] sm:$0xff] %v20_v5 }
   0x7   :  { %69 = vst [vmem:[%s137_s1 + $0x18] sm:$0xff] %v28_v9 }
   0x8   :  { %71 = vst [vmem:[%s137_s1 + $0x20] sm:$0xff] %v36_v11 }
   0x9   :  { %73 = vst [vmem:[%s137_s1 + $0x28] sm:$0xff] %v44_v13 }
   0xa   :  { %75 = vst [vmem:[%s137_s1 + $0x30] sm:$0xff] %v52_v14 }
   0xb   :  { %77 = vst [vmem:[%s137_s1 + $0x38] sm:$0xff] %v60_v15 }

// kernel: custom-call.4
= control target key start
LH: loop header
LB: loop body
LE: loop exit
PB: predicated region body
PF: predicated region fallthrough
CT: control target
= control target key end

     0   :  { %2 = vsyncpa [#allocation0], 0  ;;  %s55_s0 = inlined_call_operand.hbm [shape: c64[8,8,3,3], index: 0, kind: input, shape index: {}]   ;;  %s56_s1 = inlined_call_operand.vmem [shape: f32[8,8,3,3], index: 1, kind: output, shape index: {}]  }
   0x1   :  { %s4_s8 = sshll.u32 %s55_s0, 4  ;;  %s6_s11 = sshll.u32 %s56_s1, 4  ;;  %s5_s8 = int_to_ptr.hbm [resolvable:$true] %s4_s8  ;;  %s7_s11 = int_to_ptr.vmem [resolvable:$true] %s6_s11 }
   0x2   :  { %9 = dma.hbm_to_vmem [thread:$0]  %s5_s8, 1152, %s7_s11, [#allocation0] }
   0x3   :  { %37 = dma.done.wait [#allocation0], 1152  }
   0x4   :  { %38 = vsyncadd [#allocation0], 4294966144 }
   0x5   :  { %12 = vsyncpa [#allocation0], 1 }

// kernel: custom-call.6
= control target key start
LH: loop header
LB: loop body
LE: loop exit
PB: predicated region body
PF: predicated region fallthrough
CT: control target
= control target key end

     0   :  { %s105_s0 = inlined_call_operand.vmem [shape: f32[2,8,16,16], index: 0, kind: input, shape index: {}]   ;;  %s106_s1 = inlined_call_operand.vmem [shape: f32[2,8,16,16], index: 1, kind: input, shape index: {}]   ;;  %s107_s2 = inlined_call_operand.hbm [shape: c64[2,8,16,16], index: 2, kind: output, shape index: {}]  }
   0x1   :  { %s3_s11 = scalar_lea.hbm %s107_s2, 256 }
   0x2   :  { %4 = vsyncpa [#allocation0], 0  ;;  %s6_s14 = sshll.u32 %s105_s0, 4  ;;  %s8_s17 = sshll.u32 %s107_s2, 4  ;;  %s7_s14 = int_to_ptr.vmem [resolvable:$true] %s6_s14  ;;  %s9_s17 = int_to_ptr.hbm [resolvable:$true] %s8_s17 }
   0x3   :  { %11 = dma.vmem_to_hbm [thread:$0]  %s7_s14, 4096, %s9_s17, [#allocation0] }
   0x4   :  { %74 = dma.done.wait [#allocation0], 4096  }
   0x5   :  { %75 = vsyncadd [#allocation0], 4294963200 }
   0x6   :  { %14 = vsyncpa [#allocation0], 1 }
   0x7   :  { %15 = vsyncpa [#allocation1], 0  ;;  %s17_s20 = sshll.u32 %s106_s1, 4  ;;  %s19_s21 = sshll.u32 %s3_s11, 4  ;;  %s18_s20 = int_to_ptr.vmem [resolvable:$true] %s17_s20  ;;  %s20_s21 = int_to_ptr.hbm [resolvable:$true] %s19_s21 }
   0x8   :  { %22 = dma.vmem_to_hbm [thread:$0]  %s18_s20, 4096, %s20_s21, [#allocation1] }
   0x9   :  { %76 = dma.done.wait [#allocation1], 4096  }
   0xa   :  { %77 = vsyncadd [#allocation1], 4294963200 }
   0xb   :  { %25 = vsyncpa [#allocation1], 1 }

// kernel: complex_double_conv.5
= control target key start
LH: loop header
LB: loop body
LE: loop exit
PB: predicated region body
PF: predicated region fallthrough
CT: control target
= control target key end

     0   :  { %s549_s12 = smov 0   ;;  %s551_s13 = smov 0   ;;  %s756_s0 = inlined_call_operand.vmem [shape: f32[2,256,16], index: 0, kind: input, shape index: {}]   ;;  %s757_s1 = inlined_call_operand.vmem [shape: f32[1,16], index: 1, kind: input, shape index: {}]   ;;  %s758_s2 = inlined_call_operand.vmem [shape: f32[1,16], index: 2, kind: input, shape index: {}]   ;;  %s759_s3 = inlined_call_operand.vmem [shape: f32[2,256,16], index: 3, kind: output, shape index: {}]  }
   0x1   :  { %s553_s14 = smov 0  }
   0x2 LB: > { %s25_s15 = sadd.s32 1, %s523_s13  ;;  %p470_p0 = scmp.ge.s32.totalorder %s527_s14, 1  ;;  %s527_s14 = sphi %s553_s14, %s13_s14   ;;  %s523_s13 = sphi %s551_s13, %s761_s13   ;;  %s519_s12 = sphi %s549_s12, %s760_s12  }
   0x3   : > { %p27_p1 = scmp.ge.s32.totalorder %s25_s15, 2  ;;  %p158_p2 = scmp.lt.s32.totalorder %s527_s14, 3 }
   0x5   : > { %s763_s15 = smov (%p27_p1, %s25_s15), 0  ;;  %p159_p3 = pnand %p470_p0, %p158_p2 }
   0x6   : > { %p191_p4 = scmp.lt.s32.totalorder (!%p159_p3), %s519_s12, 1 }
   0x7   : > { %162 = sbr.rel (%p159_p3) target bundleno = 54 (0x36), region = 32 }
   0xc   : > { %s765_s12 = smov (!%p191_p4, %s519_s12), 1  ;;  %v570_v0 = vld [vmem:[%s757_s1] ss:$0 sm:$0xff]  ;;  %vm346_vm0 = vcmask 130048  }
   0xd   : > { %s477_s18 = sshll.u32 %s765_s12, 8  ;;  %v580_v1 = vld [vmem:[%s758_s2] ss:$0 sm:$0xff] }
   0xe   : > { %s575_s21 = scalar_lea.vmem %s756_s0, %s477_s18  ;;  %s603_s26 = scalar_lea.vmem %s759_s3, %s477_s18 }
   0xf   : > { %v210_v2 = vld [vmem:[%s575_s21] sm:$0xff]  ;;  %v211_v3 = vld [vmem:[%s575_s21 + $0x8] sm:$0xff]  ;;  %v212_v4 = vld [vmem:[%s575_s21 + $0x10] sm:$0xff] }
  0x10   : > { %v246_v5 = vmul.f32 %v570_v0, %v210_v2  ;;  %v247_v6 = vmul.f32 %v570_v0, %v211_v3  ;;  %v248_v7 = vmul.f32 %v570_v0, %v212_v4  ;;  %v213_v8 = vld [vmem:[%s575_s21 + $0x18] sm:$0xff]  ;;  %v214_v9 = vld [vmem:[%s575_s21 + $0x20] sm:$0xff]  ;;  %v215_v10 = vld [vmem:[%s575_s21 + $0x28] sm:$0xff] }
  0x11   : > { %v249_v11 = vmul.f32 %v570_v0, %v213_v8  ;;  %v250_v12 = vmul.f32 %v570_v0, %v214_v9  ;;  %v251_v13 = vmul.f32 %v570_v0, %v215_v10  ;;  %v216_v14 = vld [vmem:[%s575_s21 + $0x30] sm:$0xff]  ;;  %v217_v15 = vld [vmem:[%s575_s21 + $0x38] sm:$0xff]  ;;  %v218_v24 = vld [vmem:[%s575_s21 + $0x40] sm:$0xff] }
  0x12   : > { %v282_v16 = vadd.f32 %v580_v1, %v246_v5  ;;  %v283_v17 = vadd.f32 %v580_v1, %v247_v6  ;;  %v284_v18 = vadd.f32 %v580_v1, %v248_v7  ;;  %v252_v19 = vmul.f32 %v570_v0, %v216_v14  ;;  %v219_v25 = vld [vmem:[%s575_s21 + $0x48] sm:$0xff]  ;;  %v220_v26 = vld [vmem:[%s575_s21 + $0x50] sm:$0xff]  ;;  %v221_v31 = vld [vmem:[%s575_s21 + $0x58] sm:$0xff] }
  0x13   : > { %v285_v20 = vadd.f32 %v580_v1, %v249_v11  ;;  %v286_v21 = vadd.f32 %v580_v1, %v250_v12  ;;  %v287_v22 = vadd.f32 %v580_v1, %v251_v13  ;;  %v253_v23 = vmul.f32 %v570_v0, %v217_v15  ;;  %v222_v32 = vld [vmem:[%s575_s21 + $0x60] sm:$0xff]  ;;  %v223_v33 = vld [vmem:[%s575_s21 + $0x68] sm:$0xff]  ;;  %v224_v37 = vld [vmem:[%s575_s21 + $0x70] sm:$0xff] }
  0x14   : > { %v314_v27 = vmax.f32 %v282_v16, 0.0  ;;  %v315_v28 = vmax.f32 %v283_v17, 0.0  ;;  %v316_v29 = vmax.f32 %v284_v18, 0.0  ;;  %v288_v30 = vadd.f32 %v580_v1, %v252_v19  ;;  %v225_v42 = vld [vmem:[%s575_s21 + $0x78] sm:$0xff]  ;;  %v226_v54 = vld [vmem:[%s575_s21 + $0x80] sm:$0xff]  ;;  %v227_v55 = vld [vmem:[%s575_s21 + $0x88] sm:$0xff] }
  0x15   : > { %v317_v34 = vmax.f32 %v285_v20, 0.0  ;;  %v318_v35 = vmax.f32 %v286_v21, 0.0  ;;  %v289_v36 = vadd.f32 %v580_v1, %v253_v23  ;;  %v319_v38 = vmax.f32 %v287_v22, 0.0  ;;  %v228_v56 = vld [vmem:[%s575_s21 + $0x90] sm:$0xff]  ;;  %v229_v59 = vld [vmem:[%s575_s21 + $0x98] sm:$0xff]  ;;  %v230_v63 = vld [vmem:[%s575_s21 + $0xa0] sm:$0xff] }
  0x16   : > { %347 = vst.msk [vmem:[%s603_s26] sm:$0xff] %vm346_vm0, %v314_v27  ;;  %v254_v39 = vmul.f32 %v570_v0, %v218_v24  ;;  %v255_v40 = vmul.f32 %v570_v0, %v219_v25  ;;  %v256_v41 = vmul.f32 %v570_v0, %v220_v26  ;;  %v320_v43 = vmax.f32 %v288_v30, 0.0  ;;  %v231_v6 = vld [vmem:[%s575_s21 + $0xa8] sm:$0xff]  ;;  %v232_v10 = vld [vmem:[%s575_s21 + $0xb0] sm:$0xff]  ;;  %v233_v14 = vld [vmem:[%s575_s21 + $0xb8] sm:$0xff] }
  0x17   : > { %348 = vst.msk [vmem:[%s603_s26 + $0x8] sm:$0xff] %vm346_vm0, %v315_v28  ;;  %v257_v44 = vmul.f32 %v570_v0, %v221_v31  ;;  %v258_v45 = vmul.f32 %v570_v0, %v222_v32  ;;  %v259_v46 = vmul.f32 %v570_v0, %v223_v33  ;;  %v260_v50 = vmul.f32 %v570_v0, %v224_v37  ;;  %v234_v18 = vld [vmem:[%s575_s21 + $0xc0] sm:$0xff]  ;;  %v235_v22 = vld [vmem:[%s575_s21 + $0xc8] sm:$0xff]  ;;  %v236_v26 = vld [vmem:[%s575_s21 + $0xd0] sm:$0xff] }
  0x18   : > { %349 = vst.msk [vmem:[%s603_s26 + $0x10] sm:$0xff] %vm346_vm0, %v316_v29  ;;  %v290_v47 = vadd.f32 %v580_v1, %v254_v39  ;;  %v291_v48 = vadd.f32 %v580_v1, %v255_v40  ;;  %v292_v49 = vadd.f32 %v580_v1, %v256_v41  ;;  %v321_v51 = vmax.f32 %v289_v36, 0.0  ;;  %v237_v30 = vld [vmem:[%s575_s21 + $0xd8] sm:$0xff] }
  0x19   : > { %350 = vst.msk [vmem:[%s603_s26 + $0x18] sm:$0xff] %vm346_vm0, %v317_v34  ;;  %v293_v52 = vadd.f32 %v580_v1, %v257_v44  ;;  %v261_v53 = vmul.f32 %v570_v0, %v225_v42  ;;  %v294_v58 = vadd.f32 %v580_v1, %v258_v45  ;;  %v295_v62 = vadd.f32 %v580_v1, %v259_v46  ;;  %v238_v34 = vld [vmem:[%s575_s21 + $0xe0] sm:$0xff]  ;;  %v240_v42 = vld [vmem:[%s575_s21 + $0xf0] sm:$0xff]  ;;  %v241_v46 = vld [vmem:[%s575_s21 + $0xf8] sm:$0xff] }
  0x1a   : > { %351 = vst.msk [vmem:[%s603_s26 + $0x20] sm:$0xff] %vm346_vm0, %v318_v35  ;;  %v322_v57 = vmax.f32 %v290_v47, 0.0  ;;  %v323_v60 = vmax.f32 %v291_v48, 0.0  ;;  %v324_v61 = vmax.f32 %v292_v49, 0.0  ;;  %v296_v2 = vadd.f32 %v580_v1, %v260_v50 }
  0x1b   : > { %352 = vst.msk [vmem:[%s603_s26 + $0x28] sm:$0xff] %vm346_vm0, %v319_v38  ;;  %v262_v3 = vmul.f32 %v570_v0, %v226_v54  ;;  %v263_v4 = vmul.f32 %v570_v0, %v227_v55  ;;  %v264_v5 = vmul.f32 %v570_v0, %v228_v56  ;;  %v325_v7 = vmax.f32 %v293_v52, 0.0  ;;  %v239_v38 = vld [vmem:[%s575_s21 + $0xe8] sm:$0xff] }
  0x1c   : > { %353 = vst.msk [vmem:[%s603_s26 + $0x30] sm:$0xff] %vm346_vm0, %v320_v43  ;;  %v297_v8 = vadd.f32 %v580_v1, %v261_v53  ;;  %v265_v9 = vmul.f32 %v570_v0, %v229_v59  ;;  %v326_v11 = vmax.f32 %v294_v58, 0.0  ;;  %v266_v13 = vmul.f32 %v570_v0, %v230_v63 }
  0x1d   : > { %354 = vst.msk [vmem:[%s603_s26 + $0x38] sm:$0xff] %vm346_vm0, %v321_v51  ;;  %v298_v12 = vadd.f32 %v580_v1, %v262_v3  ;;  %v327_v15 = vmax.f32 %v295_v62, 0.0  ;;  %v299_v16 = vadd.f32 %v580_v1, %v263_v4  ;;  %v267_v17 = vmul.f32 %v570_v0, %v231_v6 }
  0x1e   : > { %355 = vst.msk [vmem:[%s603_s26 + $0x40] sm:$0xff] %vm346_vm0, %v322_v57  ;;  %v328_v19 = vmax.f32 %v296_v2, 0.0  ;;  %v300_v20 = vadd.f32 %v580_v1, %v264_v5  ;;  %v268_v21 = vmul.f32 %v570_v0, %v232_v10  ;;  %v329_v23 = vmax.f32 %v297_v8, 0.0 }
  0x1f   : > { %356 = vst.msk [vmem:[%s603_s26 + $0x48] sm:$0xff] %vm346_vm0, %v323_v60  ;;  %v301_v24 = vadd.f32 %v580_v1, %v265_v9  ;;  %v269_v25 = vmul.f32 %v570_v0, %v233_v14  ;;  %v330_v27 = vmax.f32 %v298_v12, 0.0  ;;  %v302_v28 = vadd.f32 %v580_v1, %v266_v13 }
  0x20   : > { %357 = vst.msk [vmem:[%s603_s26 + $0x50] sm:$0xff] %vm346_vm0, %v324_v61  ;;  %v270_v29 = vmul.f32 %v570_v0, %v234_v18  ;;  %v331_v31 = vmax.f32 %v299_v16, 0.0  ;;  %v303_v32 = vadd.f32 %v580_v1, %v267_v17  ;;  %v271_v33 = vmul.f32 %v570_v0, %v235_v22 }
  0x21   : > { %358 = vst.msk [vmem:[%s603_s26 + $0x58] sm:$0xff] %vm346_vm0, %v325_v7  ;;  %v332_v35 = vmax.f32 %v300_v20, 0.0  ;;  %v304_v36 = vadd.f32 %v580_v1, %v268_v21  ;;  %v272_v37 = vmul.f32 %v570_v0, %v236_v26  ;;  %v333_v39 = vmax.f32 %v301_v24, 0.0 }
  0x22   : > { %359 = vst.msk [vmem:[%s603_s26 + $0x60] sm:$0xff] %vm346_vm0, %v326_v11  ;;  %v305_v40 = vadd.f32 %v580_v1, %v269_v25  ;;  %v273_v41 = vmul.f32 %v570_v0, %v237_v30  ;;  %v334_v43 = vmax.f32 %v302_v28, 0.0  ;;  %v306_v44 = vadd.f32 %v580_v1, %v270_v29 }
  0x23   : > { %360 = vst.msk [vmem:[%s603_s26 + $0x68] sm:$0xff] %vm346_vm0, %v327_v15  ;;  %v274_v45 = vmul.f32 %v570_v0, %v238_v34  ;;  %v335_v47 = vmax.f32 %v303_v32, 0.0  ;;  %v307_v48 = vadd.f32 %v580_v1, %v271_v33  ;;  %v275_v49 = vmul.f32 %v570_v0, %v239_v38 }
  0x24   : > { %361 = vst.msk [vmem:[%s603_s26 + $0x70] sm:$0xff] %vm346_vm0, %v328_v19  ;;  %v336_v50 = vmax.f32 %v304_v36, 0.0  ;;  %v308_v51 = vadd.f32 %v580_v1, %v272_v37  ;;  %v276_v52 = vmul.f32 %v570_v0, %v240_v42  ;;  %v337_v53 = vmax.f32 %v305_v40, 0.0 }
  0x25   : > { %362 = vst.msk [vmem:[%s603_s26 + $0x78] sm:$0xff] %vm346_vm0, %v329_v23  ;;  %v309_v54 = vadd.f32 %v580_v1, %v273_v41  ;;  %v277_v55 = vmul.f32 %v570_v0, %v241_v46  ;;  %v338_v56 = vmax.f32 %v306_v44, 0.0  ;;  %v310_v57 = vadd.f32 %v580_v1, %v274_v45 }
  0x26   : > { %363 = vst.msk [vmem:[%s603_s26 + $0x80] sm:$0xff] %vm346_vm0, %v330_v27  ;;  %v339_v58 = vmax.f32 %v307_v48, 0.0  ;;  %v311_v59 = vadd.f32 %v580_v1, %v275_v49  ;;  %v340_v60 = vmax.f32 %v308_v51, 0.0  ;;  %v312_v0 = vadd.f32 %v580_v1, %v276_v52 }
  0x27   : > { %364 = vst.msk [vmem:[%s603_s26 + $0x88] sm:$0xff] %vm346_vm0, %v331_v31  ;;  %v341_v61 = vmax.f32 %v309_v54, 0.0  ;;  %v313_v62 = vadd.f32 %v580_v1, %v277_v55  ;;  %v342_v63 = vmax.f32 %v310_v57, 0.0 }
  0x28   : > { %365 = vst.msk [vmem:[%s603_s26 + $0x90] sm:$0xff] %vm346_vm0, %v332_v35  ;;  %v343_v2 = vmax.f32 %v311_v59, 0.0  ;;  %v344_v3 = vmax.f32 %v312_v0, 0.0 }
  0x29   : > { %366 = vst.msk [vmem:[%s603_s26 + $0x98] sm:$0xff] %vm346_vm0, %v333_v39  ;;  %v345_v4 = vmax.f32 %v313_v62, 0.0 }
  0x2a   : > { %367 = vst.msk [vmem:[%s603_s26 + $0xa0] sm:$0xff] %vm346_vm0, %v334_v43 }
  0x2b   : > { %368 = vst.msk [vmem:[%s603_s26 + $0xa8] sm:$0xff] %vm346_vm0, %v335_v47 }
  0x2c   : > { %369 = vst.msk [vmem:[%s603_s26 + $0xb0] sm:$0xff] %vm346_vm0, %v336_v50 }
  0x2d   : > { %370 = vst.msk [vmem:[%s603_s26 + $0xb8] sm:$0xff] %vm346_vm0, %v337_v53 }
  0x2e   : > { %371 = vst.msk [vmem:[%s603_s26 + $0xc0] sm:$0xff] %vm346_vm0, %v338_v56 }
  0x2f   : > { %372 = vst.msk [vmem:[%s603_s26 + $0xc8] sm:$0xff] %vm346_vm0, %v339_v58 }
  0x30   : > { %373 = vst.msk [vmem:[%s603_s26 + $0xd0] sm:$0xff] %vm346_vm0, %v340_v60 }
  0x31   : > { %374 = vst.msk [vmem:[%s603_s26 + $0xd8] sm:$0xff] %vm346_vm0, %v341_v61 }
  0x32   : > { %375 = vst.msk [vmem:[%s603_s26 + $0xe0] sm:$0xff] %vm346_vm0, %v342_v63 }
  0x33   : > { %376 = vst.msk [vmem:[%s603_s26 + $0xe8] sm:$0xff] %vm346_vm0, %v343_v2 }
  0x34   : > { %377 = vst.msk [vmem:[%s603_s26 + $0xf0] sm:$0xff] %vm346_vm0, %v344_v3 }
  0x35   : > { %378 = vst.msk [vmem:[%s603_s26 + $0xf8] sm:$0xff] %vm346_vm0, %v345_v4 }
  0x36 PF: > { %s13_s14 = sadd.s32 1, %s527_s14   ;;  %s760_s12 = smov %s523_s13 }
  0x37   : > { %p10_p5 = scmp.ge.s32.totalorder %s13_s14, 4   ;;  %s761_s13 = smov %s763_s15 }
  0x39   :  { %12 = sbr.rel (!%p10_p5) target bundleno = 2 (0x2), region = 62 }

// kernel: complex_double_conv.3
= control target key start
LH: loop header
LB: loop body
LE: loop exit
PB: predicated region body
PF: predicated region fallthrough
CT: control target
= control target key end

     0   :  { %s2955_s18 = smov 0   ;;  %s2957_s19 = smov 0   ;;  %s4347_s0 = inlined_call_operand.vmem [shape: f32[2,16,16,8], index: 0, kind: input, shape index: {}]   ;;  %s4348_s1 = inlined_call_operand.vmem [shape: f32[1,8], index: 1, kind: input, shape index: {}]   ;;  %s4349_s2 = inlined_call_operand.vmem [shape: f32[1,8], index: 2, kind: input, shape index: {}]   ;;  %s4350_s3 = inlined_call_operand.vmem [shape: f32[72,16], index: 3, kind: input, shape index: {}]   ;;  %s4351_s4 = inlined_call_operand.vmem [shape: f32[2,256,16], index: 4, kind: output, shape index: {0}]   ;;  %s4352_s5 = inlined_call_operand.vmem [shape: f32[2,1,2,16], index: 5, kind: output, shape index: {1}]  }
   0x1   :  { %s2959_s20 = smov 0  }
   0x2 LB: > { %s28_s1 = sadd.s32 1, %s2910_s19  ;;  %p2598_p0 = scmp.ge.s32.totalorder %s2914_s20, 1  ;;  %s2914_s20 = sphi %s2959_s20, %s16_s20   ;;  %s2910_s19 = sphi %s2957_s19, %s4444_s19   ;;  %s2906_s18 = sphi %s2955_s18, %s4443_s18  }
   0x3   : > { %p30_p1 = scmp.ge.s32.totalorder %s28_s1, 2  ;;  %p206_p2 = scmp.lt.s32.totalorder %s2914_s20, 3 }
   0x5   : > { %s4446_s1 = smov (%p30_p1, %s28_s1), 0  ;;  %p207_p3 = pnand %p2598_p0, %p206_p2 }
   0x7   : > { %210 = sbr.rel (%p207_p3) target bundleno = 1015 (0x3f7), region = 36 }
   0xc   : > { %vm299_vm0 = vcmask 64512   ;;  %v2916_v0 = vmov 0.0   ;;  %s2917_s2 = smov 8   ;;  %p245_p4 = scmp.lt.s32.totalorder %s2906_s18, 1  ;;  %vm302_vm1 = vcmask 58368   ;;  %vm615_vm2 = vcmask 130112  }
   0xd   : > { %300 = vst.msk [vmem:[#allocation2] sm:$0xff] %vm299_vm0, %v2916_v0  ;;  %s2918_s25 = smov 16   ;;  %s2919_s26 = smov 24   ;;  %vm808_vm3 = vcmask 195712   ;;  %vm1004_vm4 = vcmask 261312   ;;  %vm1197_vm5 = vcmask 326912  }
   0xe   : > { %301 = vst.msk [vmem:[#allocation2 + $0x8] sm:$0xff] %vm299_vm0, %v2916_v0  ;;  %s4448_s18 = smov (!%p245_p4, %s2906_s18), 1  ;;  %s2920_s27 = smov 32   ;;  %vm1390_vm6 = vcmask 392512   ;;  %vm1586_vm7 = vcmask 458112   ;;  %vm1779_vm8 = vcmask 523712  }
   0xf   : > { %304 = vst.msk [vmem:[#allocation2 + $0x18] sm:$0xff] %vm299_vm0, %v2916_v0  ;;  %s2830_s21 = sshll.u32 %s4448_s18, 8  ;;  %s2921_s28 = smov 40   ;;  %vm1972_vm9 = vcmask 589312   ;;  %vm2046_vm10 = vcmask 588800   ;;  %vm2256_vm11 = vcmask 130048  }
  0x10   : > { %305 = vst.msk [vmem:[#allocation2 + $0x20] sm:$0xff] %vm299_vm0, %v2916_v0  ;;  %s3048_s24 = scalar_lea.vmem %s4347_s0, %s2830_s21  ;;  %s2922_s29 = smov 56   ;;  %vm2358_vm12 = vcmask 122880  }
  0x11   : > { %307 = vst.msk [vmem:[#allocation2 + $0x30] sm:$0xff] %vm299_vm0, %v2916_v0  ;;  %v267_v2 = vld [vmem:[%s3048_s24] sm:$0xff]  ;;  %v268_v5 = vld [vmem:[%s3048_s24 + $0x8] sm:$0xff]  ;;  %v269_v8 = vld [vmem:[%s3048_s24 + $0x10] sm:$0xff]  ;;  %s2923_s30 = smov 64   ;;  %s2924_s6 = smov 48  }
  0x12   : > { %308 = vst.msk [vmem:[#allocation2 + $0x38] sm:$0xff] %vm299_vm0, %v2916_v0  ;;  %v271_v6 = vld [vmem:[%s3048_s24 + $0x20] sm:$0xff]  ;;  %v272_v7 = vld [vmem:[%s3048_s24 + $0x28] sm:$0xff]  ;;  %v274_v9 = vld [vmem:[%s3048_s24 + $0x38] sm:$0xff]  ;;  %s4068_s9 = scalar_lea.vmem %s4351_s4, %s2830_s21  ;;  %s2603_s21 = sshll.u32 %s4448_s18, 1 }
  0x13   : > { %310 = vst.msk [vmem:[#allocation2 + $0x48] sm:$0xff] %vm299_vm0, %v2916_v0  ;;  %v275_v10 = vld [vmem:[%s3048_s24 + $0x40] sm:$0xff]  ;;  %v270_v11 = vld [vmem:[%s3048_s24 + $0x18] sm:$0xff]  ;;  %v277_v12 = vld [vmem:[%s3048_s24 + $0x50] sm:$0xff] }
  0x14   : > { %311 = vst.msk [vmem:[#allocation2 + $0x50] sm:$0xff] %vm299_vm0, %v2916_v0  ;;  %v278_v13 = vld [vmem:[%s3048_s24 + $0x58] sm:$0xff]  ;;  %v273_v14 = vld [vmem:[%s3048_s24 + $0x30] sm:$0xff]  ;;  %v280_v16 = vld [vmem:[%s3048_s24 + $0x68] sm:$0xff] }
  0x15   : > { %v455_v1 = vld [vmem:[#allocation2 + $0x1] sm:$0xff]  ;;  %313 = vst.msk [vmem:[#allocation2 + $0x60] sm:$0xff] %vm299_vm0, %v2916_v0  ;;  %v281_v18 = vld [vmem:[%s3048_s24 + $0x70] sm:$0xff]  ;;  %v286_v25 = vld [vmem:[%s3048_s24 + $0x98] sm:$0xff] }
  0x16   : > { %519 = vrot.lane.b32.xlu0 %v455_v1, %s2917_s2  ;;  %314 = vst.msk [vmem:[#allocation2 + $0x68] sm:$0xff] %vm299_vm0, %v2916_v0  ;;  %v276_v19 = vld [vmem:[%s3048_s24 + $0x48] sm:$0xff]  ;;  %v283_v21 = vld [vmem:[%s3048_s24 + $0x80] sm:$0xff]  ;;  %v282_v29 = vld [vmem:[%s3048_s24 + $0x78] sm:$0xff] }
  0x17   : > { %316 = vst.msk [vmem:[#allocation2 + $0x78] sm:$0xff] %vm299_vm0, %v2916_v0  ;;  %v284_v22 = vld [vmem:[%s3048_s24 + $0x88] sm:$0xff]  ;;  %v279_v23 = vld [vmem:[%s3048_s24 + $0x60] sm:$0xff]  ;;  %v289_v30 = vld [vmem:[%s3048_s24 + $0xb0] sm:$0xff] }
  0x18   : > { %317 = vst.msk [vmem:[#allocation2 + $0x80] sm:$0xff] %vm299_vm0, %v2916_v0  ;;  %v287_v27 = vld [vmem:[%s3048_s24 + $0xa0] sm:$0xff]  ;;  %v290_v33 = vld [vmem:[%s3048_s24 + $0xb8] sm:$0xff]  ;;  %v285_v35 = vld [vmem:[%s3048_s24 + $0x90] sm:$0xff] }
  0x19   : > { %319 = vst.msk [vmem:[#allocation2 + $0x90] sm:$0xff] %vm299_vm0, %v2916_v0  ;;  %v292_v36 = vld [vmem:[%s3048_s24 + $0xc8] sm:$0xff]  ;;  %v293_v39 = vld [vmem:[%s3048_s24 + $0xd0] sm:$0xff]  ;;  %v295_v42 = vld [vmem:[%s3048_s24 + $0xe0] sm:$0xff] }
  0x1a   : > { %320 = vst.msk [vmem:[#allocation2 + $0x98] sm:$0xff] %vm299_vm0, %v2916_v0  ;;  %v288_v41 = vld [vmem:[%s3048_s24 + $0xa8] sm:$0xff]  ;;  %v291_v47 = vld [vmem:[%s3048_s24 + $0xc0] sm:$0xff]  ;;  %v294_v51 = vld [vmem:[%s3048_s24 + $0xd8] sm:$0xff] }
  0x1b   : > { %322 = vst.msk [vmem:[#allocation2 + $0xa8] sm:$0xff] %vm299_vm0, %v2916_v0  ;;  %v296_v45 = vld [vmem:[%s3048_s24 + $0xe8] sm:$0xff]  ;;  %v391_v63 = vld [vmem:[#allocation2] sm:$0xff] }
  0x1c   : > { %323 = vst.msk [vmem:[#allocation2 + $0xb0] sm:$0xff] %vm299_vm0, %v2916_v0 }
  0x1d   : > { %325 = vst.msk [vmem:[#allocation2 + $0xc0] sm:$0xff] %vm299_vm0, %v2916_v0 }
  0x1e   : > { %326 = vst.msk [vmem:[#allocation2 + $0xc8] sm:$0xff] %vm299_vm0, %v2916_v0 }
  0x1f   : > { %328 = vst.msk [vmem:[#allocation2 + $0xd8] sm:$0xff] %vm299_vm0, %v2916_v0 }
  0x20   : > { %329 = vst.msk [vmem:[#allocation2 + $0xe0] sm:$0xff] %vm299_vm0, %v2916_v0 }
  0x21   : > { %331 = vst.msk [vmem:[#allocation2 + $0xf0] sm:$0xff] %vm299_vm0, %v2916_v0 }
  0x22   : > { %332 = vst.msk [vmem:[#allocation2 + $0xf8] sm:$0xff] %vm299_vm0, %v2916_v0 }
  0x23   : > { %334 = vst.msk [vmem:[#allocation2 + $0x108] sm:$0xff] %vm299_vm0, %v2916_v0 }
  0x24   : > { %335 = vst.msk [vmem:[#allocation2 + $0x110] sm:$0xff] %vm299_vm0, %v2916_v0 }
  0x25   : > { %337 = vst.msk [vmem:[#allocation2 + $0x120] sm:$0xff] %vm299_vm0, %v2916_v0 }
  0x26   : > { %338 = vst.msk [vmem:[#allocation2 + $0x128] sm:$0xff] %vm299_vm0, %v2916_v0 }
  0x27   : > { %340 = vst.msk [vmem:[#allocation2 + $0x138] sm:$0xff] %vm299_vm0, %v2916_v0 }
  0x28   : > { %341 = vst.msk [vmem:[#allocation2 + $0x140] sm:$0xff] %vm299_vm0, %v2916_v0 }
  0x29   : > { %343 = vst.msk [vmem:[#allocation2 + $0x150] sm:$0xff] %vm299_vm0, %v2916_v0 }
  0x2a   : > { %344 = vst.msk [vmem:[#allocation2 + $0x158] sm:$0xff] %vm299_vm0, %v2916_v0 }
  0x2b   : > { %346 = vst.msk [vmem:[#allocation2 + $0x168] sm:$0xff] %vm299_vm0, %v2916_v0 }
  0x2c   : > { %347 = vst.msk [vmem:[#allocation2 + $0x170] sm:$0xff] %vm299_vm0, %v2916_v0 }
  0x2d   : > { %349 = vst.msk [vmem:[#allocation2 + $0x180] sm:$0xff] %vm299_vm0, %v2916_v0 }
  0x2e   : > { %350 = vst.msk [vmem:[#allocation2 + $0x188] sm:$0xff] %vm299_vm0, %v2916_v0 }
  0x2f   : > { %352 = vst.msk [vmem:[#allocation2 + $0x198] sm:$0xff] %vm299_vm0, %v2916_v0 }
  0x30   : > { %353 = vst.msk [vmem:[#allocation2 + $0x1a0] sm:$0xff] %vm299_vm0, %v2916_v0 }
  0x31   : > { %356 = vst.msk [vmem:[#allocation2 + $0x19] sm:$0xff] %vm299_vm0, %v267_v2 }
  0x32   : > { %303 = vst.msk [vmem:[#allocation2 + $0x10] sm:$0x3] %vm302_vm1, %v2916_v0 }
  0x33   : > { %306 = vst.msk [vmem:[#allocation2 + $0x28] sm:$0x3] %vm302_vm1, %v2916_v0 }
  0x34   : > { %309 = vst.msk [vmem:[#allocation2 + $0x40] sm:$0x3] %vm302_vm1, %v2916_v0 }
  0x35   : > { %312 = vst.msk [vmem:[#allocation2 + $0x58] sm:$0x3] %vm302_vm1, %v2916_v0 }
  0x36   : > { %315 = vst.msk [vmem:[#allocation2 + $0x70] sm:$0x3] %vm302_vm1, %v2916_v0 }
  0x37   : > { %318 = vst.msk [vmem:[#allocation2 + $0x88] sm:$0x3] %vm302_vm1, %v2916_v0 }
  0x38   : > { %v3074_v3 = vld [vmem:[#allocation2 + $0x19] sm:$0xff]  ;;  %321 = vst.msk [vmem:[#allocation2 + $0xa0] sm:$0x3] %vm302_vm1, %v2916_v0 }
  0x39   : > { %523 = vrot.lane.b32.xlu1 %v3074_v3, %s2917_s2  ;;  %v456_v4 = vld [vmem:[#allocation2 + $0x9] sm:$0xff]  ;;  %324 = vst.msk [vmem:[#allocation2 + $0xb8] sm:$0x3] %vm302_vm1, %v2916_v0 }
  0x3a   : > { %521 = vrot.lane.b32.xlu0 %v456_v4, %s2917_s2  ;;  %327 = vst.msk [vmem:[#allocation2 + $0xd0] sm:$0x3] %vm302_vm1, %v2916_v0  ;;  %v649_v1 = vld [vmem:[#allocation2 + $0xa] sm:$0xff]  ;;  %v3282_v4 = vld [vmem:[#allocation2 + $0x18] sm:$0xff] }
  0x3b   : > { %330 = vst.msk [vmem:[#allocation2 + $0xe8] sm:$0x3] %vm302_vm1, %v2916_v0 }
  0x3c   : > { %333 = vst.msk [vmem:[#allocation2 + $0x100] sm:$0x3] %vm302_vm1, %v2916_v0 }
  0x3d   : > { %336 = vst.msk [vmem:[#allocation2 + $0x118] sm:$0x3] %vm302_vm1, %v2916_v0 }
  0x3e   : > { %339 = vst.msk [vmem:[#allocation2 + $0x130] sm:$0x3] %vm302_vm1, %v2916_v0 }
  0x3f   : > { %342 = vst.msk [vmem:[#allocation2 + $0x148] sm:$0x3] %vm302_vm1, %v2916_v0 }
  0x40   : > { %345 = vst.msk [vmem:[#allocation2 + $0x160] sm:$0x3] %vm302_vm1, %v2916_v0 }
  0x41   : > { %348 = vst.msk [vmem:[#allocation2 + $0x178] sm:$0x3] %vm302_vm1, %v2916_v0 }
  0x42   : > { %351 = vst.msk [vmem:[#allocation2 + $0x190] sm:$0x3] %vm302_vm1, %v2916_v0 }
  0x43   : > { %354 = vst.msk [vmem:[#allocation2 + $0x1a8] sm:$0x3] %vm302_vm1, %v2916_v0 }
  0x44   : > { %357 = vst.msk [vmem:[#allocation2 + $0x21] sm:$0xff] %vm299_vm0, %v268_v5 }
  0x45   : > { %360 = vst.msk [vmem:[#allocation2 + $0x49] sm:$0xff] %vm299_vm0, %v271_v6  ;;  %v392_v6 = vld [vmem:[#allocation2 + $0x8] sm:$0xff] }
  0x46   : > { %361 = vst.msk [vmem:[#allocation2 + $0x51] sm:$0xff] %vm299_vm0, %v272_v7 }
  0x47   : > { %358 = vst.msk [vmem:[#allocation2 + $0x31] sm:$0xff] %vm299_vm0, %v269_v8 }
  0x48   : > { %363 = vst.msk [vmem:[#allocation2 + $0x69] sm:$0xff] %vm299_vm0, %v274_v9  ;;  %v648_v9 = vld [vmem:[#allocation2 + $0x2] sm:$0xff] }
  0x49   : > { %364 = vst.msk [vmem:[#allocation2 + $0x79] sm:$0xff] %vm299_vm0, %v275_v10 }
  0x4a   : > { %359 = vst.msk [vmem:[#allocation2 + $0x39] sm:$0xff] %vm299_vm0, %v270_v11 }
  0x4b   : > { %v3120_v15 = vld [vmem:[#allocation2 + $0x21] sm:$0xff]  ;;  %366 = vst.msk [vmem:[#allocation2 + $0x91] sm:$0xff] %vm299_vm0, %v277_v12 }
  0x4c   : > { %525 = vrot.lane.b32.xlu1 %v3120_v15, %s2917_s2  ;;  %v3126_v17 = vld [vmem:[#allocation2 + $0x49] sm:$0xff]  ;;  %367 = vst.msk [vmem:[#allocation2 + $0x99] sm:$0xff] %vm299_vm0, %v278_v13  ;;  %v3293_v7 = vld [vmem:[#allocation2 + $0x1a] sm:$0xff] }
  0x4d   : > { %531 = vrot.lane.b32.xlu0 %v3126_v17, %s2917_s2  ;;  %362 = vst.msk [vmem:[#allocation2 + $0x61] sm:$0xff] %vm299_vm0, %v273_v14  ;;  %v3144_v24 = vld [vmem:[#allocation2 + $0x51] sm:$0xff]  ;;  %v3301_v10 = vld [vmem:[#allocation2 + $0x20] sm:$0xff]  ;;  %v3308_v12 = vld [vmem:[#allocation2 + $0x48] sm:$0xff] }
  0x4e   : > { %v3134_v20 = vld [vmem:[#allocation2 + $0x31] sm:$0xff]  ;;  %369 = vst.msk [vmem:[#allocation2 + $0xb1] sm:$0xff] %vm299_vm0, %v280_v16  ;;  %v3320_v16 = vld [vmem:[#allocation2 + $0x22] sm:$0xff] }
  0x4f   : > { %527 = vrot.lane.b32.xlu2 %v3134_v20, %s2917_s2  ;;  %370 = vst.msk [vmem:[#allocation2 + $0xc1] sm:$0xff] %vm299_vm0, %v281_v18  ;;  %v3148_v26 = vld [vmem:[#allocation2 + $0x69] sm:$0xff]  ;;  %v3316_v14 = vld [vmem:[#allocation2 + $0x52] sm:$0xff] }
  0x50   : > { %365 = vst.msk [vmem:[#allocation2 + $0x81] sm:$0xff] %vm299_vm0, %v276_v19  ;;  %v3167_v31 = vld [vmem:[#allocation2 + $0x79] sm:$0xff]  ;;  %v3267_v61 = vld [vmem:[#allocation2 + $0x30] sm:$0xff] }
  0x51   : > { %372 = vst.msk [vmem:[#allocation2 + $0xd9] sm:$0xff] %vm299_vm0, %v283_v21  ;;  %v3155_v28 = vld [vmem:[#allocation2 + $0x39] sm:$0xff]  ;;  %v3324_v18 = vld [vmem:[#allocation2 + $0x50] sm:$0xff] }
  0x52   : > { %373 = vst.msk [vmem:[#allocation2 + $0xe1] sm:$0xff] %vm299_vm0, %v284_v22  ;;  %v3169_v32 = vld [vmem:[#allocation2 + $0x91] sm:$0xff]  ;;  %v3312_v13 = vld [vmem:[#allocation2 + $0x3a] sm:$0xff] }
  0x53   : > { %368 = vst.msk [vmem:[#allocation2 + $0xa9] sm:$0xff] %vm299_vm0, %v279_v23  ;;  %v3185_v37 = vld [vmem:[#allocation2 + $0x99] sm:$0xff] }
  0x54   : > { %533 = vrot.lane.b32.xlu1 %v3144_v24, %s2917_s2  ;;  %375 = vst.msk [vmem:[#allocation2 + $0xf9] sm:$0xff] %vm299_vm0, %v286_v25  ;;  %v3174_v34 = vld [vmem:[#allocation2 + $0x61] sm:$0xff]  ;;  %v3284_v5 = vld [vmem:[#allocation2 + $0x38] sm:$0xff] }
  0x55   : > { %537 = vrot.lane.b32.xlu0 %v3148_v26, %s2917_s2  ;;  %376 = vst.msk [vmem:[#allocation2 + $0x109] sm:$0xff] %vm299_vm0, %v287_v27  ;;  %v3187_v38 = vld [vmem:[#allocation2 + $0xb1] sm:$0xff]  ;;  %v3306_v11 = vld [vmem:[#allocation2 + $0x60] sm:$0xff]  ;;  %v3332_v21 = vld [vmem:[#allocation2 + $0x68] sm:$0xff] }
  0x56   : > { %371 = vst.msk [vmem:[#allocation2 + $0xc9] sm:$0xff] %vm299_vm0, %v282_v29  ;;  %v3203_v43 = vld [vmem:[#allocation2 + $0xc1] sm:$0xff]  ;;  %v3295_v8 = vld [vmem:[#allocation2 + $0x32] sm:$0xff]  ;;  %v3345_v29 = vld [vmem:[#allocation2 + $0x4a] sm:$0xff] }
  0x57   : > { %529 = vrot.lane.b32.xlu2 %v3155_v28, %s2917_s2  ;;  %378 = vst.msk [vmem:[#allocation2 + $0x121] sm:$0xff] %vm299_vm0, %v289_v30  ;;  %v3192_v40 = vld [vmem:[#allocation2 + $0x81] sm:$0xff] }
  0x58   : > { %379 = vst.msk [vmem:[#allocation2 + $0x129] sm:$0xff] %vm299_vm0, %v290_v33  ;;  %v3205_v44 = vld [vmem:[#allocation2 + $0xd9] sm:$0xff]  ;;  %v3336_v22 = vld [vmem:[#allocation2 + $0x62] sm:$0xff] }
  0x59   : > { %374 = vst.msk [vmem:[#allocation2 + $0xf1] sm:$0xff] %vm299_vm0, %v285_v35  ;;  %v3219_v48 = vld [vmem:[#allocation2 + $0xe1] sm:$0xff]  ;;  %v3351_v33 = vld [vmem:[#allocation2 + $0x78] sm:$0xff] }
  0x5a   : > { %381 = vst.msk [vmem:[#allocation2 + $0x141] sm:$0xff] %vm299_vm0, %v292_v36  ;;  %v3210_v46 = vld [vmem:[#allocation2 + $0xa9] sm:$0xff]  ;;  %v3330_v19 = vld [vmem:[#allocation2 + $0x80] sm:$0xff] }
  0x5b   : > { %382 = vst.msk [vmem:[#allocation2 + $0x151] sm:$0xff] %vm299_vm0, %v293_v39  ;;  %v3221_v49 = vld [vmem:[#allocation2 + $0xf9] sm:$0xff]  ;;  %v3357_v35 = vld [vmem:[#allocation2 + $0xa8] sm:$0xff]  ;;  %v3359_v36 = vld [vmem:[#allocation2 + $0x90] sm:$0xff] }
  0x5c   : > { %539 = vrot.lane.b32.xlu1 %v3167_v31, %s2917_s2  ;;  %377 = vst.msk [vmem:[#allocation2 + $0x111] sm:$0xff] %vm299_vm0, %v288_v41  ;;  %v3233_v52 = vld [vmem:[#allocation2 + $0x109] sm:$0xff]  ;;  %v3340_v25 = vld [vmem:[#allocation2 + $0x7a] sm:$0xff] }
  0x5d   : > { %543 = vrot.lane.b32.xlu0 %v3169_v32, %s2917_s2  ;;  %384 = vst.msk [vmem:[#allocation2 + $0x169] sm:$0xff] %vm299_vm0, %v295_v42  ;;  %v3225_v50 = vld [vmem:[#allocation2 + $0xc9] sm:$0xff]  ;;  %v3367_v42 = vld [vmem:[#allocation2 + $0x9a] sm:$0xff] }
  0x5e   : > { %385 = vst.msk [vmem:[#allocation2 + $0x171] sm:$0xff] %vm299_vm0, %v296_v45  ;;  %v3235_v53 = vld [vmem:[#allocation2 + $0x121] sm:$0xff]  ;;  %v3372_v45 = vld [vmem:[#allocation2 + $0x6a] sm:$0xff] }
  0x5f   : > { %535 = vrot.lane.b32.xlu2 %v3174_v34, %s2917_s2  ;;  %380 = vst.msk [vmem:[#allocation2 + $0x139] sm:$0xff] %vm299_vm0, %v291_v47  ;;  %v3245_v55 = vld [vmem:[#allocation2 + $0x129] sm:$0xff]  ;;  %v3376_v47 = vld [vmem:[#allocation2 + $0x98] sm:$0xff] }
  0x60   : > { %383 = vst.msk [vmem:[#allocation2 + $0x159] sm:$0xff] %vm299_vm0, %v294_v51  ;;  %v3239_v54 = vld [vmem:[#allocation2 + $0xf1] sm:$0xff]  ;;  %v3363_v39 = vld [vmem:[#allocation2 + $0x82] sm:$0xff] }
  0x61   : > { %v3247_v56 = vld [vmem:[#allocation2 + $0x141] sm:$0xff]  ;;  %427 = vst.msk [vmem:[#allocation3 + $0x20] sm:$0xff] %vm299_vm0, %v3267_v61 }
  0x62   : > { %v3257_v58 = vld [vmem:[#allocation2 + $0x151] sm:$0xff]  ;;  %423 = vst.msk [vmem:[#allocation3] sm:$0xff] %vm299_vm0, %v391_v63  ;;  %v3382_v51 = vld [vmem:[#allocation2 + $0xc8] sm:$0xff] }
  0x63   : > { %v3251_v57 = vld [vmem:[#allocation2 + $0x111] sm:$0xff]  ;;  %4383 = vst [vmem:[#allocation4_spill] sm:$0xff] %v3257_v58 }
  0x64   : > { %545 = vrot.lane.b32.xlu1 %v3185_v37, %s2917_s2  ;;  %v3259_v59 = vld [vmem:[#allocation2 + $0x169] sm:$0xff]  ;;  %425 = vst.msk [vmem:[#allocation3 + $0x10] sm:$0xff] %vm299_vm0, %v3282_v4 }
  0x65   : > { %549 = vrot.lane.b32.xlu0 %v3187_v38, %s2917_s2  ;;  %v3275_v0 = vld [vmem:[#allocation2 + $0x171] sm:$0xff]  ;;  %428 = vst.msk [vmem:[#allocation3 + $0x28] sm:$0xff] %vm299_vm0, %v3284_v5 }
  0x66   : > { %v3263_v60 = vld [vmem:[#allocation2 + $0x139] sm:$0xff]  ;;  %4384 = vst [vmem:[#allocation5_spill] sm:$0xff] %v3275_v0  ;;  %v3388_v63 = vld [vmem:[#allocation2 + $0xaa] sm:$0xff] }
  0x67   : > { %541 = vrot.lane.b32.xlu2 %v3192_v40, %s2917_s2  ;;  %v3279_v2 = vld [vmem:[#allocation2 + $0x159] sm:$0xff]  ;;  %424 = vst.msk [vmem:[#allocation3 + $0x8] sm:$0xff] %vm299_vm0, %v392_v6  ;;  %v3392_v6 = vld [vmem:[#allocation2 + $0xc2] sm:$0xff] }
  0x68   : > { %4385 = vst [vmem:[#allocation6_spill] sm:$0xff] %v3293_v7 }
  0x69   : > { %4386 = vst [vmem:[#allocation7_spill] sm:$0xff] %v3295_v8 }
  0x6a   : > { %426 = vst.msk [vmem:[#allocation3 + $0x18] sm:$0xff] %vm299_vm0, %v3301_v10 }
  0x6b   : > { %431 = vst.msk [vmem:[#allocation3 + $0x40] sm:$0xff] %vm299_vm0, %v3306_v11 }
  0x6c   : > { %551 = vrot.lane.b32.xlu1 %v3203_v43, %s2917_s2  ;;  %4387 = vst [vmem:[#allocation8_spill] sm:$0xff] %v3312_v13 }
  0x6d   : > { %555 = vrot.lane.b32.xlu0 %v3205_v44, %s2917_s2  ;;  %429 = vst.msk [vmem:[#allocation3 + $0x30] sm:$0xff] %vm299_vm0, %v3308_v12 }
  0x6e   : > { %4388 = vst [vmem:[#allocation9_spill] sm:$0xff] %v3316_v14 }
  0x6f   : > { %547 = vrot.lane.b32.xlu2 %v3210_v46, %s2917_s2  ;;  %4389 = vst [vmem:[#allocation10_spill] sm:$0xff] %v3320_v16 }
  0x70   : > { %430 = vst.msk [vmem:[#allocation3 + $0x38] sm:$0xff] %vm299_vm0, %v3324_v18 }
  0x71   : > { %434 = vst.msk [vmem:[#allocation3 + $0x58] sm:$0xff] %vm299_vm0, %v3330_v19 }
  0x72   : > { %4390 = vst [vmem:[#allocation11_spill] sm:$0xff] %v3336_v22 }
  0x73   : > { %432 = vst.msk [vmem:[#allocation3 + $0x48] sm:$0xff] %vm299_vm0, %v3332_v21 }
  0x74   : > { %557 = vrot.lane.b32.xlu1 %v3219_v48, %s2917_s2  ;;  %4391 = vst [vmem:[#allocation12_spill] sm:$0xff] %v3340_v25 }
  0x75   : > { %561 = vrot.lane.b32.xlu0 %v3221_v49, %s2917_s2  ;;  %4392 = vst [vmem:[#allocation13_spill] sm:$0xff] %v3345_v29 }
  0x76   : > { %433 = vst.msk [vmem:[#allocation3 + $0x50] sm:$0xff] %vm299_vm0, %v3351_v33 }
  0x77   : > { %553 = vrot.lane.b32.xlu2 %v3225_v50, %s2917_s2  ;;  %437 = vst.msk [vmem:[#allocation3 + $0x70] sm:$0xff] %vm299_vm0, %v3357_v35 }
  0x78   : > { %4393 = vst [vmem:[#allocation14_spill] sm:$0xff] %v3363_v39 }
  0x79   : > { %435 = vst.msk [vmem:[#allocation3 + $0x60] sm:$0xff] %vm299_vm0, %v3359_v36 }
  0x7a   : > { %4394 = vst [vmem:[#allocation15_spill] sm:$0xff] %v3367_v42 }
  0x7b   : > { %4395 = vst [vmem:[#allocation16_spill] sm:$0xff] %v3372_v45 }
  0x7c   : > { %563 = vrot.lane.b32.xlu1 %v3233_v52, %s2917_s2  ;;  %436 = vst.msk [vmem:[#allocation3 + $0x68] sm:$0xff] %vm299_vm0, %v3376_v47 }
  0x7d   : > { %567 = vrot.lane.b32.xlu0 %v3235_v53, %s2917_s2  ;;  %440 = vst.msk [vmem:[#allocation3 + $0x88] sm:$0xff] %vm299_vm0, %v3382_v51 }
  0x7e   : > { %4396 = vst [vmem:[#allocation17_spill] sm:$0xff] %v3388_v63 }
  0x7f   : > { %559 = vrot.lane.b32.xlu2 %v3239_v54, %s2917_s2  ;;  %4397 = vst [vmem:[#allocation18_spill] sm:$0xff] %v3392_v6 }
  0x84   : > { %569 = vrot.lane.b32.xlu1 %v3245_v55, %s2917_s2 }
  0x85   : > { %573 = vrot.lane.b32.xlu0 %v3247_v56, %s2917_s2 }
  0x87   : > { %565 = vrot.lane.b32.xlu2 %v3251_v57, %s2917_s2 }
  0x88   : > { %v520_v62 = vpop.permute.xlu0 %519 }
  0x89   : > { %616 = vst.msk [vmem:[#allocation3] sm:$0xff] %vm615_vm2, %v520_v62  ;;  %v3384_v62 = vld [vmem:[#allocation2 + $0xb0] sm:$0xff] }
  0x8a   : > { %438 = vst.msk [vmem:[#allocation3 + $0x78] sm:$0xff] %vm299_vm0, %v3384_v62 }
  0x8c   : > { %575 = vrot.lane.b32.xlu1 %v3257_v58, %s2917_s2 }
  0x8d   : > { %579 = vrot.lane.b32.xlu0 %v3259_v59, %s2917_s2 }
  0x8f   : > { %571 = vrot.lane.b32.xlu2 %v3263_v60, %s2917_s2 }
  0x94   : > { %581 = vrot.lane.b32.xlu1 %v3275_v0, %s2917_s2  ;;  %v3516_v0 = vld [vmem:[#allocation2 + $0x168] sm:$0xff] }
  0x95   : > { %714 = vrot.lane.b32.xlu0 %v649_v1, %s2918_s25  ;;  %453 = vst.msk [vmem:[#allocation3 + $0xf0] sm:$0xff] %vm299_vm0, %v3516_v0 }
  0x97   : > { %577 = vrot.lane.b32.xlu2 %v3279_v2, %s2917_s2 }
  0x9c   : > { %716 = vrot.lane.b32.xlu1 %v3293_v7, %s2918_s25  ;;  %v3489_v7 = vld [vmem:[#allocation2 + $0x158] sm:$0xff] }
  0x9d   : > { %720 = vrot.lane.b32.xlu0 %v3295_v8, %s2918_s25  ;;  %452 = vst.msk [vmem:[#allocation3 + $0xe8] sm:$0xff] %vm299_vm0, %v3489_v7  ;;  %v3498_v8 = vld [vmem:[#allocation2 + $0x152] sm:$0xff] }
  0x9e   : > { %4409 = vst [vmem:[#allocation30_spill] sm:$0xff] %v3498_v8 }
  0x9f   : > { %712 = vrot.lane.b32.xlu2 %v648_v9, %s2918_s25  ;;  %v3397_v9 = vld [vmem:[#allocation2 + $0x92] sm:$0xff] }
  0xa0   : > { %4398 = vst [vmem:[#allocation19_spill] sm:$0xff] %v3397_v9 }
  0xa4   : > { %722 = vrot.lane.b32.xlu1 %v3312_v13, %s2918_s25  ;;  %v3462_v13 = vld [vmem:[#allocation2 + $0x138] sm:$0xff] }
  0xa5   : > { %726 = vrot.lane.b32.xlu0 %v3316_v14, %s2918_s25  ;;  %449 = vst.msk [vmem:[#allocation3 + $0xd0] sm:$0xff] %vm299_vm0, %v3462_v13  ;;  %v3471_v14 = vld [vmem:[#allocation2 + $0x12a] sm:$0xff] }
  0xa6   : > { %4406 = vst [vmem:[#allocation27_spill] sm:$0xff] %v3471_v14 }
  0xa7   : > { %718 = vrot.lane.b32.xlu2 %v3320_v16, %s2918_s25 }
  0xa9   : > { %v528_v23 = vpop.permute.xlu2 %527 }
  0xaa   : > { %620 = vst.msk [vmem:[#allocation3 + $0x20] sm:$0xff] %vm615_vm2, %v528_v23  ;;  %v3401_v23 = vld [vmem:[#allocation2 + $0xc0] sm:$0xff] }
  0xab   : > { %v524_v27 = vpop.permute.xlu1 %523  ;;  %439 = vst.msk [vmem:[#allocation3 + $0x80] sm:$0xff] %vm299_vm0, %v3401_v23 }
  0xac   : > { %728 = vrot.lane.b32.xlu1 %v3336_v22, %s2918_s25  ;;  %618 = vst.msk [vmem:[#allocation3 + $0x10] sm:$0xff] %vm615_vm2, %v524_v27  ;;  %v522_v30 = vpop.permute.xlu0 %521  ;;  %v3435_v22 = vld [vmem:[#allocation2 + $0x110] sm:$0xff] }
  0xad   : > { %732 = vrot.lane.b32.xlu0 %v3340_v25, %s2918_s25  ;;  %617 = vst.msk [vmem:[#allocation3 + $0x8] sm:$0xff] %vm615_vm2, %v522_v30  ;;  %v3444_v25 = vld [vmem:[#allocation2 + $0x10a] sm:$0xff] }
  0xae   : > { %446 = vst.msk [vmem:[#allocation3 + $0xb8] sm:$0xff] %vm299_vm0, %v3435_v22 }
  0xaf   : > { %724 = vrot.lane.b32.xlu2 %v3345_v29, %s2918_s25  ;;  %4403 = vst [vmem:[#allocation24_spill] sm:$0xff] %v3444_v25  ;;  %v3494_v29 = vld [vmem:[#allocation2 + $0x13a] sm:$0xff] }
  0xb0   : > { %4408 = vst [vmem:[#allocation29_spill] sm:$0xff] %v3494_v29 }
  0xb1   : > { %v530_v41 = vpop.permute.xlu2 %529 }
  0xb2   : > { %621 = vst.msk [vmem:[#allocation3 + $0x28] sm:$0xff] %vm615_vm2, %v530_v41  ;;  %v3408_v41 = vld [vmem:[#allocation2 + $0xf0] sm:$0xff] }
  0xb3   : > { %443 = vst.msk [vmem:[#allocation3 + $0xa0] sm:$0xff] %vm299_vm0, %v3408_v41 }
  0xb4   : > { %734 = vrot.lane.b32.xlu1 %v3363_v39, %s2918_s25  ;;  %v3417_v39 = vld [vmem:[#allocation2 + $0xe2] sm:$0xff] }
  0xb5   : > { %738 = vrot.lane.b32.xlu0 %v3367_v42, %s2918_s25  ;;  %4400 = vst [vmem:[#allocation21_spill] sm:$0xff] %v3417_v39 }
  0xb7   : > { %730 = vrot.lane.b32.xlu2 %v3372_v45, %s2918_s25  ;;  %v3467_v45 = vld [vmem:[#allocation2 + $0x112] sm:$0xff] }
  0xb8   : > { %4405 = vst [vmem:[#allocation26_spill] sm:$0xff] %v3467_v45 }
  0xb9   : > { %v536_v1 = vpop.permute.xlu2 %535 }
  0xba   : > { %624 = vst.msk [vmem:[#allocation3 + $0x40] sm:$0xff] %vm615_vm2, %v536_v1  ;;  %v3411_v1 = vld [vmem:[#allocation2 + $0xd8] sm:$0xff] }
  0xbb   : > { %441 = vst.msk [vmem:[#allocation3 + $0x90] sm:$0xff] %vm299_vm0, %v3411_v1 }
  0xbc   : > { %740 = vrot.lane.b32.xlu1 %v3388_v63, %s2918_s25  ;;  %v3413_v63 = vld [vmem:[#allocation2 + $0xca] sm:$0xff] }
  0xbd   : > { %744 = vrot.lane.b32.xlu0 %v3392_v6, %s2918_s25  ;;  %4399 = vst [vmem:[#allocation20_spill] sm:$0xff] %v3413_v63 }
  0xbe   : > { %v526_v27 = vpop.permute.xlu1 %525 }
  0xbf   : > { %619 = vst.msk [vmem:[#allocation3 + $0x18] sm:$0xff] %vm615_vm2, %v526_v27  ;;  %v532_v30 = vpop.permute.xlu0 %531  ;;  %736 = vrot.lane.b32.xlu2 %v3397_v9, %s2918_s25  ;;  %v3424_v27 = vld [vmem:[#allocation2 + $0xb2] sm:$0xff] }
  0xc0   : > { %622 = vst.msk [vmem:[#allocation3 + $0x30] sm:$0xff] %vm615_vm2, %v532_v30  ;;  %v3428_v30 = vld [vmem:[#allocation2 + $0xe0] sm:$0xff]  ;;  %v3440_v9 = vld [vmem:[#allocation2 + $0xf2] sm:$0xff] }
  0xc1   : > { %v542_v6 = vpop.permute.xlu2 %541  ;;  %4401 = vst [vmem:[#allocation22_spill] sm:$0xff] %v3424_v27 }
  0xc2   : > { %627 = vst.msk [vmem:[#allocation3 + $0x58] sm:$0xff] %vm615_vm2, %v542_v6 }
  0xc3   : > { %442 = vst.msk [vmem:[#allocation3 + $0x98] sm:$0xff] %vm299_vm0, %v3428_v30 }
  0xc4   : > { %746 = vrot.lane.b32.xlu1 %v3413_v63, %s2918_s25  ;;  %v3438_v63 = vld [vmem:[#allocation2 + $0xf8] sm:$0xff]  ;;  %4402 = vst [vmem:[#allocation23_spill] sm:$0xff] %v3440_v9 }
  0xc5   : > { %750 = vrot.lane.b32.xlu0 %v3417_v39, %s2918_s25  ;;  %444 = vst.msk [vmem:[#allocation3 + $0xa8] sm:$0xff] %vm299_vm0, %v3438_v63 }
  0xc6   : > { %v534_v42 = vpop.permute.xlu1 %533 }
  0xc7   : > { %623 = vst.msk [vmem:[#allocation3 + $0x38] sm:$0xff] %vm615_vm2, %v534_v42  ;;  %v538_v6 = vpop.permute.xlu0 %537  ;;  %742 = vrot.lane.b32.xlu2 %v3424_v27, %s2918_s25  ;;  %v3451_v42 = vld [vmem:[#allocation2 + $0xda] sm:$0xff] }
  0xc8   : > { %625 = vst.msk [vmem:[#allocation3 + $0x48] sm:$0xff] %vm615_vm2, %v538_v6  ;;  %v3455_v6 = vld [vmem:[#allocation2 + $0x108] sm:$0xff] }
  0xc9   : > { %v548_v39 = vpop.permute.xlu2 %547  ;;  %4404 = vst [vmem:[#allocation25_spill] sm:$0xff] %v3451_v42 }
  0xca   : > { %630 = vst.msk [vmem:[#allocation3 + $0x70] sm:$0xff] %vm615_vm2, %v548_v39 }
  0xcb   : > { %445 = vst.msk [vmem:[#allocation3 + $0xb0] sm:$0xff] %vm299_vm0, %v3455_v6 }
  0xcc   : > { %752 = vrot.lane.b32.xlu1 %v3440_v9, %s2918_s25  ;;  %v3465_v9 = vld [vmem:[#allocation2 + $0x120] sm:$0xff] }
  0xcd   : > { %756 = vrot.lane.b32.xlu0 %v3444_v25, %s2918_s25  ;;  %447 = vst.msk [vmem:[#allocation3 + $0xc0] sm:$0xff] %vm299_vm0, %v3465_v9 }
  0xce   : > { %v540_v27 = vpop.permute.xlu1 %539 }
  0xcf   : > { %626 = vst.msk [vmem:[#allocation3 + $0x50] sm:$0xff] %vm615_vm2, %v540_v27  ;;  %v544_v39 = vpop.permute.xlu0 %543  ;;  %748 = vrot.lane.b32.xlu2 %v3451_v42, %s2918_s25  ;;  %v3478_v27 = vld [vmem:[#allocation2 + $0xfa] sm:$0xff] }
  0xd0   : > { %628 = vst.msk [vmem:[#allocation3 + $0x60] sm:$0xff] %vm615_vm2, %v544_v39  ;;  %v3482_v39 = vld [vmem:[#allocation2 + $0x128] sm:$0xff] }
  0xd1   : > { %v554_v25 = vpop.permute.xlu2 %553  ;;  %4407 = vst [vmem:[#allocation28_spill] sm:$0xff] %v3478_v27 }
  0xd2   : > { %633 = vst.msk [vmem:[#allocation3 + $0x88] sm:$0xff] %vm615_vm2, %v554_v25 }
  0xd3   : > { %448 = vst.msk [vmem:[#allocation3 + $0xc8] sm:$0xff] %vm299_vm0, %v3482_v39 }
  0xd4   : > { %758 = vrot.lane.b32.xlu1 %v3467_v45, %s2918_s25  ;;  %v3492_v45 = vld [vmem:[#allocation2 + $0x140] sm:$0xff] }
  0xd5   : > { %762 = vrot.lane.b32.xlu0 %v3471_v14, %s2918_s25  ;;  %450 = vst.msk [vmem:[#allocation3 + $0xd8] sm:$0xff] %vm299_vm0, %v3492_v45 }
  0xd6   : > { %v546_v42 = vpop.permute.xlu1 %545 }
  0xd7   : > { %629 = vst.msk [vmem:[#allocation3 + $0x68] sm:$0xff] %vm615_vm2, %v546_v42  ;;  %v550_v25 = vpop.permute.xlu0 %549  ;;  %754 = vrot.lane.b32.xlu2 %v3478_v27, %s2918_s25  ;;  %v3505_v42 = vld [vmem:[#allocation2 + $0x122] sm:$0xff] }
  0xd8   : > { %631 = vst.msk [vmem:[#allocation3 + $0x78] sm:$0xff] %vm615_vm2, %v550_v25  ;;  %v3509_v25 = vld [vmem:[#allocation2 + $0x150] sm:$0xff] }
  0xd9   : > { %v560_v14 = vpop.permute.xlu2 %559  ;;  %4410 = vst [vmem:[#allocation31_spill] sm:$0xff] %v3505_v42 }
  0xda   : > { %636 = vst.msk [vmem:[#allocation3 + $0xa0] sm:$0xff] %vm615_vm2, %v560_v14 }
  0xdb   : > { %451 = vst.msk [vmem:[#allocation3 + $0xe0] sm:$0xff] %vm299_vm0, %v3509_v25 }
  0xdc   : > { %764 = vrot.lane.b32.xlu1 %v3494_v29, %s2918_s25  ;;  %v3519_v29 = vld [vmem:[#allocation2 + $0x15a] sm:$0xff] }
  0xdd   : > { %768 = vrot.lane.b32.xlu0 %v3498_v8, %s2918_s25  ;;  %4411 = vst [vmem:[#allocation32_spill] sm:$0xff] %v3519_v29  ;;  %v3523_v8 = vld [vmem:[#allocation2 + $0x172] sm:$0xff] }
  0xde   : > { %v552_v27 = vpop.permute.xlu1 %551  ;;  %4412 = vst [vmem:[#allocation33_spill] sm:$0xff] %v3523_v8 }
  0xdf   : > { %632 = vst.msk [vmem:[#allocation3 + $0x80] sm:$0xff] %vm615_vm2, %v552_v27  ;;  %v556_v14 = vpop.permute.xlu0 %555  ;;  %760 = vrot.lane.b32.xlu2 %v3505_v42, %s2918_s25  ;;  %v3528_v27 = vld [vmem:[#allocation2 + $0x142] sm:$0xff]  ;;  %v3532_v42 = vld [vmem:[#allocation2 + $0x170] sm:$0xff] }
  0xe0   : > { %634 = vst.msk [vmem:[#allocation3 + $0x90] sm:$0xff] %vm615_vm2, %v556_v14 }
  0xe1   : > { %v566_v16 = vpop.permute.xlu2 %565  ;;  %454 = vst.msk [vmem:[#allocation3 + $0xf8] sm:$0xff] %vm299_vm0, %v3532_v42 }
  0xe2   : > { %639 = vst.msk [vmem:[#allocation3 + $0xb8] sm:$0xff] %vm615_vm2, %v566_v16 }
  0xe4   : > { %770 = vrot.lane.b32.xlu1 %v3519_v29, %s2918_s25  ;;  %v3543_v29 = vld [vmem:[#allocation2 + $0x16a] sm:$0xff] }
  0xe5   : > { %774 = vrot.lane.b32.xlu0 %v3523_v8, %s2918_s25 }
  0xe6   : > { %v558_v14 = vpop.permute.xlu1 %557 }
  0xe7   : > { %635 = vst.msk [vmem:[#allocation3 + $0x98] sm:$0xff] %vm615_vm2, %v558_v14  ;;  %v562_v58 = vpop.permute.xlu0 %561  ;;  %766 = vrot.lane.b32.xlu2 %v3528_v27, %s2918_s25 }
  0xe8   : > { %637 = vst.msk [vmem:[#allocation3 + $0xa8] sm:$0xff] %vm615_vm2, %v562_v58 }
  0xe9   : > { %v572_v16 = vpop.permute.xlu2 %571 }
  0xea   : > { %642 = vst.msk [vmem:[#allocation3 + $0xd0] sm:$0xff] %vm615_vm2, %v572_v16 }
  0xec   : > { %908 = vrot.lane.b32.xlu1 %v3282_v4, %s2919_s26 }
  0xed   : > { %912 = vrot.lane.b32.xlu0 %v3267_v61, %s2919_s26 }
  0xee   : > { %v564_v8 = vpop.permute.xlu1 %563 }
  0xef   : > { %638 = vst.msk [vmem:[#allocation3 + $0xb0] sm:$0xff] %vm615_vm2, %v564_v8  ;;  %v568_v14 = vpop.permute.xlu0 %567  ;;  %772 = vrot.lane.b32.xlu2 %v3543_v29, %s2918_s25 }
  0xf0   : > { %640 = vst.msk [vmem:[#allocation3 + $0xc0] sm:$0xff] %vm615_vm2, %v568_v14  ;;  %v297_v14 = vld [vmem:[%s3048_s24 + $0xf0] sm:$0xff] }
  0xf1   : > { %v578_v58 = vpop.permute.xlu2 %577  ;;  %386 = vst.msk [vmem:[#allocation2 + $0x181] sm:$0xff] %vm299_vm0, %v297_v14 }
  0xf2   : > { %645 = vst.msk [vmem:[#allocation3 + $0xe8] sm:$0xff] %vm615_vm2, %v578_v58 }
  0xf4   : > { %914 = vrot.lane.b32.xlu1 %v3284_v5, %s2919_s26 }
  0xf5   : > { %918 = vrot.lane.b32.xlu0 %v3324_v18, %s2919_s26 }
  0xf6   : > { %v570_v4 = vpop.permute.xlu1 %569 }
  0xf7   : > { %641 = vst.msk [vmem:[#allocation3 + $0xc8] sm:$0xff] %vm615_vm2, %v570_v4  ;;  %v574_v61 = vpop.permute.xlu0 %573  ;;  %910 = vrot.lane.b32.xlu2 %v3301_v10, %s2919_s26  ;;  %v298_v4 = vld [vmem:[%s3048_s24 + $0xf8] sm:$0xff] }
  0xf8   : > { %643 = vst.msk [vmem:[#allocation3 + $0xd8] sm:$0xff] %vm615_vm2, %v574_v61 }
  0xf9   : > { %v713_v8 = vpop.permute.xlu2 %712  ;;  %387 = vst.msk [vmem:[#allocation2 + $0x189] sm:$0xff] %vm299_vm0, %v298_v4  ;;  %v4418_v4 = vld [vmem:[#allocation6_spill] sm:$0xff] }
  0xfa   : > { %809 = vst.msk [vmem:[#allocation3] sm:$0xff] %vm808_vm3, %v713_v8 }
  0xfc   : > { %920 = vrot.lane.b32.xlu1 %v3306_v11, %s2919_s26 }
  0xfd   : > { %924 = vrot.lane.b32.xlu0 %v3351_v33, %s2919_s26 }
  0xfe   : > { %v576_v5 = vpop.permute.xlu1 %575 }
  0xff   : > { %644 = vst.msk [vmem:[#allocation3 + $0xe0] sm:$0xff] %vm615_vm2, %v576_v5  ;;  %v580_v18 = vpop.permute.xlu0 %579  ;;  %916 = vrot.lane.b32.xlu2 %v3308_v12, %s2919_s26 }
 0x100   : > { %646 = vst.msk [vmem:[#allocation3 + $0xf0] sm:$0xff] %vm615_vm2, %v580_v18 }
 0x101   : > { %v719_v10 = vpop.permute.xlu2 %718 }
 0x102   : > { %812 = vst.msk [vmem:[#allocation3 + $0x18] sm:$0xff] %vm808_vm3, %v719_v10  ;;  %v2635_v10 = vld [vmem:[#allocation2 + $0x188] sm:$0xff] }
 0x104   : > { %926 = vrot.lane.b32.xlu1 %v3330_v19, %s2919_s26 }
 0x105   : > { %930 = vrot.lane.b32.xlu0 %v3376_v47, %s2919_s26 }
 0x106   : > { %v582_v11 = vpop.permute.xlu1 %581 }
 0x107   : > { %647 = vst.msk [vmem:[#allocation3 + $0xf8] sm:$0xff] %vm615_vm2, %v582_v11  ;;  %v715_v33 = vpop.permute.xlu0 %714  ;;  %922 = vrot.lane.b32.xlu2 %v3332_v21, %s2919_s26 }
 0x108   : > { %810 = vst.msk [vmem:[#allocation3 + $0x8] sm:$0xff] %vm808_vm3, %v715_v33 }
 0x109   : > { %v725_v12 = vpop.permute.xlu2 %724 }
 0x10a   : > { %815 = vst.msk [vmem:[#allocation3 + $0x30] sm:$0xff] %vm808_vm3, %v725_v12  ;;  %v2666_v12 = vld [vmem:[#allocation2 + $0x181] sm:$0xff] }
 0x10c   : > { %932 = vrot.lane.b32.xlu1 %v3357_v35, %s2919_s26 }
 0x10d   : > { %936 = vrot.lane.b32.xlu0 %v3401_v23, %s2919_s26 }
 0x10e   : > { %v717_v19 = vpop.permute.xlu1 %716 }
 0x10f   : > { %811 = vst.msk [vmem:[#allocation3 + $0x10] sm:$0xff] %vm808_vm3, %v717_v19  ;;  %v721_v16 = vpop.permute.xlu0 %720  ;;  %928 = vrot.lane.b32.xlu2 %v3359_v36, %s2919_s26  ;;  %v4413_v19 = vld [vmem:[#allocation4_spill] sm:$0xff] }
 0x110   : > { %813 = vst.msk [vmem:[#allocation3 + $0x20] sm:$0xff] %vm808_vm3, %v721_v16 }
 0x111   : > { %v731_v21 = vpop.permute.xlu2 %730 }
 0x112   : > { %818 = vst.msk [vmem:[#allocation3 + $0x48] sm:$0xff] %vm808_vm3, %v731_v21 }
 0x114   : > { %938 = vrot.lane.b32.xlu1 %v3382_v51, %s2919_s26 }
 0x115   : > { %942 = vrot.lane.b32.xlu0 %v3428_v30, %s2919_s26 }
 0x116   : > { %v723_v35 = vpop.permute.xlu1 %722 }
 0x117   : > { %814 = vst.msk [vmem:[#allocation3 + $0x28] sm:$0xff] %vm808_vm3, %v723_v35  ;;  %v727_v23 = vpop.permute.xlu0 %726  ;;  %934 = vrot.lane.b32.xlu2 %v3384_v62, %s2919_s26  ;;  %v4415_v35 = vld [vmem:[#allocation5_spill] sm:$0xff] }
 0x118   : > { %816 = vst.msk [vmem:[#allocation3 + $0x38] sm:$0xff] %vm808_vm3, %v727_v23 }
 0x119   : > { %v737_v58 = vpop.permute.xlu2 %736 }
 0x11a   : > { %821 = vst.msk [vmem:[#allocation3 + $0x60] sm:$0xff] %vm808_vm3, %v737_v58  ;;  %v4416_v58 = vld [vmem:[#allocation7_spill] sm:$0xff] }
 0x11c   : > { %944 = vrot.lane.b32.xlu1 %v3408_v41, %s2919_s26 }
 0x11d   : > { %948 = vrot.lane.b32.xlu0 %v3455_v6, %s2919_s26 }
 0x11e   : > { %v729_v51 = vpop.permute.xlu1 %728 }
 0x11f   : > { %817 = vst.msk [vmem:[#allocation3 + $0x40] sm:$0xff] %vm808_vm3, %v729_v51  ;;  %v733_v30 = vpop.permute.xlu0 %732  ;;  %940 = vrot.lane.b32.xlu2 %v3411_v1, %s2919_s26  ;;  %v4417_v51 = vld [vmem:[#allocation13_spill] sm:$0xff] }
 0x120   : > { %819 = vst.msk [vmem:[#allocation3 + $0x50] sm:$0xff] %vm808_vm3, %v733_v30 }
 0x121   : > { %v743_v62 = vpop.permute.xlu2 %742 }
 0x122   : > { %824 = vst.msk [vmem:[#allocation3 + $0x78] sm:$0xff] %vm808_vm3, %v743_v62 }
 0x124   : > { %950 = vrot.lane.b32.xlu1 %v3435_v22, %s2919_s26 }
 0x125   : > { %954 = vrot.lane.b32.xlu0 %v3482_v39, %s2919_s26 }
 0x126   : > { %v735_v6 = vpop.permute.xlu1 %734 }
 0x127   : > { %820 = vst.msk [vmem:[#allocation3 + $0x58] sm:$0xff] %vm808_vm3, %v735_v6  ;;  %v739_v61 = vpop.permute.xlu0 %738  ;;  %946 = vrot.lane.b32.xlu2 %v3438_v63, %s2919_s26 }
 0x128   : > { %822 = vst.msk [vmem:[#allocation3 + $0x68] sm:$0xff] %vm808_vm3, %v739_v61  ;;  %v4419_v61 = vld [vmem:[#allocation9_spill] sm:$0xff] }
 0x129   : > { %v749_v1 = vpop.permute.xlu2 %748 }
 0x12a   : > { %827 = vst.msk [vmem:[#allocation3 + $0x90] sm:$0xff] %vm808_vm3, %v749_v1  ;;  %v4420_v1 = vld [vmem:[#allocation16_spill] sm:$0xff] }
 0x12c   : > { %956 = vrot.lane.b32.xlu1 %v3462_v13, %s2919_s26 }
 0x12d   : > { %960 = vrot.lane.b32.xlu0 %v3509_v25, %s2919_s26 }
 0x12e   : > { %v741_v22 = vpop.permute.xlu1 %740 }
 0x12f   : > { %823 = vst.msk [vmem:[#allocation3 + $0x70] sm:$0xff] %vm808_vm3, %v741_v22  ;;  %v745_v39 = vpop.permute.xlu0 %744  ;;  %952 = vrot.lane.b32.xlu2 %v3465_v9, %s2919_s26  ;;  %v2634_v9 = vld [vmem:[#allocation2 + $0x180] sm:$0xff] }
 0x130   : > { %825 = vst.msk [vmem:[#allocation3 + $0x80] sm:$0xff] %vm808_vm3, %v745_v39 }
 0x131   : > { %v755_v8 = vpop.permute.xlu2 %754 }
 0x132   : > { %830 = vst.msk [vmem:[#allocation3 + $0xa8] sm:$0xff] %vm808_vm3, %v755_v8  ;;  %v4421_v8 = vld [vmem:[#allocation8_spill] sm:$0xff] }
 0x134   : > { %962 = vrot.lane.b32.xlu1 %v3489_v7, %s2919_s26 }
 0x135   : > { %966 = vrot.lane.b32.xlu0 %v3532_v42, %s2919_s26 }
 0x136   : > { %v747_v13 = vpop.permute.xlu1 %746 }
 0x137   : > { %826 = vst.msk [vmem:[#allocation3 + $0x88] sm:$0xff] %vm808_vm3, %v747_v13  ;;  %v751_v5 = vpop.permute.xlu0 %750  ;;  %958 = vrot.lane.b32.xlu2 %v3492_v45, %s2919_s26 }
 0x138   : > { %828 = vst.msk [vmem:[#allocation3 + $0x98] sm:$0xff] %vm808_vm3, %v751_v5  ;;  %v4422_v5 = vld [vmem:[#allocation12_spill] sm:$0xff] }
 0x139   : > { %v761_v18 = vpop.permute.xlu2 %760 }
 0x13a   : > { %833 = vst.msk [vmem:[#allocation3 + $0xc0] sm:$0xff] %vm808_vm3, %v761_v18 }
 0x13c   : > { %968 = vrot.lane.b32.xlu1 %v2634_v9, %s2919_s26  ;;  %v4423_v9 = vld [vmem:[#allocation19_spill] sm:$0xff] }
 0x13d   : > { %1101 = vrot.lane.b32.xlu0 %v3074_v3, %s2920_s27 }
 0x13e   : > { %v753_v7 = vpop.permute.xlu1 %752 }
 0x13f   : > { %829 = vst.msk [vmem:[#allocation3 + $0xa0] sm:$0xff] %vm808_vm3, %v753_v7  ;;  %v757_v42 = vpop.permute.xlu0 %756  ;;  %964 = vrot.lane.b32.xlu2 %v3516_v0, %s2919_s26 }
 0x140   : > { %831 = vst.msk [vmem:[#allocation3 + $0xb0] sm:$0xff] %vm808_vm3, %v757_v42  ;;  %v4424_v42 = vld [vmem:[#allocation11_spill] sm:$0xff] }
 0x141   : > { %v767_v45 = vpop.permute.xlu2 %766 }
 0x142   : > { %836 = vst.msk [vmem:[#allocation3 + $0xd8] sm:$0xff] %vm808_vm3, %v767_v45 }
 0x144   : > { %1103 = vrot.lane.b32.xlu1 %v3120_v15, %s2920_s27 }
 0x145   : > { %1107 = vrot.lane.b32.xlu0 %v3155_v28, %s2920_s27 }
 0x146   : > { %v759_v3 = vpop.permute.xlu1 %758 }
 0x147   : > { %832 = vst.msk [vmem:[#allocation3 + $0xb8] sm:$0xff] %vm808_vm3, %v759_v3  ;;  %v763_v11 = vpop.permute.xlu0 %762  ;;  %970 = vrot.lane.b32.xlu2 %v2635_v10, %s2919_s26  ;;  %v4425_v10 = vld [vmem:[#allocation15_spill] sm:$0xff]  ;;  %v4426_v3 = vld [vmem:[#allocation22_spill] sm:$0xff] }
 0x148   : > { %834 = vst.msk [vmem:[#allocation3 + $0xc8] sm:$0xff] %vm808_vm3, %v763_v11 }
 0x149   : > { %v773_v0 = vpop.permute.xlu2 %772 }
 0x14a   : > { %839 = vst.msk [vmem:[#allocation3 + $0xf0] sm:$0xff] %vm808_vm3, %v773_v0 }
 0x14c   : > { %1109 = vrot.lane.b32.xlu1 %v3126_v17, %s2920_s27 }
 0x14d   : > { %1113 = vrot.lane.b32.xlu0 %v3174_v34, %s2920_s27 }
 0x14e   : > { %v765_v15 = vpop.permute.xlu1 %764 }
 0x14f   : > { %835 = vst.msk [vmem:[#allocation3 + $0xd0] sm:$0xff] %vm808_vm3, %v765_v15  ;;  %v769_v28 = vpop.permute.xlu0 %768  ;;  %1105 = vrot.lane.b32.xlu2 %v3134_v20, %s2920_s27  ;;  %v4427_v15 = vld [vmem:[#allocation14_spill] sm:$0xff] }
 0x150   : > { %837 = vst.msk [vmem:[#allocation3 + $0xe0] sm:$0xff] %vm808_vm3, %v769_v28 }
 0x151   : > { %v911_v33 = vpop.permute.xlu2 %910 }
 0x152   : > { %1006 = vst.msk [vmem:[#allocation3 + $0x8] sm:$0xff] %vm1004_vm4, %v911_v33  ;;  %v4428_v33 = vld [vmem:[#allocation18_spill] sm:$0xff] }
 0x154   : > { %1115 = vrot.lane.b32.xlu1 %v3148_v26, %s2920_s27 }
 0x155   : > { %1119 = vrot.lane.b32.xlu0 %v3192_v40, %s2920_s27 }
 0x156   : > { %v771_v17 = vpop.permute.xlu1 %770 }
 0x157   : > { %838 = vst.msk [vmem:[#allocation3 + $0xe8] sm:$0xff] %vm808_vm3, %v771_v17  ;;  %v775_v34 = vpop.permute.xlu0 %774  ;;  %1111 = vrot.lane.b32.xlu2 %v3144_v24, %s2920_s27  ;;  %v4429_v17 = vld [vmem:[#allocation25_spill] sm:$0xff] }
 0x158   : > { %840 = vst.msk [vmem:[#allocation3 + $0xf8] sm:$0xff] %vm808_vm3, %v775_v34 }
 0x159   : > { %v917_v20 = vpop.permute.xlu2 %916 }
 0x15a   : > { %1009 = vst.msk [vmem:[#allocation3 + $0x20] sm:$0xff] %vm1004_vm4, %v917_v20 }
 0x15c   : > { %1121 = vrot.lane.b32.xlu1 %v3169_v32, %s2920_s27 }
 0x15d   : > { %1125 = vrot.lane.b32.xlu0 %v3210_v46, %s2920_s27 }
 0x15e   : > { %v909_v26 = vpop.permute.xlu1 %908 }
 0x15f   : > { %1005 = vst.msk [vmem:[#allocation3] sm:$0xff] %vm1004_vm4, %v909_v26  ;;  %v913_v40 = vpop.permute.xlu0 %912  ;;  %1117 = vrot.lane.b32.xlu2 %v3167_v31, %s2920_s27  ;;  %v4430_v26 = vld [vmem:[#allocation17_spill] sm:$0xff] }
 0x160   : > { %1007 = vst.msk [vmem:[#allocation3 + $0x10] sm:$0xff] %vm1004_vm4, %v913_v40 }
 0x161   : > { %v923_v24 = vpop.permute.xlu2 %922 }
 0x162   : > { %1012 = vst.msk [vmem:[#allocation3 + $0x38] sm:$0xff] %vm1004_vm4, %v923_v24  ;;  %v4431_v24 = vld [vmem:[#allocation21_spill] sm:$0xff] }
 0x164   : > { %1127 = vrot.lane.b32.xlu1 %v3187_v38, %s2920_s27 }
 0x165   : > { %1131 = vrot.lane.b32.xlu0 %v3225_v50, %s2920_s27 }
 0x166   : > { %v915_v32 = vpop.permute.xlu1 %914 }
 0x167   : > { %1008 = vst.msk [vmem:[#allocation3 + $0x18] sm:$0xff] %vm1004_vm4, %v915_v32  ;;  %v919_v46 = vpop.permute.xlu0 %918  ;;  %1123 = vrot.lane.b32.xlu2 %v3185_v37, %s2920_s27  ;;  %v4432_v32 = vld [vmem:[#allocation28_spill] sm:$0xff] }
 0x168   : > { %1010 = vst.msk [vmem:[#allocation3 + $0x28] sm:$0xff] %vm1004_vm4, %v919_v46 }
 0x169   : > { %v929_v31 = vpop.permute.xlu2 %928 }
 0x16a   : > { %1015 = vst.msk [vmem:[#allocation3 + $0x50] sm:$0xff] %vm1004_vm4, %v929_v31 }
 0x16c   : > { %1133 = vrot.lane.b32.xlu1 %v3205_v44, %s2920_s27 }
 0x16d   : > { %1137 = vrot.lane.b32.xlu0 %v3239_v54, %s2920_s27 }
 0x16e   : > { %v921_v38 = vpop.permute.xlu1 %920 }
 0x16f   : > { %1011 = vst.msk [vmem:[#allocation3 + $0x30] sm:$0xff] %vm1004_vm4, %v921_v38  ;;  %v925_v50 = vpop.permute.xlu0 %924  ;;  %1129 = vrot.lane.b32.xlu2 %v3203_v43, %s2920_s27  ;;  %v4433_v38 = vld [vmem:[#allocation20_spill] sm:$0xff] }
 0x170   : > { %1013 = vst.msk [vmem:[#allocation3 + $0x40] sm:$0xff] %vm1004_vm4, %v925_v50 }
 0x171   : > { %v935_v37 = vpop.permute.xlu2 %934 }
 0x172   : > { %1018 = vst.msk [vmem:[#allocation3 + $0x68] sm:$0xff] %vm1004_vm4, %v935_v37  ;;  %v4434_v37 = vld [vmem:[#allocation24_spill] sm:$0xff] }
 0x174   : > { %1139 = vrot.lane.b32.xlu1 %v3221_v49, %s2920_s27 }
 0x175   : > { %1143 = vrot.lane.b32.xlu0 %v3251_v57, %s2920_s27 }
 0x176   : > { %v927_v44 = vpop.permute.xlu1 %926 }
 0x177   : > { %1014 = vst.msk [vmem:[#allocation3 + $0x48] sm:$0xff] %vm1004_vm4, %v927_v44  ;;  %v931_v54 = vpop.permute.xlu0 %930  ;;  %1135 = vrot.lane.b32.xlu2 %v3219_v48, %s2920_s27  ;;  %v4435_v44 = vld [vmem:[#allocation31_spill] sm:$0xff] }
 0x178   : > { %1016 = vst.msk [vmem:[#allocation3 + $0x58] sm:$0xff] %vm1004_vm4, %v931_v54 }
 0x179   : > { %v941_v43 = vpop.permute.xlu2 %940 }
 0x17a   : > { %1021 = vst.msk [vmem:[#allocation3 + $0x80] sm:$0xff] %vm1004_vm4, %v941_v43 }
 0x17c   : > { %1145 = vrot.lane.b32.xlu1 %v3235_v53, %s2920_s27 }
 0x17d   : > { %1149 = vrot.lane.b32.xlu0 %v3263_v60, %s2920_s27 }
 0x17e   : > { %v933_v49 = vpop.permute.xlu1 %932 }
 0x17f   : > { %1017 = vst.msk [vmem:[#allocation3 + $0x60] sm:$0xff] %vm1004_vm4, %v933_v49  ;;  %v937_v57 = vpop.permute.xlu0 %936  ;;  %1141 = vrot.lane.b32.xlu2 %v3233_v52, %s2920_s27  ;;  %v4436_v49 = vld [vmem:[#allocation23_spill] sm:$0xff] }
 0x180   : > { %1019 = vst.msk [vmem:[#allocation3 + $0x70] sm:$0xff] %vm1004_vm4, %v937_v57 }
 0x181   : > { %v947_v48 = vpop.permute.xlu2 %946 }
 0x182   : > { %1024 = vst.msk [vmem:[#allocation3 + $0x98] sm:$0xff] %vm1004_vm4, %v947_v48  ;;  %v4437_v48 = vld [vmem:[#allocation27_spill] sm:$0xff] }
 0x184   : > { %1151 = vrot.lane.b32.xlu1 %v3247_v56, %s2920_s27 }
 0x185   : > { %1155 = vrot.lane.b32.xlu0 %v3279_v2, %s2920_s27 }
 0x186   : > { %v939_v53 = vpop.permute.xlu1 %938 }
 0x187   : > { %1020 = vst.msk [vmem:[#allocation3 + $0x78] sm:$0xff] %vm1004_vm4, %v939_v53  ;;  %v943_v60 = vpop.permute.xlu0 %942  ;;  %1147 = vrot.lane.b32.xlu2 %v3245_v55, %s2920_s27  ;;  %v2667_v55 = vld [vmem:[#allocation2 + $0x189] sm:$0xff] }
 0x188   : > { %1022 = vst.msk [vmem:[#allocation3 + $0x88] sm:$0xff] %vm1004_vm4, %v943_v60 }
 0x189   : > { %v953_v52 = vpop.permute.xlu2 %952 }
 0x18a   : > { %1027 = vst.msk [vmem:[#allocation3 + $0xb0] sm:$0xff] %vm1004_vm4, %v953_v52  ;;  %v4438_v52 = vld [vmem:[#allocation26_spill] sm:$0xff] }
 0x18c   : > { %1157 = vrot.lane.b32.xlu1 %v3259_v59, %s2920_s27  ;;  %v4414_v59 = vld [vmem:[#allocation10_spill] sm:$0xff] }
 0x18d   : > { %1161 = vrot.lane.b32.xlu0 %v2666_v12, %s2920_s27 }
 0x18e   : > { %v945_v56 = vpop.permute.xlu1 %944 }
 0x18f   : > { %1023 = vst.msk [vmem:[#allocation3 + $0x90] sm:$0xff] %vm1004_vm4, %v945_v56  ;;  %v949_v2 = vpop.permute.xlu0 %948  ;;  %1153 = vrot.lane.b32.xlu2 %v4413_v19, %s2920_s27  ;;  %v4439_v56 = vld [vmem:[#allocation30_spill] sm:$0xff]  ;;  %v4440_v19 = vld [vmem:[#allocation29_spill] sm:$0xff] }
 0x190   : > { %1025 = vst.msk [vmem:[#allocation3 + $0xa0] sm:$0xff] %vm1004_vm4, %v949_v2 }
 0x191   : > { %v959_v16 = vpop.permute.xlu2 %958 }
 0x192   : > { %1030 = vst.msk [vmem:[#allocation3 + $0xc8] sm:$0xff] %vm1004_vm4, %v959_v16  ;;  %v2732_v16 = vld [vmem:[#allocation2 + $0x31] sm:$0xff] }
 0x194   : > { %1163 = vrot.lane.b32.xlu1 %v2667_v55, %s2920_s27 }
 0x195   : > { %1296 = vrot.lane.b32.xlu0 %v4414_v59, %s2921_s28  ;;  %v4441_v59 = vld [vmem:[#allocation33_spill] sm:$0xff] }
 0x196   : > { %v951_v21 = vpop.permute.xlu1 %950 }
 0x197   : > { %1026 = vst.msk [vmem:[#allocation3 + $0xa8] sm:$0xff] %vm1004_vm4, %v951_v21  ;;  %v955_v14 = vpop.permute.xlu0 %954  ;;  %1159 = vrot.lane.b32.xlu2 %v4415_v35, %s2920_s27  ;;  %v2764_v35 = vld [vmem:[#allocation2 + $0x32] sm:$0xff] }
 0x198   : > { %1028 = vst.msk [vmem:[#allocation3 + $0xb8] sm:$0xff] %vm1004_vm4, %v955_v14  ;;  %v4442_v14 = vld [vmem:[#allocation32_spill] sm:$0xff] }
 0x199   : > { %v965_v23 = vpop.permute.xlu2 %964 }
 0x19a   : > { %1033 = vst.msk [vmem:[#allocation3 + $0xe0] sm:$0xff] %vm1004_vm4, %v965_v23 }
 0x19c   : > { %1298 = vrot.lane.b32.xlu1 %v4416_v58, %s2921_s28  ;;  %v2733_v58 = vld [vmem:[#allocation2 + $0x39] sm:$0xff] }
 0x19d   : > { %1302 = vrot.lane.b32.xlu0 %v4417_v51, %s2921_s28  ;;  %v2700_v51 = vld [vmem:[#allocation2 + $0x30] sm:$0xff] }
 0x19e   : > { %v957_v30 = vpop.permute.xlu1 %956 }
 0x19f   : > { %1029 = vst.msk [vmem:[#allocation3 + $0xc0] sm:$0xff] %vm1004_vm4, %v957_v30  ;;  %v961_v62 = vpop.permute.xlu0 %960  ;;  %1294 = vrot.lane.b32.xlu2 %v4418_v4, %s2921_s28  ;;  %v2765_v4 = vld [vmem:[#allocation2 + $0x3a] sm:$0xff] }
 0x1a0   : > { %1031 = vst.msk [vmem:[#allocation3 + $0xd0] sm:$0xff] %vm1004_vm4, %v961_v62 }
 0x1a1   : > { %v971_v6 = vpop.permute.xlu2 %970 }
 0x1a2   : > { %1036 = vst.msk [vmem:[#allocation3 + $0xf8] sm:$0xff] %vm1004_vm4, %v971_v6 }
 0x1a4   : > { %1304 = vrot.lane.b32.xlu1 %v4419_v61, %s2921_s28  ;;  %v2701_v61 = vld [vmem:[#allocation2 + $0x38] sm:$0xff] }
 0x1a5   : > { %1308 = vrot.lane.b32.xlu0 %v4420_v1, %s2921_s28 }
 0x1a6   : > { %v963_v22 = vpop.permute.xlu1 %962 }
 0x1a7   : > { %1032 = vst.msk [vmem:[#allocation3 + $0xd8] sm:$0xff] %vm1004_vm4, %v963_v22  ;;  %v967_v39 = vpop.permute.xlu0 %966  ;;  %1300 = vrot.lane.b32.xlu2 %v4421_v8, %s2921_s28 }
 0x1a8   : > { %1034 = vst.msk [vmem:[#allocation3 + $0xe8] sm:$0xff] %vm1004_vm4, %v967_v39  ;;  %v2734_v39 = vld [vmem:[#allocation2 + $0x49] sm:$0xff] }
 0x1a9   : > { %v1106_v13 = vpop.permute.xlu2 %1105 }
 0x1aa   : > { %1200 = vst.msk [vmem:[#allocation3 + $0x10] sm:$0xff] %vm1197_vm5, %v1106_v13  ;;  %v2766_v13 = vld [vmem:[#allocation2 + $0x4a] sm:$0xff] }
 0x1ac   : > { %1310 = vrot.lane.b32.xlu1 %v4422_v5, %s2921_s28  ;;  %v2702_v5 = vld [vmem:[#allocation2 + $0x48] sm:$0xff] }
 0x1ad   : > { %1314 = vrot.lane.b32.xlu0 %v4423_v9, %s2921_s28 }
 0x1ae   : > { %v969_v18 = vpop.permute.xlu1 %968 }
 0x1af   : > { %1035 = vst.msk [vmem:[#allocation3 + $0xf0] sm:$0xff] %vm1004_vm4, %v969_v18  ;;  %v1102_v7 = vpop.permute.xlu0 %1101  ;;  %1306 = vrot.lane.b32.xlu2 %v4424_v42, %s2921_s28  ;;  %v2772_v18 = vld [vmem:[#allocation2 + $0x92] sm:$0xff] }
 0x1b0   : > { %1198 = vst.msk [vmem:[#allocation3] sm:$0xff] %vm1197_vm5, %v1102_v7  ;;  %v2740_v42 = vld [vmem:[#allocation2 + $0x91] sm:$0xff] }
 0x1b1   : > { %v1112_v45 = vpop.permute.xlu2 %1111 }
 0x1b2   : > { %1203 = vst.msk [vmem:[#allocation3 + $0x28] sm:$0xff] %vm1197_vm5, %v1112_v45 }
 0x1b4   : > { %1316 = vrot.lane.b32.xlu1 %v4425_v10, %s2921_s28 }
 0x1b5   : > { %1320 = vrot.lane.b32.xlu0 %v4426_v3, %s2921_s28  ;;  %v2735_v3 = vld [vmem:[#allocation2 + $0x51] sm:$0xff] }
 0x1b6   : > { %v1104_v11 = vpop.permute.xlu1 %1103 }
 0x1b7   : > { %1199 = vst.msk [vmem:[#allocation3 + $0x8] sm:$0xff] %vm1197_vm5, %v1104_v11  ;;  %v1108_v0 = vpop.permute.xlu0 %1107  ;;  %1312 = vrot.lane.b32.xlu2 %v4427_v15, %s2921_s28 }
 0x1b8   : > { %1201 = vst.msk [vmem:[#allocation3 + $0x18] sm:$0xff] %vm1197_vm5, %v1108_v0  ;;  %v2703_v0 = vld [vmem:[#allocation2 + $0x50] sm:$0xff] }
 0x1b9   : > { %v1118_v28 = vpop.permute.xlu2 %1117 }
 0x1ba   : > { %1206 = vst.msk [vmem:[#allocation3 + $0x40] sm:$0xff] %vm1197_vm5, %v1118_v28  ;;  %v2767_v28 = vld [vmem:[#allocation2 + $0x52] sm:$0xff] }
 0x1bc   : > { %1322 = vrot.lane.b32.xlu1 %v4428_v33, %s2921_s28 }
 0x1bd   : > { %1326 = vrot.lane.b32.xlu0 %v4429_v17, %s2921_s28  ;;  %v2748_v17 = vld [vmem:[#allocation2 + $0xf1] sm:$0xff] }
 0x1be   : > { %v1110_v34 = vpop.permute.xlu1 %1109 }
 0x1bf   : > { %1202 = vst.msk [vmem:[#allocation3 + $0x20] sm:$0xff] %vm1197_vm5, %v1110_v34  ;;  %v1114_v20 = vpop.permute.xlu0 %1113  ;;  %1318 = vrot.lane.b32.xlu2 %v4430_v26, %s2921_s28  ;;  %v2741_v34 = vld [vmem:[#allocation2 + $0x99] sm:$0xff] }
 0x1c0   : > { %1204 = vst.msk [vmem:[#allocation3 + $0x30] sm:$0xff] %vm1197_vm5, %v1114_v20  ;;  %v2780_v26 = vld [vmem:[#allocation2 + $0xf2] sm:$0xff] }
 0x1c1   : > { %v1124_v40 = vpop.permute.xlu2 %1123 }
 0x1c2   : > { %1209 = vst.msk [vmem:[#allocation3 + $0x58] sm:$0xff] %vm1197_vm5, %v1124_v40 }
 0x1c4   : > { %1328 = vrot.lane.b32.xlu1 %v4431_v24, %s2921_s28  ;;  %v2710_v24 = vld [vmem:[#allocation2 + $0xa8] sm:$0xff] }
 0x1c5   : > { %1332 = vrot.lane.b32.xlu0 %v4432_v32, %s2921_s28  ;;  %v2773_v32 = vld [vmem:[#allocation2 + $0x9a] sm:$0xff] }
 0x1c6   : > { %v1116_v46 = vpop.permute.xlu1 %1115 }
 0x1c7   : > { %1205 = vst.msk [vmem:[#allocation3 + $0x38] sm:$0xff] %vm1197_vm5, %v1116_v46  ;;  %v1120_v31 = vpop.permute.xlu0 %1119  ;;  %1324 = vrot.lane.b32.xlu2 %v4433_v38, %s2921_s28  ;;  %v2736_v38 = vld [vmem:[#allocation2 + $0x61] sm:$0xff] }
 0x1c8   : > { %1207 = vst.msk [vmem:[#allocation3 + $0x48] sm:$0xff] %vm1197_vm5, %v1120_v31 }
 0x1c9   : > { %v1130_v50 = vpop.permute.xlu2 %1129 }
 0x1ca   : > { %1212 = vst.msk [vmem:[#allocation3 + $0x70] sm:$0xff] %vm1197_vm5, %v1130_v50 }
 0x1cc   : > { %1334 = vrot.lane.b32.xlu1 %v4434_v37, %s2921_s28  ;;  %v2704_v37 = vld [vmem:[#allocation2 + $0x60] sm:$0xff] }
 0x1cd   : > { %1338 = vrot.lane.b32.xlu0 %v4435_v44, %s2921_s28 }
 0x1ce   : > { %v1122_v54 = vpop.permute.xlu1 %1121 }
 0x1cf   : > { %1208 = vst.msk [vmem:[#allocation3 + $0x50] sm:$0xff] %vm1197_vm5, %v1122_v54  ;;  %v1126_v43 = vpop.permute.xlu0 %1125  ;;  %1330 = vrot.lane.b32.xlu2 %v4436_v49, %s2921_s28 }
 0x1d0   : > { %1210 = vst.msk [vmem:[#allocation3 + $0x60] sm:$0xff] %vm1197_vm5, %v1126_v43  ;;  %v2768_v43 = vld [vmem:[#allocation2 + $0x62] sm:$0xff] }
 0x1d1   : > { %v1136_v57 = vpop.permute.xlu2 %1135 }
 0x1d2   : > { %1215 = vst.msk [vmem:[#allocation3 + $0x88] sm:$0xff] %vm1197_vm5, %v1136_v57  ;;  %v2749_v57 = vld [vmem:[#allocation2 + $0xf9] sm:$0xff] }
 0x1d4   : > { %1340 = vrot.lane.b32.xlu1 %v4437_v48, %s2921_s28  ;;  %v2742_v48 = vld [vmem:[#allocation2 + $0xa9] sm:$0xff] }
 0x1d5   : > { %1344 = vrot.lane.b32.xlu0 %v3528_v27, %s2921_s28 }
 0x1d6   : > { %v1128_v53 = vpop.permute.xlu1 %1127 }
 0x1d7   : > { %1211 = vst.msk [vmem:[#allocation3 + $0x68] sm:$0xff] %vm1197_vm5, %v1128_v53  ;;  %v1132_v60 = vpop.permute.xlu0 %1131  ;;  %1336 = vrot.lane.b32.xlu2 %v4438_v52, %s2921_s28 }
 0x1d8   : > { %1213 = vst.msk [vmem:[#allocation3 + $0x78] sm:$0xff] %vm1197_vm5, %v1132_v60  ;;  %v2781_v60 = vld [vmem:[#allocation2 + $0xfa] sm:$0xff] }
 0x1d9   : > { %v1142_v12 = vpop.permute.xlu2 %1141 }
 0x1da   : > { %1218 = vst.msk [vmem:[#allocation3 + $0xa0] sm:$0xff] %vm1197_vm5, %v1142_v12  ;;  %v2711_v12 = vld [vmem:[#allocation2 + $0xb0] sm:$0xff] }
 0x1dc   : > { %1346 = vrot.lane.b32.xlu1 %v4439_v56, %s2921_s28  ;;  %v2774_v56 = vld [vmem:[#allocation2 + $0xaa] sm:$0xff] }
 0x1dd   : > { %1350 = vrot.lane.b32.xlu0 %v3543_v29, %s2921_s28 }
 0x1de   : > { %v1134_v2 = vpop.permute.xlu1 %1133 }
 0x1df   : > { %1214 = vst.msk [vmem:[#allocation3 + $0x80] sm:$0xff] %vm1197_vm5, %v1134_v2  ;;  %v1138_v27 = vpop.permute.xlu0 %1137  ;;  %1342 = vrot.lane.b32.xlu2 %v4440_v19, %s2921_s28  ;;  %v2045_v2 = vld [vmem:[%s4350_s3 + $0x40] sm:$0xff] }
 0x1e0   : > { %1216 = vst.msk [vmem:[#allocation3 + $0x90] sm:$0xff] %vm1197_vm5, %v1138_v27  ;;  %2150 = vmatpush.msra.mxu0 %v2045_v2  ;;  %2832 = vmatpush.msra.mxu1 %v2045_v2 }
 0x1e1   : > { %v1148_v55 = vpop.permute.xlu2 %1147  ;;  %2833 = vmatpush.msra.mxu2 %v2045_v2  ;;  %2834 = vmatpush.msra.mxu3 %v2045_v2  ;;  %v2707_v2 = vld [vmem:[#allocation2 + $0x80] sm:$0xff] }
 0x1e2   : > { %1221 = vst.msk [vmem:[#allocation3 + $0xb8] sm:$0xff] %vm1197_vm5, %v1148_v55  ;;  %v2044_v55 = vld [vmem:[%s4350_s3 + $0x38] sm:$0xff] }
 0x1e3   : > { %2151 = vmatpush.msra.mxu0 %v2044_v55  ;;  %2835 = vmatpush.msra.mxu1 %v2044_v55 }
 0x1e4   : > { %1352 = vrot.lane.b32.xlu1 %v4441_v59, %s2921_s28  ;;  %v2737_v59 = vld [vmem:[#allocation2 + $0x69] sm:$0xff]  ;;  %2836 = vmatpush.msra.mxu2 %v2044_v55 }
 0x1e5   : > { %1683 = vrot.lane.b32.xlu0 %v2732_v16, %s2922_s29  ;;  %v2043_v16 = vld [vmem:[%s4350_s3 + $0x30] sm:$0xff]  ;;  %2837 = vmatpush.msra.mxu3 %v2044_v55 }
 0x1e6   : > { %v1140_v29 = vpop.permute.xlu1 %1139  ;;  %2152 = vmatpush.msra.mxu0 %v2043_v16  ;;  %2838 = vmatpush.msra.mxu1 %v2043_v16 }
 0x1e7   : > { %1217 = vst.msk [vmem:[#allocation3 + $0x98] sm:$0xff] %vm1197_vm5, %v1140_v29  ;;  %v1144_v21 = vpop.permute.xlu0 %1143  ;;  %1348 = vrot.lane.b32.xlu2 %v4442_v14, %s2921_s28  ;;  %v2718_v14 = vld [vmem:[#allocation2 + $0x108] sm:$0xff]  ;;  %2839 = vmatpush.msra.mxu2 %v2043_v16 }
 0x1e8   : > { %1219 = vst.msk [vmem:[#allocation3 + $0xa8] sm:$0xff] %vm1197_vm5, %v1144_v21  ;;  %v2042_v21 = vld [vmem:[%s4350_s3 + $0x28] sm:$0xff]  ;;  %2840 = vmatpush.msra.mxu3 %v2043_v16 }
 0x1e9   : > { %v1154_v23 = vpop.permute.xlu2 %1153  ;;  %2153 = vmatpush.msra.mxu0 %v2042_v21  ;;  %2841 = vmatpush.msra.mxu1 %v2042_v21  ;;  %v2726_v16 = vld [vmem:[#allocation2 + $0x168] sm:$0xff] }
 0x1ea   : > { %1224 = vst.msk [vmem:[#allocation3 + $0xd0] sm:$0xff] %vm1197_vm5, %v1154_v23  ;;  %v2041_v23 = vld [vmem:[%s4350_s3 + $0x20] sm:$0xff]  ;;  %2842 = vmatpush.msra.mxu2 %v2042_v21  ;;  %2843 = vmatpush.msra.mxu3 %v2042_v21  ;;  %v2745_v21 = vld [vmem:[#allocation2 + $0xc9] sm:$0xff] }
 0x1eb   : > { %2154 = vmatpush.msra.mxu0 %v2041_v23  ;;  %2844 = vmatpush.msra.mxu1 %v2041_v23 }
 0x1ec   : > { %1876 = vrot.lane.b32.xlu1 %v2764_v35, %s2923_s30  ;;  %v2705_v35 = vld [vmem:[#allocation2 + $0x68] sm:$0xff]  ;;  %2845 = vmatpush.msra.mxu2 %v2041_v23 }
 0x1ed   : > { %1685 = vrot.lane.b32.xlu0 %v2733_v58, %s2922_s29  ;;  %2846 = vmatpush.msra.mxu3 %v2041_v23 }
 0x1ee   : > { %v1146_v30 = vpop.permute.xlu1 %1145 }
 0x1ef   : > { %1220 = vst.msk [vmem:[#allocation3 + $0xb0] sm:$0xff] %vm1197_vm5, %v1146_v30  ;;  %v1150_v62 = vpop.permute.xlu0 %1149  ;;  %1490 = vrot.lane.b32.xlu2 %v2700_v51, %s2924_s6  ;;  %v2040_v30 = vld [vmem:[%s4350_s3 + $0x18] sm:$0xff] }
 0x1f0   : > { %1222 = vst.msk [vmem:[#allocation3 + $0xc0] sm:$0xff] %vm1197_vm5, %v1150_v62  ;;  %2155 = vmatpush.msra.mxu0 %v2040_v30  ;;  %v2039_v62 = vld [vmem:[%s4350_s3 + $0x10] sm:$0xff]  ;;  %2847 = vmatpush.msra.mxu1 %v2040_v30 }
 0x1f1   : > { %v1160_v6 = vpop.permute.xlu2 %1159  ;;  %2848 = vmatpush.msra.mxu2 %v2040_v30  ;;  %2849 = vmatpush.msra.mxu3 %v2040_v30  ;;  %v2784_v30 = vld [vmem:[#allocation2 + $0x122] sm:$0xff] }
 0x1f2   : > { %1227 = vst.msk [vmem:[#allocation3 + $0xe8] sm:$0xff] %vm1197_vm5, %v1160_v6  ;;  %v2038_v6 = vld [vmem:[%s4350_s3 + $0x8] sm:$0xff]  ;;  %2156 = vmatpush.msra.mxu0 %v2039_v62  ;;  %2850 = vmatpush.msra.mxu1 %v2039_v62 }
 0x1f3   : > { %2851 = vmatpush.msra.mxu2 %v2039_v62  ;;  %2852 = vmatpush.msra.mxu3 %v2039_v62  ;;  %v2771_v62 = vld [vmem:[#allocation2 + $0x82] sm:$0xff] }
 0x1f4   : > { %1878 = vrot.lane.b32.xlu1 %v2765_v4, %s2923_s30  ;;  %2157 = vmatpush.msra.mxu0 %v2038_v6 }
 0x1f5   : > { %1506 = vrot.lane.b32.xlu0 %v3359_v36, %s2924_s6  ;;  %2853 = vmatpush.msra.mxu1 %v2038_v6 }
 0x1f6   : > { %v1152_v1 = vpop.permute.xlu1 %1151  ;;  %2854 = vmatpush.msra.mxu2 %v2038_v6  ;;  %2855 = vmatpush.msra.mxu3 %v2038_v6 }
 0x1f7   : > { %1223 = vst.msk [vmem:[#allocation3 + $0xc8] sm:$0xff] %vm1197_vm5, %v1152_v1  ;;  %v1156_v22 = vpop.permute.xlu0 %1155  ;;  %1492 = vrot.lane.b32.xlu2 %v2701_v61, %s2924_s6  ;;  %v2775_v61 = vld [vmem:[#allocation2 + $0xb2] sm:$0xff] }
 0x1f8   : > { %1225 = vst.msk [vmem:[#allocation3 + $0xd8] sm:$0xff] %vm1197_vm5, %v1156_v22  ;;  %v2743_v1 = vld [vmem:[#allocation2 + $0xb1] sm:$0xff]  ;;  %v2037_v22 = vld [vmem:[%s4350_s3] sm:$0xff] }
 0x1f9   : > { %v1295_v8 = vpop.permute.xlu2 %1294  ;;  %2158 = vmatpush.msra.mxu0 %v2037_v22  ;;  %2856 = vmatpush.msra.mxu1 %v2037_v22 }
 0x1fa   : > { %1391 = vst.msk [vmem:[#allocation3] sm:$0xff] %vm1390_vm6, %v1295_v8  ;;  %2857 = vmatpush.msra.mxu2 %v2037_v22  ;;  %2858 = vmatpush.msra.mxu3 %v2037_v22 }
 0x1fc   : > { %1687 = vrot.lane.b32.xlu1 %v2734_v39, %s2922_s29 }
 0x1fd   : > { %1880 = vrot.lane.b32.xlu0 %v2766_v13, %s2923_s30 }
 0x1fe   : > { %v1158_v36 = vpop.permute.xlu1 %1157 }
 0x1ff   : > { %1226 = vst.msk [vmem:[#allocation3 + $0xe0] sm:$0xff] %vm1197_vm5, %v1158_v36  ;;  %v1162_v9 = vpop.permute.xlu0 %1161  ;;  %1494 = vrot.lane.b32.xlu2 %v2702_v5, %s2924_s6  ;;  %v2782_v5 = vld [vmem:[#allocation2 + $0x10a] sm:$0xff] }
 0x200   : > { %1228 = vst.msk [vmem:[#allocation3 + $0xf0] sm:$0xff] %vm1197_vm5, %v1162_v9  ;;  %v2769_v36 = vld [vmem:[#allocation2 + $0x6a] sm:$0xff] }
 0x201   : > { %v1301_v7 = vpop.permute.xlu2 %1300 }
 0x202   : > { %1394 = vst.msk [vmem:[#allocation3 + $0x18] sm:$0xff] %vm1390_vm6, %v1301_v7  ;;  %v2788_v7 = vld [vmem:[#allocation2 + $0x152] sm:$0xff] }
 0x204   : > { %1892 = vrot.lane.b32.xlu1 %v2772_v18, %s2923_s30 }
 0x205   : > { %1508 = vrot.lane.b32.xlu0 %v3376_v47, %s2924_s6 }
 0x206   : > { %v1164_v45 = vpop.permute.xlu1 %1163 }
 0x207   : > { %1229 = vst.msk [vmem:[#allocation3 + $0xf8] sm:$0xff] %vm1197_vm5, %v1164_v45  ;;  %v1297_v10 = vpop.permute.xlu0 %1296  ;;  %1699 = vrot.lane.b32.xlu2 %v2740_v42, %s2922_s29  ;;  %v2712_v45 = vld [vmem:[#allocation2 + $0xc0] sm:$0xff] }
 0x208   : > { %1392 = vst.msk [vmem:[#allocation3 + $0x8] sm:$0xff] %vm1390_vm6, %v1297_v10  ;;  %v2756_v10 = vld [vmem:[#allocation2 + $0x151] sm:$0xff] }
 0x209   : > { %v1307_v11 = vpop.permute.xlu2 %1306 }
 0x20a   : > { %1397 = vst.msk [vmem:[#allocation3 + $0x30] sm:$0xff] %vm1390_vm6, %v1307_v11 }
 0x20c   : > { %1689 = vrot.lane.b32.xlu1 %v2735_v3, %s2922_s29 }
 0x20d   : > { %1522 = vrot.lane.b32.xlu0 %v3408_v41, %s2924_s6 }
 0x20e   : > { %v1299_v15 = vpop.permute.xlu1 %1298 }
 0x20f   : > { %1393 = vst.msk [vmem:[#allocation3 + $0x10] sm:$0xff] %vm1390_vm6, %v1299_v15  ;;  %v1303_v47 = vpop.permute.xlu0 %1302  ;;  %1496 = vrot.lane.b32.xlu2 %v2703_v0, %s2924_s6  ;;  %v2738_v0 = vld [vmem:[#allocation2 + $0x79] sm:$0xff] }
 0x210   : > { %1395 = vst.msk [vmem:[#allocation3 + $0x20] sm:$0xff] %vm1390_vm6, %v1303_v47  ;;  %v2719_v47 = vld [vmem:[#allocation2 + $0x110] sm:$0xff] }
 0x211   : > { %v1313_v33 = vpop.permute.xlu2 %1312 }
 0x212   : > { %1400 = vst.msk [vmem:[#allocation3 + $0x48] sm:$0xff] %vm1390_vm6, %v1313_v33 }
 0x214   : > { %1882 = vrot.lane.b32.xlu1 %v2767_v28, %s2923_s30  ;;  %v2706_v28 = vld [vmem:[#allocation2 + $0x78] sm:$0xff] }
 0x215   : > { %1715 = vrot.lane.b32.xlu0 %v2748_v17, %s2922_s29 }
 0x216   : > { %v1305_v20 = vpop.permute.xlu1 %1304 }
 0x217   : > { %1396 = vst.msk [vmem:[#allocation3 + $0x28] sm:$0xff] %vm1390_vm6, %v1305_v20  ;;  %v1309_v41 = vpop.permute.xlu0 %1308  ;;  %1701 = vrot.lane.b32.xlu2 %v2741_v34, %s2922_s29  ;;  %v2725_v34 = vld [vmem:[#allocation2 + $0x158] sm:$0xff] }
 0x218   : > { %1398 = vst.msk [vmem:[#allocation3 + $0x38] sm:$0xff] %vm1390_vm6, %v1309_v41  ;;  %v2776_v41 = vld [vmem:[#allocation2 + $0xc2] sm:$0xff] }
 0x219   : > { %v1319_v40 = vpop.permute.xlu2 %1318 }
 0x21a   : > { %1403 = vst.msk [vmem:[#allocation3 + $0x60] sm:$0xff] %vm1390_vm6, %v1319_v40 }
 0x21c   : > { %1908 = vrot.lane.b32.xlu1 %v2780_v26, %s2923_s30  ;;  %v2744_v26 = vld [vmem:[#allocation2 + $0xc1] sm:$0xff] }
 0x21d   : > { %1510 = vrot.lane.b32.xlu0 %v2710_v24, %s2924_s6 }
 0x21e   : > { %v1311_v46 = vpop.permute.xlu1 %1310 }
 0x21f   : > { %1399 = vst.msk [vmem:[#allocation3 + $0x40] sm:$0xff] %vm1390_vm6, %v1311_v46  ;;  %v1315_v31 = vpop.permute.xlu0 %1314  ;;  %1894 = vrot.lane.b32.xlu2 %v2773_v32, %s2923_s30  ;;  %v2751_v46 = vld [vmem:[#allocation2 + $0x111] sm:$0xff] }
 0x220   : > { %1401 = vst.msk [vmem:[#allocation3 + $0x50] sm:$0xff] %vm1390_vm6, %v1315_v31 }
 0x221   : > { %v1325_v50 = vpop.permute.xlu2 %1324 }
 0x222   : > { %1406 = vst.msk [vmem:[#allocation3 + $0x78] sm:$0xff] %vm1390_vm6, %v1325_v50  ;;  %v2770_v50 = vld [vmem:[#allocation2 + $0x7a] sm:$0xff] }
 0x224   : > { %1691 = vrot.lane.b32.xlu1 %v2736_v38, %s2922_s29  ;;  %v2783_v38 = vld [vmem:[#allocation2 + $0x112] sm:$0xff] }
 0x225   : > { %1524 = vrot.lane.b32.xlu0 %v3438_v63, %s2924_s6 }
 0x226   : > { %v1317_v44 = vpop.permute.xlu1 %1316 }
 0x227   : > { %1402 = vst.msk [vmem:[#allocation3 + $0x58] sm:$0xff] %vm1390_vm6, %v1317_v44  ;;  %v1321_v54 = vpop.permute.xlu0 %1320  ;;  %1498 = vrot.lane.b32.xlu2 %v2704_v37, %s2924_s6 }
 0x228   : > { %1404 = vst.msk [vmem:[#allocation3 + $0x68] sm:$0xff] %vm1390_vm6, %v1321_v54 }
 0x229   : > { %v1331_v49 = vpop.permute.xlu2 %1330 }
 0x22a   : > { %1409 = vst.msk [vmem:[#allocation3 + $0x90] sm:$0xff] %vm1390_vm6, %v1331_v49 }
 0x22c   : > { %1884 = vrot.lane.b32.xlu1 %v2768_v43, %s2923_s30  ;;  %v2789_v43 = vld [vmem:[#allocation2 + $0x15a] sm:$0xff] }
 0x22d   : > { %1717 = vrot.lane.b32.xlu0 %v2749_v57, %s2922_s29  ;;  %v2713_v57 = vld [vmem:[#allocation2 + $0xc8] sm:$0xff] }
 0x22e   : > { %v1323_v53 = vpop.permute.xlu1 %1322 }
 0x22f   : > { %1405 = vst.msk [vmem:[#allocation3 + $0x70] sm:$0xff] %vm1390_vm6, %v1323_v53  ;;  %v1327_v63 = vpop.permute.xlu0 %1326  ;;  %1703 = vrot.lane.b32.xlu2 %v2742_v48, %s2922_s29  ;;  %v2757_v48 = vld [vmem:[#allocation2 + $0x159] sm:$0xff] }
 0x230   : > { %1407 = vst.msk [vmem:[#allocation3 + $0x80] sm:$0xff] %vm1390_vm6, %v1327_v63 }
 0x231   : > { %v1337_v52 = vpop.permute.xlu2 %1336 }
 0x232   : > { %1412 = vst.msk [vmem:[#allocation3 + $0xa8] sm:$0xff] %vm1390_vm6, %v1337_v52  ;;  %v2739_v52 = vld [vmem:[#allocation2 + $0x81] sm:$0xff] }
 0x234   : > { %1910 = vrot.lane.b32.xlu1 %v2781_v60, %s2923_s30 }
 0x235   : > { %1512 = vrot.lane.b32.xlu0 %v2711_v12, %s2924_s6 }
 0x236   : > { %v1329_v27 = vpop.permute.xlu1 %1328 }
 0x237   : > { %1408 = vst.msk [vmem:[#allocation3 + $0x88] sm:$0xff] %vm1390_vm6, %v1329_v27  ;;  %v1333_v19 = vpop.permute.xlu0 %1332  ;;  %1896 = vrot.lane.b32.xlu2 %v2774_v56, %s2923_s30  ;;  %v2720_v56 = vld [vmem:[#allocation2 + $0x120] sm:$0xff] }
 0x238   : > { %1410 = vst.msk [vmem:[#allocation3 + $0x98] sm:$0xff] %vm1390_vm6, %v1333_v19 }
 0x239   : > { %v1343_v29 = vpop.permute.xlu2 %1342 }
 0x23a   : > { %1415 = vst.msk [vmem:[#allocation3 + $0xc0] sm:$0xff] %vm1390_vm6, %v1343_v29  ;;  %v2777_v29 = vld [vmem:[#allocation2 + $0xca] sm:$0xff] }
 0x23c   : > { %1693 = vrot.lane.b32.xlu1 %v2737_v59, %s2922_s29 }
 0x23d   : > { %1526 = vrot.lane.b32.xlu0 %v2718_v14, %s2924_s6 }
 0x23e   : > { %v1335_v58 = vpop.permute.xlu1 %1334 }
 0x23f   : > { %1411 = vst.msk [vmem:[#allocation3 + $0xa0] sm:$0xff] %vm1390_vm6, %v1335_v58  ;;  %v1339_v51 = vpop.permute.xlu0 %1338  ;;  %1500 = vrot.lane.b32.xlu2 %v2705_v35, %s2924_s6  ;;  %v2752_v58 = vld [vmem:[#allocation2 + $0x121] sm:$0xff] }
 0x240   : > { %1413 = vst.msk [vmem:[#allocation3 + $0xb0] sm:$0xff] %vm1390_vm6, %v1339_v51 }
 0x241   : > { %v1349_v4 = vpop.permute.xlu2 %1348 }
 0x242   : > { %1418 = vst.msk [vmem:[#allocation3 + $0xd8] sm:$0xff] %vm1390_vm6, %v1349_v4 }
 0x244   : > { %1538 = vrot.lane.b32.xlu1 %v3509_v25, %s2924_s6  ;;  %v2750_v25 = vld [vmem:[#allocation2 + $0x109] sm:$0xff] }
 0x245   : > { %1898 = vrot.lane.b32.xlu0 %v2775_v61, %s2923_s30 }
 0x246   : > { %v1341_v39 = vpop.permute.xlu1 %1340 }
 0x247   : > { %1414 = vst.msk [vmem:[#allocation3 + $0xb8] sm:$0xff] %vm1390_vm6, %v1341_v39  ;;  %v1345_v8 = vpop.permute.xlu0 %1344  ;;  %1705 = vrot.lane.b32.xlu2 %v2743_v1, %s2922_s29  ;;  %v2790_v1 = vld [vmem:[#allocation2 + $0x16a] sm:$0xff]  ;;  %v2746_v39 = vld [vmem:[#allocation2 + $0xd9] sm:$0xff] }
 0x248   : > { %1416 = vst.msk [vmem:[#allocation3 + $0xc8] sm:$0xff] %vm1390_vm6, %v1345_v8  ;;  %v2758_v8 = vld [vmem:[#allocation2 + $0x169] sm:$0xff] }
 0x249   : > { %v1491_v13 = vpop.permute.xlu2 %1490 }
 0x24a   : > { %1587 = vst.msk [vmem:[#allocation3] sm:$0xff] %vm1586_vm7, %v1491_v13 }
 0x24c   : > { %1719 = vrot.lane.b32.xlu1 %v2750_v25, %s2922_s29 }
 0x24d   : > { %1912 = vrot.lane.b32.xlu0 %v2782_v5, %s2923_s30 }
 0x24e   : > { %v1347_v9 = vpop.permute.xlu1 %1346 }
 0x24f   : > { %1417 = vst.msk [vmem:[#allocation3 + $0xd0] sm:$0xff] %vm1390_vm6, %v1347_v9  ;;  %v1351_v18 = vpop.permute.xlu0 %1350  ;;  %1886 = vrot.lane.b32.xlu2 %v2769_v36, %s2923_s30  ;;  %v2721_v36 = vld [vmem:[#allocation2 + $0x128] sm:$0xff] }
 0x250   : > { %1419 = vst.msk [vmem:[#allocation3 + $0xe0] sm:$0xff] %vm1390_vm6, %v1351_v18 }
 0x251   : > { %v1493_v42 = vpop.permute.xlu2 %1492 }
 0x252   : > { %1588 = vst.msk [vmem:[#allocation3 + $0x8] sm:$0xff] %vm1586_vm7, %v1493_v42  ;;  %v2714_v42 = vld [vmem:[#allocation2 + $0xd8] sm:$0xff] }
 0x254   : > { %1924 = vrot.lane.b32.xlu1 %v2788_v7, %s2923_s30  ;;  %v2778_v7 = vld [vmem:[#allocation2 + $0xda] sm:$0xff] }
 0x255   : > { %1514 = vrot.lane.b32.xlu0 %v2712_v45, %s2924_s6 }
 0x256   : > { %v1353_v3 = vpop.permute.xlu1 %1352 }
 0x257   : > { %1420 = vst.msk [vmem:[#allocation3 + $0xe8] sm:$0xff] %vm1390_vm6, %v1353_v3  ;;  %v1684_v11 = vpop.permute.xlu0 %1683  ;;  %1731 = vrot.lane.b32.xlu2 %v2756_v10, %s2922_s29  ;;  %v2753_v3 = vld [vmem:[#allocation2 + $0x129] sm:$0xff] }
 0x258   : > { %1780 = vst.msk [vmem:[#allocation3] sm:$0xff] %vm1779_vm8, %v1684_v11 }
 0x259   : > { %v1495_v15 = vpop.permute.xlu2 %1494 }
 0x25a   : > { %1589 = vst.msk [vmem:[#allocation3 + $0x10] sm:$0xff] %vm1586_vm7, %v1495_v15  ;;  %v2727_v15 = vld [vmem:[#allocation2 + $0x170] sm:$0xff] }
 0x25c   : > { %1695 = vrot.lane.b32.xlu1 %v2738_v0, %s2922_s29  ;;  %v2785_v0 = vld [vmem:[#allocation2 + $0x12a] sm:$0xff] }
 0x25d   : > { %1528 = vrot.lane.b32.xlu0 %v2719_v47, %s2924_s6 }
 0x25e   : > { %v1877_v33 = vpop.permute.xlu1 %1876 }
 0x25f   : > { %1973 = vst.msk [vmem:[#allocation3] sm:$0xff] %vm1972_vm9, %v1877_v33  ;;  %v1686_v17 = vpop.permute.xlu0 %1685  ;;  %1502 = vrot.lane.b32.xlu2 %v2706_v28, %s2924_s6 }
 0x260   : > { %1781 = vst.msk [vmem:[#allocation3 + $0x8] sm:$0xff] %vm1779_vm8, %v1686_v17  ;;  %v2791_v17 = vld [vmem:[#allocation2 + $0x172] sm:$0xff] }
 0x261   : > { %v1700_v20 = vpop.permute.xlu2 %1699 }
 0x264   : > { %1540 = vrot.lane.b32.xlu1 %v2725_v34, %s2924_s6 }
 0x265   : > { %1900 = vrot.lane.b32.xlu0 %v2776_v41, %s2923_s30  ;;  %v2759_v41 = vld [vmem:[#allocation2 + $0x171] sm:$0xff] }
 0x266   : > { %v1879_v40 = vpop.permute.xlu1 %1878  ;;  %v2005_v24 = vld [vmem:[#allocation3] sm:$0xff] }
 0x267   : > { %1974 = vst.msk [vmem:[#allocation3 + $0x8] sm:$0xff] %vm1972_vm9, %v1879_v40  ;;  %2796 = vmatmul.msk.f32.vlgmr.msra.gmra.mxu0 %vm2046_vm10, %v2005_v24  ;;  %v1507_v32 = vpop.permute.xlu0 %1506  ;;  %1707 = vrot.lane.b32.xlu2 %v2744_v26, %s2922_s29 }
 0x268   : > { %1595 = vst.msk [vmem:[#allocation3 + $0x40] sm:$0xff] %vm1586_vm7, %v1507_v32  ;;  %v2722_v32 = vld [vmem:[#allocation2 + $0x138] sm:$0xff] }
 0x269   : > { %1788 = vst.msk [vmem:[#allocation3 + $0x40] sm:$0xff] %vm1779_vm8, %v1700_v20  ;;  %v1497_v31 = vpop.permute.xlu2 %1496  ;;  %v2747_v20 = vld [vmem:[#allocation2 + $0xe1] sm:$0xff] }
 0x26a   : > { %1590 = vst.msk [vmem:[#allocation3 + $0x18] sm:$0xff] %vm1586_vm7, %v1497_v31  ;;  %v2779_v31 = vld [vmem:[#allocation2 + $0xe2] sm:$0xff] }
 0x26c   : > { %1721 = vrot.lane.b32.xlu1 %v2751_v46, %s2922_s29 }
 0x26d   : > { %1914 = vrot.lane.b32.xlu0 %v2783_v38, %s2923_s30  ;;  %v2715_v38 = vld [vmem:[#allocation2 + $0xe0] sm:$0xff] }
 0x26e   : > { %v1688_v37 = vpop.permute.xlu1 %1687  ;;  %v2006_v44 = vld [vmem:[#allocation3 + $0x8] sm:$0xff] }
 0x26f   : > { %1782 = vst.msk [vmem:[#allocation3 + $0x10] sm:$0xff] %vm1779_vm8, %v1688_v37  ;;  %2797 = vmatmul.msk.f32.gmra.mxu0 %vm2046_vm10, %v2006_v44  ;;  %v1881_v54 = vpop.permute.xlu0 %1880  ;;  %1888 = vrot.lane.b32.xlu2 %v2770_v50, %s2923_s30 }
 0x270   : > { %1975 = vst.msk [vmem:[#allocation3 + $0x10] sm:$0xff] %vm1972_vm9, %v1881_v54  ;;  %v2754_v54 = vld [vmem:[#allocation2 + $0x139] sm:$0xff] }
 0x271   : > { %v1702_v49 = vpop.permute.xlu2 %1701 }
 0x274   : > { %1926 = vrot.lane.b32.xlu1 %v2789_v43, %s2923_s30 }
 0x275   : > { %1516 = vrot.lane.b32.xlu0 %v2713_v57, %s2924_s6  ;;  %v2728_v57 = vld [vmem:[#allocation2 + $0x180] sm:$0xff] }
 0x276   : > { %v1893_v53 = vpop.permute.xlu1 %1892 }
 0x277   : > { %1981 = vst.msk [vmem:[#allocation3 + $0x40] sm:$0xff] %vm1972_vm9, %v1893_v53  ;;  %v1509_v63 = vpop.permute.xlu0 %1508  ;;  %v2007_v60 = vld [vmem:[#allocation3 + $0x10] sm:$0xff]  ;;  %1733 = vrot.lane.b32.xlu2 %v2757_v48, %s2922_s29 }
 0x278   : > { %1596 = vst.msk [vmem:[#allocation3 + $0x48] sm:$0xff] %vm1586_vm7, %v1509_v63  ;;  %2798 = vmatmul.msk.f32.gmra.mxu0 %vm2046_vm10, %v2007_v60  ;;  %v2792_v60 = vld [vmem:[#allocation2 + $0x182] sm:$0xff] }
 0x279   : > { %1789 = vst.msk [vmem:[#allocation3 + $0x48] sm:$0xff] %vm1779_vm8, %v1702_v49  ;;  %v1895_v12 = vpop.permute.xlu2 %1894  ;;  %v2786_v49 = vld [vmem:[#allocation2 + $0x13a] sm:$0xff] }
 0x27a   : > { %1982 = vst.msk [vmem:[#allocation3 + $0x48] sm:$0xff] %vm1972_vm9, %v1895_v12  ;;  %v2729_v12 = vld [vmem:[#allocation2 + $0x188] sm:$0xff] }
 0x27c   : > { %1697 = vrot.lane.b32.xlu1 %v2739_v52, %s2922_s29 }
 0x27d   : > { %1530 = vrot.lane.b32.xlu0 %v2720_v56, %s2924_s6  ;;  %v2760_v56 = vld [vmem:[#allocation2 + $0x181] sm:$0xff] }
 0x27e   : > { %v1690_v27 = vpop.permute.xlu1 %1689  ;;  %v2013_v19 = vld [vmem:[#allocation3 + $0x40] sm:$0xff] }
 0x27f   : > { %1783 = vst.msk [vmem:[#allocation3 + $0x18] sm:$0xff] %vm1779_vm8, %v1690_v27  ;;  %2804 = vmatmul.msk.f32.vlgmr.msra.gmra.mxu1 %vm2046_vm10, %v2013_v19  ;;  %v1523_v55 = vpop.permute.xlu0 %1522  ;;  %1504 = vrot.lane.b32.xlu2 %v2707_v2, %s2924_s6 }
 0x280   : > { %1603 = vst.msk [vmem:[#allocation3 + $0x80] sm:$0xff] %vm1586_vm7, %v1523_v55  ;;  %v2755_v55 = vld [vmem:[#allocation2 + $0x141] sm:$0xff] }
 0x281   : > { %v1499_v59 = vpop.permute.xlu2 %1498  ;;  %v2014_v14 = vld [vmem:[#allocation3 + $0x48] sm:$0xff] }
 0x282   : > { %1591 = vst.msk [vmem:[#allocation3 + $0x20] sm:$0xff] %vm1586_vm7, %v1499_v59  ;;  %v2787_v59 = vld [vmem:[#allocation2 + $0x142] sm:$0xff] }
 0x284   : > { %1542 = vrot.lane.b32.xlu1 %v2726_v16, %s2924_s6 }
 0x285   : > { %1902 = vrot.lane.b32.xlu0 %v2777_v29, %s2923_s30  ;;  %v2723_v29 = vld [vmem:[#allocation2 + $0x140] sm:$0xff] }
 0x286   : > { %v1883_v35 = vpop.permute.xlu1 %1882 }
 0x287   : > { %1976 = vst.msk [vmem:[#allocation3 + $0x18] sm:$0xff] %vm1972_vm9, %v1883_v35  ;;  %v1716_v23 = vpop.permute.xlu0 %1715  ;;  %1709 = vrot.lane.b32.xlu2 %v2745_v21, %s2922_s29  ;;  %2805 = vmatmul.msk.f32.gmra.mxu1 %vm2046_vm10, %v2014_v14 }
 0x288   : > { %1796 = vst.msk [vmem:[#allocation3 + $0x80] sm:$0xff] %vm1779_vm8, %v1716_v23  ;;  %v2793_v23 = vld [vmem:[#allocation2 + $0x18a] sm:$0xff] }
 0x289   : > { %v1704_v51 = vpop.permute.xlu2 %1703 }
 0x28c   : > { %1723 = vrot.lane.b32.xlu1 %v2752_v58, %s2922_s29 }
 0x28d   : > { %1916 = vrot.lane.b32.xlu0 %v2784_v30, %s2923_s30  ;;  %v2761_v30 = vld [vmem:[#allocation2 + $0x189] sm:$0xff] }
 0x28e   : > { %v1909_v4 = vpop.permute.xlu1 %1908  ;;  %v2008_v6 = vld [vmem:[#allocation3 + $0x18] sm:$0xff] }
 0x28f   : > { %1989 = vst.msk [vmem:[#allocation3 + $0x80] sm:$0xff] %vm1972_vm9, %v1909_v4  ;;  %2799 = vmatmul.msk.f32.gmra.mxu0 %vm2046_vm10, %v2008_v6  ;;  %v1511_v61 = vpop.permute.xlu0 %1510  ;;  %1890 = vrot.lane.b32.xlu2 %v2771_v62, %s2923_s30 }
 0x290   : > { %1597 = vst.msk [vmem:[#allocation3 + $0x50] sm:$0xff] %vm1586_vm7, %v1511_v61  ;;  %v2762_v61 = vld [vmem:[#allocation2 + $0x199] sm:$0xff] }
 0x291   : > { %1790 = vst.msk [vmem:[#allocation3 + $0x50] sm:$0xff] %vm1779_vm8, %v1704_v51  ;;  %v1897_v22 = vpop.permute.xlu2 %1896  ;;  %v2730_v51 = vld [vmem:[#allocation2 + $0x198] sm:$0xff] }
 0x292   : > { %1983 = vst.msk [vmem:[#allocation3 + $0x50] sm:$0xff] %vm1972_vm9, %v1897_v22 }
 0x294   : > { %1928 = vrot.lane.b32.xlu1 %v2790_v1, %s2923_s30 }
 0x295   : > { %1711 = vrot.lane.b32.xlu0 %v2746_v39, %s2922_s29 }
 0x296   : > { %v1692_v25 = vpop.permute.xlu1 %1691  ;;  %v2021_v13 = vld [vmem:[#allocation3 + $0x80] sm:$0xff] }
 0x297   : > { %1784 = vst.msk [vmem:[#allocation3 + $0x20] sm:$0xff] %vm1779_vm8, %v1692_v25  ;;  %2812 = vmatmul.msk.f32.vlgmr.msra.gmra.mxu2 %vm2046_vm10, %v2021_v13  ;;  %v1525_v5 = vpop.permute.xlu0 %1524  ;;  %1735 = vrot.lane.b32.xlu2 %v2758_v8, %s2922_s29  ;;  %v2731_v25 = vld [vmem:[#allocation2 + $0x1a0] sm:$0xff] }
 0x298   : > { %1604 = vst.msk [vmem:[#allocation3 + $0x88] sm:$0xff] %vm1586_vm7, %v1525_v5  ;;  %v2795_v5 = vld [vmem:[#allocation2 + $0x1a2] sm:$0xff] }
 0x299   : > { %v1501_v9 = vpop.permute.xlu2 %1500  ;;  %v2015_v18 = vld [vmem:[#allocation3 + $0x50] sm:$0xff] }
 0x29a   : > { %1592 = vst.msk [vmem:[#allocation3 + $0x28] sm:$0xff] %vm1586_vm7, %v1501_v9  ;;  %2806 = vmatmul.msk.f32.gmra.mxu1 %vm2046_vm10, %v2015_v18  ;;  %v2794_v9 = vld [vmem:[#allocation2 + $0x19a] sm:$0xff] }
 0x29c   : > { %1532 = vrot.lane.b32.xlu1 %v2721_v36, %s2924_s6 }
 0x29d   : > { %1904 = vrot.lane.b32.xlu0 %v2778_v7, %s2923_s30 }
 0x29e   : > { %v1885_v45 = vpop.permute.xlu1 %1884 }
 0x29f   : > { %1977 = vst.msk [vmem:[#allocation3 + $0x20] sm:$0xff] %vm1972_vm9, %v1885_v45  ;;  %v1718_v10 = vpop.permute.xlu0 %1717  ;;  %1518 = vrot.lane.b32.xlu2 %v2714_v42, %s2924_s6 }
 0x2a0   : > { %1797 = vst.msk [vmem:[#allocation3 + $0x88] sm:$0xff] %vm1779_vm8, %v1718_v10 }
 0x2a1   : > { %v1706_v11 = vpop.permute.xlu2 %1705 }
 0x2a4   : > { %1725 = vrot.lane.b32.xlu1 %v2753_v3, %s2922_s29 }
 0x2a5   : > { %1918 = vrot.lane.b32.xlu0 %v2785_v0, %s2923_s30 }
 0x2a6   : > { %v1911_v47 = vpop.permute.xlu1 %1910  ;;  %v2009_v28 = vld [vmem:[#allocation3 + $0x20] sm:$0xff] }
 0x2a7   : > { %1990 = vst.msk [vmem:[#allocation3 + $0x88] sm:$0xff] %vm1972_vm9, %v1911_v47  ;;  %2800 = vmatmul.msk.f32.gmra.mxu0 %vm2046_vm10, %v2009_v28  ;;  %v1513_v33 = vpop.permute.xlu0 %1512  ;;  %1544 = vrot.lane.b32.xlu2 %v2727_v15, %s2924_s6 }
 0x2a8   : > { %1598 = vst.msk [vmem:[#allocation3 + $0x58] sm:$0xff] %vm1586_vm7, %v1513_v33 }
 0x2a9   : > { %1791 = vst.msk [vmem:[#allocation3 + $0x58] sm:$0xff] %vm1779_vm8, %v1706_v11  ;;  %v1887_v34 = vpop.permute.xlu2 %1886  ;;  %v2763_v11 = vld [vmem:[#allocation2 + $0x1a1] sm:$0xff] }
 0x2ac   : > { %1930 = vrot.lane.b32.xlu1 %v2791_v17, %s2923_s30 }
 0x2ad   : > { %1713 = vrot.lane.b32.xlu0 %v2747_v20, %s2922_s29 }
 0x2ae   : > { %v1694_v26 = vpop.permute.xlu1 %1693  ;;  %v2022_v40 = vld [vmem:[#allocation3 + $0x88] sm:$0xff] }
 0x2af   : > { %1785 = vst.msk [vmem:[#allocation3 + $0x28] sm:$0xff] %vm1779_vm8, %v1694_v26  ;;  %2813 = vmatmul.msk.f32.gmra.mxu2 %vm2046_vm10, %v2022_v40  ;;  %v1527_v24 = vpop.permute.xlu0 %1526  ;;  %1737 = vrot.lane.b32.xlu2 %v2759_v41, %s2922_s29 }
 0x2b0   : > { %1978 = vst.msk [vmem:[#allocation3 + $0x28] sm:$0xff] %vm1972_vm9, %v1887_v34 }
 0x2b1   : > { %1605 = vst.msk [vmem:[#allocation3 + $0x90] sm:$0xff] %vm1586_vm7, %v1527_v24  ;;  %v1732_v46 = vpop.permute.xlu2 %1731 }
 0x2b4   : > { %1534 = vrot.lane.b32.xlu1 %v2722_v32, %s2924_s6 }
 0x2b5   : > { %1906 = vrot.lane.b32.xlu0 %v2779_v31, %s2923_s30 }
 0x2b6   : > { %v1539_v50 = vpop.permute.xlu1 %1538 }
 0x2b7   : > { %1611 = vst.msk [vmem:[#allocation3 + $0xc0] sm:$0xff] %vm1586_vm7, %v1539_v50  ;;  %v1899_v37 = vpop.permute.xlu0 %1898  ;;  %v2010_v44 = vld [vmem:[#allocation3 + $0x28] sm:$0xff]  ;;  %1520 = vrot.lane.b32.xlu2 %v2715_v38, %s2924_s6 }
 0x2b8   : > { %1804 = vst.msk [vmem:[#allocation3 + $0xc0] sm:$0xff] %vm1779_vm8, %v1732_v46  ;;  %2801 = vmatmul.msk.f32.gmra.mxu0 %vm2046_vm10, %v2010_v44 }
 0x2b9   : > { %1984 = vst.msk [vmem:[#allocation3 + $0x58] sm:$0xff] %vm1972_vm9, %v1899_v37  ;;  %v1503_v43 = vpop.permute.xlu2 %1502 }
 0x2ba   : > { %1593 = vst.msk [vmem:[#allocation3 + $0x30] sm:$0xff] %vm1586_vm7, %v1503_v43 }
 0x2bc   : > { %1727 = vrot.lane.b32.xlu1 %v2754_v54, %s2922_s29 }
 0x2bd   : > { %1920 = vrot.lane.b32.xlu0 %v2786_v49, %s2923_s30 }
 0x2be   : > { %v1720_v48 = vpop.permute.xlu1 %1719 }
 0x2bf   : > { %1798 = vst.msk [vmem:[#allocation3 + $0x90] sm:$0xff] %vm1779_vm8, %v1720_v48  ;;  %v1913_v53 = vpop.permute.xlu0 %1912  ;;  %1546 = vrot.lane.b32.xlu2 %v2728_v57, %s2924_s6 }
 0x2c0   : > { %1991 = vst.msk [vmem:[#allocation3 + $0x90] sm:$0xff] %vm1972_vm9, %v1913_v53  ;;  %v2016_v63 = vld [vmem:[#allocation3 + $0x58] sm:$0xff] }
 0x2c1   : > { %2807 = vmatmul.msk.f32.gmra.mxu1 %vm2046_vm10, %v2016_v63  ;;  %v1708_v52 = vpop.permute.xlu2 %1707 }
 0x2c4   : > { %1932 = vrot.lane.b32.xlu1 %v2792_v60, %s2923_s30 }
 0x2c5   : > { %1548 = vrot.lane.b32.xlu0 %v2729_v12, %s2924_s6 }
 0x2c6   : > { %v1925_v2 = vpop.permute.xlu1 %1924 }
 0x2c7   : > { %1997 = vst.msk [vmem:[#allocation3 + $0xc0] sm:$0xff] %vm1972_vm9, %v1925_v2  ;;  %v1515_v27 = vpop.permute.xlu0 %1514  ;;  %v2023_v19 = vld [vmem:[#allocation3 + $0x90] sm:$0xff]  ;;  %1739 = vrot.lane.b32.xlu2 %v2760_v56, %s2922_s29 }
 0x2c8   : > { %1599 = vst.msk [vmem:[#allocation3 + $0x60] sm:$0xff] %vm1586_vm7, %v1515_v27  ;;  %2814 = vmatmul.msk.f32.gmra.mxu2 %vm2046_vm10, %v2023_v19 }
 0x2c9   : > { %1792 = vst.msk [vmem:[#allocation3 + $0x60] sm:$0xff] %vm1779_vm8, %v1708_v52  ;;  %v1889_v16 = vpop.permute.xlu2 %1888 }
 0x2cc   : > { %1729 = vrot.lane.b32.xlu1 %v2755_v55, %s2922_s29 }
 0x2cd   : > { %1922 = vrot.lane.b32.xlu0 %v2787_v59, %s2923_s30 }
 0x2ce   : > { %v1696_v21 = vpop.permute.xlu1 %1695  ;;  %v2029_v14 = vld [vmem:[#allocation3 + $0xc0] sm:$0xff] }
 0x2cf   : > { %1786 = vst.msk [vmem:[#allocation3 + $0x30] sm:$0xff] %vm1779_vm8, %v1696_v21  ;;  %2820 = vmatmul.msk.f32.vlgmr.msra.gmra.mxu3 %vm2046_vm10, %v2029_v14  ;;  %v1529_v35 = vpop.permute.xlu0 %1528  ;;  %1536 = vrot.lane.b32.xlu2 %v2723_v29, %s2924_s6 }
 0x2d0   : > { %1979 = vst.msk [vmem:[#allocation3 + $0x30] sm:$0xff] %vm1972_vm9, %v1889_v16 }
 0x2d1   : > { %1606 = vst.msk [vmem:[#allocation3 + $0x98] sm:$0xff] %vm1586_vm7, %v1529_v35  ;;  %v1734_v58 = vpop.permute.xlu2 %1733 }
 0x2d4   : > { %1934 = vrot.lane.b32.xlu1 %v2793_v23, %s2923_s30 }
 0x2d5   : > { %1550 = vrot.lane.b32.xlu0 %v2730_v51, %s2924_s6 }
 0x2d6   : > { %v1541_v62 = vpop.permute.xlu1 %1540 }
 0x2d7   : > { %1612 = vst.msk [vmem:[#allocation3 + $0xc8] sm:$0xff] %vm1586_vm7, %v1541_v62  ;;  %v1901_v4 = vpop.permute.xlu0 %1900  ;;  %v2011_v6 = vld [vmem:[#allocation3 + $0x30] sm:$0xff]  ;;  %1741 = vrot.lane.b32.xlu2 %v2761_v30, %s2922_s29 }
 0x2d8   : > { %1805 = vst.msk [vmem:[#allocation3 + $0xc8] sm:$0xff] %vm1779_vm8, %v1734_v58  ;;  %2802 = vmatmul.msk.f32.gmra.mxu0 %vm2046_vm10, %v2011_v6 }
 0x2d9   : > { %1985 = vst.msk [vmem:[#allocation3 + $0x60] sm:$0xff] %vm1972_vm9, %v1901_v4  ;;  %v1505_v1 = vpop.permute.xlu2 %1504 }
 0x2da   : > { %1594 = vst.msk [vmem:[#allocation3 + $0x38] sm:$0xff] %vm1586_vm7, %v1505_v1 }
 0x2dc   : > { %1743 = vrot.lane.b32.xlu1 %v2762_v61, %s2922_s29 }
 0x2dd   : > { %1356 = vrot.lane.b32.xlu0 %v2793_v23, %s2921_s28 }
 0x2de   : > { %v1722_v22 = vpop.permute.xlu1 %1721 }
 0x2df   : > { %1799 = vst.msk [vmem:[#allocation3 + $0x98] sm:$0xff] %vm1779_vm8, %v1722_v22  ;;  %v1915_v39 = vpop.permute.xlu0 %1914  ;;  %1354 = vrot.lane.b32.xlu2 %v2792_v60, %s2921_s28 }
 0x2e0   : > { %1992 = vst.msk [vmem:[#allocation3 + $0x98] sm:$0xff] %vm1972_vm9, %v1915_v39  ;;  %v2017_v8 = vld [vmem:[#allocation3 + $0x60] sm:$0xff] }
 0x2e1   : > { %2808 = vmatmul.msk.f32.gmra.mxu1 %vm2046_vm10, %v2017_v8  ;;  %v1710_v13 = vpop.permute.xlu2 %1709 }
 0x2e4   : > { %1552 = vrot.lane.b32.xlu1 %v2731_v25, %s2924_s6  ;;  %v2160_v36 = vpop.f32.mrf.mxu0 }
 0x2e5   : > { %2257 = vst.msk [vmem:[%s4068_s9] sm:$0xff] %vm2256_vm11, %v2160_v36  ;;  %1938 = vrot.lane.b32.xlu0 %v2795_v5, %s2923_s30  ;;  %v2360_v10 = vmul.f32 %v2160_v36, %v2160_v36  ;;  %v2289_v0 = vsel %vm2256_vm11, %v2160_v36, 0.0 }
 0x2e6   : > { %v1927_v18 = vpop.permute.xlu1 %1926 }
 0x2e7   : > { %1998 = vst.msk [vmem:[#allocation3 + $0xc8] sm:$0xff] %vm1972_vm9, %v1927_v18  ;;  %v1517_v7 = vpop.permute.xlu0 %1516  ;;  %v2024_v42 = vld [vmem:[#allocation3 + $0x98] sm:$0xff]  ;;  %1936 = vrot.lane.b32.xlu2 %v2794_v9, %s2923_s30  ;;  %v2392_v34 = vsel %vm2256_vm11, %v2360_v10, 0.0  ;;  %s266_s30 = scalar_lea.vmem %s4352_s5, %s2603_s21 }
 0x2e8   : > { %1600 = vst.msk [vmem:[#allocation3 + $0x68] sm:$0xff] %vm1586_vm7, %v1517_v7  ;;  %2815 = vmatmul.msk.f32.gmra.mxu2 %vm2046_vm10, %v2024_v42 }
 0x2e9   : > { %1793 = vst.msk [vmem:[#allocation3 + $0x68] sm:$0xff] %vm1779_vm8, %v1710_v13  ;;  %v1891_v45 = vpop.permute.xlu2 %1890 }
 0x2ec   : > { %v2163_v3 = vpop.f32.mrf.mxu0 }
 0x2ed   : > { %2258 = vst.msk [vmem:[%s4068_s9 + $0x8] sm:$0xff] %vm2256_vm11, %v2163_v3  ;;  %v2290_v15 = vsel %vm2256_vm11, %v2163_v3, 0.0  ;;  %v2361_v47 = vmul.f32 %v2163_v3, %v2163_v3 }
 0x2ee   : > { %v2291_v28 = vadd.f32 %v2290_v15, %v2289_v0  ;;  %v1698_v33 = vpop.permute.xlu1 %1697  ;;  %v2030_v17 = vld [vmem:[#allocation3 + $0xc8] sm:$0xff] }
 0x2ef   : > { %v2393_v20 = vsel %vm2256_vm11, %v2361_v47, 0.0  ;;  %1787 = vst.msk [vmem:[#allocation3 + $0x38] sm:$0xff] %vm1779_vm8, %v1698_v33  ;;  %2821 = vmatmul.msk.f32.gmra.mxu3 %vm2046_vm10, %v2030_v17  ;;  %v1531_v41 = vpop.permute.xlu0 %1530  ;;  %1745 = vrot.lane.b32.xlu2 %v2763_v11, %s2922_s29 }
 0x2f0   : > { %v2394_v26 = vadd.f32 %v2393_v20, %v2392_v34  ;;  %1980 = vst.msk [vmem:[#allocation3 + $0x38] sm:$0xff] %vm1972_vm9, %v1891_v45 }
 0x2f1   : > { %1607 = vst.msk [vmem:[#allocation3 + $0xa0] sm:$0xff] %vm1586_vm7, %v1531_v41  ;;  %v1736_v40 = vpop.permute.xlu2 %1735 }
 0x2f5   : > { %v2166_v24 = vpop.f32.mrf.mxu0 }
 0x2f6   : > { %v1543_v32 = vpop.permute.xlu1 %1542  ;;  %2259 = vst.msk [vmem:[%s4068_s9 + $0x10] sm:$0xff] %vm2256_vm11, %v2166_v24  ;;  %v2292_v46 = vsel %vm2256_vm11, %v2166_v24, 0.0  ;;  %v2362_v31 = vmul.f32 %v2166_v24, %v2166_v24 }
 0x2f7   : > { %1613 = vst.msk [vmem:[#allocation3 + $0xd0] sm:$0xff] %vm1586_vm7, %v1543_v32  ;;  %v2293_v38 = vadd.f32 %v2292_v46, %v2291_v28  ;;  %v1903_v50 = vpop.permute.xlu0 %1902  ;;  %v2012_v37 = vld [vmem:[#allocation3 + $0x38] sm:$0xff] }
 0x2f8   : > { %v2395_v44 = vsel %vm2256_vm11, %v2362_v31, 0.0  ;;  %1986 = vst.msk [vmem:[#allocation3 + $0x68] sm:$0xff] %vm1972_vm9, %v1903_v50  ;;  %2803 = vmatmul.msk.f32.gmra.mxu0 %vm2046_vm10, %v2012_v37 }
 0x2f9   : > { %v2396_v54 = vadd.f32 %v2395_v44, %v2394_v26  ;;  %1806 = vst.msk [vmem:[#allocation3 + $0xd0] sm:$0xff] %vm1779_vm8, %v1736_v40  ;;  %v1519_v43 = vpop.permute.xlu2 %1518 }
 0x2fa   : > { %1601 = vst.msk [vmem:[#allocation3 + $0x70] sm:$0xff] %vm1586_vm7, %v1519_v43 }
 0x2fc   : > { %v4099_v49 = vpop.f32.mrf.mxu1 }
 0x2fd   : > { %2265 = vst.msk [vmem:[%s4068_s9 + $0x40] sm:$0xff] %vm2256_vm11, %v4099_v49 }
 0x2fe   : > { %v1724_v57 = vpop.permute.xlu1 %1723 }
 0x2ff   : > { %1800 = vst.msk [vmem:[#allocation3 + $0xa0] sm:$0xff] %vm1779_vm8, %v1724_v57  ;;  %v1917_v48 = vpop.permute.xlu0 %1916  ;;  %v2018_v53 = vld [vmem:[#allocation3 + $0x68] sm:$0xff] }
 0x300   : > { %1993 = vst.msk [vmem:[#allocation3 + $0xa0] sm:$0xff] %vm1972_vm9, %v1917_v48  ;;  %2809 = vmatmul.msk.f32.gmra.mxu1 %vm2046_vm10, %v2018_v53 }
 0x301   : > { %v1545_v63 = vpop.permute.xlu2 %1544 }
 0x302   : > { %1614 = vst.msk [vmem:[#allocation3 + $0xd8] sm:$0xff] %vm1586_vm7, %v1545_v63 }
 0x304   : > { %v4108_v60 = vpop.f32.mrf.mxu1 }
 0x305   : > { %2266 = vst.msk [vmem:[%s4068_s9 + $0x48] sm:$0xff] %vm2256_vm11, %v4108_v60 }
 0x306   : > { %v1929_v52 = vpop.permute.xlu1 %1928 }
 0x307   : > { %1999 = vst.msk [vmem:[#allocation3 + $0xd0] sm:$0xff] %vm1972_vm9, %v1929_v52  ;;  %v1712_v12 = vpop.permute.xlu0 %1711  ;;  %v2025_v56 = vld [vmem:[#allocation3 + $0xa0] sm:$0xff] }
 0x308   : > { %1794 = vst.msk [vmem:[#allocation3 + $0x70] sm:$0xff] %vm1779_vm8, %v1712_v12  ;;  %2816 = vmatmul.msk.f32.gmra.mxu2 %vm2046_vm10, %v2025_v56 }
 0x309   : > { %v1738_v2 = vpop.permute.xlu2 %1737 }
 0x30a   : > { %1807 = vst.msk [vmem:[#allocation3 + $0xd8] sm:$0xff] %vm1779_vm8, %v1738_v2 }
 0x30c   : > { %v2169_v27 = vpop.f32.mrf.mxu0 }
 0x30d   : > { %2260 = vst.msk [vmem:[%s4068_s9 + $0x18] sm:$0xff] %vm2256_vm11, %v2169_v27  ;;  %v2294_v19 = vsel %vm2256_vm11, %v2169_v27, 0.0  ;;  %v2363_v55 = vmul.f32 %v2169_v27, %v2169_v27 }
 0x30e   : > { %v2295_v16 = vadd.f32 %v2294_v19, %v2293_v38  ;;  %v1533_v59 = vpop.permute.xlu1 %1532  ;;  %v2031_v29 = vld [vmem:[#allocation3 + $0xd0] sm:$0xff] }
 0x30f   : > { %v2397_v21 = vsel %vm2256_vm11, %v2363_v55, 0.0  ;;  %1608 = vst.msk [vmem:[#allocation3 + $0xa8] sm:$0xff] %vm1586_vm7, %v1533_v59  ;;  %2822 = vmatmul.msk.f32.gmra.mxu3 %vm2046_vm10, %v2031_v29  ;;  %v1905_v14 = vpop.permute.xlu0 %1904 }
 0x310   : > { %v2398_v35 = vadd.f32 %v2397_v21, %v2396_v54  ;;  %1987 = vst.msk [vmem:[#allocation3 + $0x70] sm:$0xff] %vm1972_vm9, %v1905_v14 }
 0x311   : > { %v1521_v23 = vpop.permute.xlu2 %1520 }
 0x312   : > { %1602 = vst.msk [vmem:[#allocation3 + $0x78] sm:$0xff] %vm1586_vm7, %v1521_v23 }
 0x316   : > { %v1726_v58 = vpop.permute.xlu1 %1725 }
 0x317   : > { %1801 = vst.msk [vmem:[#allocation3 + $0xa8] sm:$0xff] %vm1779_vm8, %v1726_v58  ;;  %v1919_v51 = vpop.permute.xlu0 %1918  ;;  %v2019_v30 = vld [vmem:[#allocation3 + $0x70] sm:$0xff]  ;;  %v4126_v62 = vpop.f32.mrf.mxu1 }
 0x318   : > { %1994 = vst.msk [vmem:[#allocation3 + $0xa8] sm:$0xff] %vm1972_vm9, %v1919_v51  ;;  %2810 = vmatmul.msk.f32.gmra.mxu1 %vm2046_vm10, %v2019_v30  ;;  %v2368_v51 = vmul.f32 %v4099_v49, %v4099_v49 }
 0x319   : > { %2267 = vst.msk [vmem:[%s4068_s9 + $0x50] sm:$0xff] %vm2256_vm11, %v4126_v62  ;;  %v1547_v4 = vpop.permute.xlu2 %1546 }
 0x31a   : > { %v4133_v6 = vpop.f32.mrf.mxu2  ;;  %1615 = vst.msk [vmem:[#allocation3 + $0xe0] sm:$0xff] %vm1586_vm7, %v1547_v4 }
 0x31b   : > { %2273 = vst.msk [vmem:[%s4068_s9 + $0x80] sm:$0xff] %vm2256_vm11, %v4133_v6 }
 0x31e   : > { %v1931_v61 = vpop.permute.xlu1 %1930 }
 0x31f   : > { %2000 = vst.msk [vmem:[#allocation3 + $0xd8] sm:$0xff] %vm1972_vm9, %v1931_v61  ;;  %v1714_v1 = vpop.permute.xlu0 %1713  ;;  %v2026_v22 = vld [vmem:[#allocation3 + $0xa8] sm:$0xff] }
 0x320   : > { %1795 = vst.msk [vmem:[#allocation3 + $0x78] sm:$0xff] %vm1779_vm8, %v1714_v1  ;;  %2817 = vmatmul.msk.f32.gmra.mxu2 %vm2046_vm10, %v2026_v22  ;;  %v2304_v1 = vsel %vm2256_vm11, %v4099_v49, 0.0  ;;  %v2369_v22 = vmul.f32 %v4108_v60, %v4108_v60 }
 0x321   : > { %v1740_v39 = vpop.permute.xlu2 %1739 }
 0x322   : > { %1808 = vst.msk [vmem:[#allocation3 + $0xe0] sm:$0xff] %vm1779_vm8, %v1740_v39  ;;  %v2409_v49 = vsel %vm2256_vm11, %v2369_v22, 0.0 }
 0x324   : > { %v2172_v8 = vpop.f32.mrf.mxu0 }
 0x325   : > { %2261 = vst.msk [vmem:[%s4068_s9 + $0x20] sm:$0xff] %vm2256_vm11, %v2172_v8  ;;  %v2296_v25 = vsel %vm2256_vm11, %v2172_v8, 0.0  ;;  %v2364_v13 = vmul.f32 %v2172_v8, %v2172_v8 }
 0x326   : > { %v2297_v5 = vadd.f32 %v2296_v25, %v2295_v16  ;;  %v1535_v36 = vpop.permute.xlu1 %1534  ;;  %v2032_v9 = vld [vmem:[#allocation3 + $0xd8] sm:$0xff] }
 0x327   : > { %v2399_v18 = vsel %vm2256_vm11, %v2364_v13, 0.0  ;;  %1609 = vst.msk [vmem:[#allocation3 + $0xb0] sm:$0xff] %vm1586_vm7, %v1535_v36  ;;  %2823 = vmatmul.msk.f32.gmra.mxu3 %vm2046_vm10, %v2032_v9  ;;  %v1907_v7 = vpop.permute.xlu0 %1906  ;;  %v2407_v13 = vsel %vm2256_vm11, %v2368_v51, 0.0  ;;  %v2370_v36 = vmul.f32 %v4126_v62, %v4126_v62 }
 0x328   : > { %v2400_v42 = vadd.f32 %v2399_v18, %v2398_v35  ;;  %1988 = vst.msk [vmem:[#allocation3 + $0x78] sm:$0xff] %vm1972_vm9, %v1907_v7  ;;  %v2308_v7 = vsel %vm2256_vm11, %v4126_v62, 0.0 }
 0x329   : > { %v1537_v45 = vpop.permute.xlu2 %1536 }
 0x32a   : > { %1610 = vst.msk [vmem:[#allocation3 + $0xb8] sm:$0xff] %vm1586_vm7, %v1537_v45 }
 0x32e   : > { %v1728_v10 = vpop.permute.xlu1 %1727 }
 0x32f   : > { %1802 = vst.msk [vmem:[#allocation3 + $0xb0] sm:$0xff] %vm1779_vm8, %v1728_v10  ;;  %v1921_v3 = vpop.permute.xlu0 %1920  ;;  %v2020_v11 = vld [vmem:[#allocation3 + $0x78] sm:$0xff] }
 0x330   : > { %1995 = vst.msk [vmem:[#allocation3 + $0xb0] sm:$0xff] %vm1972_vm9, %v1921_v3  ;;  %2811 = vmatmul.msk.f32.gmra.mxu1 %vm2046_vm10, %v2020_v11  ;;  %v2411_v11 = vsel %vm2256_vm11, %v2370_v36, 0.0 }
 0x331   : > { %v1742_v0 = vpop.permute.xlu2 %1741 }
 0x332   : > { %v4154_v15 = vpop.f32.mrf.mxu2 }
 0x333   : > { %2274 = vst.msk [vmem:[%s4068_s9 + $0x88] sm:$0xff] %vm2256_vm11, %v4154_v15 }
 0x335   : > { %v2175_v47 = vpop.f32.mrf.mxu0 }
 0x336   : > { %2262 = vst.msk [vmem:[%s4068_s9 + $0x28] sm:$0xff] %vm2256_vm11, %v2175_v47  ;;  %v2298_v28 = vsel %vm2256_vm11, %v2175_v47, 0.0  ;;  %v2365_v33 = vmul.f32 %v2175_v47, %v2175_v47  ;;  %v1933_v17 = vpop.permute.xlu1 %1932 }
 0x337   : > { %v2299_v34 = vadd.f32 %v2298_v28, %v2297_v5  ;;  %2001 = vst.msk [vmem:[#allocation3 + $0xe0] sm:$0xff] %vm1972_vm9, %v1933_v17  ;;  %v1549_v20 = vpop.permute.xlu0 %1548  ;;  %v2027_v41 = vld [vmem:[#allocation3 + $0xb0] sm:$0xff]  ;;  %v2306_v5 = vsel %vm2256_vm11, %v4108_v60, 0.0 }
 0x338   : > { %v2401_v26 = vsel %vm2256_vm11, %v2365_v33, 0.0  ;;  %1616 = vst.msk [vmem:[#allocation3 + $0xe8] sm:$0xff] %vm1586_vm7, %v1549_v20  ;;  %2818 = vmatmul.msk.f32.gmra.mxu2 %vm2046_vm10, %v2027_v41 }
 0x339   : > { %v2402_v40 = vadd.f32 %v2401_v26, %v2400_v42  ;;  %1809 = vst.msk [vmem:[#allocation3 + $0xe8] sm:$0xff] %vm1779_vm8, %v1742_v0  ;;  %v1355_v24 = vpop.permute.xlu2 %1354 }
 0x33a   : > { %1421 = vst.msk [vmem:[#allocation3 + $0xf0] sm:$0xff] %vm1390_vm6, %v1355_v24 }
 0x33e   : > { %v4168_v32 = vpop.f32.mrf.mxu1  ;;  %v1730_v46 = vpop.permute.xlu1 %1729  ;;  %v2033_v31 = vld [vmem:[#allocation3 + $0xe0] sm:$0xff] }
 0x33f   : > { %2268 = vst.msk [vmem:[%s4068_s9 + $0x58] sm:$0xff] %vm2256_vm11, %v4168_v32  ;;  %2824 = vmatmul.msk.f32.gmra.mxu3 %vm2046_vm10, %v2033_v31  ;;  %v1923_v38 = vpop.permute.xlu0 %1922  ;;  %v2371_v42 = vmul.f32 %v4168_v32, %v4168_v32  ;;  %v2310_v60 = vsel %vm2256_vm11, %v4168_v32, 0.0 }
 0x340   : > { %1803 = vst.msk [vmem:[#allocation3 + $0xb8] sm:$0xff] %vm1779_vm8, %v1730_v46 }
 0x341   : > { %1996 = vst.msk [vmem:[#allocation3 + $0xb8] sm:$0xff] %vm1972_vm9, %v1923_v38  ;;  %v1937_v43 = vpop.permute.xlu2 %1936  ;;  %v2413_v62 = vsel %vm2256_vm11, %v2371_v42, 0.0 }
 0x346   : > { %v1935_v50 = vpop.permute.xlu1 %1934 }
 0x347   : > { %2002 = vst.msk [vmem:[#allocation3 + $0xe8] sm:$0xff] %vm1972_vm9, %v1935_v50  ;;  %v1551_v37 = vpop.permute.xlu0 %1550 }
 0x348   : > { %1617 = vst.msk [vmem:[#allocation3 + $0xf0] sm:$0xff] %vm1586_vm7, %v1551_v37  ;;  %v2028_v44 = vld [vmem:[#allocation3 + $0xb8] sm:$0xff] }
 0x349   : > { %2819 = vmatmul.msk.f32.gmra.mxu2 %vm2046_vm10, %v2028_v44  ;;  %v1746_v12 = vpop.permute.xlu2 %1745 }
 0x34b   : > { %v4179_v54 = vpop.f32.mrf.mxu2 }
 0x34c   : > { %2275 = vst.msk [vmem:[%s4068_s9 + $0x90] sm:$0xff] %vm2256_vm11, %v4179_v54  ;;  %v2378_v51 = vmul.f32 %v4179_v54, %v4179_v54 }
 0x34e   : > { %v1744_v57 = vpop.permute.xlu1 %1743  ;;  %v2034_v48 = vld [vmem:[#allocation3 + $0xe8] sm:$0xff] }
 0x34f   : > { %1810 = vst.msk [vmem:[#allocation3 + $0xf0] sm:$0xff] %vm1779_vm8, %v1744_v57  ;;  %2825 = vmatmul.msk.f32.gmra.mxu3 %vm2046_vm10, %v2034_v48  ;;  %v1357_v53 = vpop.permute.xlu0 %1356 }
 0x350   : > { %2003 = vst.msk [vmem:[#allocation3 + $0xf0] sm:$0xff] %vm1972_vm9, %v1937_v43 }
 0x351   : > { %1422 = vst.msk [vmem:[#allocation3 + $0xf8] sm:$0xff] %vm1390_vm6, %v1357_v53 }
 0x352   : > { %v4188_v63 = vpop.f32.mrf.mxu3 }
 0x353   : > { %2281 = vst.msk [vmem:[%s4068_s9 + $0xc0] sm:$0xff] %vm2256_vm11, %v4188_v63 }
 0x355   : > { %v2178_v52 = vpop.f32.mrf.mxu0 }
 0x356   : > { %2263 = vst.msk [vmem:[%s4068_s9 + $0x30] sm:$0xff] %vm2256_vm11, %v2178_v52  ;;  %v2300_v56 = vsel %vm2256_vm11, %v2178_v52, 0.0  ;;  %v2366_v2 = vmul.f32 %v2178_v52, %v2178_v52  ;;  %v1553_v27 = vpop.permute.xlu1 %1552 }
 0x357   : > { %v2301_v19 = vadd.f32 %v2300_v56, %v2299_v34  ;;  %1618 = vst.msk [vmem:[#allocation3 + $0xf8] sm:$0xff] %vm1586_vm7, %v1553_v27  ;;  %v1939_v55 = vpop.permute.xlu0 %1938  ;;  %v2035_v16 = vld [vmem:[#allocation3 + $0xf0] sm:$0xff] }
 0x358   : > { %v2403_v59 = vsel %vm2256_vm11, %v2366_v2, 0.0  ;;  %1811 = vst.msk [vmem:[#allocation3 + $0xf8] sm:$0xff] %vm1779_vm8, %v1746_v12  ;;  %2826 = vmatmul.msk.f32.gmra.mxu3 %vm2046_vm10, %v2035_v16  ;;  %v2376_v12 = vmul.f32 %v4133_v6, %v4133_v6  ;;  %v2377_v16 = vmul.f32 %v4154_v15, %v4154_v15 }
 0x359   : > { %v2404_v29 = vadd.f32 %v2403_v59, %v2402_v40  ;;  %2004 = vst.msk [vmem:[#allocation3 + $0xf8] sm:$0xff] %vm1972_vm9, %v1939_v55  ;;  %v2320_v55 = vsel %vm2256_vm11, %v4133_v6, 0.0  ;;  %v2324_v6 = vsel %vm2256_vm11, %v4179_v54, 0.0 }
 0x35e   : > { %v2196_v21 = vpop.f32.mrf.mxu1 }
 0x35f   : > { %2269 = vst.msk [vmem:[%s4068_s9 + $0x60] sm:$0xff] %vm2256_vm11, %v2196_v21  ;;  %v2372_v0 = vmul.f32 %v2196_v21, %v2196_v21  ;;  %v2312_v33 = vsel %vm2256_vm11, %v2196_v21, 0.0 }
 0x360   : > { %v2036_v14 = vld [vmem:[#allocation3 + $0xf8] sm:$0xff] }
 0x361   : > { %2827 = vmatmul.msk.f32.gmra.mxu3 %vm2046_vm10, %v2036_v14  ;;  %v2415_v41 = vsel %vm2256_vm11, %v2372_v0, 0.0  ;;  %v2423_v14 = vsel %vm2256_vm11, %v2376_v12, 0.0 }
 0x36b   : > { %v4204_v35 = vpop.f32.mrf.mxu2 }
 0x36c   : > { %2276 = vst.msk [vmem:[%s4068_s9 + $0x98] sm:$0xff] %vm2256_vm11, %v4204_v35 }
 0x372   : > { %v4209_v23 = vpop.f32.mrf.mxu3 }
 0x373   : > { %2282 = vst.msk [vmem:[%s4068_s9 + $0xc8] sm:$0xff] %vm2256_vm11, %v4209_v23 }
 0x375   : > { %v2181_v58 = vpop.f32.mrf.mxu0 }
 0x376   : > { %2264 = vst.msk [vmem:[%s4068_s9 + $0x38] sm:$0xff] %vm2256_vm11, %v2181_v58  ;;  %v2302_v30 = vsel %vm2256_vm11, %v2181_v58, 0.0  ;;  %v2367_v4 = vmul.f32 %v2181_v58, %v2181_v58  ;;  %v2322_v58 = vsel %vm2256_vm11, %v4154_v15, 0.0  ;;  %v2326_v15 = vsel %vm2256_vm11, %v4204_v35, 0.0 }
 0x377   : > { %v2303_v61 = vadd.f32 %v2302_v30, %v2301_v19 }
 0x378   : > { %v2405_v39 = vsel %vm2256_vm11, %v2367_v4, 0.0 }
 0x379   : > { %v2305_v8 = vadd.f32 %v2304_v1, %v2303_v61  ;;  %v2406_v25 = vadd.f32 %v2405_v39, %v2404_v29  ;;  %v2425_v61 = vsel %vm2256_vm11, %v2377_v16, 0.0  ;;  %v2379_v1 = vmul.f32 %v4204_v35, %v4204_v35 }
 0x37b   : > { %v2307_v9 = vadd.f32 %v2306_v5, %v2305_v8  ;;  %v2408_v18 = vadd.f32 %v2407_v13, %v2406_v25  ;;  %v2427_v8 = vsel %vm2256_vm11, %v2378_v51, 0.0  ;;  %v2429_v36 = vsel %vm2256_vm11, %v2379_v1, 0.0 }
 0x37d   : > { %v2309_v45 = vadd.f32 %v2308_v7, %v2307_v9  ;;  %v2410_v10 = vadd.f32 %v2409_v49, %v2408_v18  ;;  %v2199_v3 = vpop.f32.mrf.mxu1 }
 0x37e   : > { %2270 = vst.msk [vmem:[%s4068_s9 + $0x68] sm:$0xff] %vm2256_vm11, %v2199_v3  ;;  %v2373_v17 = vmul.f32 %v2199_v3, %v2199_v3  ;;  %v2314_v26 = vsel %vm2256_vm11, %v2199_v3, 0.0 }
 0x37f   : > { %v2412_v47 = vadd.f32 %v2411_v11, %v2410_v10  ;;  %v2311_v28 = vadd.f32 %v2310_v60, %v2309_v45 }
 0x380   : > { %v2417_v32 = vsel %vm2256_vm11, %v2373_v17, 0.0  ;;  %v2384_v17 = vmul.f32 %v4188_v63, %v4188_v63 }
 0x381   : > { %v2313_v34 = vadd.f32 %v2312_v33, %v2311_v28  ;;  %v2414_v20 = vadd.f32 %v2413_v62, %v2412_v47 }
 0x383   : > { %v2315_v40 = vadd.f32 %v2314_v26, %v2313_v34  ;;  %v2416_v24 = vadd.f32 %v2415_v41, %v2414_v20 }
 0x385   : > { %v2418_v46 = vadd.f32 %v2417_v32, %v2416_v24  ;;  %v2385_v24 = vmul.f32 %v4209_v23, %v4209_v23 }
 0x38b   : > { %v2220_v31 = vpop.f32.mrf.mxu2 }
 0x38c   : > { %2277 = vst.msk [vmem:[%s4068_s9 + $0xa0] sm:$0xff] %vm2256_vm11, %v2220_v31  ;;  %v2380_v25 = vmul.f32 %v2220_v31, %v2220_v31  ;;  %v2328_v9 = vsel %vm2256_vm11, %v2220_v31, 0.0 }
 0x38e   : > { %v2431_v49 = vsel %vm2256_vm11, %v2380_v25, 0.0 }
 0x392   : > { %v4246_v38 = vpop.f32.mrf.mxu3 }
 0x393   : > { %2283 = vst.msk [vmem:[%s4068_s9 + $0xd0] sm:$0xff] %vm2256_vm11, %v4246_v38 }
 0x395   : > { %v2202_v50 = vpop.f32.mrf.mxu1 }
 0x396   : > { %2271 = vst.msk [vmem:[%s4068_s9 + $0x70] sm:$0xff] %vm2256_vm11, %v2202_v50  ;;  %v2374_v44 = vmul.f32 %v2202_v50, %v2202_v50  ;;  %v2316_v43 = vsel %vm2256_vm11, %v2202_v50, 0.0  ;;  %v2439_v50 = vsel %vm2256_vm11, %v2384_v17, 0.0 }
 0x397   : > { %v2317_v53 = vadd.f32 %v2316_v43, %v2315_v40  ;;  %v2336_v40 = vsel %vm2256_vm11, %v4188_v63, 0.0  ;;  %v2441_v63 = vsel %vm2256_vm11, %v2385_v24, 0.0 }
 0x398   : > { %v2419_v48 = vsel %vm2256_vm11, %v2374_v44, 0.0  ;;  %v2386_v44 = vmul.f32 %v4246_v38, %v4246_v38 }
 0x399   : > { %v2420_v27 = vadd.f32 %v2419_v48, %v2418_v46 }
 0x3a3   : > { %v2223_v37 = vpop.f32.mrf.mxu2 }
 0x3a4   : > { %2278 = vst.msk [vmem:[%s4068_s9 + $0xa8] sm:$0xff] %vm2256_vm11, %v2223_v37  ;;  %v2381_v35 = vmul.f32 %v2223_v37, %v2223_v37  ;;  %v2330_v10 = vsel %vm2256_vm11, %v2223_v37, 0.0  ;;  %v2338_v37 = vsel %vm2256_vm11, %v4209_v23, 0.0 }
 0x3a6   : > { %v2433_v60 = vsel %vm2256_vm11, %v2381_v35, 0.0 }
 0x3aa   : > { %v4256_v57 = vpop.f32.mrf.mxu3 }
 0x3ab   : > { %2284 = vst.msk [vmem:[%s4068_s9 + $0xd8] sm:$0xff] %vm2256_vm11, %v4256_v57  ;;  %v2387_v23 = vmul.f32 %v4256_v57, %v4256_v57 }
 0x3ad   : > { %v2205_v52 = vpop.f32.mrf.mxu1  ;;  %v2445_v16 = vsel %vm2256_vm11, %v2387_v23, 0.0 }
 0x3ae   : > { %2272 = vst.msk [vmem:[%s4068_s9 + $0x78] sm:$0xff] %vm2256_vm11, %v2205_v52  ;;  %v2318_v56 = vsel %vm2256_vm11, %v2205_v52, 0.0  ;;  %v2375_v2 = vmul.f32 %v2205_v52, %v2205_v52  ;;  %v2340_v52 = vsel %vm2256_vm11, %v4246_v38, 0.0 }
 0x3af   : > { %v2319_v19 = vadd.f32 %v2318_v56, %v2317_v53 }
 0x3b0   : > { %v2421_v59 = vsel %vm2256_vm11, %v2375_v2, 0.0  ;;  %v2443_v2 = vsel %vm2256_vm11, %v2386_v44, 0.0 }
 0x3b1   : > { %v2321_v29 = vadd.f32 %v2320_v55, %v2319_v19  ;;  %v2422_v21 = vadd.f32 %v2421_v59, %v2420_v27  ;;  %v2342_v19 = vsel %vm2256_vm11, %v4256_v57, 0.0 }
 0x3b3   : > { %v2323_v30 = vadd.f32 %v2322_v58, %v2321_v29  ;;  %v2424_v4 = vadd.f32 %v2423_v14, %v2422_v21 }
 0x3b5   : > { %v2325_v22 = vadd.f32 %v2324_v6, %v2323_v30  ;;  %v2426_v39 = vadd.f32 %v2425_v61, %v2424_v4 }
 0x3b7   : > { %v2428_v13 = vadd.f32 %v2427_v8, %v2426_v39  ;;  %v2327_v5 = vadd.f32 %v2326_v15, %v2325_v22 }
 0x3b9   : > { %v2329_v54 = vadd.f32 %v2328_v9, %v2327_v5  ;;  %v2430_v18 = vadd.f32 %v2429_v36, %v2428_v13 }
 0x3bb   : > { %v2226_v7 = vpop.f32.mrf.mxu2  ;;  %v2432_v42 = vadd.f32 %v2431_v49, %v2430_v18  ;;  %v2331_v11 = vadd.f32 %v2330_v10, %v2329_v54 }
 0x3bc   : > { %2279 = vst.msk [vmem:[%s4068_s9 + $0xb0] sm:$0xff] %vm2256_vm11, %v2226_v7  ;;  %v2382_v3 = vmul.f32 %v2226_v7, %v2226_v7  ;;  %v2332_v0 = vsel %vm2256_vm11, %v2226_v7, 0.0 }
 0x3bd   : > { %v2434_v47 = vadd.f32 %v2433_v60, %v2432_v42  ;;  %v2333_v62 = vadd.f32 %v2332_v0, %v2331_v11 }
 0x3be   : > { %v2435_v28 = vsel %vm2256_vm11, %v2382_v3, 0.0 }
 0x3bf   : > { %v2436_v41 = vadd.f32 %v2435_v28, %v2434_v47 }
 0x3c2   : > { %v2244_v45 = vpop.f32.mrf.mxu3 }
 0x3c3   : > { %2285 = vst.msk [vmem:[%s4068_s9 + $0xe0] sm:$0xff] %vm2256_vm11, %v2244_v45  ;;  %v2388_v59 = vmul.f32 %v2244_v45, %v2244_v45  ;;  %v2344_v38 = vsel %vm2256_vm11, %v2244_v45, 0.0 }
 0x3c5   : > { %v2447_v58 = vsel %vm2256_vm11, %v2388_v59, 0.0 }
 0x3cc   : > { %v2229_v33 = vpop.f32.mrf.mxu2 }
 0x3cd   : > { %2280 = vst.msk [vmem:[%s4068_s9 + $0xb8] sm:$0xff] %vm2256_vm11, %v2229_v33  ;;  %v2334_v34 = vsel %vm2256_vm11, %v2229_v33, 0.0  ;;  %v2383_v20 = vmul.f32 %v2229_v33, %v2229_v33 }
 0x3ce   : > { %v2335_v26 = vadd.f32 %v2334_v34, %v2333_v62 }
 0x3cf   : > { %v2437_v32 = vsel %vm2256_vm11, %v2383_v20, 0.0 }
 0x3d0   : > { %v2337_v46 = vadd.f32 %v2336_v40, %v2335_v26  ;;  %v2438_v31 = vadd.f32 %v2437_v32, %v2436_v41 }
 0x3d2   : > { %v2339_v43 = vadd.f32 %v2338_v37, %v2337_v46  ;;  %v2440_v48 = vadd.f32 %v2439_v50, %v2438_v31  ;;  %v2247_v53 = vpop.f32.mrf.mxu3 }
 0x3d3   : > { %2286 = vst.msk [vmem:[%s4068_s9 + $0xe8] sm:$0xff] %vm2256_vm11, %v2247_v53  ;;  %v2389_v51 = vmul.f32 %v2247_v53, %v2247_v53  ;;  %v2346_v4 = vsel %vm2256_vm11, %v2247_v53, 0.0 }
 0x3d4   : > { %v2341_v12 = vadd.f32 %v2340_v52, %v2339_v43  ;;  %v2442_v56 = vadd.f32 %v2441_v63, %v2440_v48 }
 0x3d5   : > { %v2449_v6 = vsel %vm2256_vm11, %v2389_v51, 0.0 }
 0x3d6   : > { %v2444_v27 = vadd.f32 %v2443_v2, %v2442_v56  ;;  %v2343_v55 = vadd.f32 %v2342_v19, %v2341_v12 }
 0x3d8   : > { %v2446_v29 = vadd.f32 %v2445_v16, %v2444_v27  ;;  %v2345_v14 = vadd.f32 %v2344_v38, %v2343_v55 }
 0x3da   : > { %v2448_v30 = vadd.f32 %v2447_v58, %v2446_v29  ;;  %v2347_v57 = vadd.f32 %v2346_v4, %v2345_v14 }
 0x3db   : > { %v2250_v21 = vpop.f32.mrf.mxu3 }
 0x3dc   : > { %2287 = vst.msk [vmem:[%s4068_s9 + $0xf0] sm:$0xff] %vm2256_vm11, %v2250_v21  ;;  %v2390_v61 = vmul.f32 %v2250_v21, %v2250_v21  ;;  %v2348_v1 = vsel %vm2256_vm11, %v2250_v21, 0.0  ;;  %v2450_v22 = vadd.f32 %v2449_v6, %v2448_v30 }
 0x3dd   : > { %v2349_v8 = vadd.f32 %v2348_v1, %v2347_v57 }
 0x3de   : > { %v2451_v39 = vsel %vm2256_vm11, %v2390_v61, 0.0 }
 0x3df   : > { %v2452_v5 = vadd.f32 %v2451_v39, %v2450_v22 }
 0x3e4   : > { %v2253_v15 = vpop.f32.mrf.mxu3 }
 0x3e5   : > { %2288 = vst.msk [vmem:[%s4068_s9 + $0xf8] sm:$0xff] %vm2256_vm11, %v2253_v15  ;;  %v2350_v25 = vsel %vm2256_vm11, %v2253_v15, 0.0  ;;  %v2391_v13 = vmul.f32 %v2253_v15, %v2253_v15 }
 0x3e6   : > { %v2351_v36 = vadd.f32 %v2350_v25, %v2349_v8 }
 0x3e7   : > { %v2453_v9 = vsel %vm2256_vm11, %v2391_v13, 0.0 }
 0x3e8   : > { %v2352_v54 = vrot.slane %v2351_v36, 4  ;;  %v2454_v18 = vadd.f32 %v2453_v9, %v2452_v5 }
 0x3ea   : > { %v2353_v49 = vadd.f32 %v2352_v54, %v2351_v36  ;;  %v2455_v7 = vrot.slane %v2454_v18, 4 }
 0x3ec   : > { %v2354_v42 = vrot.slane %v2353_v49, 2  ;;  %v2456_v45 = vadd.f32 %v2455_v7, %v2454_v18 }
 0x3ee   : > { %v2355_v35 = vadd.f32 %v2354_v42, %v2353_v49  ;;  %v2457_v10 = vrot.slane %v2456_v45, 2 }
 0x3f0   : > { %v2356_v3 = vrot.slane %v2355_v35, 1  ;;  %v2458_v11 = vadd.f32 %v2457_v10, %v2456_v45 }
 0x3f2   : > { %v2357_v60 = vadd.f32 %v2356_v3, %v2355_v35  ;;  %v2459_v0 = vrot.slane %v2458_v11, 1 }
 0x3f4   : > { %2359 = vst.msk [vmem:[%s266_s30] sm:$0x1] %vm2358_vm12, %v2357_v60  ;;  %v2460_v47 = vadd.f32 %v2459_v0, %v2458_v11 }
 0x3f6   : > { %2461 = vst.msk [vmem:[%s266_s30 + $0x1] sm:$0x1] %vm2358_vm12, %v2460_v47 }
 0x3f7 PF: > { %s16_s20 = sadd.s32 1, %s2914_s20   ;;  %s4443_s18 = smov %s2910_s19 }
 0x3f8   : > { %p13_p5 = scmp.ge.s32.totalorder %s16_s20, 4   ;;  %s4444_s19 = smov %s4446_s1 }
 0x3fa   :  { %15 = sbr.rel (!%p13_p5) target bundleno = 2 (0x2), region = 82 }

// kernel: complex_double_conv.4
= control target key start
LH: loop header
LB: loop body
LE: loop exit
PB: predicated region body
PF: predicated region fallthrough
CT: control target
= control target key end

     0   :  { %s3089_s18 = smov 0   ;;  %s3091_s19 = smov 0   ;;  %s4598_s0 = inlined_call_operand.vmem [shape: f32[2,16,16,16], index: 0, kind: input, shape index: {}]   ;;  %s4599_s1 = inlined_call_operand.vmem [shape: f32[1,16], index: 1, kind: input, shape index: {}]   ;;  %s4600_s2 = inlined_call_operand.vmem [shape: f32[1,16], index: 2, kind: input, shape index: {}]   ;;  %s4601_s3 = inlined_call_operand.vmem [shape: f32[144,16], index: 3, kind: input, shape index: {}]   ;;  %s4602_s4 = inlined_call_operand.vmem [shape: f32[2,256,16], index: 4, kind: output, shape index: {0}]   ;;  %s4603_s5 = inlined_call_operand.vmem [shape: f32[2,1,2,16], index: 5, kind: output, shape index: {1}]  }
   0x1   :  { %s3093_s20 = smov 0  }
   0x2 LB: > { %s28_s21 = sadd.s32 1, %s3045_s19  ;;  %p2725_p0 = scmp.ge.s32.totalorder %s3049_s20, 1  ;;  %s3049_s20 = sphi %s3093_s20, %s16_s20   ;;  %s3045_s19 = sphi %s3091_s19, %s4605_s19   ;;  %s3041_s18 = sphi %s3089_s18, %s4604_s18  }
   0x3   : > { %p30_p1 = scmp.ge.s32.totalorder %s28_s21, 2  ;;  %p206_p2 = scmp.lt.s32.totalorder %s3049_s20, 3 }
   0x5   : > { %s4607_s21 = smov (%p30_p1, %s28_s21), 0  ;;  %p207_p3 = pnand %p2725_p0, %p206_p2 }
   0x6   : > { %p245_p4 = scmp.lt.s32.totalorder (!%p207_p3), %s3041_s18, 1  ;;  %s3052_s22 = smov (!%p207_p3), 16  }
   0x7   : > { %210 = sbr.rel (%p207_p3) target bundleno = 937 (0x3a9), region = 36  ;;  %s3053_s6 = smov (!%p207_p3), 32  }
   0x8   : > { %s3054_s7 = smov (!%p207_p3), 48   ;;  %s3055_s8 = smov (!%p207_p3), 64  }
   0x9   : > { %s3056_s9 = smov (!%p207_p3), 80   ;;  %s3057_s10 = smov (!%p207_p3), 96  }
   0xa   : > { %s3058_s15 = smov (!%p207_p3), 112  }
   0xc   : > { %vm403_vm0 = vcmask 130048   ;;  %v3051_v0 = vmov 0.0   ;;  %s4609_s18 = smov (!%p245_p4, %s3041_s18), 1  ;;  %v3163_v2 = vld [vmem:[%s4599_s1] ss:$0 sm:$0xff]  ;;  %vm406_vm1 = vcmask 123904  }
   0xd   : > { %404 = vst.msk [vmem:[#allocation2] sm:$0xff] %vm403_vm0, %v3051_v0  ;;  %s2957_s23 = sshll.u32 %s4609_s18, 8  ;;  %v3178_v5 = vld [vmem:[%s4600_s2] ss:$0 sm:$0xff]  ;;  %vm719_vm2 = vcmask 261248   ;;  %vm912_vm3 = vcmask 392448  }
   0xe   : > { %405 = vst.msk [vmem:[#allocation2 + $0x8] sm:$0xff] %vm403_vm0, %v3051_v0  ;;  %s3154_s26 = scalar_lea.vmem %s4598_s0, %s2957_s23  ;;  %vm1108_vm4 = vcmask 523648   ;;  %vm1301_vm5 = vcmask 654848   ;;  %vm1494_vm6 = vcmask 786048   ;;  %vm1690_vm7 = vcmask 917248  }
   0xf   : > { %408 = vst.msk [vmem:[#allocation2 + $0x18] sm:$0xff] %vm403_vm0, %v3051_v0  ;;  %v267_v3 = vld [vmem:[%s3154_s26] sm:$0xff]  ;;  %v268_v8 = vld [vmem:[%s3154_s26 + $0x8] sm:$0xff]  ;;  %v274_v13 = vld [vmem:[%s3154_s26 + $0x38] sm:$0xff]  ;;  %vm1883_vm8 = vcmask 1048448   ;;  %vm2485_vm9 = vcmask 122880  }
  0x10   : > { %409 = vst.msk [vmem:[#allocation2 + $0x20] sm:$0xff] %vm403_vm0, %v3051_v0  ;;  %v303_v4 = vmul.f32 %v3163_v2, %v267_v3  ;;  %v271_v9 = vld [vmem:[%s3154_s26 + $0x20] sm:$0xff]  ;;  %v272_v10 = vld [vmem:[%s3154_s26 + $0x28] sm:$0xff]  ;;  %v304_v12 = vmul.f32 %v3163_v2, %v268_v8  ;;  %v269_v16 = vld [vmem:[%s3154_s26 + $0x10] sm:$0xff]  ;;  %v310_v19 = vmul.f32 %v3163_v2, %v274_v13 }
  0x11   : > { %411 = vst.msk [vmem:[#allocation2 + $0x30] sm:$0xff] %vm403_vm0, %v3051_v0  ;;  %v307_v15 = vmul.f32 %v3163_v2, %v271_v9  ;;  %v308_v17 = vmul.f32 %v3163_v2, %v272_v10  ;;  %v275_v18 = vld [vmem:[%s3154_s26 + $0x40] sm:$0xff]  ;;  %v277_v20 = vld [vmem:[%s3154_s26 + $0x50] sm:$0xff]  ;;  %v305_v22 = vmul.f32 %v3163_v2, %v269_v16  ;;  %v270_v23 = vld [vmem:[%s3154_s26 + $0x18] sm:$0xff] }
  0x12   : > { %412 = vst.msk [vmem:[#allocation2 + $0x38] sm:$0xff] %vm403_vm0, %v3051_v0  ;;  %v339_v6 = vadd.f32 %v3178_v5, %v303_v4  ;;  %v340_v21 = vadd.f32 %v3178_v5, %v304_v12  ;;  %v311_v25 = vmul.f32 %v3163_v2, %v275_v18  ;;  %v278_v26 = vld [vmem:[%s3154_s26 + $0x58] sm:$0xff]  ;;  %v313_v28 = vmul.f32 %v3163_v2, %v277_v20  ;;  %v280_v29 = vld [vmem:[%s3154_s26 + $0x68] sm:$0xff]  ;;  %v273_v32 = vld [vmem:[%s3154_s26 + $0x30] sm:$0xff] }
  0x13   : > { %414 = vst.msk [vmem:[#allocation2 + $0x48] sm:$0xff] %vm403_vm0, %v3051_v0  ;;  %v343_v24 = vadd.f32 %v3178_v5, %v307_v15  ;;  %v344_v27 = vadd.f32 %v3178_v5, %v308_v17  ;;  %v346_v30 = vadd.f32 %v3178_v5, %v310_v19  ;;  %v306_v31 = vmul.f32 %v3163_v2, %v270_v23  ;;  %v281_v36 = vld [vmem:[%s3154_s26 + $0x70] sm:$0xff]  ;;  %v283_v40 = vld [vmem:[%s3154_s26 + $0x80] sm:$0xff]  ;;  %v276_v44 = vld [vmem:[%s3154_s26 + $0x48] sm:$0xff] }
  0x14   : > { %415 = vst.msk [vmem:[#allocation2 + $0x50] sm:$0xff] %vm403_vm0, %v3051_v0  ;;  %v371_v7 = vmax.f32 %v339_v6, 0.0  ;;  %v372_v33 = vmax.f32 %v340_v21, 0.0  ;;  %v341_v34 = vadd.f32 %v3178_v5, %v305_v22  ;;  %v314_v35 = vmul.f32 %v3163_v2, %v278_v26  ;;  %v284_v54 = vld [vmem:[%s3154_s26 + $0x88] sm:$0xff]  ;;  %v286_v58 = vld [vmem:[%s3154_s26 + $0x98] sm:$0xff]  ;;  %v279_v62 = vld [vmem:[%s3154_s26 + $0x60] sm:$0xff] }
  0x15   : > { %v559_v1 = vld [vmem:[#allocation2 + $0x1] sm:$0xff]  ;;  %417 = vst.msk [vmem:[#allocation2 + $0x60] sm:$0xff] %vm403_vm0, %v3051_v0  ;;  %v375_v37 = vmax.f32 %v343_v24, 0.0  ;;  %v347_v38 = vadd.f32 %v3178_v5, %v311_v25  ;;  %v316_v39 = vmul.f32 %v3163_v2, %v280_v29  ;;  %v376_v41 = vmax.f32 %v344_v27, 0.0  ;;  %v289_v18 = vld [vmem:[%s3154_s26 + $0xb0] sm:$0xff]  ;;  %v282_v22 = vld [vmem:[%s3154_s26 + $0x78] sm:$0xff] }
  0x16   : > { %623 = vrot.lane.b32.xlu0 %v559_v1, %s3052_s22  ;;  %418 = vst.msk [vmem:[#allocation2 + $0x68] sm:$0xff] %vm403_vm0, %v3051_v0  ;;  %v349_v42 = vadd.f32 %v3178_v5, %v313_v28  ;;  %v309_v43 = vmul.f32 %v3163_v2, %v273_v32  ;;  %v378_v45 = vmax.f32 %v346_v30, 0.0  ;;  %v342_v46 = vadd.f32 %v3178_v5, %v306_v31  ;;  %v287_v15 = vld [vmem:[%s3154_s26 + $0xa0] sm:$0xff] }
  0x17   : > { %420 = vst.msk [vmem:[#allocation2 + $0x78] sm:$0xff] %vm403_vm0, %v3051_v0  ;;  %v317_v47 = vmul.f32 %v3163_v2, %v281_v36  ;;  %v373_v48 = vmax.f32 %v341_v34, 0.0  ;;  %v350_v49 = vadd.f32 %v3178_v5, %v314_v35  ;;  %v319_v50 = vmul.f32 %v3163_v2, %v283_v40  ;;  %v290_v34 = vld [vmem:[%s3154_s26 + $0xb8] sm:$0xff]  ;;  %v292_v36 = vld [vmem:[%s3154_s26 + $0xc8] sm:$0xff] }
  0x18   : > { %421 = vst.msk [vmem:[#allocation2 + $0x80] sm:$0xff] %vm403_vm0, %v3051_v0  ;;  %v379_v51 = vmax.f32 %v347_v38, 0.0  ;;  %v352_v52 = vadd.f32 %v3178_v5, %v316_v39  ;;  %v312_v53 = vmul.f32 %v3163_v2, %v276_v44  ;;  %v381_v55 = vmax.f32 %v349_v42, 0.0  ;;  %v285_v38 = vld [vmem:[%s3154_s26 + $0x90] sm:$0xff] }
  0x19   : > { %423 = vst.msk [vmem:[#allocation2 + $0x90] sm:$0xff] %vm403_vm0, %v3051_v0  ;;  %v345_v56 = vadd.f32 %v3178_v5, %v309_v43  ;;  %v320_v57 = vmul.f32 %v3163_v2, %v284_v54  ;;  %v374_v59 = vmax.f32 %v342_v46, 0.0  ;;  %v353_v60 = vadd.f32 %v3178_v5, %v317_v47 }
  0x1a   : > { %424 = vst.msk [vmem:[#allocation2 + $0x98] sm:$0xff] %vm403_vm0, %v3051_v0  ;;  %v322_v61 = vmul.f32 %v3163_v2, %v286_v58  ;;  %v382_v63 = vmax.f32 %v350_v49, 0.0  ;;  %v315_v1 = vmul.f32 %v3163_v2, %v279_v62  ;;  %v384_v3 = vmax.f32 %v352_v52, 0.0  ;;  %v293_v49 = vld [vmem:[%s3154_s26 + $0xd0] sm:$0xff] }
  0x1b   : > { %426 = vst.msk [vmem:[#allocation2 + $0xa8] sm:$0xff] %vm403_vm0, %v3051_v0  ;;  %v348_v4 = vadd.f32 %v3178_v5, %v312_v53  ;;  %v377_v6 = vmax.f32 %v345_v56, 0.0  ;;  %v385_v9 = vmax.f32 %v353_v60, 0.0  ;;  %v323_v17 = vmul.f32 %v3163_v2, %v287_v15  ;;  %v288_v53 = vld [vmem:[%s3154_s26 + $0xa8] sm:$0xff] }
  0x1c   : > { %427 = vst.msk [vmem:[#allocation2 + $0xb0] sm:$0xff] %vm403_vm0, %v3051_v0  ;;  %v358_v10 = vadd.f32 %v3178_v5, %v322_v61  ;;  %v351_v13 = vadd.f32 %v3178_v5, %v315_v1  ;;  %v325_v21 = vmul.f32 %v3163_v2, %v289_v18  ;;  %v318_v25 = vmul.f32 %v3163_v2, %v282_v22 }
  0x1d   : > { %429 = vst.msk [vmem:[#allocation2 + $0xc0] sm:$0xff] %vm403_vm0, %v3051_v0  ;;  %v359_v24 = vadd.f32 %v3178_v5, %v323_v17  ;;  %v326_v35 = vmul.f32 %v3163_v2, %v290_v34  ;;  %v321_v40 = vmul.f32 %v3163_v2, %v285_v38 }
  0x1e   : > { %430 = vst.msk [vmem:[#allocation2 + $0xc8] sm:$0xff] %vm403_vm0, %v3051_v0  ;;  %v390_v20 = vmax.f32 %v358_v10, 0.0  ;;  %v383_v23 = vmax.f32 %v351_v13, 0.0  ;;  %v361_v27 = vadd.f32 %v3178_v5, %v325_v21  ;;  %v354_v30 = vadd.f32 %v3178_v5, %v318_v25 }
  0x1f   : > { %432 = vst.msk [vmem:[#allocation2 + $0xd8] sm:$0xff] %vm403_vm0, %v3051_v0  ;;  %v391_v29 = vmax.f32 %v359_v24, 0.0  ;;  %v362_v39 = vadd.f32 %v3178_v5, %v326_v35  ;;  %v495_v35 = vld [vmem:[#allocation2] sm:$0xff] }
  0x20   : > { %433 = vst.msk [vmem:[#allocation2 + $0xe0] sm:$0xff] %vm403_vm0, %v3051_v0  ;;  %v393_v31 = vmax.f32 %v361_v27, 0.0  ;;  %v386_v32 = vmax.f32 %v354_v30, 0.0 }
  0x21   : > { %435 = vst.msk [vmem:[#allocation2 + $0xf0] sm:$0xff] %vm403_vm0, %v3051_v0  ;;  %v394_v44 = vmax.f32 %v362_v39, 0.0 }
  0x22   : > { %436 = vst.msk [vmem:[#allocation2 + $0xf8] sm:$0xff] %vm403_vm0, %v3051_v0 }
  0x23   : > { %438 = vst.msk [vmem:[#allocation2 + $0x108] sm:$0xff] %vm403_vm0, %v3051_v0 }
  0x24   : > { %439 = vst.msk [vmem:[#allocation2 + $0x110] sm:$0xff] %vm403_vm0, %v3051_v0 }
  0x25   : > { %441 = vst.msk [vmem:[#allocation2 + $0x120] sm:$0xff] %vm403_vm0, %v3051_v0 }
  0x26   : > { %442 = vst.msk [vmem:[#allocation2 + $0x128] sm:$0xff] %vm403_vm0, %v3051_v0 }
  0x27   : > { %444 = vst.msk [vmem:[#allocation2 + $0x138] sm:$0xff] %vm403_vm0, %v3051_v0 }
  0x28   : > { %445 = vst.msk [vmem:[#allocation2 + $0x140] sm:$0xff] %vm403_vm0, %v3051_v0 }
  0x29   : > { %447 = vst.msk [vmem:[#allocation2 + $0x150] sm:$0xff] %vm403_vm0, %v3051_v0 }
  0x2a   : > { %448 = vst.msk [vmem:[#allocation2 + $0x158] sm:$0xff] %vm403_vm0, %v3051_v0 }
  0x2b   : > { %450 = vst.msk [vmem:[#allocation2 + $0x168] sm:$0xff] %vm403_vm0, %v3051_v0 }
  0x2c   : > { %451 = vst.msk [vmem:[#allocation2 + $0x170] sm:$0xff] %vm403_vm0, %v3051_v0 }
  0x2d   : > { %453 = vst.msk [vmem:[#allocation2 + $0x180] sm:$0xff] %vm403_vm0, %v3051_v0 }
  0x2e   : > { %454 = vst.msk [vmem:[#allocation2 + $0x188] sm:$0xff] %vm403_vm0, %v3051_v0 }
  0x2f   : > { %456 = vst.msk [vmem:[#allocation2 + $0x198] sm:$0xff] %vm403_vm0, %v3051_v0 }
  0x30   : > { %457 = vst.msk [vmem:[#allocation2 + $0x1a0] sm:$0xff] %vm403_vm0, %v3051_v0 }
  0x31   : > { %460 = vst.msk [vmem:[#allocation2 + $0x19] sm:$0xff] %vm403_vm0, %v371_v7  ;;  %v356_v7 = vadd.f32 %v3178_v5, %v320_v57 }
  0x32   : > { %407 = vst.msk [vmem:[#allocation2 + $0x10] sm:$0x3] %vm406_vm1, %v3051_v0 }
  0x33   : > { %410 = vst.msk [vmem:[#allocation2 + $0x28] sm:$0x3] %vm406_vm1, %v3051_v0  ;;  %v388_v16 = vmax.f32 %v356_v7, 0.0 }
  0x34   : > { %413 = vst.msk [vmem:[#allocation2 + $0x40] sm:$0x3] %vm406_vm1, %v3051_v0 }
  0x35   : > { %416 = vst.msk [vmem:[#allocation2 + $0x58] sm:$0x3] %vm406_vm1, %v3051_v0 }
  0x36   : > { %419 = vst.msk [vmem:[#allocation2 + $0x70] sm:$0x3] %vm406_vm1, %v3051_v0 }
  0x37   : > { %422 = vst.msk [vmem:[#allocation2 + $0x88] sm:$0x3] %vm406_vm1, %v3051_v0 }
  0x38   : > { %v561_v11 = vld [vmem:[#allocation2 + $0x19] sm:$0xff]  ;;  %425 = vst.msk [vmem:[#allocation2 + $0xa0] sm:$0x3] %vm406_vm1, %v3051_v0 }
  0x39   : > { %627 = vrot.lane.b32.xlu1 %v561_v11, %s3052_s22  ;;  %v560_v14 = vld [vmem:[#allocation2 + $0x9] sm:$0xff]  ;;  %428 = vst.msk [vmem:[#allocation2 + $0xb8] sm:$0x3] %vm406_vm1, %v3051_v0 }
  0x3a   : > { %625 = vrot.lane.b32.xlu0 %v560_v14, %s3052_s22  ;;  %431 = vst.msk [vmem:[#allocation2 + $0xd0] sm:$0x3] %vm406_vm1, %v3051_v0  ;;  %v380_v14 = vmax.f32 %v348_v4, 0.0  ;;  %v753_v39 = vld [vmem:[#allocation2 + $0xa] sm:$0xff] }
  0x3b   : > { %434 = vst.msk [vmem:[#allocation2 + $0xe8] sm:$0x3] %vm406_vm1, %v3051_v0 }
  0x3c   : > { %437 = vst.msk [vmem:[#allocation2 + $0x100] sm:$0x3] %vm406_vm1, %v3051_v0 }
  0x3d   : > { %440 = vst.msk [vmem:[#allocation2 + $0x118] sm:$0x3] %vm406_vm1, %v3051_v0 }
  0x3e   : > { %443 = vst.msk [vmem:[#allocation2 + $0x130] sm:$0x3] %vm406_vm1, %v3051_v0 }
  0x3f   : > { %446 = vst.msk [vmem:[#allocation2 + $0x148] sm:$0x3] %vm406_vm1, %v3051_v0 }
  0x40   : > { %449 = vst.msk [vmem:[#allocation2 + $0x160] sm:$0x3] %vm406_vm1, %v3051_v0 }
  0x41   : > { %452 = vst.msk [vmem:[#allocation2 + $0x178] sm:$0x3] %vm406_vm1, %v3051_v0 }
  0x42   : > { %455 = vst.msk [vmem:[#allocation2 + $0x190] sm:$0x3] %vm406_vm1, %v3051_v0 }
  0x43   : > { %458 = vst.msk [vmem:[#allocation2 + $0x1a8] sm:$0x3] %vm406_vm1, %v3051_v0  ;;  %v355_v0 = vadd.f32 %v3178_v5, %v319_v50  ;;  %v329_v50 = vmul.f32 %v3163_v2, %v293_v49 }
  0x44   : > { %461 = vst.msk [vmem:[#allocation2 + $0x21] sm:$0xff] %vm403_vm0, %v372_v33 }
  0x45   : > { %464 = vst.msk [vmem:[#allocation2 + $0x49] sm:$0xff] %vm403_vm0, %v375_v37  ;;  %v387_v12 = vmax.f32 %v355_v0, 0.0  ;;  %v328_v37 = vmul.f32 %v3163_v2, %v292_v36  ;;  %v365_v54 = vadd.f32 %v3178_v5, %v329_v50  ;;  %v296_v0 = vld [vmem:[%s3154_s26 + $0xe8] sm:$0xff] }
  0x46   : > { %465 = vst.msk [vmem:[#allocation2 + $0x51] sm:$0xff] %vm403_vm0, %v376_v41  ;;  %v332_v1 = vmul.f32 %v3163_v2, %v296_v0 }
  0x47   : > { %467 = vst.msk [vmem:[#allocation2 + $0x69] sm:$0xff] %vm403_vm0, %v378_v45  ;;  %v364_v42 = vadd.f32 %v3178_v5, %v328_v37  ;;  %v357_v45 = vadd.f32 %v3178_v5, %v321_v40 }
  0x48   : > { %462 = vst.msk [vmem:[#allocation2 + $0x31] sm:$0xff] %vm403_vm0, %v373_v48  ;;  %v368_v4 = vadd.f32 %v3178_v5, %v332_v1 }
  0x49   : > { %468 = vst.msk [vmem:[#allocation2 + $0x79] sm:$0xff] %vm403_vm0, %v379_v51  ;;  %v396_v46 = vmax.f32 %v364_v42, 0.0  ;;  %v389_v47 = vmax.f32 %v357_v45, 0.0  ;;  %v295_v51 = vld [vmem:[%s3154_s26 + $0xe0] sm:$0xff]  ;;  %v496_v42 = vld [vmem:[#allocation2 + $0x8] sm:$0xff] }
  0x4a   : > { %470 = vst.msk [vmem:[#allocation2 + $0x91] sm:$0xff] %vm403_vm0, %v381_v55  ;;  %v331_v52 = vmul.f32 %v3163_v2, %v295_v51  ;;  %v324_v55 = vmul.f32 %v3163_v2, %v288_v53  ;;  %v400_v10 = vmax.f32 %v368_v4, 0.0 }
  0x4b   : > { %v3298_v8 = vld [vmem:[#allocation2 + $0x21] sm:$0xff]  ;;  %463 = vst.msk [vmem:[#allocation2 + $0x39] sm:$0xff] %vm403_vm0, %v374_v59  ;;  %v397_v59 = vmax.f32 %v365_v54, 0.0 }
  0x4c   : > { %629 = vrot.lane.b32.xlu1 %v3298_v8, %s3052_s22  ;;  %v565_v11 = vld [vmem:[#allocation2 + $0x49] sm:$0xff]  ;;  %471 = vst.msk [vmem:[#allocation2 + $0x99] sm:$0xff] %vm403_vm0, %v382_v63  ;;  %v367_v57 = vadd.f32 %v3178_v5, %v331_v52  ;;  %v360_v60 = vadd.f32 %v3178_v5, %v324_v55  ;;  %v3450_v49 = vld [vmem:[#allocation2 + $0x20] sm:$0xff] }
  0x4d   : > { %635 = vrot.lane.b32.xlu0 %v565_v11, %s3052_s22  ;;  %473 = vst.msk [vmem:[#allocation2 + $0xb1] sm:$0xff] %vm403_vm0, %v384_v3  ;;  %v566_v26 = vld [vmem:[#allocation2 + $0x51] sm:$0xff]  ;;  %v291_v3 = vld [vmem:[%s3154_s26 + $0xc0] sm:$0xff]  ;;  %v3454_v51 = vld [vmem:[#allocation2 + $0x48] sm:$0xff] }
  0x4e   : > { %466 = vst.msk [vmem:[#allocation2 + $0x61] sm:$0xff] %vm403_vm0, %v377_v6  ;;  %v568_v28 = vld [vmem:[#allocation2 + $0x69] sm:$0xff]  ;;  %v399_v61 = vmax.f32 %v367_v57, 0.0  ;;  %v392_v62 = vmax.f32 %v360_v60, 0.0  ;;  %v327_v6 = vmul.f32 %v3163_v2, %v291_v3 }
  0x4f   : > { %v563_v19 = vld [vmem:[#allocation2 + $0x31] sm:$0xff]  ;;  %474 = vst.msk [vmem:[#allocation2 + $0xc1] sm:$0xff] %vm403_vm0, %v385_v9  ;;  %v3467_v53 = vld [vmem:[#allocation2 + $0x22] sm:$0xff] }
  0x50   : > { %631 = vrot.lane.b32.xlu2 %v563_v19, %s3052_s22  ;;  %476 = vst.msk [vmem:[#allocation2 + $0xd9] sm:$0xff] %vm403_vm0, %v387_v12  ;;  %v569_v41 = vld [vmem:[#allocation2 + $0x79] sm:$0xff]  ;;  %v363_v11 = vadd.f32 %v3178_v5, %v327_v6  ;;  %v3421_v36 = vld [vmem:[#allocation2 + $0x30] sm:$0xff] }
  0x51   : > { %469 = vst.msk [vmem:[#allocation2 + $0x81] sm:$0xff] %vm403_vm0, %v380_v14  ;;  %v3342_v43 = vld [vmem:[#allocation2 + $0x91] sm:$0xff] }
  0x52   : > { %477 = vst.msk [vmem:[#allocation2 + $0xe1] sm:$0xff] %vm403_vm0, %v388_v16  ;;  %v3327_v33 = vld [vmem:[#allocation2 + $0x39] sm:$0xff]  ;;  %v395_v12 = vmax.f32 %v363_v11, 0.0  ;;  %v3438_v45 = vld [vmem:[#allocation2 + $0x4a] sm:$0xff] }
  0x53   : > { %479 = vst.msk [vmem:[#allocation2 + $0xf9] sm:$0xff] %vm403_vm0, %v390_v20  ;;  %v572_v56 = vld [vmem:[#allocation2 + $0x99] sm:$0xff]  ;;  %v761_v50 = vld [vmem:[#allocation2 + $0x6a] sm:$0xff] }
  0x54   : > { %637 = vrot.lane.b32.xlu1 %v566_v26, %s3052_s22  ;;  %472 = vst.msk [vmem:[#allocation2 + $0xa9] sm:$0xff] %vm403_vm0, %v383_v23  ;;  %v3363_v58 = vld [vmem:[#allocation2 + $0xb1] sm:$0xff]  ;;  %v3406_v25 = vld [vmem:[#allocation2 + $0x3a] sm:$0xff] }
  0x55   : > { %641 = vrot.lane.b32.xlu0 %v568_v28, %s3052_s22  ;;  %480 = vst.msk [vmem:[#allocation2 + $0x109] sm:$0xff] %vm403_vm0, %v391_v29  ;;  %v3349_v48 = vld [vmem:[#allocation2 + $0x61] sm:$0xff]  ;;  %v294_v14 = vld [vmem:[%s3154_s26 + $0xd8] sm:$0xff]  ;;  %v3469_v54 = vld [vmem:[#allocation2 + $0x50] sm:$0xff] }
  0x56   : > { %482 = vst.msk [vmem:[#allocation2 + $0x121] sm:$0xff] %vm403_vm0, %v393_v31  ;;  %v575_v7 = vld [vmem:[#allocation2 + $0xc1] sm:$0xff]  ;;  %v330_v15 = vmul.f32 %v3163_v2, %v294_v14  ;;  %v3401_v23 = vld [vmem:[#allocation2 + $0x32] sm:$0xff] }
  0x57   : > { %475 = vst.msk [vmem:[#allocation2 + $0xc9] sm:$0xff] %vm403_vm0, %v386_v32  ;;  %v577_v9 = vld [vmem:[#allocation2 + $0xd9] sm:$0xff]  ;;  %v760_v30 = vld [vmem:[#allocation2 + $0x62] sm:$0xff]  ;;  %v3492_v0 = vld [vmem:[#allocation2 + $0x90] sm:$0xff] }
  0x58   : > { %633 = vrot.lane.b32.xlu2 %v3327_v33, %s3052_s22  ;;  %483 = vst.msk [vmem:[#allocation2 + $0x129] sm:$0xff] %vm403_vm0, %v394_v44  ;;  %v3370_v63 = vld [vmem:[#allocation2 + $0x81] sm:$0xff]  ;;  %v366_v18 = vadd.f32 %v3178_v5, %v330_v15  ;;  %v759_v28 = vld [vmem:[#allocation2 + $0x52] sm:$0xff] }
  0x59   : > { %485 = vst.msk [vmem:[#allocation2 + $0x141] sm:$0xff] %vm403_vm0, %v396_v46  ;;  %v578_v16 = vld [vmem:[#allocation2 + $0xe1] sm:$0xff]  ;;  %v3434_v44 = vld [vmem:[#allocation2 + $0x38] sm:$0xff] }
  0x5a   : > { %478 = vst.msk [vmem:[#allocation2 + $0xf1] sm:$0xff] %vm403_vm0, %v389_v47  ;;  %v580_v17 = vld [vmem:[#allocation2 + $0xf9] sm:$0xff]  ;;  %v398_v19 = vmax.f32 %v366_v18, 0.0  ;;  %v752_v47 = vld [vmem:[#allocation2 + $0x2] sm:$0xff] }
  0x5b   : > { %486 = vst.msk [vmem:[#allocation2 + $0x151] sm:$0xff] %vm403_vm0, %v397_v59  ;;  %v3385_v13 = vld [vmem:[#allocation2 + $0xa9] sm:$0xff]  ;;  %v3442_v46 = vld [vmem:[#allocation2 + $0x1a] sm:$0xff]  ;;  %v764_v15 = vld [vmem:[#allocation2 + $0x92] sm:$0xff] }
  0x5c   : > { %643 = vrot.lane.b32.xlu1 %v569_v41, %s3052_s22  ;;  %488 = vst.msk [vmem:[#allocation2 + $0x169] sm:$0xff] %vm403_vm0, %v399_v61  ;;  %v581_v21 = vld [vmem:[#allocation2 + $0x109] sm:$0xff]  ;;  %v3430_v41 = vld [vmem:[#allocation2 + $0x18] sm:$0xff]  ;;  %v3460_v52 = vld [vmem:[#allocation2 + $0x60] sm:$0xff] }
  0x5d   : > { %647 = vrot.lane.b32.xlu0 %v3342_v43, %s3052_s22  ;;  %481 = vst.msk [vmem:[#allocation2 + $0x111] sm:$0xff] %vm403_vm0, %v392_v62  ;;  %v583_v22 = vld [vmem:[#allocation2 + $0x121] sm:$0xff]  ;;  %v3488_v62 = vld [vmem:[#allocation2 + $0x78] sm:$0xff]  ;;  %v766_v11 = vld [vmem:[#allocation2 + $0xaa] sm:$0xff] }
  0x5e   : > { %489 = vst.msk [vmem:[#allocation2 + $0x171] sm:$0xff] %vm403_vm0, %v400_v10  ;;  %v3395_v20 = vld [vmem:[#allocation2 + $0xc9] sm:$0xff]  ;;  %v762_v57 = vld [vmem:[#allocation2 + $0x7a] sm:$0xff] }
  0x5f   : > { %484 = vst.msk [vmem:[#allocation2 + $0x139] sm:$0xff] %vm403_vm0, %v395_v12  ;;  %v584_v26 = vld [vmem:[#allocation2 + $0x129] sm:$0xff]  ;;  %v765_v4 = vld [vmem:[#allocation2 + $0x9a] sm:$0xff] }
  0x60   : > { %639 = vrot.lane.b32.xlu2 %v3349_v48, %s3052_s22  ;;  %487 = vst.msk [vmem:[#allocation2 + $0x159] sm:$0xff] %vm403_vm0, %v398_v19  ;;  %v586_v27 = vld [vmem:[#allocation2 + $0x141] sm:$0xff]  ;;  %v3526_v19 = vld [vmem:[#allocation2 + $0xd8] sm:$0xff] }
  0x61   : > { %v3404_v24 = vld [vmem:[#allocation2 + $0xf1] sm:$0xff]  ;;  %1948 = vst.msk [vmem:[#allocation3 + $0x8] sm:$0xff] %vm403_vm0, %v3401_v23  ;;  %v3473_v55 = vld [vmem:[#allocation2 + $0x68] sm:$0xff] }
  0x62   : > { %1949 = vst.msk [vmem:[#allocation3 + $0x18] sm:$0xff] %vm403_vm0, %v3406_v25  ;;  %v587_v31 = vld [vmem:[#allocation2 + $0x151] sm:$0xff]  ;;  %v3498_v1 = vld [vmem:[#allocation2 + $0xa8] sm:$0xff] }
  0x63   : > { %1951 = vst.msk [vmem:[#allocation3 + $0x38] sm:$0xff] %vm403_vm0, %v759_v28  ;;  %v589_v32 = vld [vmem:[#allocation2 + $0x169] sm:$0xff] }
  0x64   : > { %649 = vrot.lane.b32.xlu1 %v572_v56, %s3052_s22  ;;  %v582_v29 = vld [vmem:[#allocation2 + $0x111] sm:$0xff]  ;;  %1952 = vst.msk [vmem:[#allocation3 + $0x48] sm:$0xff] %vm403_vm0, %v760_v30  ;;  %v3479_v56 = vld [vmem:[#allocation2 + $0x80] sm:$0xff]  ;;  %v3514_v10 = vld [vmem:[#allocation2 + $0xc8] sm:$0xff] }
  0x65   : > { %653 = vrot.lane.b32.xlu0 %v3363_v58, %s3052_s22  ;;  %527 = vst.msk [vmem:[#allocation3] sm:$0xff] %vm403_vm0, %v495_v35  ;;  %v590_v38 = vld [vmem:[#allocation2 + $0x171] sm:$0xff]  ;;  %v763_v3 = vld [vmem:[#allocation2 + $0x82] sm:$0xff] }
  0x66   : > { %v585_v34 = vld [vmem:[#allocation2 + $0x139] sm:$0xff]  ;;  %531 = vst.msk [vmem:[#allocation3 + $0x40] sm:$0xff] %vm403_vm0, %v3421_v36  ;;  %v768_v12 = vld [vmem:[#allocation2 + $0xc2] sm:$0xff] }
  0x67   : > { %v588_v40 = vld [vmem:[#allocation2 + $0x159] sm:$0xff]  ;;  %529 = vst.msk [vmem:[#allocation3 + $0x20] sm:$0xff] %vm403_vm0, %v3430_v41 }
  0x68   : > { %645 = vrot.lane.b32.xlu2 %v3370_v63, %s3052_s22  ;;  %528 = vst.msk [vmem:[#allocation3 + $0x10] sm:$0xff] %vm403_vm0, %v496_v42  ;;  %v3556_v35 = vld [vmem:[#allocation2 + $0xf2] sm:$0xff] }
  0x69   : > { %532 = vst.msk [vmem:[#allocation3 + $0x50] sm:$0xff] %vm403_vm0, %v3434_v44 }
  0x6a   : > { %1950 = vst.msk [vmem:[#allocation3 + $0x28] sm:$0xff] %vm403_vm0, %v3438_v45 }
  0x6b   : > { %530 = vst.msk [vmem:[#allocation3 + $0x30] sm:$0xff] %vm403_vm0, %v3450_v49 }
  0x6c   : > { %655 = vrot.lane.b32.xlu1 %v575_v7, %s3052_s22  ;;  %1953 = vst.msk [vmem:[#allocation3 + $0x58] sm:$0xff] %vm403_vm0, %v761_v50  ;;  %v3505_v7 = vld [vmem:[#allocation2 + $0x98] sm:$0xff] }
  0x6d   : > { %659 = vrot.lane.b32.xlu0 %v577_v9, %s3052_s22  ;;  %533 = vst.msk [vmem:[#allocation3 + $0x60] sm:$0xff] %vm403_vm0, %v3454_v51  ;;  %v3509_v9 = vld [vmem:[#allocation2 + $0xb0] sm:$0xff] }
  0x6e   : > { %535 = vst.msk [vmem:[#allocation3 + $0x80] sm:$0xff] %vm403_vm0, %v3460_v52 }
  0x6f   : > { %534 = vst.msk [vmem:[#allocation3 + $0x70] sm:$0xff] %vm403_vm0, %v3469_v54 }
  0x70   : > { %651 = vrot.lane.b32.xlu2 %v3385_v13, %s3052_s22  ;;  %536 = vst.msk [vmem:[#allocation3 + $0x90] sm:$0xff] %vm403_vm0, %v3473_v55 }
  0x71   : > { %538 = vst.msk [vmem:[#allocation3 + $0xb0] sm:$0xff] %vm403_vm0, %v3479_v56 }
  0x72   : > { %537 = vst.msk [vmem:[#allocation3 + $0xa0] sm:$0xff] %vm403_vm0, %v3488_v62 }
  0x73   : > { %539 = vst.msk [vmem:[#allocation3 + $0xc0] sm:$0xff] %vm403_vm0, %v3492_v0 }
  0x74   : > { %661 = vrot.lane.b32.xlu1 %v578_v16, %s3052_s22  ;;  %541 = vst.msk [vmem:[#allocation3 + $0xe0] sm:$0xff] %vm403_vm0, %v3498_v1  ;;  %v3521_v16 = vld [vmem:[#allocation2 + $0xc0] sm:$0xff] }
  0x75   : > { %665 = vrot.lane.b32.xlu0 %v580_v17, %s3052_s22  ;;  %540 = vst.msk [vmem:[#allocation3 + $0xd0] sm:$0xff] %vm403_vm0, %v3505_v7 }
  0x76   : > { %542 = vst.msk [vmem:[#allocation3 + $0xf0] sm:$0xff] %vm403_vm0, %v3509_v9 }
  0x77   : > { %544 = vst.msk [vmem:[#allocation3 + $0x110] sm:$0xff] %vm403_vm0, %v3514_v10 }
  0x78   : > { %657 = vrot.lane.b32.xlu2 %v3395_v20, %s3052_s22  ;;  %543 = vst.msk [vmem:[#allocation3 + $0x100] sm:$0xff] %vm403_vm0, %v3521_v16 }
  0x79   : > { %545 = vst.msk [vmem:[#allocation3 + $0x120] sm:$0xff] %vm403_vm0, %v3526_v19 }
  0x7c   : > { %667 = vrot.lane.b32.xlu1 %v581_v21, %s3052_s22  ;;  %v3530_v21 = vld [vmem:[#allocation2 + $0xf0] sm:$0xff] }
  0x7d   : > { %671 = vrot.lane.b32.xlu0 %v583_v22, %s3052_s22  ;;  %v3532_v22 = vld [vmem:[#allocation2 + $0xca] sm:$0xff]  ;;  %547 = vst.msk [vmem:[#allocation3 + $0x140] sm:$0xff] %vm403_vm0, %v3530_v21 }
  0x80   : > { %663 = vrot.lane.b32.xlu2 %v3404_v24, %s3052_s22 }
  0x84   : > { %673 = vrot.lane.b32.xlu1 %v584_v26, %s3052_s22  ;;  %v3536_v26 = vld [vmem:[#allocation2 + $0xe2] sm:$0xff] }
  0x85   : > { %677 = vrot.lane.b32.xlu0 %v586_v27, %s3052_s22 }
  0x88   : > { %669 = vrot.lane.b32.xlu2 %v582_v29, %s3052_s22  ;;  %v624_v37 = vpop.permute.xlu0 %623  ;;  %v3545_v29 = vld [vmem:[#allocation2 + $0xe0] sm:$0xff] }
  0x89   : > { %720 = vst.msk [vmem:[#allocation3] sm:$0xff] %vm719_vm2, %v624_v37  ;;  %v774_v37 = vld [vmem:[#allocation2 + $0x10a] sm:$0xff] }
  0x8a   : > { %546 = vst.msk [vmem:[#allocation3 + $0x130] sm:$0xff] %vm403_vm0, %v3545_v29 }
  0x8c   : > { %679 = vrot.lane.b32.xlu1 %v587_v31, %s3052_s22 }
  0x8d   : > { %683 = vrot.lane.b32.xlu0 %v589_v32, %s3052_s22  ;;  %v3550_v32 = vld [vmem:[#allocation2 + $0xf8] sm:$0xff] }
  0x8e   : > { %548 = vst.msk [vmem:[#allocation3 + $0x150] sm:$0xff] %vm403_vm0, %v3550_v32 }
  0x90   : > { %675 = vrot.lane.b32.xlu2 %v585_v34, %s3052_s22  ;;  %v3554_v34 = vld [vmem:[#allocation2 + $0x110] sm:$0xff] }
  0x91   : > { %550 = vst.msk [vmem:[#allocation3 + $0x170] sm:$0xff] %vm403_vm0, %v3554_v34 }
  0x94   : > { %685 = vrot.lane.b32.xlu1 %v590_v38, %s3052_s22 }
  0x95   : > { %818 = vrot.lane.b32.xlu0 %v753_v39, %s3053_s6  ;;  %v3566_v39 = vld [vmem:[#allocation2 + $0xda] sm:$0xff] }
  0x98   : > { %681 = vrot.lane.b32.xlu2 %v588_v40, %s3052_s22  ;;  %v3568_v40 = vld [vmem:[#allocation2 + $0x108] sm:$0xff]  ;;  %s4228_s22 = scalar_lea.vmem %s4602_s4, %s2957_s23  ;;  %s2730_s23 = sshll.u32 %s4609_s18, 1 }
  0x99   : > { %549 = vst.msk [vmem:[#allocation3 + $0x160] sm:$0xff] %vm403_vm0, %v3568_v40 }
  0x9c   : > { %820 = vrot.lane.b32.xlu1 %v3442_v46, %s3053_s6 }
  0x9d   : > { %824 = vrot.lane.b32.xlu0 %v3401_v23, %s3053_s6 }
  0xa0   : > { %816 = vrot.lane.b32.xlu2 %v752_v47, %s3053_s6 }
  0xa4   : > { %826 = vrot.lane.b32.xlu1 %v3406_v25, %s3053_s6 }
  0xa5   : > { %830 = vrot.lane.b32.xlu0 %v759_v28, %s3053_s6  ;;  %v767_v28 = vld [vmem:[#allocation2 + $0xb2] sm:$0xff] }
  0xa8   : > { %822 = vrot.lane.b32.xlu2 %v3467_v53, %s3053_s6 }
  0xaa   : > { %v632_v59 = vpop.permute.xlu2 %631 }
  0xab   : > { %724 = vst.msk [vmem:[#allocation3 + $0x40] sm:$0xff] %vm719_vm2, %v632_v59  ;;  %v628_v60 = vpop.permute.xlu1 %627  ;;  %v775_v59 = vld [vmem:[#allocation2 + $0x112] sm:$0xff] }
  0xac   : > { %832 = vrot.lane.b32.xlu1 %v760_v30, %s3053_s6  ;;  %722 = vst.msk [vmem:[#allocation3 + $0x20] sm:$0xff] %vm719_vm2, %v628_v60  ;;  %v626_v61 = vpop.permute.xlu0 %625  ;;  %v777_v60 = vld [vmem:[#allocation2 + $0x12a] sm:$0xff] }
  0xad   : > { %836 = vrot.lane.b32.xlu0 %v762_v57, %s3053_s6  ;;  %721 = vst.msk [vmem:[#allocation3 + $0x10] sm:$0xff] %vm719_vm2, %v626_v61  ;;  %v3578_v57 = vld [vmem:[#allocation2 + $0x138] sm:$0xff] }
  0xae   : > { %553 = vst.msk [vmem:[#allocation3 + $0x1a0] sm:$0xff] %vm403_vm0, %v3578_v57 }
  0xb0   : > { %828 = vrot.lane.b32.xlu2 %v3438_v45, %s3053_s6 }
  0xb2   : > { %v634_v6 = vpop.permute.xlu2 %633 }
  0xb3   : > { %725 = vst.msk [vmem:[#allocation3 + $0x50] sm:$0xff] %vm719_vm2, %v634_v6 }
  0xb4   : > { %838 = vrot.lane.b32.xlu1 %v763_v3, %s3053_s6  ;;  %v773_v3 = vld [vmem:[#allocation2 + $0xfa] sm:$0xff] }
  0xb5   : > { %842 = vrot.lane.b32.xlu0 %v765_v4, %s3053_s6  ;;  %v3587_v4 = vld [vmem:[#allocation2 + $0x128] sm:$0xff] }
  0xb6   : > { %552 = vst.msk [vmem:[#allocation3 + $0x190] sm:$0xff] %vm403_vm0, %v3587_v4 }
  0xb8   : > { %834 = vrot.lane.b32.xlu2 %v761_v50, %s3053_s6  ;;  %v3573_v50 = vld [vmem:[#allocation2 + $0x120] sm:$0xff] }
  0xb9   : > { %551 = vst.msk [vmem:[#allocation3 + $0x180] sm:$0xff] %vm403_vm0, %v3573_v50 }
  0xba   : > { %v640_v14 = vpop.permute.xlu2 %639 }
  0xbb   : > { %728 = vst.msk [vmem:[#allocation3 + $0x80] sm:$0xff] %vm719_vm2, %v640_v14  ;;  %v3596_v14 = vld [vmem:[#allocation2 + $0x158] sm:$0xff] }
  0xbc   : > { %844 = vrot.lane.b32.xlu1 %v766_v11, %s3053_s6  ;;  %556 = vst.msk [vmem:[#allocation3 + $0x1d0] sm:$0xff] %vm403_vm0, %v3596_v14 }
  0xbd   : > { %848 = vrot.lane.b32.xlu0 %v768_v12, %s3053_s6  ;;  %v3592_v12 = vld [vmem:[#allocation2 + $0x140] sm:$0xff] }
  0xbe   : > { %v630_v17 = vpop.permute.xlu1 %629  ;;  %554 = vst.msk [vmem:[#allocation3 + $0x1b0] sm:$0xff] %vm403_vm0, %v3592_v12 }
  0xbf   : > { %723 = vst.msk [vmem:[#allocation3 + $0x30] sm:$0xff] %vm719_vm2, %v630_v17  ;;  %v636_v18 = vpop.permute.xlu0 %635  ;;  %v780_v17 = vld [vmem:[#allocation2 + $0x152] sm:$0xff] }
  0xc0   : > { %726 = vst.msk [vmem:[#allocation3 + $0x60] sm:$0xff] %vm719_vm2, %v636_v18  ;;  %840 = vrot.lane.b32.xlu2 %v764_v15, %s3053_s6  ;;  %v778_v15 = vld [vmem:[#allocation2 + $0x13a] sm:$0xff] }
  0xc2   : > { %v646_v27 = vpop.permute.xlu2 %645 }
  0xc3   : > { %731 = vst.msk [vmem:[#allocation3 + $0xb0] sm:$0xff] %vm719_vm2, %v646_v27  ;;  %v776_v27 = vld [vmem:[#allocation2 + $0x122] sm:$0xff] }
  0xc4   : > { %850 = vrot.lane.b32.xlu1 %v3532_v22, %s3053_s6 }
  0xc5   : > { %854 = vrot.lane.b32.xlu0 %v3536_v26, %s3053_s6 }
  0xc6   : > { %v638_v30 = vpop.permute.xlu1 %637 }
  0xc7   : > { %727 = vst.msk [vmem:[#allocation3 + $0x70] sm:$0xff] %vm719_vm2, %v638_v30  ;;  %v642_v31 = vpop.permute.xlu0 %641 }
  0xc8   : > { %729 = vst.msk [vmem:[#allocation3 + $0x90] sm:$0xff] %vm719_vm2, %v642_v31  ;;  %846 = vrot.lane.b32.xlu2 %v767_v28, %s3053_s6  ;;  %v3605_v28 = vld [vmem:[#allocation2 + $0x150] sm:$0xff] }
  0xc9   : > { %555 = vst.msk [vmem:[#allocation3 + $0x1c0] sm:$0xff] %vm403_vm0, %v3605_v28 }
  0xca   : > { %v652_v38 = vpop.permute.xlu2 %651 }
  0xcb   : > { %734 = vst.msk [vmem:[#allocation3 + $0xe0] sm:$0xff] %vm719_vm2, %v652_v38  ;;  %v781_v38 = vld [vmem:[#allocation2 + $0x15a] sm:$0xff] }
  0xcc   : > { %856 = vrot.lane.b32.xlu1 %v3556_v35, %s3053_s6 }
  0xcd   : > { %860 = vrot.lane.b32.xlu0 %v774_v37, %s3053_s6  ;;  %v3610_v37 = vld [vmem:[#allocation2 + $0x168] sm:$0xff] }
  0xce   : > { %v644_v42 = vpop.permute.xlu1 %643  ;;  %557 = vst.msk [vmem:[#allocation3 + $0x1e0] sm:$0xff] %vm403_vm0, %v3610_v37 }
  0xcf   : > { %730 = vst.msk [vmem:[#allocation3 + $0xa0] sm:$0xff] %vm719_vm2, %v644_v42  ;;  %v648_v47 = vpop.permute.xlu0 %647  ;;  %v783_v42 = vld [vmem:[#allocation2 + $0x172] sm:$0xff] }
  0xd0   : > { %732 = vst.msk [vmem:[#allocation3 + $0xc0] sm:$0xff] %vm719_vm2, %v648_v47  ;;  %852 = vrot.lane.b32.xlu2 %v3566_v39, %s3053_s6 }
  0xd2   : > { %v658_v61 = vpop.permute.xlu2 %657 }
  0xd3   : > { %737 = vst.msk [vmem:[#allocation3 + $0x110] sm:$0xff] %vm719_vm2, %v658_v61 }
  0xd4   : > { %862 = vrot.lane.b32.xlu1 %v775_v59, %s3053_s6  ;;  %v779_v59 = vld [vmem:[#allocation2 + $0x142] sm:$0xff] }
  0xd5   : > { %866 = vrot.lane.b32.xlu0 %v777_v60, %s3053_s6  ;;  %v3619_v60 = vld [vmem:[#allocation2 + $0x170] sm:$0xff] }
  0xd6   : > { %v650_v6 = vpop.permute.xlu1 %649  ;;  %558 = vst.msk [vmem:[#allocation3 + $0x1f0] sm:$0xff] %vm403_vm0, %v3619_v60 }
  0xd7   : > { %733 = vst.msk [vmem:[#allocation3 + $0xd0] sm:$0xff] %vm719_vm2, %v650_v6  ;;  %v654_v11 = vpop.permute.xlu0 %653 }
  0xd8   : > { %735 = vst.msk [vmem:[#allocation3 + $0xf0] sm:$0xff] %vm719_vm2, %v654_v11  ;;  %858 = vrot.lane.b32.xlu2 %v773_v3, %s3053_s6  ;;  %v782_v11 = vld [vmem:[#allocation2 + $0x16a] sm:$0xff] }
  0xda   : > { %v664_v18 = vpop.permute.xlu2 %663 }
  0xdb   : > { %740 = vst.msk [vmem:[#allocation3 + $0x140] sm:$0xff] %vm719_vm2, %v664_v18 }
  0xdc   : > { %868 = vrot.lane.b32.xlu1 %v778_v15, %s3053_s6 }
  0xdd   : > { %872 = vrot.lane.b32.xlu0 %v780_v17, %s3053_s6 }
  0xde   : > { %v656_v30 = vpop.permute.xlu1 %655 }
  0xdf   : > { %736 = vst.msk [vmem:[#allocation3 + $0x100] sm:$0xff] %vm719_vm2, %v656_v30  ;;  %v660_v31 = vpop.permute.xlu0 %659 }
  0xe0   : > { %738 = vst.msk [vmem:[#allocation3 + $0x120] sm:$0xff] %vm719_vm2, %v660_v31  ;;  %864 = vrot.lane.b32.xlu2 %v776_v27, %s3053_s6 }
  0xe2   : > { %v670_v47 = vpop.permute.xlu2 %669 }
  0xe3   : > { %743 = vst.msk [vmem:[#allocation3 + $0x170] sm:$0xff] %vm719_vm2, %v670_v47 }
  0xe4   : > { %874 = vrot.lane.b32.xlu1 %v781_v38, %s3053_s6 }
  0xe5   : > { %878 = vrot.lane.b32.xlu0 %v783_v42, %s3053_s6 }
  0xe6   : > { %v662_v61 = vpop.permute.xlu1 %661 }
  0xe7   : > { %739 = vst.msk [vmem:[#allocation3 + $0x130] sm:$0xff] %vm719_vm2, %v662_v61  ;;  %v666_v3 = vpop.permute.xlu0 %665 }
  0xe8   : > { %741 = vst.msk [vmem:[#allocation3 + $0x150] sm:$0xff] %vm719_vm2, %v666_v3  ;;  %870 = vrot.lane.b32.xlu2 %v779_v59, %s3053_s6 }
  0xea   : > { %v676_v6 = vpop.permute.xlu2 %675 }
  0xeb   : > { %746 = vst.msk [vmem:[#allocation3 + $0x1a0] sm:$0xff] %vm719_vm2, %v676_v6 }
  0xec   : > { %1012 = vrot.lane.b32.xlu1 %v3430_v41, %s3054_s7 }
  0xed   : > { %1016 = vrot.lane.b32.xlu0 %v3421_v36, %s3054_s7 }
  0xee   : > { %v668_v15 = vpop.permute.xlu1 %667 }
  0xef   : > { %742 = vst.msk [vmem:[#allocation3 + $0x160] sm:$0xff] %vm719_vm2, %v668_v15  ;;  %v672_v17 = vpop.permute.xlu0 %671 }
  0xf0   : > { %744 = vst.msk [vmem:[#allocation3 + $0x180] sm:$0xff] %vm719_vm2, %v672_v17  ;;  %876 = vrot.lane.b32.xlu2 %v782_v11, %s3053_s6 }
  0xf2   : > { %v682_v18 = vpop.permute.xlu2 %681 }
  0xf3   : > { %749 = vst.msk [vmem:[#allocation3 + $0x1d0] sm:$0xff] %vm719_vm2, %v682_v18  ;;  %v298_v18 = vld [vmem:[%s3154_s26 + $0xf8] sm:$0xff] }
  0xf4   : > { %1018 = vrot.lane.b32.xlu1 %v3434_v44, %s3054_s7 }
  0xf5   : > { %1022 = vrot.lane.b32.xlu0 %v3469_v54, %s3054_s7 }
  0xf6   : > { %v674_v41 = vpop.permute.xlu1 %673 }
  0xf7   : > { %745 = vst.msk [vmem:[#allocation3 + $0x190] sm:$0xff] %vm719_vm2, %v674_v41  ;;  %v678_v27 = vpop.permute.xlu0 %677 }
  0xf8   : > { %747 = vst.msk [vmem:[#allocation3 + $0x1b0] sm:$0xff] %vm719_vm2, %v678_v27  ;;  %1014 = vrot.lane.b32.xlu2 %v3450_v49, %s3054_s7 }
  0xfa   : > { %v817_v30 = vpop.permute.xlu2 %816 }
  0xfb   : > { %913 = vst.msk [vmem:[#allocation3] sm:$0xff] %vm912_vm3, %v817_v30 }
  0xfc   : > { %1024 = vrot.lane.b32.xlu1 %v3460_v52, %s3054_s7 }
  0xfd   : > { %1028 = vrot.lane.b32.xlu0 %v3488_v62, %s3054_s7 }
  0xfe   : > { %v680_v31 = vpop.permute.xlu1 %679 }
  0xff   : > { %748 = vst.msk [vmem:[#allocation3 + $0x1c0] sm:$0xff] %vm719_vm2, %v680_v31  ;;  %v684_v38 = vpop.permute.xlu0 %683 }
 0x100   : > { %750 = vst.msk [vmem:[#allocation3 + $0x1e0] sm:$0xff] %vm719_vm2, %v684_v38  ;;  %1020 = vrot.lane.b32.xlu2 %v3454_v51, %s3054_s7 }
 0x102   : > { %v823_v49 = vpop.permute.xlu2 %822 }
 0x103   : > { %916 = vst.msk [vmem:[#allocation3 + $0x30] sm:$0xff] %vm912_vm3, %v823_v49 }
 0x104   : > { %1030 = vrot.lane.b32.xlu1 %v3479_v56, %s3054_s7  ;;  %v297_v56 = vld [vmem:[%s3154_s26 + $0xf0] sm:$0xff] }
 0x105   : > { %1034 = vrot.lane.b32.xlu0 %v3505_v7, %s3054_s7  ;;  %v333_v61 = vmul.f32 %v3163_v2, %v297_v56 }
 0x106   : > { %v686_v42 = vpop.permute.xlu1 %685 }
 0x107   : > { %751 = vst.msk [vmem:[#allocation3 + $0x1f0] sm:$0xff] %vm719_vm2, %v686_v42  ;;  %v819_v47 = vpop.permute.xlu0 %818  ;;  %v369_v6 = vadd.f32 %v3178_v5, %v333_v61 }
 0x108   : > { %914 = vst.msk [vmem:[#allocation3 + $0x10] sm:$0xff] %vm912_vm3, %v819_v47  ;;  %1026 = vrot.lane.b32.xlu2 %v3473_v55, %s3054_s7 }
 0x109   : > { %v401_v15 = vmax.f32 %v369_v6, 0.0 }
 0x10a   : > { %v829_v59 = vpop.permute.xlu2 %828 }
 0x10b   : > { %919 = vst.msk [vmem:[#allocation3 + $0x60] sm:$0xff] %vm912_vm3, %v829_v59 }
 0x10c   : > { %1036 = vrot.lane.b32.xlu1 %v3498_v1, %s3054_s7  ;;  %490 = vst.msk [vmem:[#allocation2 + $0x181] sm:$0xff] %vm403_vm0, %v401_v15 }
 0x10d   : > { %1040 = vrot.lane.b32.xlu0 %v3521_v16, %s3054_s7 }
 0x10e   : > { %v821_v7 = vpop.permute.xlu1 %820 }
 0x10f   : > { %915 = vst.msk [vmem:[#allocation3 + $0x20] sm:$0xff] %vm912_vm3, %v821_v7  ;;  %v825_v3 = vpop.permute.xlu0 %824  ;;  %v3738_v7 = vld [vmem:[#allocation2 + $0x49] sm:$0xff] }
 0x110   : > { %917 = vst.msk [vmem:[#allocation3 + $0x40] sm:$0xff] %vm912_vm3, %v825_v3  ;;  %1032 = vrot.lane.b32.xlu2 %v3492_v0, %s3054_s7  ;;  %v3751_v3 = vld [vmem:[#allocation2 + $0x69] sm:$0xff] }
 0x112   : > { %v835_v11 = vpop.permute.xlu2 %834 }
 0x113   : > { %922 = vst.msk [vmem:[#allocation3 + $0x90] sm:$0xff] %vm912_vm3, %v835_v11  ;;  %v2761_v49 = vld [vmem:[#allocation2 + $0x180] sm:$0xff] }
 0x114   : > { %1042 = vrot.lane.b32.xlu1 %v3514_v10, %s3054_s7 }
 0x115   : > { %1046 = vrot.lane.b32.xlu0 %v3545_v29, %s3054_s7 }
 0x116   : > { %v827_v1 = vpop.permute.xlu1 %826 }
 0x117   : > { %918 = vst.msk [vmem:[#allocation3 + $0x50] sm:$0xff] %vm912_vm3, %v827_v1  ;;  %v831_v16 = vpop.permute.xlu0 %830 }
 0x118   : > { %920 = vst.msk [vmem:[#allocation3 + $0x70] sm:$0xff] %vm912_vm3, %v831_v16  ;;  %1038 = vrot.lane.b32.xlu2 %v3509_v9, %s3054_s7  ;;  %v334_v9 = vmul.f32 %v3163_v2, %v298_v18 }
 0x11a   : > { %v841_v0 = vpop.permute.xlu2 %840  ;;  %v370_v27 = vadd.f32 %v3178_v5, %v334_v9 }
 0x11b   : > { %925 = vst.msk [vmem:[#allocation3 + $0xc0] sm:$0xff] %vm912_vm3, %v841_v0 }
 0x11c   : > { %1048 = vrot.lane.b32.xlu1 %v3530_v21, %s3054_s7  ;;  %v402_v30 = vmax.f32 %v370_v27, 0.0 }
 0x11d   : > { %1052 = vrot.lane.b32.xlu0 %v3568_v40, %s3054_s7 }
 0x11e   : > { %v833_v10 = vpop.permute.xlu1 %832  ;;  %491 = vst.msk [vmem:[#allocation2 + $0x189] sm:$0xff] %vm403_vm0, %v402_v30 }
 0x11f   : > { %921 = vst.msk [vmem:[#allocation3 + $0x80] sm:$0xff] %vm912_vm3, %v833_v10  ;;  %v837_v17 = vpop.permute.xlu0 %836 }
 0x120   : > { %923 = vst.msk [vmem:[#allocation3 + $0xa0] sm:$0xff] %vm912_vm3, %v837_v17  ;;  %1044 = vrot.lane.b32.xlu2 %v3526_v19, %s3054_s7 }
 0x122   : > { %v847_v41 = vpop.permute.xlu2 %846 }
 0x123   : > { %928 = vst.msk [vmem:[#allocation3 + $0xf0] sm:$0xff] %vm912_vm3, %v847_v41  ;;  %v3800_v41 = vld [vmem:[%s4601_s3 + $0x88] sm:$0xff] }
 0x124   : > { %1054 = vrot.lane.b32.xlu1 %v3554_v34, %s3054_s7  ;;  %2285 = vmatpush.msra.mxu1 %v3800_v41 }
 0x125   : > { %1058 = vrot.lane.b32.xlu0 %v3587_v4, %s3054_s7  ;;  %v2762_v47 = vld [vmem:[#allocation2 + $0x188] sm:$0xff] }
 0x126   : > { %v839_v31 = vpop.permute.xlu1 %838 }
 0x127   : > { %924 = vst.msk [vmem:[#allocation3 + $0xb0] sm:$0xff] %vm912_vm3, %v839_v31  ;;  %v843_v19 = vpop.permute.xlu0 %842 }
 0x128   : > { %926 = vst.msk [vmem:[#allocation3 + $0xd0] sm:$0xff] %vm912_vm3, %v843_v19  ;;  %1050 = vrot.lane.b32.xlu2 %v3550_v32, %s3054_s7  ;;  %v1983_v19 = vld [vmem:[#allocation3 + $0x18] sm:$0xff] }
 0x12a   : > { %v853_v2 = vpop.permute.xlu2 %852 }
 0x12b   : > { %931 = vst.msk [vmem:[#allocation3 + $0x120] sm:$0xff] %vm912_vm3, %v853_v2 }
 0x12c   : > { %1060 = vrot.lane.b32.xlu1 %v3578_v57, %s3054_s7 }
 0x12d   : > { %1064 = vrot.lane.b32.xlu0 %v3605_v28, %s3054_s7 }
 0x12e   : > { %v845_v5 = vpop.permute.xlu1 %844 }
 0x12f   : > { %927 = vst.msk [vmem:[#allocation3 + $0xe0] sm:$0xff] %vm912_vm3, %v845_v5  ;;  %v849_v4 = vpop.permute.xlu0 %848 }
 0x130   : > { %929 = vst.msk [vmem:[#allocation3 + $0x100] sm:$0xff] %vm912_vm3, %v849_v4  ;;  %1056 = vrot.lane.b32.xlu2 %v3573_v50, %s3054_s7  ;;  %v2763_v50 = vld [vmem:[#allocation2 + $0x19] sm:$0xff] }
 0x131   : > { %v1985_v4 = vld [vmem:[#allocation3 + $0x28] sm:$0xff] }
 0x132   : > { %v859_v38 = vpop.permute.xlu2 %858 }
 0x133   : > { %934 = vst.msk [vmem:[#allocation3 + $0x150] sm:$0xff] %vm912_vm3, %v859_v38  ;;  %v3828_v38 = vld [vmem:[#allocation2 + $0xe1] sm:$0xff] }
 0x134   : > { %1066 = vrot.lane.b32.xlu1 %v3596_v14, %s3054_s7 }
 0x135   : > { %1070 = vrot.lane.b32.xlu0 %v3619_v60, %s3054_s7 }
 0x136   : > { %v851_v57 = vpop.permute.xlu1 %850 }
 0x137   : > { %930 = vst.msk [vmem:[#allocation3 + $0x110] sm:$0xff] %vm912_vm3, %v851_v57  ;;  %v855_v28 = vpop.permute.xlu0 %854 }
 0x138   : > { %932 = vst.msk [vmem:[#allocation3 + $0x130] sm:$0xff] %vm912_vm3, %v855_v28  ;;  %1062 = vrot.lane.b32.xlu2 %v3592_v12, %s3054_s7  ;;  %v1987_v28 = vld [vmem:[#allocation3 + $0x38] sm:$0xff] }
 0x13a   : > { %v865_v42 = vpop.permute.xlu2 %864 }
 0x13b   : > { %937 = vst.msk [vmem:[#allocation3 + $0x180] sm:$0xff] %vm912_vm3, %v865_v42 }
 0x13c   : > { %1072 = vrot.lane.b32.xlu1 %v2761_v49, %s3054_s7 }
 0x13d   : > { %1205 = vrot.lane.b32.xlu0 %v2763_v50, %s3055_s8 }
 0x13e   : > { %v857_v14 = vpop.permute.xlu1 %856 }
 0x13f   : > { %933 = vst.msk [vmem:[#allocation3 + $0x140] sm:$0xff] %vm912_vm3, %v857_v14  ;;  %v861_v60 = vpop.permute.xlu0 %860  ;;  %v2794_v14 = vld [vmem:[#allocation2 + $0x189] sm:$0xff] }
 0x140   : > { %935 = vst.msk [vmem:[#allocation3 + $0x160] sm:$0xff] %vm912_vm3, %v861_v60  ;;  %1068 = vrot.lane.b32.xlu2 %v3610_v37, %s3054_s7 }
 0x142   : > { %v871_v12 = vpop.permute.xlu2 %870 }
 0x143   : > { %940 = vst.msk [vmem:[#allocation3 + $0x1b0] sm:$0xff] %vm912_vm3, %v871_v12 }
 0x144   : > { %1207 = vrot.lane.b32.xlu1 %v3298_v8, %s3055_s8  ;;  %v3745_v8 = vld [vmem:[#allocation2 + $0x31] sm:$0xff] }
 0x145   : > { %1211 = vrot.lane.b32.xlu0 %v3327_v33, %s3055_s8 }
 0x146   : > { %v863_v59 = vpop.permute.xlu1 %862 }
 0x147   : > { %936 = vst.msk [vmem:[#allocation3 + $0x170] sm:$0xff] %vm912_vm3, %v863_v59  ;;  %v867_v56 = vpop.permute.xlu0 %866  ;;  %v3859_v59 = vld [vmem:[#allocation2 + $0x7a] sm:$0xff] }
 0x148   : > { %938 = vst.msk [vmem:[#allocation3 + $0x190] sm:$0xff] %vm912_vm3, %v867_v56  ;;  %1074 = vrot.lane.b32.xlu2 %v2762_v47, %s3054_s7 }
 0x149   : > { %1954 = vst.msk [vmem:[#allocation3 + $0x68] sm:$0xff] %vm403_vm0, %v3859_v59 }
 0x14a   : > { %v877_v37 = vpop.permute.xlu2 %876 }
 0x14b   : > { %943 = vst.msk [vmem:[#allocation3 + $0x1e0] sm:$0xff] %vm912_vm3, %v877_v37 }
 0x14c   : > { %1213 = vrot.lane.b32.xlu1 %v3738_v7, %s3055_s8 }
 0x14d   : > { %1217 = vrot.lane.b32.xlu0 %v3349_v48, %s3055_s8  ;;  %v3758_v48 = vld [vmem:[#allocation2 + $0x51] sm:$0xff] }
 0x14e   : > { %v869_v33 = vpop.permute.xlu1 %868 }
 0x14f   : > { %939 = vst.msk [vmem:[#allocation3 + $0x1a0] sm:$0xff] %vm912_vm3, %v869_v33  ;;  %v873_v61 = vpop.permute.xlu0 %872 }
 0x150   : > { %941 = vst.msk [vmem:[#allocation3 + $0x1c0] sm:$0xff] %vm912_vm3, %v873_v61  ;;  %1209 = vrot.lane.b32.xlu2 %v3745_v8, %s3055_s8 }
 0x152   : > { %v1015_v6 = vpop.permute.xlu2 %1014 }
 0x153   : > { %1110 = vst.msk [vmem:[#allocation3 + $0x10] sm:$0xff] %vm1108_vm4, %v1015_v6  ;;  %v2059_v6 = vld [vmem:[%s4601_s3 + $0x78] sm:$0xff] }
 0x154   : > { %1219 = vrot.lane.b32.xlu1 %v3751_v3, %s3055_s8  ;;  %2158 = vmatpush.msra.mxu0 %v2059_v6 }
 0x155   : > { %1223 = vrot.lane.b32.xlu0 %v3370_v63, %s3055_s8  ;;  %v3769_v63 = vld [vmem:[#allocation2 + $0x79] sm:$0xff]  ;;  %2959 = vmatpush.msra.mxu2 %v2059_v6 }
 0x156   : > { %v875_v11 = vpop.permute.xlu1 %874  ;;  %2960 = vmatpush.msra.mxu3 %v2059_v6 }
 0x157   : > { %942 = vst.msk [vmem:[#allocation3 + $0x1d0] sm:$0xff] %vm912_vm3, %v875_v11  ;;  %v879_v15 = vpop.permute.xlu0 %878 }
 0x158   : > { %944 = vst.msk [vmem:[#allocation3 + $0x1f0] sm:$0xff] %vm912_vm3, %v879_v15  ;;  %1215 = vrot.lane.b32.xlu2 %v3758_v48, %s3055_s8  ;;  %v3891_v15 = vld [vmem:[#allocation2 + $0x92] sm:$0xff] }
 0x159   : > { %1956 = vst.msk [vmem:[#allocation3 + $0x88] sm:$0xff] %vm403_vm0, %v3891_v15 }
 0x15a   : > { %v1021_v1 = vpop.permute.xlu2 %1020 }
 0x15b   : > { %1113 = vst.msk [vmem:[#allocation3 + $0x40] sm:$0xff] %vm1108_vm4, %v1021_v1  ;;  %v2057_v1 = vld [vmem:[%s4601_s3 + $0x68] sm:$0xff] }
 0x15c   : > { %1225 = vrot.lane.b32.xlu1 %v3342_v43, %s3055_s8  ;;  %v3780_v43 = vld [vmem:[#allocation2 + $0x99] sm:$0xff] }
 0x15d   : > { %1229 = vrot.lane.b32.xlu0 %v3385_v13, %s3055_s8 }
 0x15e   : > { %v1013_v16 = vpop.permute.xlu1 %1012 }
 0x15f   : > { %1109 = vst.msk [vmem:[#allocation3] sm:$0xff] %vm1108_vm4, %v1013_v16  ;;  %v1017_v0 = vpop.permute.xlu0 %1016  ;;  %v2890_v16 = vld [vmem:[#allocation2 + $0x1a1] sm:$0xff] }
 0x160   : > { %1111 = vst.msk [vmem:[#allocation3 + $0x20] sm:$0xff] %vm1108_vm4, %v1017_v0  ;;  %1221 = vrot.lane.b32.xlu2 %v3769_v63, %s3055_s8 }
 0x162   : > { %v1027_v10 = vpop.permute.xlu2 %1026 }
 0x163   : > { %1116 = vst.msk [vmem:[#allocation3 + $0x70] sm:$0xff] %vm1108_vm4, %v1027_v10  ;;  %v2056_v10 = vld [vmem:[%s4601_s3 + $0x60] sm:$0xff] }
 0x164   : > { %1231 = vrot.lane.b32.xlu1 %v3363_v58, %s3055_s8  ;;  %v3791_v58 = vld [vmem:[#allocation2 + $0xc1] sm:$0xff] }
 0x165   : > { %1398 = vrot.lane.b32.xlu0 %v3442_v46, %s3056_s9 }
 0x166   : > { %v1019_v13 = vpop.permute.xlu1 %1018 }
 0x167   : > { %1112 = vst.msk [vmem:[#allocation3 + $0x30] sm:$0xff] %vm1108_vm4, %v1019_v13  ;;  %v1023_v17 = vpop.permute.xlu0 %1022 }
 0x168   : > { %1114 = vst.msk [vmem:[#allocation3 + $0x50] sm:$0xff] %vm1108_vm4, %v1023_v17  ;;  %1227 = vrot.lane.b32.xlu2 %v3780_v43, %s3055_s8  ;;  %v2054_v17 = vld [vmem:[%s4601_s3 + $0x50] sm:$0xff] }
 0x16a   : > { %v1033_v18 = vpop.permute.xlu2 %1032 }
 0x16b   : > { %1119 = vst.msk [vmem:[#allocation3 + $0xa0] sm:$0xff] %vm1108_vm4, %v1033_v18  ;;  %v2863_v18 = vld [vmem:[#allocation2 + $0x61] sm:$0xff] }
 0x16c   : > { %1594 = vrot.lane.b32.xlu1 %v3421_v36, %s3057_s10  ;;  %v3805_v36 = vld [vmem:[%s4601_s3 + $0x80] sm:$0xff] }
 0x16d   : > { %1400 = vrot.lane.b32.xlu0 %v3467_v53, %s3056_s9  ;;  %v1981_v53 = vld [vmem:[#allocation3 + $0x8] sm:$0xff]  ;;  %2286 = vmatpush.msra.mxu1 %v3805_v36 }
 0x16e   : > { %v1025_v46 = vpop.permute.xlu1 %1024  ;;  %2923 = vmatmul.msk.f32.vlgmr.msra.gmra.mxu1 %vm403_vm0, %v1981_v53  ;;  %v1997_v53 = vld [vmem:[#allocation3 + $0x88] sm:$0xff] }
 0x16f   : > { %1115 = vst.msk [vmem:[#allocation3 + $0x60] sm:$0xff] %vm1108_vm4, %v1025_v46  ;;  %v1029_v9 = vpop.permute.xlu0 %1028  ;;  %v3915_v46 = vld [vmem:[#allocation2 + $0xf9] sm:$0xff] }
 0x170   : > { %1117 = vst.msk [vmem:[#allocation3 + $0x80] sm:$0xff] %vm1108_vm4, %v1029_v9  ;;  %1233 = vrot.lane.b32.xlu2 %v3791_v58, %s3055_s8 }
 0x172   : > { %v1039_v27 = vpop.permute.xlu2 %1038 }
 0x173   : > { %1122 = vst.msk [vmem:[#allocation3 + $0xd0] sm:$0xff] %vm1108_vm4, %v1039_v27  ;;  %v3918_v27 = vld [vmem:[#allocation2 + $0x9a] sm:$0xff] }
 0x174   : > { %1596 = vrot.lane.b32.xlu1 %v3434_v44, %s3057_s10  ;;  %1957 = vst.msk [vmem:[#allocation3 + $0x98] sm:$0xff] %vm403_vm0, %v3918_v27 }
 0x175   : > { %1402 = vrot.lane.b32.xlu0 %v3401_v23, %s3056_s9  ;;  %v2860_v23 = vld [vmem:[#allocation2 + $0x39] sm:$0xff] }
 0x176   : > { %v1031_v30 = vpop.permute.xlu1 %1030  ;;  %2924 = vmatmul.msk.f32.gmra.mxu1 %vm403_vm0, %v1983_v19  ;;  %v2052_v19 = vld [vmem:[%s4601_s3 + $0x40] sm:$0xff] }
 0x177   : > { %1118 = vst.msk [vmem:[#allocation3 + $0x90] sm:$0xff] %vm1108_vm4, %v1031_v30  ;;  %v1035_v31 = vpop.permute.xlu0 %1034  ;;  %v2053_v30 = vld [vmem:[%s4601_s3 + $0x48] sm:$0xff] }
 0x178   : > { %1120 = vst.msk [vmem:[#allocation3 + $0xb0] sm:$0xff] %vm1108_vm4, %v1035_v31  ;;  %1787 = vrot.lane.b32.xlu2 %v3745_v8, %s3058_s15  ;;  %v3873_v8 = vld [vmem:[#allocation2 + $0x82] sm:$0xff] }
 0x179   : > { %1955 = vst.msk [vmem:[#allocation3 + $0x78] sm:$0xff] %vm403_vm0, %v3873_v8 }
 0x17a   : > { %v1045_v2 = vpop.permute.xlu2 %1044 }
 0x17b   : > { %1125 = vst.msk [vmem:[#allocation3 + $0x100] sm:$0xff] %vm1108_vm4, %v1045_v2 }
 0x17c   : > { %1235 = vrot.lane.b32.xlu1 %v3395_v20, %s3055_s8 }
 0x17d   : > { %1428 = vrot.lane.b32.xlu0 %v3532_v22, %s3056_s9 }
 0x17e   : > { %v1037_v44 = vpop.permute.xlu1 %1036  ;;  %2925 = vmatmul.msk.f32.gmra.mxu1 %vm403_vm0, %v1985_v4 }
 0x17f   : > { %1121 = vst.msk [vmem:[#allocation3 + $0xc0] sm:$0xff] %vm1108_vm4, %v1037_v44  ;;  %v1041_v5 = vpop.permute.xlu0 %1040  ;;  %v2050_v44 = vld [vmem:[%s4601_s3 + $0x30] sm:$0xff] }
 0x180   : > { %1123 = vst.msk [vmem:[#allocation3 + $0xe0] sm:$0xff] %vm1108_vm4, %v1041_v5  ;;  %1789 = vrot.lane.b32.xlu2 %v2860_v23, %s3058_s15  ;;  %v1995_v11 = vld [vmem:[#allocation3 + $0x78] sm:$0xff]  ;;  %v2051_v23 = vld [vmem:[%s4601_s3 + $0x38] sm:$0xff] }
 0x181   : > { %v2800_v5 = vld [vmem:[#allocation2 + $0x52] sm:$0xff] }
 0x182   : > { %v1051_v57 = vpop.permute.xlu2 %1050 }
 0x183   : > { %1128 = vst.msk [vmem:[#allocation3 + $0x130] sm:$0xff] %vm1108_vm4, %v1051_v57  ;;  %v3943_v57 = vld [vmem:[#allocation2 + $0xaa] sm:$0xff] }
 0x184   : > { %1791 = vrot.lane.b32.xlu1 %v3738_v7, %s3058_s15  ;;  %v2858_v7 = vld [vmem:[#allocation2 + $0x1a0] sm:$0xff]  ;;  %1958 = vst.msk [vmem:[#allocation3 + $0xa8] sm:$0xff] %vm403_vm0, %v3943_v57 }
 0x185   : > { %1817 = vrot.lane.b32.xlu0 %v3828_v38, %s3058_s15 }
 0x186   : > { %v1043_v20 = vpop.permute.xlu1 %1042  ;;  %2926 = vmatmul.msk.f32.gmra.mxu1 %vm403_vm0, %v1987_v28 }
 0x187   : > { %1124 = vst.msk [vmem:[#allocation3 + $0xf0] sm:$0xff] %vm1108_vm4, %v1043_v20  ;;  %v1047_v22 = vpop.permute.xlu0 %1046 }
 0x188   : > { %1126 = vst.msk [vmem:[#allocation3 + $0x110] sm:$0xff] %vm1108_vm4, %v1047_v22  ;;  %1598 = vrot.lane.b32.xlu2 %v3454_v51, %s3057_s10  ;;  %v1989_v51 = vld [vmem:[#allocation3 + $0x48] sm:$0xff]  ;;  %v2048_v22 = vld [vmem:[%s4601_s3 + $0x20] sm:$0xff] }
 0x18a   : > { %v1057_v49 = vpop.permute.xlu2 %1056 }
 0x18b   : > { %1131 = vst.msk [vmem:[#allocation3 + $0x160] sm:$0xff] %vm1108_vm4, %v1057_v49  ;;  %v2046_v49 = vld [vmem:[%s4601_s3 + $0x10] sm:$0xff] }
 0x18c   : > { %1404 = vrot.lane.b32.xlu1 %v3406_v25, %s3056_s9  ;;  %v2779_v25 = vld [vmem:[#allocation2 + $0xd9] sm:$0xff] }
 0x18d   : > { %1600 = vrot.lane.b32.xlu0 %v3469_v54, %s3057_s10 }
 0x18e   : > { %v1049_v50 = vpop.permute.xlu1 %1048  ;;  %2927 = vmatmul.msk.f32.gmra.mxu1 %vm403_vm0, %v1989_v51  ;;  %v3968_v51 = vld [vmem:[#allocation2 + $0xb2] sm:$0xff] }
 0x18f   : > { %1127 = vst.msk [vmem:[#allocation3 + $0x120] sm:$0xff] %vm1108_vm4, %v1049_v50  ;;  %v1053_v42 = vpop.permute.xlu0 %1052 }
 0x190   : > { %1129 = vst.msk [vmem:[#allocation3 + $0x140] sm:$0xff] %vm1108_vm4, %v1053_v42  ;;  %1624 = vrot.lane.b32.xlu2 %v3545_v29, %s3057_s10  ;;  %v1991_v29 = vld [vmem:[#allocation3 + $0x58] sm:$0xff]  ;;  %v2001_v42 = vld [vmem:[#allocation3 + $0xa8] sm:$0xff] }
 0x191   : > { %1959 = vst.msk [vmem:[#allocation3 + $0xb8] sm:$0xff] %vm403_vm0, %v3968_v51 }
 0x192   : > { %v1063_v60 = vpop.permute.xlu2 %1062 }
 0x193   : > { %1134 = vst.msk [vmem:[#allocation3 + $0x190] sm:$0xff] %vm1108_vm4, %v1063_v60  ;;  %v2781_v60 = vld [vmem:[#allocation2 + $0xf1] sm:$0xff] }
 0x194   : > { %1430 = vrot.lane.b32.xlu1 %v3566_v39, %s3056_s9 }
 0x195   : > { %1267 = vrot.lane.b32.xlu0 %v2794_v14, %s3055_s8  ;;  %v3976_v14 = vld [vmem:[#allocation2 + $0x10a] sm:$0xff] }
 0x196   : > { %v1055_v54 = vpop.permute.xlu1 %1054  ;;  %2928 = vmatmul.msk.f32.gmra.mxu1 %vm403_vm0, %v1991_v29  ;;  %1966 = vst.msk [vmem:[#allocation3 + $0x128] sm:$0xff] %vm403_vm0, %v3976_v14 }
 0x197   : > { %1130 = vst.msk [vmem:[#allocation3 + $0x150] sm:$0xff] %vm1108_vm4, %v1055_v54  ;;  %v1059_v12 = vpop.permute.xlu0 %1058  ;;  %v2044_v54 = vld [vmem:[%s4601_s3] sm:$0xff] }
 0x198   : > { %1132 = vst.msk [vmem:[#allocation3 + $0x170] sm:$0xff] %vm1108_vm4, %v1059_v12  ;;  %1237 = vrot.lane.b32.xlu2 %v2779_v25, %s3055_s8  ;;  %v3982_v25 = vld [vmem:[#allocation2 + $0xfa] sm:$0xff]  ;;  %v2877_v12 = vld [vmem:[#allocation2 + $0x109] sm:$0xff] }
 0x199   : > { %1965 = vst.msk [vmem:[#allocation3 + $0x118] sm:$0xff] %vm403_vm0, %v3982_v25 }
 0x19a   : > { %v1069_v47 = vpop.permute.xlu2 %1068 }
 0x19b   : > { %1137 = vst.msk [vmem:[#allocation3 + $0x1c0] sm:$0xff] %vm1108_vm4, %v1069_v47  ;;  %v2003_v47 = vld [vmem:[#allocation3 + $0xb8] sm:$0xff] }
 0x19c   : > { %1626 = vrot.lane.b32.xlu1 %v3530_v21, %s3057_s10  ;;  %v1993_v21 = vld [vmem:[#allocation3 + $0x68] sm:$0xff] }
 0x19d   : > { %1819 = vrot.lane.b32.xlu0 %v3404_v24, %s3058_s15  ;;  %v2826_v24 = vld [vmem:[#allocation2 + $0x18a] sm:$0xff] }
 0x19e   : > { %v1061_v39 = vpop.permute.xlu1 %1060  ;;  %2929 = vmatmul.msk.f32.gmra.mxu1 %vm403_vm0, %v1993_v21 }
 0x19f   : > { %1133 = vst.msk [vmem:[#allocation3 + $0x180] sm:$0xff] %vm1108_vm4, %v1061_v39  ;;  %v1065_v56 = vpop.permute.xlu0 %1064  ;;  %v3995_v39 = vld [vmem:[#allocation2 + $0xc2] sm:$0xff] }
 0x1a0   : > { %1135 = vst.msk [vmem:[#allocation3 + $0x1a0] sm:$0xff] %vm1108_vm4, %v1065_v56  ;;  %1793 = vrot.lane.b32.xlu2 %v3758_v48, %s3058_s15  ;;  %v2058_v48 = vld [vmem:[%s4601_s3 + $0x70] sm:$0xff] }
 0x1a1   : > { %2159 = vmatpush.msra.mxu0 %v2058_v48  ;;  %2961 = vmatpush.msra.mxu2 %v2058_v48  ;;  %1960 = vst.msk [vmem:[#allocation3 + $0xc8] sm:$0xff] %vm403_vm0, %v3995_v39 }
 0x1a2   : > { %v1075_v37 = vpop.permute.xlu2 %1074  ;;  %2962 = vmatpush.msra.mxu3 %v2058_v48  ;;  %v2905_v48 = vld [vmem:[#allocation2 + $0xda] sm:$0xff] }
 0x1a3   : > { %1140 = vst.msk [vmem:[#allocation3 + $0x1f0] sm:$0xff] %vm1108_vm4, %v1075_v37  ;;  %2160 = vmatpush.msra.mxu0 %v2057_v1  ;;  %2963 = vmatpush.msra.mxu2 %v2057_v1 }
 0x1a4   : > { %1656 = vrot.lane.b32.xlu1 %v2858_v7, %s3057_s10  ;;  %2964 = vmatpush.msra.mxu3 %v2057_v1  ;;  %1962 = vst.msk [vmem:[#allocation3 + $0xe8] sm:$0xff] %vm403_vm0, %v2905_v48  ;;  %v2906_v1 = vld [vmem:[#allocation2 + $0xe2] sm:$0xff] }
 0x1a5   : > { %1406 = vrot.lane.b32.xlu0 %v3438_v45, %s3056_s9  ;;  %2161 = vmatpush.msra.mxu0 %v2056_v10  ;;  %1963 = vst.msk [vmem:[#allocation3 + $0xf8] sm:$0xff] %vm403_vm0, %v2906_v1  ;;  %v2017_v1 = vld [vmem:[#allocation3 + $0x128] sm:$0xff] }
 0x1a6   : > { %v1067_v33 = vpop.permute.xlu1 %1066  ;;  %2930 = vmatmul.msk.f32.gmra.mxu1 %vm403_vm0, %v1995_v11  ;;  %2965 = vmatpush.msra.mxu2 %v2056_v10 }
 0x1a7   : > { %1136 = vst.msk [vmem:[#allocation3 + $0x1b0] sm:$0xff] %vm1108_vm4, %v1067_v33  ;;  %v1071_v61 = vpop.permute.xlu0 %1070  ;;  %2966 = vmatpush.msra.mxu3 %v2056_v10  ;;  %v2801_v33 = vld [vmem:[#allocation2 + $0x62] sm:$0xff] }
 0x1a8   : > { %1138 = vst.msk [vmem:[#allocation3 + $0x1d0] sm:$0xff] %vm1108_vm4, %v1071_v61  ;;  %1460 = vrot.lane.b32.xlu2 %v2826_v24, %s3056_s9  ;;  %v2005_v21 = vld [vmem:[#allocation3 + $0xc8] sm:$0xff]  ;;  %v2904_v24 = vld [vmem:[#allocation2 + $0xca] sm:$0xff] }
 0x1a9   : > { %1961 = vst.msk [vmem:[#allocation3 + $0xd8] sm:$0xff] %vm403_vm0, %v2904_v24  ;;  %v4088_v24 = vld [vmem:[#allocation2 + $0x13a] sm:$0xff] }
 0x1aa   : > { %v1210_v45 = vpop.permute.xlu2 %1209  ;;  %1970 = vst.msk [vmem:[#allocation3 + $0x168] sm:$0xff] %vm403_vm0, %v4088_v24 }
 0x1ab   : > { %1304 = vst.msk [vmem:[#allocation3 + $0x20] sm:$0xff] %vm1301_vm5, %v1210_v45  ;;  %v2009_v11 = vld [vmem:[#allocation3 + $0xe8] sm:$0xff] }
 0x1ac   : > { %1239 = vrot.lane.b32.xlu1 %v3828_v38, %s3055_s8  ;;  %v1999_v38 = vld [vmem:[#allocation3 + $0x98] sm:$0xff] }
 0x1ad   : > { %1432 = vrot.lane.b32.xlu0 %v3536_v26, %s3056_s9  ;;  %v2055_v26 = vld [vmem:[%s4601_s3 + $0x58] sm:$0xff] }
 0x1ae   : > { %v1073_v0 = vpop.permute.xlu1 %1072  ;;  %2162 = vmatpush.msra.mxu0 %v2055_v26  ;;  %2967 = vmatpush.msra.mxu2 %v2055_v26 }
 0x1af   : > { %1139 = vst.msk [vmem:[#allocation3 + $0x1e0] sm:$0xff] %vm1108_vm4, %v1073_v0  ;;  %v1206_v13 = vpop.permute.xlu0 %1205  ;;  %2931 = vmatmul.msk.f32.gmra.mxu1 %vm403_vm0, %v1997_v53  ;;  %2968 = vmatpush.msra.mxu3 %v2055_v26  ;;  %v2866_v26 = vld [vmem:[#allocation2 + $0x81] sm:$0xff] }
 0x1b0   : > { %1302 = vst.msk [vmem:[#allocation3] sm:$0xff] %vm1301_vm5, %v1206_v13  ;;  %1849 = vrot.lane.b32.xlu2 %v2890_v16, %s3058_s15  ;;  %2163 = vmatpush.msra.mxu0 %v2054_v17  ;;  %v2878_v16 = vld [vmem:[#allocation2 + $0x111] sm:$0xff] }
 0x1b1   : > { %2969 = vmatpush.msra.mxu2 %v2054_v17  ;;  %2970 = vmatpush.msra.mxu3 %v2054_v17  ;;  %v2879_v17 = vld [vmem:[#allocation2 + $0x121] sm:$0xff] }
 0x1b2   : > { %v1216_v9 = vpop.permute.xlu2 %1215  ;;  %2164 = vmatpush.msra.mxu0 %v2053_v30 }
 0x1b3   : > { %1307 = vst.msk [vmem:[#allocation3 + $0x50] sm:$0xff] %vm1301_vm5, %v1216_v9  ;;  %2971 = vmatpush.msra.mxu2 %v2053_v30  ;;  %2972 = vmatpush.msra.mxu3 %v2053_v30  ;;  %v2834_v9 = vld [vmem:[#allocation2 + $0x80] sm:$0xff] }
 0x1b4   : > { %1795 = vrot.lane.b32.xlu1 %v2863_v18, %s3058_s15  ;;  %2165 = vmatpush.msra.mxu0 %v2052_v19 }
 0x1b5   : > { %1821 = vrot.lane.b32.xlu0 %v3915_v46, %s3058_s15  ;;  %2973 = vmatpush.msra.mxu2 %v2052_v19 }
 0x1b6   : > { %v1208_v31 = vpop.permute.xlu1 %1207  ;;  %2166 = vmatpush.msra.mxu0 %v2051_v23  ;;  %2974 = vmatpush.msra.mxu3 %v2052_v19 }
 0x1b7   : > { %1303 = vst.msk [vmem:[#allocation3 + $0x10] sm:$0xff] %vm1301_vm5, %v1208_v31  ;;  %v1212_v2 = vpop.permute.xlu0 %1211  ;;  %2932 = vmatmul.msk.f32.gmra.mxu1 %vm403_vm0, %v1999_v38  ;;  %2975 = vmatpush.msra.mxu2 %v2051_v23 }
 0x1b8   : > { %1305 = vst.msk [vmem:[#allocation3 + $0x30] sm:$0xff] %vm1301_vm5, %v1212_v2  ;;  %1602 = vrot.lane.b32.xlu2 %v3460_v52, %s3057_s10  ;;  %2167 = vmatpush.msra.mxu0 %v2050_v44  ;;  %v2049_v52 = vld [vmem:[%s4601_s3 + $0x28] sm:$0xff]  ;;  %v2835_v2 = vld [vmem:[#allocation2 + $0x90] sm:$0xff] }
 0x1b9   : > { %2977 = vmatpush.msra.mxu2 %v2050_v44  ;;  %2976 = vmatpush.msra.mxu3 %v2051_v23 }
 0x1ba   : > { %v1222_v4 = vpop.permute.xlu2 %1221  ;;  %2168 = vmatpush.msra.mxu0 %v2049_v52 }
 0x1bb   : > { %1310 = vst.msk [vmem:[#allocation3 + $0x80] sm:$0xff] %vm1301_vm5, %v1222_v4  ;;  %2979 = vmatpush.msra.mxu2 %v2049_v52  ;;  %2978 = vmatpush.msra.mxu3 %v2050_v44  ;;  %v2847_v44 = vld [vmem:[#allocation2 + $0x120] sm:$0xff] }
 0x1bc   : > { %1408 = vrot.lane.b32.xlu1 %v2800_v5, %s3056_s9  ;;  %2169 = vmatpush.msra.mxu0 %v2048_v22 }
 0x1bd   : > { %1604 = vrot.lane.b32.xlu0 %v3473_v55, %s3057_s10  ;;  %v2047_v55 = vld [vmem:[%s4601_s3 + $0x18] sm:$0xff]  ;;  %2981 = vmatpush.msra.mxu2 %v2048_v22 }
 0x1be   : > { %v1214_v20 = vpop.permute.xlu1 %1213  ;;  %2170 = vmatpush.msra.mxu0 %v2047_v55  ;;  %2980 = vmatpush.msra.mxu3 %v2049_v52  ;;  %v2848_v52 = vld [vmem:[#allocation2 + $0x128] sm:$0xff] }
 0x1bf   : > { %1306 = vst.msk [vmem:[#allocation3 + $0x40] sm:$0xff] %vm1301_vm5, %v1214_v20  ;;  %v1218_v28 = vpop.permute.xlu0 %1217  ;;  %2933 = vmatmul.msk.f32.gmra.mxu1 %vm403_vm0, %v2001_v42  ;;  %2983 = vmatpush.msra.mxu2 %v2047_v55 }
 0x1c0   : > { %1308 = vst.msk [vmem:[#allocation3 + $0x60] sm:$0xff] %vm1301_vm5, %v1218_v28  ;;  %1628 = vrot.lane.b32.xlu2 %v3550_v32, %s3057_s10  ;;  %2171 = vmatpush.msra.mxu0 %v2046_v49  ;;  %v2045_v32 = vld [vmem:[%s4601_s3 + $0x8] sm:$0xff] }
 0x1c1   : > { %2982 = vmatpush.msra.mxu3 %v2048_v22  ;;  %2985 = vmatpush.msra.mxu2 %v2046_v49  ;;  %v2907_v22 = vld [vmem:[#allocation2 + $0xf2] sm:$0xff]  ;;  %v2817_v28 = vld [vmem:[#allocation2 + $0x122] sm:$0xff] }
 0x1c2   : > { %v1228_v50 = vpop.permute.xlu2 %1227  ;;  %2172 = vmatpush.msra.mxu0 %v2045_v32  ;;  %1964 = vst.msk [vmem:[#allocation3 + $0x108] sm:$0xff] %vm403_vm0, %v2907_v22  ;;  %v4143_v22 = vld [vmem:[#allocation2 + $0x15a] sm:$0xff] }
 0x1c3   : > { %1313 = vst.msk [vmem:[#allocation3 + $0xb0] sm:$0xff] %vm1301_vm5, %v1228_v50  ;;  %2984 = vmatpush.msra.mxu3 %v2047_v55  ;;  %2987 = vmatpush.msra.mxu2 %v2045_v32 }
 0x1c4   : > { %1434 = vrot.lane.b32.xlu1 %v3556_v35, %s3056_s9  ;;  %2173 = vmatpush.msra.mxu0 %v2044_v54  ;;  %1968 = vst.msk [vmem:[#allocation3 + $0x148] sm:$0xff] %vm403_vm0, %v2817_v28 }
 0x1c5   : > { %1630 = vrot.lane.b32.xlu0 %v3568_v40, %s3057_s10  ;;  %2986 = vmatpush.msra.mxu3 %v2046_v49  ;;  %1973 = vst.msk [vmem:[#allocation3 + $0x198] sm:$0xff] %vm403_vm0, %v4143_v22 }
 0x1c6   : > { %v1220_v35 = vpop.permute.xlu1 %1219  ;;  %2989 = vmatpush.msra.mxu2 %v2044_v54 }
 0x1c7   : > { %1309 = vst.msk [vmem:[#allocation3 + $0x70] sm:$0xff] %vm1301_vm5, %v1220_v35  ;;  %v1224_v40 = vpop.permute.xlu0 %1223  ;;  %2934 = vmatmul.msk.f32.gmra.mxu1 %vm403_vm0, %v2003_v47  ;;  %2988 = vmatpush.msra.mxu3 %v2045_v32  ;;  %v2880_v32 = vld [vmem:[#allocation2 + $0x129] sm:$0xff]  ;;  %v2867_v35 = vld [vmem:[#allocation2 + $0x91] sm:$0xff] }
 0x1c8   : > { %1311 = vst.msk [vmem:[#allocation3 + $0x90] sm:$0xff] %vm1301_vm5, %v1224_v40  ;;  %1241 = vrot.lane.b32.xlu2 %v2781_v60, %s3055_s8 }
 0x1c9   : > { %2990 = vmatpush.msra.mxu3 %v2044_v54 }
 0x1ca   : > { %v1234_v29 = vpop.permute.xlu2 %1233 }
 0x1cb   : > { %1316 = vst.msk [vmem:[#allocation3 + $0xe0] sm:$0xff] %vm1301_vm5, %v1234_v29  ;;  %2991 = vmatpush.msrb.mxu3 %v3800_v41  ;;  %v2802_v41 = vld [vmem:[#allocation2 + $0x6a] sm:$0xff]  ;;  %v2836_v29 = vld [vmem:[#allocation2 + $0x98] sm:$0xff] }
 0x1cc   : > { %1823 = vrot.lane.b32.xlu1 %v2877_v12, %s3058_s15 }
 0x1cd   : > { %1243 = vrot.lane.b32.xlu0 %v3915_v46, %s3055_s8  ;;  %2992 = vmatpush.msrb.mxu3 %v3805_v36  ;;  %v2011_v46 = vld [vmem:[#allocation3 + $0xf8] sm:$0xff] }
 0x1ce   : > { %v1226_v56 = vpop.permute.xlu1 %1225 }
 0x1cf   : > { %1312 = vst.msk [vmem:[#allocation3 + $0xa0] sm:$0xff] %vm1301_vm5, %v1226_v56  ;;  %v1230_v7 = vpop.permute.xlu0 %1229  ;;  %2935 = vmatmul.msk.f32.gmra.mxu1 %vm403_vm0, %v2005_v21  ;;  %v2849_v21 = vld [vmem:[#allocation2 + $0x138] sm:$0xff] }
 0x1d0   : > { %1314 = vst.msk [vmem:[#allocation3 + $0xc0] sm:$0xff] %vm1301_vm5, %v1230_v7  ;;  %1797 = vrot.lane.b32.xlu2 %v3751_v3, %s3058_s15 }
 0x1d2   : > { %v1788_v37 = vpop.permute.xlu2 %1787 }
 0x1d4   : > { %1606 = vrot.lane.b32.xlu1 %v3488_v62, %s3057_s10  ;;  %v4018_v62 = vld [vmem:[#allocation2 + $0x112] sm:$0xff] }
 0x1d5   : > { %1799 = vrot.lane.b32.xlu0 %v3769_v63, %s3058_s15  ;;  %1967 = vst.msk [vmem:[#allocation3 + $0x138] sm:$0xff] %vm403_vm0, %v4018_v62  ;;  %v2007_v63 = vld [vmem:[#allocation3 + $0xd8] sm:$0xff] }
 0x1d6   : > { %v1232_v3 = vpop.permute.xlu1 %1231 }
 0x1d7   : > { %1315 = vst.msk [vmem:[#allocation3 + $0xd0] sm:$0xff] %vm1301_vm5, %v1232_v3  ;;  %v1399_v61 = vpop.permute.xlu0 %1398  ;;  %2936 = vmatmul.msk.f32.gmra.mxu1 %vm403_vm0, %v2007_v63 }
 0x1d8   : > { %1495 = vst.msk [vmem:[#allocation3] sm:$0xff] %vm1494_vm6, %v1399_v61  ;;  %1410 = vrot.lane.b32.xlu2 %v2801_v33, %s3056_s9 }
 0x1da   : > { %v1790_v6 = vpop.permute.xlu2 %1789 }
 0x1dc   : > { %1632 = vrot.lane.b32.xlu1 %v3554_v34, %s3057_s10 }
 0x1dd   : > { %1412 = vrot.lane.b32.xlu0 %v2802_v41, %s3056_s9 }
 0x1de   : > { %v1595_v36 = vpop.permute.xlu1 %1594 }
 0x1df   : > { %1691 = vst.msk [vmem:[#allocation3] sm:$0xff] %vm1690_vm7, %v1595_v36  ;;  %v1401_v45 = vpop.permute.xlu0 %1400  ;;  %2937 = vmatmul.msk.f32.gmra.mxu1 %vm403_vm0, %v2009_v11 }
 0x1e0   : > { %1884 = vst.msk [vmem:[#allocation3] sm:$0xff] %vm1883_vm8, %v1788_v37  ;;  %1436 = vrot.lane.b32.xlu2 %v3982_v25, %s3056_s9  ;;  %v2013_v25 = vld [vmem:[#allocation3 + $0x108] sm:$0xff] }
 0x1e1   : > { %1496 = vst.msk [vmem:[#allocation3 + $0x10] sm:$0xff] %vm1494_vm6, %v1401_v45  ;;  %v2869_v45 = vld [vmem:[#allocation2 + $0xa9] sm:$0xff] }
 0x1e2   : > { %v1599_v34 = vpop.permute.xlu2 %1598 }
 0x1e4   : > { %1245 = vrot.lane.b32.xlu1 %v2877_v12, %s3055_s8 }
 0x1e5   : > { %1438 = vrot.lane.b32.xlu0 %v3976_v14, %s3056_s9 }
 0x1e6   : > { %v1597_v0 = vpop.permute.xlu1 %1596 }
 0x1e7   : > { %1692 = vst.msk [vmem:[#allocation3 + $0x10] sm:$0xff] %vm1690_vm7, %v1597_v0  ;;  %v1403_v10 = vpop.permute.xlu0 %1402  ;;  %v1980_v13 = vld [vmem:[#allocation3] sm:$0xff]  ;;  %2938 = vmatmul.msk.f32.gmra.mxu1 %vm403_vm0, %v2011_v46  ;;  %v2019_v46 = vld [vmem:[#allocation3 + $0x138] sm:$0xff] }
 0x1e8   : > { %1885 = vst.msk [vmem:[#allocation3 + $0x10] sm:$0xff] %vm1883_vm8, %v1790_v6  ;;  %2174 = vmatmul.f32.vlgmr.msra.gmra.mxu0 %v1980_v13  ;;  %1825 = vrot.lane.b32.xlu2 %v2878_v16, %s3058_s15 }
 0x1e9   : > { %1497 = vst.msk [vmem:[#allocation3 + $0x20] sm:$0xff] %vm1494_vm6, %v1403_v10 }
 0x1ea   : > { %1693 = vst.msk [vmem:[#allocation3 + $0x20] sm:$0xff] %vm1690_vm7, %v1599_v34  ;;  %v1625_v18 = vpop.permute.xlu2 %1624  ;;  %v2882_v34 = vld [vmem:[#allocation2 + $0x141] sm:$0xff] }
 0x1eb   : > { %v4049_v19 = vpop.f32.mrf.mxu1 }
 0x1ec   : > { %1801 = vrot.lane.b32.xlu1 %v2866_v26, %s3058_s15  ;;  %v4117_v26 = vld [vmem:[#allocation2 + $0x142] sm:$0xff] }
 0x1ed   : > { %1827 = vrot.lane.b32.xlu0 %v2879_v17, %s3058_s15  ;;  %1971 = vst.msk [vmem:[#allocation3 + $0x178] sm:$0xff] %vm403_vm0, %v4117_v26 }
 0x1ee   : > { %v1236_v53 = vpop.permute.xlu1 %1235 }
 0x1ef   : > { %1317 = vst.msk [vmem:[#allocation3 + $0xf0] sm:$0xff] %vm1301_vm5, %v1236_v53  ;;  %v1429_v30 = vpop.permute.xlu0 %1428  ;;  %v1982_v31 = vld [vmem:[#allocation3 + $0x10] sm:$0xff]  ;;  %2939 = vmatmul.msk.f32.gmra.mxu1 %vm403_vm0, %v2013_v25  ;;  %v4158_v25 = vld [vmem:[#allocation2 + $0x16a] sm:$0xff] }
 0x1f0   : > { %1510 = vst.msk [vmem:[#allocation3 + $0xf0] sm:$0xff] %vm1494_vm6, %v1429_v30  ;;  %2177 = vmatmul.f32.gmra.mxu0 %v1982_v31  ;;  %1608 = vrot.lane.b32.xlu2 %v2834_v9, %s3057_s10  ;;  %v2850_v9 = vld [vmem:[#allocation2 + $0x140] sm:$0xff] }
 0x1f1   : > { %1706 = vst.msk [vmem:[#allocation3 + $0xf0] sm:$0xff] %vm1690_vm7, %v1625_v18 }
 0x1f2   : > { %v1238_v23 = vpop.permute.xlu2 %1237  ;;  %1974 = vst.msk [vmem:[#allocation3 + $0x1a8] sm:$0xff] %vm403_vm0, %v4158_v25 }
 0x1f3   : > { %1318 = vst.msk [vmem:[#allocation3 + $0x100] sm:$0xff] %vm1301_vm5, %v1238_v23  ;;  %v4058_v38 = vpop.f32.mrf.mxu1  ;;  %v4128_v23 = vld [vmem:[#allocation2 + $0x152] sm:$0xff] }
 0x1f4   : > { %1414 = vrot.lane.b32.xlu1 %v3859_v59, %s3056_s9  ;;  %v2818_v59 = vld [vmem:[#allocation2 + $0x12a] sm:$0xff]  ;;  %1972 = vst.msk [vmem:[#allocation3 + $0x188] sm:$0xff] %vm403_vm0, %v4128_v23 }
 0x1f5   : > { %1610 = vrot.lane.b32.xlu0 %v2835_v2, %s3057_s10  ;;  %1969 = vst.msk [vmem:[#allocation3 + $0x158] sm:$0xff] %vm403_vm0, %v2818_v59 }
 0x1f6   : > { %v1792_v5 = vpop.permute.xlu1 %1791 }
 0x1f7   : > { %1886 = vst.msk [vmem:[#allocation3 + $0x20] sm:$0xff] %vm1883_vm8, %v1792_v5  ;;  %v1818_v4 = vpop.permute.xlu0 %1817 }
 0x1f8   : > { %1899 = vst.msk [vmem:[#allocation3 + $0xf0] sm:$0xff] %vm1883_vm8, %v1818_v4  ;;  %1634 = vrot.lane.b32.xlu2 %v2847_v44, %s3057_s10  ;;  %v2851_v44 = vld [vmem:[#allocation2 + $0x150] sm:$0xff]  ;;  %v2021_v4 = vld [vmem:[#allocation3 + $0x148] sm:$0xff] }
 0x1fa   : > { %v1794_v20 = vpop.permute.xlu2 %1793 }
 0x1fb   : > { %v4070_v14 = vpop.f32.mrf.mxu1 }
 0x1fc   : > { %1440 = vrot.lane.b32.xlu1 %v4018_v62, %s3056_s9 }
 0x1fd   : > { %1636 = vrot.lane.b32.xlu0 %v2848_v52, %s3057_s10 }
 0x1fe   : > { %v1405_v55 = vpop.permute.xlu1 %1404  ;;  %v1984_v49 = vld [vmem:[#allocation3 + $0x20] sm:$0xff] }
 0x1ff   : > { %1498 = vst.msk [vmem:[#allocation3 + $0x30] sm:$0xff] %vm1494_vm6, %v1405_v55  ;;  %v1601_v50 = vpop.permute.xlu0 %1600  ;;  %2180 = vmatmul.f32.gmra.mxu0 %v1984_v49  ;;  %v2010_v42 = vld [vmem:[#allocation3 + $0xf0] sm:$0xff] }
 0x200   : > { %1694 = vst.msk [vmem:[#allocation3 + $0x30] sm:$0xff] %vm1690_vm7, %v1601_v50  ;;  %1247 = vrot.lane.b32.xlu2 %v2878_v16, %s3055_s8  ;;  %2219 = vmatmul.f32.vlgmr.msra.gmra.mxu2 %v2010_v42  ;;  %v2837_v16 = vld [vmem:[#allocation2 + $0xa8] sm:$0xff]  ;;  %v2870_v42 = vld [vmem:[#allocation2 + $0xb1] sm:$0xff] }
 0x201   : > { %1887 = vst.msk [vmem:[#allocation3 + $0x30] sm:$0xff] %vm1883_vm8, %v1794_v20  ;;  %v2023_v50 = vld [vmem:[#allocation3 + $0x158] sm:$0xff] }
 0x202   : > { %v1461_v60 = vpop.permute.xlu2 %1460 }
 0x203   : > { %v4079_v47 = vpop.f32.mrf.mxu1 }
 0x204   : > { %1829 = vrot.lane.b32.xlu1 %v2880_v32, %s3058_s15 }
 0x205   : > { %1249 = vrot.lane.b32.xlu0 %v2879_v17, %s3055_s8  ;;  %v2838_v17 = vld [vmem:[#allocation2 + $0xb0] sm:$0xff] }
 0x206   : > { %v1431_v54 = vpop.permute.xlu1 %1430 }
 0x207   : > { %1511 = vst.msk [vmem:[#allocation3 + $0x100] sm:$0xff] %vm1494_vm6, %v1431_v54  ;;  %v1268_v40 = vpop.permute.xlu0 %1267 }
 0x208   : > { %1333 = vst.msk [vmem:[#allocation3 + $0x1f0] sm:$0xff] %vm1301_vm5, %v1268_v40  ;;  %v1986_v12 = vld [vmem:[#allocation3 + $0x30] sm:$0xff]  ;;  %1803 = vrot.lane.b32.xlu2 %v2867_v35, %s3058_s15  ;;  %v2025_v40 = vld [vmem:[#allocation3 + $0x168] sm:$0xff] }
 0x209   : > { %1526 = vst.msk [vmem:[#allocation3 + $0x1f0] sm:$0xff] %vm1494_vm6, %v1461_v60  ;;  %2183 = vmatmul.f32.gmra.mxu0 %v1986_v12  ;;  %v2839_v35 = vld [vmem:[#allocation2 + $0xc0] sm:$0xff] }
 0x20a   : > { %v1850_v56 = vpop.permute.xlu2 %1849 }
 0x20b   : > { %v4092_v3 = vpop.f32.mrf.mxu1 }
 0x20c   : > { %1612 = vrot.lane.b32.xlu1 %v2836_v29, %s3057_s10 }
 0x20d   : > { %1805 = vrot.lane.b32.xlu0 %v3780_v43, %s3058_s15 }
 0x20e   : > { %v1627_v7 = vpop.permute.xlu1 %1626 }
 0x20f   : > { %1707 = vst.msk [vmem:[#allocation3 + $0x100] sm:$0xff] %vm1690_vm7, %v1627_v7  ;;  %v1820_v37 = vpop.permute.xlu0 %1819 }
 0x210   : > { %1900 = vst.msk [vmem:[#allocation3 + $0x100] sm:$0xff] %vm1883_vm8, %v1820_v37  ;;  %1416 = vrot.lane.b32.xlu2 %v3873_v8, %s3056_s9  ;;  %v2015_v8 = vld [vmem:[#allocation3 + $0x118] sm:$0xff]  ;;  %v4173_v37 = vld [vmem:[#allocation2 + $0x172] sm:$0xff] }
 0x211   : > { %2940 = vmatmul.msk.f32.gmra.mxu1 %vm403_vm0, %v2015_v8  ;;  %1975 = vst.msk [vmem:[#allocation3 + $0x1b8] sm:$0xff] %vm403_vm0, %v4173_v37  ;;  %v2029_v8 = vld [vmem:[#allocation3 + $0x188] sm:$0xff] }
 0x212   : > { %v1603_v33 = vpop.permute.xlu2 %1602 }
 0x213   : > { %v4105_v6 = vpop.f32.mrf.mxu1 }
 0x214   : > { %1638 = vrot.lane.b32.xlu1 %v2849_v21, %s3057_s10  ;;  %v2852_v21 = vld [vmem:[#allocation2 + $0x158] sm:$0xff] }
 0x215   : > { %1418 = vrot.lane.b32.xlu0 %v3891_v15, %s3056_s9  ;;  %v2881_v15 = vld [vmem:[#allocation2 + $0x139] sm:$0xff] }
 0x216   : > { %v1657_v43 = vpop.permute.xlu1 %1656 }
 0x217   : > { %1722 = vst.msk [vmem:[#allocation3 + $0x1f0] sm:$0xff] %vm1690_vm7, %v1657_v43  ;;  %v1407_v61 = vpop.permute.xlu0 %1406  ;;  %v2012_v62 = vld [vmem:[#allocation3 + $0x100] sm:$0xff] }
 0x218   : > { %1915 = vst.msk [vmem:[#allocation3 + $0x1f0] sm:$0xff] %vm1883_vm8, %v1850_v56  ;;  %1442 = vrot.lane.b32.xlu2 %v2817_v28, %s3056_s9  ;;  %2222 = vmatmul.f32.gmra.mxu2 %v2012_v62  ;;  %v2883_v28 = vld [vmem:[#allocation2 + $0x151] sm:$0xff] }
 0x219   : > { %1499 = vst.msk [vmem:[#allocation3 + $0x40] sm:$0xff] %vm1494_vm6, %v1407_v61 }
 0x21a   : > { %1695 = vst.msk [vmem:[#allocation3 + $0x40] sm:$0xff] %vm1690_vm7, %v1603_v33  ;;  %v1629_v41 = vpop.permute.xlu2 %1628 }
 0x21b   : > { %v4115_v13 = vpop.f32.mrf.mxu1 }
 0x21c   : > { %1251 = vrot.lane.b32.xlu1 %v2880_v32, %s3055_s8 }
 0x21d   : > { %1444 = vrot.lane.b32.xlu0 %v2818_v59, %s3056_s9 }
 0x21e   : > { %v1240_v63 = vpop.permute.xlu1 %1239 }
 0x21f   : > { %1319 = vst.msk [vmem:[#allocation3 + $0x110] sm:$0xff] %vm1301_vm5, %v1240_v63  ;;  %v1433_v48 = vpop.permute.xlu0 %1432  ;;  %v2042_v36 = vld [vmem:[#allocation3 + $0x1f0] sm:$0xff] }
 0x220   : > { %1512 = vst.msk [vmem:[#allocation3 + $0x110] sm:$0xff] %vm1494_vm6, %v1433_v48  ;;  %2267 = vmatmul.f32.vlgmr.msra.gmra.mxu3 %v2042_v36  ;;  %1831 = vrot.lane.b32.xlu2 %v2881_v15, %s3058_s15  ;;  %v2920_v36 = vld [vmem:[#allocation2 + $0x18a] sm:$0xff] }
 0x221   : > { %1708 = vst.msk [vmem:[#allocation3 + $0x110] sm:$0xff] %vm1690_vm7, %v1629_v41 }
 0x222   : > { %v1242_v11 = vpop.permute.xlu2 %1241  ;;  %1977 = vst.msk [vmem:[#allocation3 + $0x1d8] sm:$0xff] %vm403_vm0, %v2920_v36 }
 0x223   : > { %1320 = vst.msk [vmem:[#allocation3 + $0x120] sm:$0xff] %vm1301_vm5, %v1242_v11  ;;  %v4206_v11 = vld [vmem:[#allocation2 + $0x169] sm:$0xff] }
 0x224   : > { %1807 = vrot.lane.b32.xlu1 %v2869_v45, %s3058_s15  ;;  %v2872_v45 = vld [vmem:[#allocation2 + $0xc9] sm:$0xff] }
 0x225   : > { %1833 = vrot.lane.b32.xlu0 %v2882_v34, %s3058_s15 }
 0x226   : > { %v1796_v0 = vpop.permute.xlu1 %1795 }
 0x227   : > { %1888 = vst.msk [vmem:[#allocation3 + $0x40] sm:$0xff] %vm1883_vm8, %v1796_v0  ;;  %v1822_v10 = vpop.permute.xlu0 %1821 }
 0x228   : > { %1901 = vst.msk [vmem:[#allocation3 + $0x110] sm:$0xff] %vm1883_vm8, %v1822_v10  ;;  %2941 = vmatmul.msk.f32.vlgmr.msrb.gmra.mxu3 %vm403_vm0, %v2017_v1  ;;  %1614 = vrot.lane.b32.xlu2 %v2837_v16, %s3057_s10  ;;  %v2031_v16 = vld [vmem:[#allocation3 + $0x198] sm:$0xff] }
 0x229   : > { %v2840_v10 = vld [vmem:[#allocation2 + $0xc8] sm:$0xff] }
 0x22a   : > { %v1798_v18 = vpop.permute.xlu2 %1797 }
 0x22c   : > { %1420 = vrot.lane.b32.xlu1 %v3918_v27, %s3056_s9  ;;  %v4134_v27 = vpop.f32.mrf.mxu1 }
 0x22d   : > { %1616 = vrot.lane.b32.xlu0 %v2838_v17, %s3057_s10  ;;  %v2921_v17 = vld [vmem:[#allocation2 + $0x19a] sm:$0xff] }
 0x22e   : > { %v1409_v53 = vpop.permute.xlu1 %1408  ;;  %v1988_v30 = vld [vmem:[#allocation3 + $0x40] sm:$0xff]  ;;  %1978 = vst.msk [vmem:[#allocation3 + $0x1e8] sm:$0xff] %vm403_vm0, %v2921_v17 }
 0x22f   : > { %1500 = vst.msk [vmem:[#allocation3 + $0x50] sm:$0xff] %vm1494_vm6, %v1409_v53  ;;  %v1605_v31 = vpop.permute.xlu0 %1604  ;;  %2186 = vmatmul.f32.gmra.mxu0 %v1988_v30  ;;  %v2014_v2 = vld [vmem:[#allocation3 + $0x110] sm:$0xff]  ;;  %v2033_v30 = vld [vmem:[#allocation3 + $0x1a8] sm:$0xff] }
 0x230   : > { %1696 = vst.msk [vmem:[#allocation3 + $0x50] sm:$0xff] %vm1690_vm7, %v1605_v31  ;;  %2942 = vmatmul.msk.f32.gmra.mxu3 %vm403_vm0, %v2019_v46  ;;  %1640 = vrot.lane.b32.xlu2 %v2850_v9, %s3057_s10 }
 0x231   : > { %1889 = vst.msk [vmem:[#allocation3 + $0x50] sm:$0xff] %vm1883_vm8, %v1798_v18  ;;  %2225 = vmatmul.f32.gmra.mxu2 %v2014_v2  ;;  %v2841_v18 = vld [vmem:[#allocation2 + $0xd8] sm:$0xff] }
 0x232   : > { %v1411_v5 = vpop.permute.xlu2 %1410 }
 0x233   : > { %1501 = vst.msk [vmem:[#allocation3 + $0x60] sm:$0xff] %vm1494_vm6, %v1411_v5 }
 0x234   : > { %1446 = vrot.lane.b32.xlu1 %v4088_v24, %s3056_s9  ;;  %v4150_v49 = vpop.f32.mrf.mxu1  ;;  %v2027_v24 = vld [vmem:[#allocation3 + $0x178] sm:$0xff] }
 0x235   : > { %1642 = vrot.lane.b32.xlu0 %v2851_v44, %s3057_s10  ;;  %v2853_v44 = vld [vmem:[#allocation2 + $0x168] sm:$0xff] }
 0x236   : > { %v1435_v52 = vpop.permute.xlu1 %1434 }
 0x237   : > { %1513 = vst.msk [vmem:[#allocation3 + $0x120] sm:$0xff] %vm1494_vm6, %v1435_v52  ;;  %v1631_v20 = vpop.permute.xlu0 %1630 }
 0x238   : > { %1709 = vst.msk [vmem:[#allocation3 + $0x120] sm:$0xff] %vm1690_vm7, %v1631_v20  ;;  %2943 = vmatmul.msk.f32.gmra.mxu3 %vm403_vm0, %v2021_v4  ;;  %v1990_v59 = vld [vmem:[#allocation3 + $0x50] sm:$0xff]  ;;  %1253 = vrot.lane.b32.xlu2 %v2881_v15, %s3055_s8 }
 0x239   : > { %2189 = vmatmul.f32.gmra.mxu0 %v1990_v59  ;;  %v4196_v15 = vld [vmem:[#allocation2 + $0x159] sm:$0xff]  ;;  %v2922_v4 = vld [vmem:[#allocation2 + $0x1a2] sm:$0xff] }
 0x23a   : > { %v1437_v55 = vpop.permute.xlu2 %1436  ;;  %1979 = vst.msk [vmem:[#allocation3 + $0x1f8] sm:$0xff] %vm403_vm0, %v2922_v4  ;;  %v2035_v59 = vld [vmem:[#allocation3 + $0x1b8] sm:$0xff] }
 0x23c   : > { %1835 = vrot.lane.b32.xlu1 %v2883_v28, %s3058_s15  ;;  %v4166_v12 = vpop.f32.mrf.mxu1 }
 0x23d   : > { %1255 = vrot.lane.b32.xlu0 %v2882_v34, %s3055_s8 }
 0x23e   : > { %v1824_v32 = vpop.permute.xlu1 %1823 }
 0x23f   : > { %1902 = vst.msk [vmem:[#allocation3 + $0x120] sm:$0xff] %vm1883_vm8, %v1824_v32  ;;  %v1244_v60 = vpop.permute.xlu0 %1243 }
 0x240   : > { %1321 = vst.msk [vmem:[#allocation3 + $0x130] sm:$0xff] %vm1301_vm5, %v1244_v60  ;;  %2944 = vmatmul.msk.f32.gmra.mxu3 %vm403_vm0, %v2023_v50  ;;  %1809 = vrot.lane.b32.xlu2 %v2870_v42, %s3058_s15 }
 0x241   : > { %1514 = vst.msk [vmem:[#allocation3 + $0x130] sm:$0xff] %vm1494_vm6, %v1437_v55 }
 0x242   : > { %v1826_v54 = vpop.permute.xlu2 %1825 }
 0x244   : > { %1618 = vrot.lane.b32.xlu1 %v2839_v35, %s3057_s10  ;;  %v4181_v62 = vpop.f32.mrf.mxu1 }
 0x245   : > { %1811 = vrot.lane.b32.xlu0 %v3791_v58, %s3058_s15 }
 0x246   : > { %v1607_v29 = vpop.permute.xlu1 %1606  ;;  %v2016_v56 = vld [vmem:[#allocation3 + $0x120] sm:$0xff] }
 0x247   : > { %1697 = vst.msk [vmem:[#allocation3 + $0x60] sm:$0xff] %vm1690_vm7, %v1607_v29  ;;  %v1800_v7 = vpop.permute.xlu0 %1799  ;;  %2228 = vmatmul.f32.gmra.mxu2 %v2016_v56  ;;  %v2886_v29 = vld [vmem:[#allocation2 + $0x171] sm:$0xff] }
 0x248   : > { %1890 = vst.msk [vmem:[#allocation3 + $0x60] sm:$0xff] %vm1883_vm8, %v1800_v7  ;;  %2945 = vmatmul.msk.f32.gmra.mxu3 %vm403_vm0, %v2025_v40  ;;  %1422 = vrot.lane.b32.xlu2 %v3943_v57, %s3056_s9  ;;  %v4185_v57 = vld [vmem:[#allocation2 + $0x182] sm:$0xff] }
 0x249   : > { %1976 = vst.msk [vmem:[#allocation3 + $0x1c8] sm:$0xff] %vm403_vm0, %v4185_v57 }
 0x24a   : > { %v1609_v58 = vpop.permute.xlu2 %1608 }
 0x24c   : > { %1644 = vrot.lane.b32.xlu1 %v2852_v21, %s3057_s10  ;;  %v4204_v34 = vpop.f32.mrf.mxu1 }
 0x24d   : > { %1424 = vrot.lane.b32.xlu0 %v3968_v51, %s3056_s9 }
 0x24e   : > { %v1633_v33 = vpop.permute.xlu1 %1632 }
 0x24f   : > { %1710 = vst.msk [vmem:[#allocation3 + $0x130] sm:$0xff] %vm1690_vm7, %v1633_v33  ;;  %v1413_v43 = vpop.permute.xlu0 %1412  ;;  %v1992_v61 = vld [vmem:[#allocation3 + $0x60] sm:$0xff]  ;;  %v2873_v33 = vld [vmem:[#allocation2 + $0xd9] sm:$0xff] }
 0x250   : > { %1903 = vst.msk [vmem:[#allocation3 + $0x130] sm:$0xff] %vm1883_vm8, %v1826_v54  ;;  %2192 = vmatmul.f32.gmra.mxu0 %v1992_v61  ;;  %2946 = vmatmul.msk.f32.gmra.mxu3 %vm403_vm0, %v2027_v24 }
 0x251   : > { %1502 = vst.msk [vmem:[#allocation3 + $0x70] sm:$0xff] %vm1494_vm6, %v1413_v43  ;;  %1448 = vrot.lane.b32.xlu2 %v4117_v26, %s3056_s9 }
 0x252   : > { %1698 = vst.msk [vmem:[#allocation3 + $0x70] sm:$0xff] %vm1690_vm7, %v1609_v58  ;;  %v1635_v51 = vpop.permute.xlu2 %1634  ;;  %v2037_v58 = vld [vmem:[#allocation3 + $0x1c8] sm:$0xff] }
 0x254   : > { %1257 = vrot.lane.b32.xlu1 %v2883_v28, %s3055_s8  ;;  %v4218_v9 = vpop.f32.mrf.mxu1 }
 0x255   : > { %1450 = vrot.lane.b32.xlu0 %v4128_v23, %s3056_s9 }
 0x256   : > { %v1246_v41 = vpop.permute.xlu1 %1245 }
 0x257   : > { %1322 = vst.msk [vmem:[#allocation3 + $0x140] sm:$0xff] %vm1301_vm5, %v1246_v41  ;;  %v1439_v63 = vpop.permute.xlu0 %1438  ;;  %v2018_v48 = vld [vmem:[#allocation3 + $0x130] sm:$0xff] }
 0x258   : > { %1515 = vst.msk [vmem:[#allocation3 + $0x140] sm:$0xff] %vm1494_vm6, %v1439_v63  ;;  %2947 = vmatmul.msk.f32.gmra.mxu3 %vm403_vm0, %v2029_v8  ;;  %2231 = vmatmul.f32.gmra.mxu2 %v2018_v48 }
 0x259   : > { %1711 = vst.msk [vmem:[#allocation3 + $0x140] sm:$0xff] %vm1690_vm7, %v1635_v51  ;;  %1837 = vrot.lane.b32.xlu2 %v4196_v15, %s3058_s15  ;;  %v2855_v51 = vld [vmem:[#allocation2 + $0x180] sm:$0xff] }
 0x25a   : > { %v1248_v1 = vpop.permute.xlu2 %1247 }
 0x25b   : > { %1323 = vst.msk [vmem:[#allocation3 + $0x150] sm:$0xff] %vm1301_vm5, %v1248_v1 }
 0x25c   : > { %1813 = vrot.lane.b32.xlu1 %v2872_v45, %s3058_s15  ;;  %v4243_v28 = vpop.f32.mrf.mxu1 }
 0x25d   : > { %1839 = vrot.lane.b32.xlu0 %v4206_v11, %s3058_s15 }
 0x25e   : > { %v1802_v0 = vpop.permute.xlu1 %1801 }
 0x25f   : > { %1891 = vst.msk [vmem:[#allocation3 + $0x70] sm:$0xff] %vm1883_vm8, %v1802_v0  ;;  %v1828_v26 = vpop.permute.xlu0 %1827 }
 0x260   : > { %1904 = vst.msk [vmem:[#allocation3 + $0x140] sm:$0xff] %vm1883_vm8, %v1828_v26  ;;  %2948 = vmatmul.msk.f32.gmra.mxu3 %vm403_vm0, %v2031_v16  ;;  %v2888_v26 = vld [vmem:[#allocation2 + $0x189] sm:$0xff] }
 0x261   : > { %1620 = vrot.lane.b32.xlu2 %v2840_v10, %s3057_s10 }
 0x262   : > { %v1804_v46 = vpop.permute.xlu2 %1803 }
 0x264   : > { %1426 = vrot.lane.b32.xlu1 %v3995_v39, %s3056_s9  ;;  %v4261_v61 = vpop.f32.mrf.mxu1 }
 0x265   : > { %1622 = vrot.lane.b32.xlu0 %v2841_v18, %s3057_s10  ;;  %v2175_v53 = vpop.f32.mrf.mxu0 }
 0x266   : > { %v2289_v31 = vadd.f32 %v4049_v19, %v2175_v53  ;;  %v1415_v2 = vpop.permute.xlu1 %1414  ;;  %v1994_v23 = vld [vmem:[#allocation3 + $0x70] sm:$0xff]  ;;  %v2854_v19 = vld [vmem:[#allocation2 + $0x170] sm:$0xff]  ;;  %v2041_v53 = vld [vmem:[#allocation3 + $0x1e8] sm:$0xff] }
 0x267   : > { %1503 = vst.msk [vmem:[#allocation3 + $0x80] sm:$0xff] %vm1494_vm6, %v1415_v2  ;;  %v1611_v5 = vpop.permute.xlu0 %1610  ;;  %2195 = vmatmul.f32.gmra.mxu0 %v1994_v23  ;;  %v2020_v39 = vld [vmem:[#allocation3 + $0x140] sm:$0xff] }
 0x268   : > { %2384 = vst.msk [vmem:[%s4228_s22] sm:$0xff] %vm403_vm0, %v2289_v31  ;;  %2949 = vmatmul.msk.f32.gmra.mxu3 %vm403_vm0, %v2033_v30  ;;  %2234 = vmatmul.f32.gmra.mxu2 %v2020_v39  ;;  %v2487_v55 = vmul.f32 %v2289_v31, %v2289_v31  ;;  %v2416_v60 = vsel %vm403_vm0, %v2289_v31, 0.0 }
 0x269   : > { %1699 = vst.msk [vmem:[#allocation3 + $0x80] sm:$0xff] %vm1690_vm7, %v1611_v5  ;;  %1646 = vrot.lane.b32.xlu2 %v2853_v44, %s3057_s10 }
 0x26a   : > { %1892 = vst.msk [vmem:[#allocation3 + $0x80] sm:$0xff] %vm1883_vm8, %v1804_v46  ;;  %v1417_v52 = vpop.permute.xlu2 %1416 }
 0x26b   : > { %1504 = vst.msk [vmem:[#allocation3 + $0x90] sm:$0xff] %vm1494_vm6, %v1417_v52 }
 0x26c   : > { %1452 = vrot.lane.b32.xlu1 %v4143_v22, %s3056_s9  ;;  %v2333_v0 = vpop.f32.mrf.mxu1 }
 0x26d   : > { %v2178_v20 = vpop.f32.mrf.mxu0  ;;  %1648 = vrot.lane.b32.xlu0 %v2854_v19, %s3057_s10 }
 0x26e   : > { %v2292_v50 = vadd.f32 %v4058_v38, %v2178_v20  ;;  %v1441_v42 = vpop.permute.xlu1 %1440  ;;  %v2519_v38 = vsel %vm403_vm0, %v2487_v55, 0.0  ;;  %v2043_v20 = vld [vmem:[#allocation3 + $0x1f8] sm:$0xff] }
 0x26f   : > { %1516 = vst.msk [vmem:[#allocation3 + $0x150] sm:$0xff] %vm1494_vm6, %v1441_v42  ;;  %v1637_v32 = vpop.permute.xlu0 %1636  ;;  %v2856_v55 = vld [vmem:[#allocation2 + $0x188] sm:$0xff] }
 0x270   : > { %2385 = vst.msk [vmem:[%s4228_s22 + $0x8] sm:$0xff] %vm403_vm0, %v2292_v50  ;;  %v2417_v22 = vsel %vm403_vm0, %v2292_v50, 0.0  ;;  %v2488_v35 = vmul.f32 %v2292_v50, %v2292_v50  ;;  %2950 = vmatmul.msk.f32.gmra.mxu3 %vm403_vm0, %v2035_v59 }
 0x271   : > { %v2418_v54 = vadd.f32 %v2417_v22, %v2416_v60  ;;  %1712 = vst.msk [vmem:[#allocation3 + $0x150] sm:$0xff] %vm1690_vm7, %v1637_v32  ;;  %v1996_v40 = vld [vmem:[#allocation3 + $0x80] sm:$0xff]  ;;  %1259 = vrot.lane.b32.xlu2 %v4196_v15, %s3055_s8  ;;  %v2039_v15 = vld [vmem:[#allocation3 + $0x1d8] sm:$0xff]  ;;  %v2889_v32 = vld [vmem:[#allocation2 + $0x199] sm:$0xff] }
 0x272   : > { %v2520_v56 = vsel %vm403_vm0, %v2488_v35, 0.0  ;;  %2198 = vmatmul.f32.gmra.mxu0 %v1996_v40  ;;  %v1443_v7 = vpop.permute.xlu2 %1442 }
 0x273   : > { %v2521_v21 = vadd.f32 %v2520_v56, %v2519_v38 }
 0x274   : > { %1841 = vrot.lane.b32.xlu1 %v2886_v29, %s3058_s15 }
 0x275   : > { %1454 = vrot.lane.b32.xlu0 %v4158_v25, %s3056_s9 }
 0x276   : > { %v1830_v24 = vpop.permute.xlu1 %1829 }
 0x277   : > { %1905 = vst.msk [vmem:[#allocation3 + $0x150] sm:$0xff] %vm1883_vm8, %v1830_v24  ;;  %v1250_v43 = vpop.permute.xlu0 %1249 }
 0x278   : > { %1324 = vst.msk [vmem:[#allocation3 + $0x160] sm:$0xff] %vm1301_vm5, %v1250_v43  ;;  %2951 = vmatmul.msk.f32.gmra.mxu3 %vm403_vm0, %v2037_v58 }
 0x279   : > { %1517 = vst.msk [vmem:[#allocation3 + $0x160] sm:$0xff] %vm1494_vm6, %v1443_v7  ;;  %1815 = vrot.lane.b32.xlu2 %v2873_v33, %s3058_s15 }
 0x27a   : > { %v1832_v8 = vpop.permute.xlu2 %1831 }
 0x27c   : > { %1650 = vrot.lane.b32.xlu1 %v2855_v51, %s3057_s10  ;;  %v2181_v25 = vpop.f32.mrf.mxu0 }
 0x27d   : > { %v2295_v41 = vadd.f32 %v4070_v14, %v2181_v25  ;;  %1263 = vrot.lane.b32.xlu0 %v2886_v29, %s3055_s8 }
 0x27e   : > { %v1613_v63 = vpop.permute.xlu1 %1612  ;;  %v2022_v48 = vld [vmem:[#allocation3 + $0x150] sm:$0xff] }
 0x27f   : > { %2386 = vst.msk [vmem:[%s4228_s22 + $0x10] sm:$0xff] %vm403_vm0, %v2295_v41  ;;  %v2419_v36 = vsel %vm403_vm0, %v2295_v41, 0.0  ;;  %v2489_v45 = vmul.f32 %v2295_v41, %v2295_v41  ;;  %v1806_v1 = vpop.permute.xlu0 %1805  ;;  %2237 = vmatmul.f32.gmra.mxu2 %v2022_v48 }
 0x280   : > { %v2420_v16 = vadd.f32 %v2419_v36, %v2418_v54  ;;  %1700 = vst.msk [vmem:[#allocation3 + $0x90] sm:$0xff] %vm1690_vm7, %v1613_v63  ;;  %2952 = vmatmul.msk.f32.gmra.mxu3 %vm403_vm0, %v2039_v15  ;;  %v2336_v54 = vpop.f32.mrf.mxu1 }
 0x281   : > { %v2522_v14 = vsel %vm403_vm0, %v2489_v45, 0.0  ;;  %1893 = vst.msk [vmem:[#allocation3 + $0x90] sm:$0xff] %vm1883_vm8, %v1806_v1  ;;  %1261 = vrot.lane.b32.xlu2 %v4206_v11, %s3055_s8 }
 0x282   : > { %v2523_v10 = vadd.f32 %v2522_v14, %v2521_v21  ;;  %v1615_v17 = vpop.permute.xlu2 %1614 }
 0x283   : > { %v2220_v18 = vpop.f32.mrf.mxu2 }
 0x284   : > { %1456 = vrot.lane.b32.xlu1 %v4173_v37, %s3056_s9  ;;  %v4281_v46 = vadd.f32 %v2333_v0, %v2220_v18  ;;  %v2793_v37 = vld [vmem:[#allocation2 + $0x181] sm:$0xff] }
 0x285   : > { %1845 = vrot.lane.b32.xlu0 %v2888_v26, %s3058_s15 }
 0x286   : > { %v1639_v30 = vpop.permute.xlu1 %1638  ;;  %v2184_v31 = vpop.f32.mrf.mxu0  ;;  %2399 = vst.msk [vmem:[%s4228_s22 + $0x78] sm:$0xff] %vm403_vm0, %v4281_v46 }
 0x287   : > { %1713 = vst.msk [vmem:[#allocation3 + $0x160] sm:$0xff] %vm1690_vm7, %v1639_v30  ;;  %v2298_v11 = vadd.f32 %v4079_v47, %v2184_v31  ;;  %v1419_v2 = vpop.permute.xlu0 %1418  ;;  %v2857_v47 = vld [vmem:[#allocation2 + $0x198] sm:$0xff] }
 0x288   : > { %1906 = vst.msk [vmem:[#allocation3 + $0x160] sm:$0xff] %vm1883_vm8, %v1832_v8  ;;  %v1998_v23 = vld [vmem:[#allocation3 + $0x90] sm:$0xff]  ;;  %2953 = vmatmul.msk.f32.gmra.mxu3 %vm403_vm0, %v2041_v53 }
 0x289   : > { %2387 = vst.msk [vmem:[%s4228_s22 + $0x18] sm:$0xff] %vm403_vm0, %v2298_v11  ;;  %v2421_v44 = vsel %vm403_vm0, %v2298_v11, 0.0  ;;  %v2490_v5 = vmul.f32 %v2298_v11, %v2298_v11  ;;  %2201 = vmatmul.f32.gmra.mxu0 %v1998_v23  ;;  %1843 = vrot.lane.b32.xlu2 %v2793_v37, %s3058_s15 }
 0x28a   : > { %v2422_v39 = vadd.f32 %v2421_v44, %v2420_v16  ;;  %1505 = vst.msk [vmem:[#allocation3 + $0xa0] sm:$0xff] %vm1494_vm6, %v1419_v2  ;;  %v1641_v4 = vpop.permute.xlu2 %1640 }
 0x28b   : > { %v2524_v19 = vsel %vm403_vm0, %v2490_v5, 0.0  ;;  %1701 = vst.msk [vmem:[#allocation3 + $0xa0] sm:$0xff] %vm1690_vm7, %v1615_v17 }
 0x28c   : > { %v2525_v52 = vadd.f32 %v2524_v19, %v2523_v10  ;;  %1265 = vrot.lane.b32.xlu1 %v2793_v37, %s3055_s8 }
 0x28d   : > { %1654 = vrot.lane.b32.xlu0 %v2857_v47, %s3057_s10 }
 0x28e   : > { %v1252_v59 = vpop.permute.xlu1 %1251  ;;  %v2339_v0 = vpop.f32.mrf.mxu1 }
 0x28f   : > { %1325 = vst.msk [vmem:[#allocation3 + $0x170] sm:$0xff] %vm1301_vm5, %v1252_v59  ;;  %v1445_v50 = vpop.permute.xlu0 %1444  ;;  %v2024_v42 = vld [vmem:[#allocation3 + $0x160] sm:$0xff] }
 0x290   : > { %1518 = vst.msk [vmem:[#allocation3 + $0x170] sm:$0xff] %vm1494_vm6, %v1445_v50  ;;  %2954 = vmatmul.msk.f32.gmra.mxu3 %vm403_vm0, %v2043_v20  ;;  %2240 = vmatmul.f32.gmra.mxu2 %v2024_v42 }
 0x291   : > { %1714 = vst.msk [vmem:[#allocation3 + $0x170] sm:$0xff] %vm1690_vm7, %v1641_v4  ;;  %1652 = vrot.lane.b32.xlu2 %v2856_v55, %s3057_s10  ;;  %s266_s10 = scalar_lea.vmem %s4603_s5, %s2730_s23 }
 0x292   : > { %v1254_v60 = vpop.permute.xlu2 %1253 }
 0x293   : > { %1326 = vst.msk [vmem:[#allocation3 + $0x180] sm:$0xff] %vm1301_vm5, %v1254_v60 }
 0x294   : > { %1847 = vrot.lane.b32.xlu1 %v2889_v32, %s3058_s15 }
 0x296   : > { %v1808_v22 = vpop.permute.xlu1 %1807 }
 0x297   : > { %1894 = vst.msk [vmem:[#allocation3 + $0xa0] sm:$0xff] %vm1883_vm8, %v1808_v22  ;;  %v1834_v35 = vpop.permute.xlu0 %1833 }
 0x298   : > { %1907 = vst.msk [vmem:[#allocation3 + $0x170] sm:$0xff] %vm1883_vm8, %v1834_v35 }
 0x299   : > { %1458 = vrot.lane.b32.xlu2 %v4185_v57, %s3056_s9 }
 0x29a   : > { %v1810_v40 = vpop.permute.xlu2 %1809 }
 0x29b   : > { %v2223_v29 = vpop.f32.mrf.mxu2 }
 0x29c   : > { %v4311_v38 = vadd.f32 %v2336_v54, %v2223_v29 }
 0x29e   : > { %v1421_v56 = vpop.permute.xlu1 %1420  ;;  %v2000_v7 = vld [vmem:[#allocation3 + $0xa0] sm:$0xff]  ;;  %2400 = vst.msk [vmem:[%s4228_s22 + $0x80] sm:$0xff] %vm403_vm0, %v4311_v38 }
 0x29f   : > { %1506 = vst.msk [vmem:[#allocation3 + $0xb0] sm:$0xff] %vm1494_vm6, %v1421_v56  ;;  %v1617_v21 = vpop.permute.xlu0 %1616  ;;  %2204 = vmatmul.f32.gmra.mxu0 %v2000_v7  ;;  %v2026_v58 = vld [vmem:[#allocation3 + $0x170] sm:$0xff] }
 0x2a0   : > { %1702 = vst.msk [vmem:[#allocation3 + $0xb0] sm:$0xff] %vm1690_vm7, %v1617_v21  ;;  %2243 = vmatmul.f32.gmra.mxu2 %v2026_v58 }
 0x2a1   : > { %1895 = vst.msk [vmem:[#allocation3 + $0xb0] sm:$0xff] %vm1883_vm8, %v1810_v40 }
 0x2a2   : > { %v1423_v57 = vpop.permute.xlu2 %1422 }
 0x2a3   : > { %v4319_v24 = vpop.f32.mrf.mxu3  ;;  %1507 = vst.msk [vmem:[#allocation3 + $0xc0] sm:$0xff] %vm1494_vm6, %v1423_v57 }
 0x2a6   : > { %v1447_v33 = vpop.permute.xlu1 %1446 }
 0x2a7   : > { %1519 = vst.msk [vmem:[#allocation3 + $0x180] sm:$0xff] %vm1494_vm6, %v1447_v33  ;;  %v1643_v43 = vpop.permute.xlu0 %1642 }
 0x2a8   : > { %1715 = vst.msk [vmem:[#allocation3 + $0x180] sm:$0xff] %vm1690_vm7, %v1643_v43  ;;  %v2002_v51 = vld [vmem:[#allocation3 + $0xb0] sm:$0xff] }
 0x2a9   : > { %2207 = vmatmul.f32.gmra.mxu0 %v2002_v51 }
 0x2ab   : > { %v2342_v8 = vpop.f32.mrf.mxu3  ;;  %v1449_v25 = vpop.permute.xlu2 %1448 }
 0x2ac   : > { %v2187_v41 = vpop.f32.mrf.mxu0 }
 0x2ad   : > { %v2301_v15 = vadd.f32 %v4092_v3, %v2187_v41 }
 0x2ae   : > { %v1836_v63 = vpop.permute.xlu1 %1835 }
 0x2af   : > { %2388 = vst.msk [vmem:[%s4228_s22 + $0x20] sm:$0xff] %vm403_vm0, %v2301_v15  ;;  %v2423_v48 = vsel %vm403_vm0, %v2301_v15, 0.0  ;;  %v2491_v36 = vmul.f32 %v2301_v15, %v2301_v15  ;;  %v1256_v45 = vpop.permute.xlu0 %1255 }
 0x2b0   : > { %v2424_v1 = vadd.f32 %v2423_v48, %v2422_v39  ;;  %1908 = vst.msk [vmem:[#allocation3 + $0x180] sm:$0xff] %vm1883_vm8, %v1836_v63 }
 0x2b1   : > { %v2526_v16 = vsel %vm403_vm0, %v2491_v36, 0.0  ;;  %1327 = vst.msk [vmem:[#allocation3 + $0x190] sm:$0xff] %vm1301_vm5, %v1256_v45 }
 0x2b2   : > { %v2527_v14 = vadd.f32 %v2526_v16, %v2525_v52  ;;  %1520 = vst.msk [vmem:[#allocation3 + $0x190] sm:$0xff] %vm1494_vm6, %v1449_v25 }
 0x2b3   : > { %v4332_v3 = vpop.f32.mrf.mxu3  ;;  %v1838_v10 = vpop.permute.xlu2 %1837 }
 0x2b4   : > { %v2226_v26 = vpop.f32.mrf.mxu2 }
 0x2b5   : > { %v4334_v53 = vadd.f32 %v2339_v0, %v2226_v26 }
 0x2b6   : > { %v1619_v17 = vpop.permute.xlu1 %1618  ;;  %v2190_v18 = vpop.f32.mrf.mxu0 }
 0x2b7   : > { %1703 = vst.msk [vmem:[#allocation3 + $0xc0] sm:$0xff] %vm1690_vm7, %v1619_v17  ;;  %v2304_v30 = vadd.f32 %v4105_v6, %v2190_v18  ;;  %v1812_v31 = vpop.permute.xlu0 %1811  ;;  %v2028_v11 = vld [vmem:[#allocation3 + $0x180] sm:$0xff] }
 0x2b8   : > { %1896 = vst.msk [vmem:[#allocation3 + $0xc0] sm:$0xff] %vm1883_vm8, %v1812_v31  ;;  %2246 = vmatmul.f32.gmra.mxu2 %v2028_v11 }
 0x2b9   : > { %2389 = vst.msk [vmem:[%s4228_s22 + $0x28] sm:$0xff] %vm403_vm0, %v2304_v30  ;;  %v2425_v2 = vsel %vm403_vm0, %v2304_v30, 0.0  ;;  %v2492_v23 = vmul.f32 %v2304_v30, %v2304_v30 }
 0x2ba   : > { %v2426_v37 = vadd.f32 %v2425_v2, %v2424_v1  ;;  %2401 = vst.msk [vmem:[%s4228_s22 + $0x88] sm:$0xff] %vm403_vm0, %v4334_v53 }
 0x2bb   : > { %v2528_v44 = vsel %vm403_vm0, %v2492_v23, 0.0  ;;  %v4346_v5 = vpop.f32.mrf.mxu3  ;;  %v1621_v39 = vpop.permute.xlu2 %1620 }
 0x2bc   : > { %v2529_v6 = vadd.f32 %v2528_v44, %v2527_v14 }
 0x2be   : > { %v1645_v4 = vpop.permute.xlu1 %1644 }
 0x2bf   : > { %1716 = vst.msk [vmem:[#allocation3 + $0x190] sm:$0xff] %vm1690_vm7, %v1645_v4  ;;  %v1425_v47 = vpop.permute.xlu0 %1424  ;;  %v2004_v19 = vld [vmem:[#allocation3 + $0xc0] sm:$0xff] }
 0x2c0   : > { %1909 = vst.msk [vmem:[#allocation3 + $0x190] sm:$0xff] %vm1883_vm8, %v1838_v10  ;;  %2210 = vmatmul.f32.gmra.mxu0 %v2004_v19 }
 0x2c1   : > { %1508 = vst.msk [vmem:[#allocation3 + $0xd0] sm:$0xff] %vm1494_vm6, %v1425_v47 }
 0x2c2   : > { %1704 = vst.msk [vmem:[#allocation3 + $0xd0] sm:$0xff] %vm1690_vm7, %v1621_v39 }
 0x2c3   : > { %v4352_v52 = vpop.f32.mrf.mxu3  ;;  %v1647_v20 = vpop.permute.xlu2 %1646 }
 0x2c6   : > { %v1258_v59 = vpop.permute.xlu1 %1257 }
 0x2c7   : > { %1328 = vst.msk [vmem:[#allocation3 + $0x1a0] sm:$0xff] %vm1301_vm5, %v1258_v59  ;;  %v1451_v55 = vpop.permute.xlu0 %1450  ;;  %v2030_v50 = vld [vmem:[#allocation3 + $0x190] sm:$0xff] }
 0x2c8   : > { %1521 = vst.msk [vmem:[#allocation3 + $0x1a0] sm:$0xff] %vm1494_vm6, %v1451_v55  ;;  %2249 = vmatmul.f32.gmra.mxu2 %v2030_v50 }
 0x2c9   : > { %1717 = vst.msk [vmem:[#allocation3 + $0x1a0] sm:$0xff] %vm1690_vm7, %v1647_v20 }
 0x2ca   : > { %v2229_v42 = vpop.f32.mrf.mxu2 }
 0x2cb   : > { %v4357_v32 = vadd.f32 %v2342_v8, %v2229_v42  ;;  %v4359_v60 = vpop.f32.mrf.mxu3  ;;  %v1260_v22 = vpop.permute.xlu2 %1259 }
 0x2cc   : > { %1329 = vst.msk [vmem:[#allocation3 + $0x1b0] sm:$0xff] %vm1301_vm5, %v1260_v22 }
 0x2cd   : > { %2402 = vst.msk [vmem:[%s4228_s22 + $0x90] sm:$0xff] %vm403_vm0, %v4357_v32  ;;  %v2193_v35 = vpop.f32.mrf.mxu0 }
 0x2ce   : > { %v2307_v54 = vadd.f32 %v4115_v13, %v2193_v35  ;;  %v1814_v40 = vpop.permute.xlu1 %1813 }
 0x2cf   : > { %1897 = vst.msk [vmem:[#allocation3 + $0xd0] sm:$0xff] %vm1883_vm8, %v1814_v40  ;;  %v1840_v29 = vpop.permute.xlu0 %1839 }
 0x2d0   : > { %2390 = vst.msk [vmem:[%s4228_s22 + $0x30] sm:$0xff] %vm403_vm0, %v2307_v54  ;;  %v2427_v56 = vsel %vm403_vm0, %v2307_v54, 0.0  ;;  %v2493_v7 = vmul.f32 %v2307_v54, %v2307_v54 }
 0x2d1   : > { %v2428_v21 = vadd.f32 %v2427_v56, %v2426_v37  ;;  %1910 = vst.msk [vmem:[#allocation3 + $0x1a0] sm:$0xff] %vm1883_vm8, %v1840_v29 }
 0x2d2   : > { %v2530_v58 = vsel %vm403_vm0, %v2493_v7, 0.0 }
 0x2d3   : > { %v2531_v57 = vadd.f32 %v2530_v58, %v2529_v6  ;;  %v4372_v33 = vpop.f32.mrf.mxu3  ;;  %v1816_v43 = vpop.permute.xlu2 %1815 }
 0x2d6   : > { %v1427_v13 = vpop.permute.xlu1 %1426  ;;  %v2006_v51 = vld [vmem:[#allocation3 + $0xd0] sm:$0xff] }
 0x2d7   : > { %1509 = vst.msk [vmem:[#allocation3 + $0xe0] sm:$0xff] %vm1494_vm6, %v1427_v13  ;;  %v1623_v8 = vpop.permute.xlu0 %1622  ;;  %2213 = vmatmul.f32.gmra.mxu0 %v2006_v51 }
 0x2d8   : > { %1705 = vst.msk [vmem:[#allocation3 + $0xe0] sm:$0xff] %vm1690_vm7, %v1623_v8  ;;  %v2032_v25 = vld [vmem:[#allocation3 + $0x1a0] sm:$0xff] }
 0x2d9   : > { %1898 = vst.msk [vmem:[#allocation3 + $0xe0] sm:$0xff] %vm1883_vm8, %v1816_v43  ;;  %2252 = vmatmul.f32.gmra.mxu2 %v2032_v25 }
 0x2db   : > { %v4377_v41 = vpop.f32.mrf.mxu3  ;;  %v2232_v15 = vpop.f32.mrf.mxu2 }
 0x2dc   : > { %v4380_v63 = vadd.f32 %v4332_v3, %v2232_v15  ;;  %v1262_v48 = vpop.permute.xlu2 %1261 }
 0x2dd   : > { %1330 = vst.msk [vmem:[#allocation3 + $0x1c0] sm:$0xff] %vm1301_vm5, %v1262_v48 }
 0x2de   : > { %v1453_v36 = vpop.permute.xlu1 %1452  ;;  %2403 = vst.msk [vmem:[%s4228_s22 + $0x98] sm:$0xff] %vm403_vm0, %v4380_v63 }
 0x2df   : > { %1522 = vst.msk [vmem:[#allocation3 + $0x1b0] sm:$0xff] %vm1494_vm6, %v1453_v36  ;;  %v1649_v45 = vpop.permute.xlu0 %1648 }
 0x2e0   : > { %1718 = vst.msk [vmem:[#allocation3 + $0x1b0] sm:$0xff] %vm1690_vm7, %v1649_v45  ;;  %v2008_v1 = vld [vmem:[#allocation3 + $0xe0] sm:$0xff] }
 0x2e1   : > { %2216 = vmatmul.f32.gmra.mxu0 %v2008_v1 }
 0x2e3   : > { %v4388_v16 = vpop.f32.mrf.mxu3 }
 0x2e4   : > { %v2196_v14 = vpop.f32.mrf.mxu0  ;;  %v1844_v11 = vpop.permute.xlu2 %1843 }
 0x2e5   : > { %v2310_v0 = vadd.f32 %v4134_v27, %v2196_v14 }
 0x2e6   : > { %v1842_v3 = vpop.permute.xlu1 %1841 }
 0x2e7   : > { %2391 = vst.msk [vmem:[%s4228_s22 + $0x38] sm:$0xff] %vm403_vm0, %v2310_v0  ;;  %v2429_v10 = vsel %vm403_vm0, %v2310_v0, 0.0  ;;  %v2494_v26 = vmul.f32 %v2310_v0, %v2310_v0  ;;  %v1455_v17 = vpop.permute.xlu0 %1454 }
 0x2e8   : > { %v2430_v18 = vadd.f32 %v2429_v10, %v2428_v21  ;;  %1911 = vst.msk [vmem:[#allocation3 + $0x1b0] sm:$0xff] %vm1883_vm8, %v1842_v3 }
 0x2e9   : > { %v2532_v30 = vsel %vm403_vm0, %v2494_v26, 0.0  ;;  %1523 = vst.msk [vmem:[#allocation3 + $0x1c0] sm:$0xff] %vm1494_vm6, %v1455_v17 }
 0x2ea   : > { %v2533_v31 = vadd.f32 %v2532_v30, %v2531_v57 }
 0x2eb   : > { %v4397_v2 = vpop.f32.mrf.mxu3  ;;  %v2235_v27 = vpop.f32.mrf.mxu2 }
 0x2ec   : > { %v4400_v23 = vadd.f32 %v4346_v5, %v2235_v27  ;;  %v1653_v50 = vpop.permute.xlu2 %1652 }
 0x2ee   : > { %v1651_v37 = vpop.permute.xlu1 %1650  ;;  %2404 = vst.msk [vmem:[%s4228_s22 + $0xa0] sm:$0xff] %vm403_vm0, %v4400_v23 }
 0x2ef   : > { %1719 = vst.msk [vmem:[#allocation3 + $0x1c0] sm:$0xff] %vm1690_vm7, %v1651_v37  ;;  %v2199_v44 = vpop.f32.mrf.mxu0  ;;  %v2034_v39 = vld [vmem:[#allocation3 + $0x1b0] sm:$0xff]  ;;  %v1264_v6 = vpop.permute.xlu0 %1263 }
 0x2f0   : > { %v2313_v4 = vadd.f32 %v4150_v49, %v2199_v44  ;;  %1912 = vst.msk [vmem:[#allocation3 + $0x1c0] sm:$0xff] %vm1883_vm8, %v1844_v11  ;;  %2255 = vmatmul.f32.gmra.mxu2 %v2034_v39 }
 0x2f1   : > { %1331 = vst.msk [vmem:[#allocation3 + $0x1d0] sm:$0xff] %vm1301_vm5, %v1264_v6 }
 0x2f2   : > { %2392 = vst.msk [vmem:[%s4228_s22 + $0x40] sm:$0xff] %vm403_vm0, %v2313_v4  ;;  %v2431_v5 = vsel %vm403_vm0, %v2313_v4, 0.0  ;;  %v2495_v47 = vmul.f32 %v2313_v4, %v2313_v4 }
 0x2f3   : > { %v2432_v19 = vadd.f32 %v2431_v5, %v2430_v18  ;;  %v4412_v20 = vpop.f32.mrf.mxu3 }
 0x2f4   : > { %v2534_v59 = vsel %vm403_vm0, %v2495_v47, 0.0  ;;  %v1459_v54 = vpop.permute.xlu2 %1458 }
 0x2f5   : > { %v2535_v55 = vadd.f32 %v2534_v59, %v2533_v31 }
 0x2f6   : > { %v1457_v42 = vpop.permute.xlu1 %1456 }
 0x2f7   : > { %1524 = vst.msk [vmem:[#allocation3 + $0x1d0] sm:$0xff] %vm1494_vm6, %v1457_v42  ;;  %v1846_v49 = vpop.permute.xlu0 %1845  ;;  %v2036_v22 = vld [vmem:[#allocation3 + $0x1c0] sm:$0xff] }
 0x2f8   : > { %1720 = vst.msk [vmem:[#allocation3 + $0x1d0] sm:$0xff] %vm1690_vm7, %v1653_v50  ;;  %2258 = vmatmul.f32.gmra.mxu2 %v2036_v22 }
 0x2f9   : > { %1913 = vst.msk [vmem:[#allocation3 + $0x1d0] sm:$0xff] %vm1883_vm8, %v1846_v49 }
 0x2fb   : > { %v4418_v35 = vpop.f32.mrf.mxu3 }
 0x2fe   : > { %v1266_v40 = vpop.permute.xlu1 %1265 }
 0x2ff   : > { %1332 = vst.msk [vmem:[#allocation3 + $0x1e0] sm:$0xff] %vm1301_vm5, %v1266_v40  ;;  %v1655_v29 = vpop.permute.xlu0 %1654 }
 0x300   : > { %v2038_v56 = vld [vmem:[#allocation3 + $0x1d0] sm:$0xff]  ;;  %1525 = vst.msk [vmem:[#allocation3 + $0x1e0] sm:$0xff] %vm1494_vm6, %v1459_v54 }
 0x301   : > { %2261 = vmatmul.f32.gmra.mxu2 %v2038_v56  ;;  %1721 = vst.msk [vmem:[#allocation3 + $0x1e0] sm:$0xff] %vm1690_vm7, %v1655_v29 }
 0x302   : > { %v2238_v7 = vpop.f32.mrf.mxu2 }
 0x303   : > { %v4424_v21 = vadd.f32 %v4352_v52, %v2238_v7  ;;  %v4426_v58 = vpop.f32.mrf.mxu3  ;;  %v2502_v7 = vmul.f32 %v4281_v46, %v4281_v46 }
 0x305   : > { %2405 = vst.msk [vmem:[%s4228_s22 + $0xa8] sm:$0xff] %vm403_vm0, %v4424_v21 }
 0x306   : > { %v2202_v57 = vpop.f32.mrf.mxu0  ;;  %v1848_v43 = vpop.permute.xlu1 %1847 }
 0x307   : > { %v2316_v13 = vadd.f32 %v4166_v12, %v2202_v57  ;;  %1914 = vst.msk [vmem:[#allocation3 + $0x1e0] sm:$0xff] %vm1883_vm8, %v1848_v43 }
 0x309   : > { %2393 = vst.msk [vmem:[%s4228_s22 + $0x48] sm:$0xff] %vm403_vm0, %v2316_v13  ;;  %v2433_v51 = vsel %vm403_vm0, %v2316_v13, 0.0  ;;  %v2496_v52 = vmul.f32 %v2316_v13, %v2316_v13 }
 0x30a   : > { %v2434_v8 = vadd.f32 %v2433_v51, %v2432_v19  ;;  %v2445_v51 = vsel %vm403_vm0, %v4281_v46, 0.0  ;;  %v2449_v46 = vsel %vm403_vm0, %v4334_v53, 0.0 }
 0x30b   : > { %v2536_v25 = vsel %vm403_vm0, %v2496_v52, 0.0  ;;  %v4437_v15 = vpop.f32.mrf.mxu3 }
 0x30c   : > { %v2537_v48 = vadd.f32 %v2536_v25, %v2535_v55 }
 0x30e   : > { %v2040_v36 = vld [vmem:[#allocation3 + $0x1e0] sm:$0xff] }
 0x30f   : > { %2264 = vmatmul.f32.gmra.mxu2 %v2040_v36  ;;  %v2447_v36 = vsel %vm403_vm0, %v4311_v38, 0.0 }
 0x313   : > { %v2381_v45 = vpop.f32.mrf.mxu3  ;;  %v2241_v1 = vpop.f32.mrf.mxu2 }
 0x314   : > { %v4440_v12 = vadd.f32 %v2381_v45, %v4319_v24  ;;  %v4443_v14 = vadd.f32 %v4359_v60, %v2241_v1  ;;  %v2504_v45 = vmul.f32 %v4334_v53, %v4334_v53  ;;  %v2453_v53 = vsel %vm403_vm0, %v4380_v63, 0.0 }
 0x316   : > { %2415 = vst.msk [vmem:[%s4228_s22 + $0xf8] sm:$0xff] %vm403_vm0, %v4440_v12 }
 0x317   : > { %2406 = vst.msk [vmem:[%s4228_s22 + $0xb0] sm:$0xff] %vm403_vm0, %v4443_v14 }
 0x31c   : > { %v2205_v0 = vpop.f32.mrf.mxu0 }
 0x31d   : > { %v2319_v3 = vadd.f32 %v4181_v62, %v2205_v0 }
 0x31f   : > { %2394 = vst.msk [vmem:[%s4228_s22 + $0x50] sm:$0xff] %vm403_vm0, %v2319_v3  ;;  %v2435_v10 = vsel %vm403_vm0, %v2319_v3, 0.0  ;;  %v2497_v26 = vmul.f32 %v2319_v3, %v2319_v3 }
 0x320   : > { %v2436_v24 = vadd.f32 %v2435_v10, %v2434_v8  ;;  %v2505_v10 = vmul.f32 %v4357_v32, %v4357_v32 }
 0x321   : > { %v2538_v17 = vsel %vm403_vm0, %v2497_v26, 0.0 }
 0x322   : > { %v2539_v60 = vadd.f32 %v2538_v17, %v2537_v48  ;;  %v2548_v48 = vsel %vm403_vm0, %v2502_v7, 0.0  ;;  %v2552_v17 = vsel %vm403_vm0, %v2504_v45, 0.0 }
 0x323   : > { %v2244_v18 = vpop.f32.mrf.mxu2 }
 0x324   : > { %v4457_v30 = vadd.f32 %v4372_v33, %v2244_v18 }
 0x326   : > { %v2208_v31 = vpop.f32.mrf.mxu0  ;;  %2407 = vst.msk [vmem:[%s4228_s22 + $0xb8] sm:$0xff] %vm403_vm0, %v4457_v30 }
 0x327   : > { %v2322_v62 = vadd.f32 %v4204_v34, %v2208_v31 }
 0x329   : > { %2395 = vst.msk [vmem:[%s4228_s22 + $0x58] sm:$0xff] %vm403_vm0, %v2322_v62  ;;  %v2437_v11 = vsel %vm403_vm0, %v2322_v62, 0.0  ;;  %v2498_v27 = vmul.f32 %v2322_v62, %v2322_v62  ;;  %v2554_v62 = vsel %vm403_vm0, %v2505_v10, 0.0 }
 0x32a   : > { %v2438_v37 = vadd.f32 %v2437_v11, %v2436_v24  ;;  %v2507_v11 = vmul.f32 %v4400_v23, %v4400_v23 }
 0x32b   : > { %v2540_v44 = vsel %vm403_vm0, %v2498_v27, 0.0 }
 0x32c   : > { %v2541_v39 = vadd.f32 %v2540_v44, %v2539_v60  ;;  %v2506_v60 = vmul.f32 %v4380_v63, %v4380_v63  ;;  %v2457_v63 = vsel %vm403_vm0, %v4424_v21, 0.0 }
 0x32e   : > { %v2556_v44 = vsel %vm403_vm0, %v2506_v60, 0.0 }
 0x33b   : > { %v2247_v6 = vpop.f32.mrf.mxu2 }
 0x33c   : > { %v4468_v33 = vadd.f32 %v4377_v41, %v2247_v6 }
 0x33d   : > { %v2211_v4 = vpop.f32.mrf.mxu0 }
 0x33e   : > { %2408 = vst.msk [vmem:[%s4228_s22 + $0xc0] sm:$0xff] %vm403_vm0, %v4468_v33  ;;  %v2325_v34 = vadd.f32 %v4218_v9, %v2211_v4 }
 0x340   : > { %2396 = vst.msk [vmem:[%s4228_s22 + $0x60] sm:$0xff] %vm403_vm0, %v2325_v34  ;;  %v2499_v59 = vmul.f32 %v2325_v34, %v2325_v34  ;;  %v2439_v55 = vsel %vm403_vm0, %v2325_v34, 0.0  ;;  %v2558_v34 = vsel %vm403_vm0, %v2507_v11, 0.0 }
 0x341   : > { %v2440_v22 = vadd.f32 %v2439_v55, %v2438_v37  ;;  %v2510_v55 = vmul.f32 %v4457_v30, %v4457_v30 }
 0x342   : > { %v2542_v42 = vsel %vm403_vm0, %v2499_v59, 0.0 }
 0x343   : > { %v2543_v29 = vadd.f32 %v2542_v42, %v2541_v39  ;;  %v2508_v39 = vmul.f32 %v4424_v21, %v4424_v21  ;;  %v2461_v21 = vsel %vm403_vm0, %v4457_v30, 0.0 }
 0x345   : > { %v2560_v59 = vsel %vm403_vm0, %v2508_v39, 0.0 }
 0x34b   : > { %v2250_v5 = vpop.f32.mrf.mxu2 }
 0x34c   : > { %v4477_v47 = vadd.f32 %v4388_v16, %v2250_v5  ;;  %v2509_v5 = vmul.f32 %v4443_v14, %v4443_v14 }
 0x34e   : > { %2409 = vst.msk [vmem:[%s4228_s22 + $0xc8] sm:$0xff] %vm403_vm0, %v4477_v47  ;;  %v2562_v42 = vsel %vm403_vm0, %v2509_v5, 0.0 }
 0x354   : > { %v2214_v19 = vpop.f32.mrf.mxu0 }
 0x355   : > { %v2328_v41 = vadd.f32 %v4243_v28, %v2214_v19 }
 0x357   : > { %2397 = vst.msk [vmem:[%s4228_s22 + $0x68] sm:$0xff] %vm403_vm0, %v2328_v41  ;;  %v2500_v9 = vmul.f32 %v2328_v41, %v2328_v41  ;;  %v2441_v16 = vsel %vm403_vm0, %v2328_v41, 0.0 }
 0x358   : > { %v2442_v56 = vadd.f32 %v2441_v16, %v2440_v22  ;;  %v2511_v16 = vmul.f32 %v4468_v33, %v4468_v33 }
 0x359   : > { %v2544_v40 = vsel %vm403_vm0, %v2500_v9, 0.0 }
 0x35a   : > { %v2545_v43 = vadd.f32 %v2544_v40, %v2543_v29  ;;  %v2463_v29 = vsel %vm403_vm0, %v4468_v33, 0.0  ;;  %v2566_v30 = vsel %vm403_vm0, %v2511_v16, 0.0  ;;  %v2465_v33 = vsel %vm403_vm0, %v4477_v47, 0.0 }
 0x35c   : > { %v2253_v50 = vpop.f32.mrf.mxu2 }
 0x35d   : > { %v4489_v49 = vadd.f32 %v4397_v2, %v2253_v50 }
 0x35e   : > { %v2217_v54 = vpop.f32.mrf.mxu0 }
 0x35f   : > { %v2331_v28 = vadd.f32 %v4261_v61, %v2217_v54  ;;  %2410 = vst.msk [vmem:[%s4228_s22 + $0xd0] sm:$0xff] %vm403_vm0, %v4489_v49  ;;  %v2503_v61 = vmul.f32 %v4311_v38, %v4311_v38  ;;  %v2451_v38 = vsel %vm403_vm0, %v4357_v32, 0.0  ;;  %v2455_v32 = vsel %vm403_vm0, %v4400_v23, 0.0 }
 0x360   : > { %v2459_v23 = vsel %vm403_vm0, %v4443_v14, 0.0  ;;  %v2564_v14 = vsel %vm403_vm0, %v2510_v55, 0.0 }
 0x361   : > { %2398 = vst.msk [vmem:[%s4228_s22 + $0x70] sm:$0xff] %vm403_vm0, %v2331_v28  ;;  %v2443_v57 = vsel %vm403_vm0, %v2331_v28, 0.0  ;;  %v2501_v2 = vmul.f32 %v2331_v28, %v2331_v28  ;;  %v2550_v3 = vsel %vm403_vm0, %v2503_v61, 0.0 }
 0x362   : > { %v2444_v13 = vadd.f32 %v2443_v57, %v2442_v56 }
 0x363   : > { %v2546_v52 = vsel %vm403_vm0, %v2501_v2, 0.0 }
 0x364   : > { %v2446_v8 = vadd.f32 %v2445_v51, %v2444_v13  ;;  %v2547_v25 = vadd.f32 %v2546_v52, %v2545_v43 }
 0x366   : > { %v2448_v1 = vadd.f32 %v2447_v36, %v2446_v8  ;;  %v2549_v0 = vadd.f32 %v2548_v48, %v2547_v25  ;;  %v2513_v8 = vmul.f32 %v4489_v49, %v4489_v49  ;;  %v2467_v25 = vsel %vm403_vm0, %v4489_v49, 0.0 }
 0x368   : > { %v2450_v26 = vadd.f32 %v2449_v46, %v2448_v1  ;;  %v2551_v24 = vadd.f32 %v2550_v3, %v2549_v0  ;;  %v2570_v36 = vsel %vm403_vm0, %v2513_v8, 0.0 }
 0x36a   : > { %v2452_v18 = vadd.f32 %v2451_v38, %v2450_v26  ;;  %v2553_v31 = vadd.f32 %v2552_v17, %v2551_v24 }
 0x36c   : > { %v2454_v27 = vadd.f32 %v2453_v53, %v2452_v18  ;;  %v2555_v37 = vadd.f32 %v2554_v62, %v2553_v31  ;;  %v2518_v53 = vmul.f32 %v4440_v12, %v4440_v12 }
 0x36e   : > { %v2557_v6 = vadd.f32 %v2556_v44, %v2555_v37  ;;  %v2456_v4 = vadd.f32 %v2455_v32, %v2454_v27  ;;  %v2477_v32 = vsel %vm403_vm0, %v4440_v12, 0.0 }
 0x370   : > { %v2458_v19 = vadd.f32 %v2457_v63, %v2456_v4  ;;  %v2559_v41 = vadd.f32 %v2558_v34, %v2557_v6  ;;  %v2580_v4 = vsel %vm403_vm0, %v2518_v53, 0.0 }
 0x372   : > { %v2460_v9 = vadd.f32 %v2459_v23, %v2458_v19  ;;  %v2561_v50 = vadd.f32 %v2560_v59, %v2559_v41 }
 0x373   : > { %v2256_v22 = vpop.f32.mrf.mxu2 }
 0x374   : > { %v2462_v54 = vadd.f32 %v2461_v21, %v2460_v9  ;;  %v2563_v40 = vadd.f32 %v2562_v42, %v2561_v50  ;;  %v2370_v28 = vadd.f32 %v4412_v20, %v2256_v22  ;;  %v2512_v20 = vmul.f32 %v4477_v47, %v4477_v47 }
 0x376   : > { %v2464_v56 = vadd.f32 %v2463_v29, %v2462_v54  ;;  %v2565_v7 = vadd.f32 %v2564_v14, %v2563_v40  ;;  %2411 = vst.msk [vmem:[%s4228_s22 + $0xd8] sm:$0xff] %vm403_vm0, %v2370_v28  ;;  %v2568_v52 = vsel %vm403_vm0, %v2512_v20, 0.0  ;;  %v2514_v45 = vmul.f32 %v2370_v28, %v2370_v28 }
 0x377   : > { %v2469_v47 = vsel %vm403_vm0, %v2370_v28, 0.0 }
 0x378   : > { %v2567_v57 = vadd.f32 %v2566_v30, %v2565_v7  ;;  %v2466_v61 = vadd.f32 %v2465_v33, %v2464_v56  ;;  %v2572_v3 = vsel %vm403_vm0, %v2514_v45, 0.0 }
 0x37a   : > { %v2468_v48 = vadd.f32 %v2467_v25, %v2466_v61 }
 0x37b   : > { %v2259_v2 = vpop.f32.mrf.mxu2 }
 0x37c   : > { %v2373_v43 = vadd.f32 %v4418_v35, %v2259_v2  ;;  %v2569_v35 = vadd.f32 %v2568_v52, %v2567_v57  ;;  %v2470_v0 = vadd.f32 %v2469_v47, %v2468_v48 }
 0x37e   : > { %2412 = vst.msk [vmem:[%s4228_s22 + $0xe0] sm:$0xff] %vm403_vm0, %v2373_v43  ;;  %v2571_v1 = vadd.f32 %v2570_v36, %v2569_v35  ;;  %v2471_v46 = vsel %vm403_vm0, %v2373_v43, 0.0 }
 0x37f   : > { %v2472_v17 = vadd.f32 %v2471_v46, %v2470_v0 }
 0x380   : > { %v2573_v26 = vadd.f32 %v2572_v3, %v2571_v1 }
 0x384   : > { %v2262_v13 = vpop.f32.mrf.mxu2 }
 0x385   : > { %v2376_v51 = vadd.f32 %v4426_v58, %v2262_v13  ;;  %v2515_v58 = vmul.f32 %v2373_v43, %v2373_v43 }
 0x387   : > { %2413 = vst.msk [vmem:[%s4228_s22 + $0xe8] sm:$0xff] %vm403_vm0, %v2376_v51  ;;  %v2516_v10 = vmul.f32 %v2376_v51, %v2376_v51  ;;  %v2574_v24 = vsel %vm403_vm0, %v2515_v58, 0.0  ;;  %v2473_v49 = vsel %vm403_vm0, %v2376_v51, 0.0 }
 0x388   : > { %v2575_v31 = vadd.f32 %v2574_v24, %v2573_v26  ;;  %v2474_v62 = vadd.f32 %v2473_v49, %v2472_v17 }
 0x389   : > { %v2576_v60 = vsel %vm403_vm0, %v2516_v10, 0.0 }
 0x38a   : > { %v2577_v37 = vadd.f32 %v2576_v60, %v2575_v31 }
 0x392   : > { %v2265_v38 = vpop.f32.mrf.mxu2 }
 0x393   : > { %v2379_v18 = vadd.f32 %v4437_v15, %v2265_v38 }
 0x395   : > { %2414 = vst.msk [vmem:[%s4228_s22 + $0xf0] sm:$0xff] %vm403_vm0, %v2379_v18  ;;  %v2475_v11 = vsel %vm403_vm0, %v2379_v18, 0.0  ;;  %v2517_v27 = vmul.f32 %v2379_v18, %v2379_v18 }
 0x396   : > { %v2476_v44 = vadd.f32 %v2475_v11, %v2474_v62 }
 0x397   : > { %v2578_v39 = vsel %vm403_vm0, %v2517_v27, 0.0 }
 0x398   : > { %v2478_v6 = vadd.f32 %v2477_v32, %v2476_v44  ;;  %v2579_v15 = vadd.f32 %v2578_v39, %v2577_v37 }
 0x39a   : > { %v2479_v34 = vrot.slane %v2478_v6, 4  ;;  %v2581_v63 = vadd.f32 %v2580_v4, %v2579_v15 }
 0x39c   : > { %v2480_v5 = vadd.f32 %v2479_v34, %v2478_v6  ;;  %v2582_v19 = vrot.slane %v2581_v63, 4 }
 0x39e   : > { %v2481_v41 = vrot.slane %v2480_v5, 2  ;;  %v2583_v59 = vadd.f32 %v2582_v19, %v2581_v63 }
 0x3a0   : > { %v2482_v23 = vadd.f32 %v2481_v41, %v2480_v5  ;;  %v2584_v55 = vrot.slane %v2583_v59, 2 }
 0x3a2   : > { %v2483_v9 = vrot.slane %v2482_v23, 1  ;;  %v2585_v50 = vadd.f32 %v2584_v55, %v2583_v59 }
 0x3a4   : > { %v2484_v12 = vadd.f32 %v2483_v9, %v2482_v23  ;;  %v2586_v42 = vrot.slane %v2585_v50, 1 }
 0x3a6   : > { %2486 = vst.msk [vmem:[%s266_s10] sm:$0x1] %vm2485_vm9, %v2484_v12  ;;  %v2587_v21 = vadd.f32 %v2586_v42, %v2585_v50 }
 0x3a8   : > { %2588 = vst.msk [vmem:[%s266_s10 + $0x1] sm:$0x1] %vm2485_vm9, %v2587_v21 }
 0x3a9 PF: > { %s16_s20 = sadd.s32 1, %s3049_s20   ;;  %s4604_s18 = smov %s3045_s19 }
 0x3aa   : > { %p13_p5 = scmp.ge.s32.totalorder %s16_s20, 4   ;;  %s4605_s19 = smov %s4607_s21 }
 0x3ac   :  { %15 = sbr.rel (!%p13_p5) target bundleno = 2 (0x2), region = 82 }

</bundles_post_ra>
